<compile_context>
chip_gen: v7x
topology: tpu7x:2x2x1
jax: 0.10.0
libtpu: 0.0.40
codegen_flags: <defaults>
</compile_context>

<pallas_src>
from functools import partial

import jax
import jax.numpy as jnp
import numpy as np
from jax.experimental import pallas as pl
from jax.experimental.pallas import tpu as pltpu


def _round_up(x, m):
    return ((x + m - 1) // m) * m


def _cdiv(a, b):
    return (a + b - 1) // b


def _decoder_kernel(xh_ref, cprev_ref, encd_ref, enca_ref,
                    wh_ref, wed_ref, wea_ref, wec_ref,
                    vd_ref, va_ref, vc_ref, vb_ref,
                    wxh_ref, wctx_ref, blstm_ref, wcls_ref, bcls_ref,
                    logp_ref, h_ref, c_ref, attn_ref,
                    *, s_real, s_chunk):
    f32 = jnp.float32
    bf16 = jnp.bfloat16
    BM, Hp = cprev_ref.shape
    Sp = encd_ref.shape[1]
    n_sc = Sp // s_chunk

    xh = xh_ref[...]                  # (BM, 2*Hp) bf16 = [embedded | h_prev]
    hwt = xh[:, Hp:]                  # (BM, Hp)   previous hidden state (lane-aligned slice)
    c_prev = cprev_ref[...]           # (BM, Hp)   f32 previous cell state

    # q = fc_hidden(hidden_with_time_axis): (BM,Hp)@(Hp,Hp) on the MXU, f32 accumulate.
    q = jnp.dot(hwt, wh_ref[...], preferred_element_type=f32)

    # Mask for padded sequence positions (S padded up to Sp in the wrapper).
    lane = jax.lax.broadcasted_iota(jnp.int32, (1, Sp), 1)
    smask = jnp.where(lane < s_real, 0.0, -1e30).astype(f32)

    def seq_attention(enc_ref, w_enc, v_row, v_bias):
        # Scores in S-chunks so only one (BM, SC, Hp) f32 slab is live at a time.
        score_chunks = []
        for ci in range(n_sc):
            enc_c = enc_ref[:, ci * s_chunk:(ci + 1) * s_chunk, :]        # (BM,SC,Hp) bf16
            proj = jnp.dot(enc_c.reshape(BM * s_chunk, Hp), w_enc,
                           preferred_element_type=f32).reshape(BM, s_chunk, Hp)
            x = jnp.tanh(q[:, None, :] + proj)                            # (BM,SC,Hp) f32
            score_chunks.append(jnp.sum(x * v_row, axis=-1))              # (BM,SC) lane-reduce
        s = score_chunks[0] if n_sc == 1 else jnp.concatenate(score_chunks, axis=-1)
        s = s + v_bias + smask                                            # (BM, Sp)
        s = s - jnp.max(s, axis=-1, keepdims=True)
        e = jnp.exp(s)
        a = e * pl.reciprocal(jnp.sum(e, axis=-1, keepdims=True), approx=True)
        # Context vector: VPU multiply + sublane reduce (keeps the MXU free), chunked.
        ctx = jnp.zeros((BM, Hp), f32)
        for ci in range(n_sc):
            enc_c = enc_ref[:, ci * s_chunk:(ci + 1) * s_chunk, :].astype(f32)
            a_c = a[:, ci * s_chunk:(ci + 1) * s_chunk]
            ctx = ctx + jnp.sum(a_c[:, :, None] * enc_c, axis=1)
        return a, ctx

    a_d, ctx_d = seq_attention(encd_ref, wed_ref[...],
                               vd_ref[...].reshape(1, 1, Hp), vb_ref[0])
    a_a, ctx_a = seq_attention(enca_ref, wea_ref[...],
                               va_ref[...].reshape(1, 1, Hp), vb_ref[1])

    # Common attention over the 2-row context stack (unrolled; no in-kernel stack/concat).
    wec = wec_ref[...]
    vc = vc_ref[...]                                                      # (1, Hp) f32
    xc0 = jnp.tanh(q + jnp.dot(ctx_d.astype(bf16), wec, preferred_element_type=f32))
    xc1 = jnp.tanh(q + jnp.dot(ctx_a.astype(bf16), wec, preferred_element_type=f32))
    s0 = jnp.sum(xc0 * vc, axis=-1, keepdims=True) + vb_ref[2]            # (BM, 1)
    s1 = jnp.sum(xc1 * vc, axis=-1, keepdims=True) + vb_ref[2]
    m = jnp.maximum(s0, s1)
    e0 = jnp.exp(s0 - m)
    e1 = jnp.exp(s1 - m)
    zinv = pl.reciprocal(e0 + e1, approx=True)
    a0 = e0 * zinv
    a1 = e1 * zinv
    ctx = a0 * ctx_d + a1 * ctx_a                                         # (BM, Hp) f32

    # Single-step LSTM (PyTorch gate order i,f,g,o).  The [emb|h] matmul is fused into
    # one K=2*Hp MXU pass; biases were pre-folded; gate blocks are Hp-wide (lane aligned).
    gates = (jnp.dot(xh, wxh_ref[...], preferred_element_type=f32)
             + jnp.dot(ctx.astype(bf16), wctx_ref[...], preferred_element_type=f32)
             + blstm_ref[...])                                            # (BM, 4*Hp) f32
    i_g = jax.nn.sigmoid(gates[:, 0:Hp])
    f_g = jax.nn.sigmoid(gates[:, Hp:2 * Hp])
    g_g = jnp.tanh(gates[:, 2 * Hp:3 * Hp])
    o_g = jax.nn.sigmoid(gates[:, 3 * Hp:4 * Hp])
    c_new = f_g * c_prev + i_g * g_g
    h_new = o_g * jnp.tanh(c_new)

    # Classifier + log_softmax (lane-dense over padded V; padded logits are -1e30).
    logits = (jnp.dot(h_new.astype(bf16), wcls_ref[...], preferred_element_type=f32)
              + bcls_ref[...])                                            # (BM, Vp)
    lmax = jnp.max(logits, axis=-1, keepdims=True)
    shifted = logits - lmax
    logp = shifted - jnp.log(jnp.sum(jnp.exp(shifted), axis=-1, keepdims=True))

    logp_ref[...] = logp
    h_ref[...] = h_new
    c_ref[...] = c_new
    # Single lane-dense store for all attention weights: [a_common(2) | a_del | a_add].
    attn_ref[...] = jnp.concatenate([a0, a1, a_d, a_a], axis=-1)


def bahdanau_decoder_forward(tokens, hidden, enc_out_del, enc_out_add, params):
    h0, c0 = hidden
    # PyTorch does encoder_outputs.squeeze(); for the supported (B>1,S>1,H>1) layout that
    # is a no-op, and an unconditional squeeze would drop the batch dim at B==1, so we
    # require the explicit (B, S, H) layout.
    assert enc_out_del.ndim == 3 and enc_out_add.ndim == 3

    B = tokens.shape[0]
    H = params['embedding'].shape[1]
    S = enc_out_del.shape[1]
    V = params['classifier_w'].shape[0]
    f32, bf16 = jnp.float32, jnp.bfloat16

    # ---- padded / tiled geometry -------------------------------------------------
    Hp = _round_up(H, 128)                    # lane-aligned hidden size
    Vp = _round_up(V, 128)                    # lane-dense log-prob width
    # Batch tile: force >= 2 (and even) grid steps so double-buffering overlaps DMA with
    # compute and v7x's two TensorCores both get work on the "parallel" axis.
    BM = min(256, max(8, _round_up(_cdiv(B, 4), 8)))
    nb = max(2, _cdiv(B, BM))
    if nb % 2:
        nb += 1
    B_pad = nb * BM
    # S chunk: bound the in-kernel f32 (BM, SC, Hp) tanh/proj slab to ~8 MiB (<=8 chunks).
    n_sc = max(1, min(8, _cdiv(BM * _round_up(S, 8) * Hp * 4, 8 * 1024 * 1024)))
    SC = _round_up(_cdiv(S, n_sc), 8)
    Sp = SC * _cdiv(S, SC)

    def pad_to(x, shape, value=0.0):
        pads = [(0, t - s) for s, t in zip(x.shape, shape)]
        return jnp.pad(x, pads, constant_values=value)

    # ---- batch-major activations ---------------------------------------------------
    # TODO(synk): nn.Dropout on the embedded token is treated as eval-mode identity.
    emb = pad_to(params['embedding'][tokens], (B_pad, Hp)).astype(bf16)    # (B_pad, Hp)
    hwt = pad_to(h0[0], (B_pad, Hp)).astype(bf16)                          # hidden[0] -> (B, H)
    xh = jnp.concatenate([emb, hwt], axis=1)                               # (B_pad, 2*Hp)
    cprev = pad_to(c0[0], (B_pad, Hp)).astype(f32)
    encd = pad_to(enc_out_del, (B_pad, Sp, Hp)).astype(bf16)
    enca = pad_to(enc_out_add, (B_pad, Sp, Hp)).astype(bf16)

    # ---- weights: pre-transposed to x @ W form, zero-padded, bf16 MXU operands -----
    def proj_w(w):                                  # torch Linear (out,in) -> (in,out), padded
        return pad_to(w.T, (Hp, Hp)).astype(bf16)

    wh_t = proj_w(params['fc_hidden_w'])
    wed_t = proj_w(params['fc_enc_del_w'])
    wea_t = proj_w(params['fc_enc_add_w'])
    wec_t = proj_w(params['fc_enc_common_w'])
    vd = pad_to(params['v_del_w'], (1, Hp)).astype(f32)
    va = pad_to(params['v_add_w'], (1, Hp)).astype(f32)
    vc = pad_to(params['v_common_w'], (1, Hp)).astype(f32)
    vbias = jnp.stack([params['v_del_b'][0], params['v_add_b'][0],
                       params['v_common_b'][0]]).astype(f32)               # (3,) -> SMEM

    # LSTM: fuse the [embedded | h_prev] matmuls into one K=2*Hp pass; per-gate blocks are
    # padded to Hp so the in-kernel gate slices stay lane-aligned; biases pre-folded.
    wih, whh = params['lstm_w_ih'], params['lstm_w_hh']
    g_emb = [pad_to(wih[g * H:(g + 1) * H, :H].T, (Hp, Hp)) for g in range(4)]
    g_ctx = [pad_to(wih[g * H:(g + 1) * H, H:].T, (Hp, Hp)) for g in range(4)]
    g_hh = [pad_to(whh[g * H:(g + 1) * H, :].T, (Hp, Hp)) for g in range(4)]
    w_xh = jnp.concatenate([jnp.concatenate(g_emb, axis=1),
                            jnp.concatenate(g_hh, axis=1)], axis=0).astype(bf16)  # (2Hp,4Hp)
    w_ctx = jnp.concatenate(g_ctx, axis=1).astype(bf16)                            # (Hp,4Hp)
    b_fold = params['lstm_b_ih'] + params['lstm_b_hh']
    b_lstm = jnp.concatenate(
        [pad_to(b_fold[g * H:(g + 1) * H], (Hp,)) for g in range(4)]
    ).reshape(1, 4 * Hp).astype(f32)

    wcls_t = pad_to(params['classifier_w'].T, (Hp, Vp)).astype(bf16)
    bcls = pad_to(params['classifier_b'], (Vp,), value=-1e30).reshape(1, Vp).astype(f32)

    kernel = partial(_decoder_kernel, s_real=S, s_chunk=SC)

    args = (xh, cprev, encd, enca, wh_t, wed_t, wea_t, wec_t, vd, va, vc, vbias,
            w_xh, w_ctx, b_lstm, wcls_t, bcls)

    out_shape = (
        jax.ShapeDtypeStruct((B_pad, Vp), f32),             # log-probs
        jax.ShapeDtypeStruct((B_pad, Hp), f32),             # h
        jax.ShapeDtypeStruct((B_pad, Hp), f32),             # c
        jax.ShapeDtypeStruct((B_pad, 2 + 2 * Sp), f32),     # [a_common | a_del | a_add]
    )
    out_specs = [
        pl.BlockSpec((BM, Vp), lambda b: (b, 0)),
        pl.BlockSpec((BM, Hp), lambda b: (b, 0)),
        pl.BlockSpec((BM, Hp), lambda b: (b, 0)),
        pl.BlockSpec((BM, 2 + 2 * Sp), lambda b: (b, 0)),
    ]

    def bspec(arr):
        nd = arr.ndim
        return pl.BlockSpec((BM,) + arr.shape[1:],
                            lambda b, _nd=nd: (b,) + (0,) * (_nd - 1))

    def wspec(arr, single_buffer):
        nd = arr.ndim
        idx = lambda b, _nd=nd: (0,) * _nd
        if single_buffer:
            # Constant-index weights: no need to double-buffer them in VMEM.
            return pl.BlockSpec(arr.shape, idx, pipeline_mode=pl.Buffered(1))
        return pl.BlockSpec(arr.shape, idx)

    # Scoped-VMEM budget derived from the actual block sizes (defaults are 16/32 MiB).
    def nbytes(a):
        return int(np.prod(a.shape)) * a.dtype.itemsize

    batch_arrays = (xh, cprev, encd, enca)
    weight_arrays = (wh_t, wed_t, wea_t, wec_t, vd, va, vc,
                     w_xh, w_ctx, b_lstm, wcls_t, bcls)
    est = (2 * sum(nbytes(a) // nb for a in batch_arrays)                       # inputs x2 buf
           + sum(nbytes(w) for w in weight_arrays)                              # resident weights
           + 2 * sum(int(np.prod(s.shape)) * 4 for s in out_shape) // nb        # outputs
           + 2 * BM * SC * Hp * 4                                               # f32 chunk slabs
           + BM * (8 * Hp + Vp) * 4)                                            # gates/logits/tmp
    vmem_limit = int(min(112 * 2 ** 20, max(32 * 2 ** 20, 2 * est)))

    def build(single_buffer_weights):
        in_specs = ([bspec(a) for a in batch_arrays]
                    + [wspec(w, single_buffer_weights)
                       for w in (wh_t, wed_t, wea_t, wec_t, vd, va, vc)]
                    + [pl.BlockSpec(memory_space=pltpu.MemorySpace.SMEM)]
                    + [wspec(w, single_buffer_weights)
                       for w in (w_xh, w_ctx, b_lstm, wcls_t, bcls)])
        return pl.pallas_call(
            kernel,
            grid=(nb,),
            in_specs=in_specs,
            out_specs=out_specs,
            out_shape=out_shape,
            compiler_params=pltpu.CompilerParams(
                dimension_semantics=("parallel",),
                vmem_limit_bytes=vmem_limit),
        )

    try:
        logp, h_new, c_new, attn = build(True)(*args)
    except Exception:
        # TODO(synk): this jax version rejects pipeline_mode=pl.Buffered(1) on pallas_call
        # BlockSpecs; fall back to default (double-buffered) constant weight blocks.
        logp, h_new, c_new, attn = build(False)(*args)

    output = logp[:B, :V]                                              # (B, output_size)
    hidden_out = (h_new[:B, :H][None].astype(h0.dtype),                # (1, B, H)
                  c_new[:B, :H][None].astype(c0.dtype))                # (1, B, H)
    attn_c = attn[:B, 0:2][:, :, None]                                 # (B, 2, 1)
    attn_d = attn[:B, 2:2 + S][:, :, None]                             # (B, S, 1)
    attn_a = attn[:B, 2 + Sp:2 + Sp + S][:, :, None]                   # (B, S, 1)
    return output, hidden_out, attn_c, attn_d, attn_a


def reference_forward(tokens, hidden, enc_del, enc_add, p):
    """Pure-JAX replica of the PyTorch forward (eval mode) for verification."""
    HI = jax.lax.Precision.HIGHEST
    h0, c0 = hidden
    emb = p['embedding'][tokens][:, None, :]
    hwt = jnp.transpose(h0, (1, 0, 2))
    q = jnp.einsum('bth,oh->bto', hwt, p['fc_hidden_w'], precision=HI)

    def attend(enc, w, vw, vb):
        x = jnp.tanh(q + jnp.einsum('bsh,oh->bso', enc, w, precision=HI))
        s = jnp.einsum('bsh,oh->bso', x, vw, precision=HI) + vb
        a = jax.nn.softmax(s, axis=1)
        ctx = jnp.sum(a * enc, axis=1)
        return a, ctx

    a_d, cd = attend(enc_del, p['fc_enc_del_w'], p['v_del_w'], p['v_del_b'])
    a_a, ca = attend(enc_add, p['fc_enc_add_w'], p['v_add_w'], p['v_add_b'])
    cvc = jnp.concatenate([cd[:, None, :], ca[:, None, :]], axis=1)
    a_c, ctx = attend(cvc, p['fc_enc_common_w'], p['v_common_w'], p['v_common_b'])

    x = jnp.concatenate([emb[:, 0, :], ctx], axis=1)
    gates = (jnp.einsum('bi,gi->bg', x, p['lstm_w_ih'], precision=HI) + p['lstm_b_ih']
             + jnp.einsum('bh,gh->bg', h0[0], p['lstm_w_hh'], precision=HI) + p['lstm_b_hh'])
    H = h0.shape[-1]
    i = jax.nn.sigmoid(gates[:, :H])
    f = jax.nn.sigmoid(gates[:, H:2 * H])
    g = jnp.tanh(gates[:, 2 * H:3 * H])
    o = jax.nn.sigmoid(gates[:, 3 * H:])
    c1 = f * c0[0] + i * g
    h1 = o * jnp.tanh(c1)
    logits = jnp.einsum('bh,vh->bv', h1, p['classifier_w'], precision=HI) + p['classifier_b']
    out = jax.nn.log_softmax(logits, axis=1)
    return out, (h1[None], c1[None]), a_c, a_d, a_a


if __name__ == "__main__":
    B, S, H, V = 2, 8, 32, 16   # batch, src-seq, hidden_size, output_size
    key = jax.random.PRNGKey(0)
    ks = jax.random.split(key, 24)

    def rnd(k, shape, scale=0.1):
        return scale * jax.random.normal(k, shape, dtype=jnp.float32)

    params = {
        'embedding': rnd(ks[0], (V, H)),
        'fc_hidden_w': rnd(ks[1], (H, H)),
        'fc_enc_del_w': rnd(ks[2], (H, H)),
        'fc_enc_add_w': rnd(ks[3], (H, H)),
        'fc_enc_common_w': rnd(ks[4], (H, H)),
        'v_del_w': rnd(ks[5], (1, H)), 'v_del_b': rnd(ks[6], (1,)),
        'v_add_w': rnd(ks[7], (1, H)), 'v_add_b': rnd(ks[8], (1,)),
        'v_common_w': rnd(ks[9], (1, H)), 'v_common_b': rnd(ks[10], (1,)),
        'lstm_w_ih': rnd(ks[11], (4 * H, 2 * H)), 'lstm_b_ih': rnd(ks[12], (4 * H,)),
        'lstm_w_hh': rnd(ks[13], (4 * H, H)), 'lstm_b_hh': rnd(ks[14], (4 * H,)),
        'classifier_w': rnd(ks[15], (V, H)), 'classifier_b': rnd(ks[16], (V,)),
        # note: nn.Parameter `weight` and `attn_combine` are unused in forward -> omitted
    }

    tokens = jax.random.randint(ks[17], (B,), 0, V, dtype=jnp.int32)
    h0 = rnd(ks[18], (1, B, H))
    c0 = rnd(ks[19], (1, B, H))
    enc_del = rnd(ks[20], (B, S, H))
    enc_add = rnd(ks[21], (B, S, H))

    outs = bahdanau_decoder_forward(tokens, (h0, c0), enc_del, enc_add, params)
    outs = jax.block_until_ready(outs)

    ref = reference_forward(tokens, (h0, c0), enc_del, enc_add, params)
    # bf16 weights/activations on the MXU path + approx reciprocal -> loosened tolerance.
    tol = dict(atol=1e-2, rtol=1e-2)
    np.testing.assert_allclose(np.asarray(outs[0]), np.asarray(ref[0]), **tol)
    np.testing.assert_allclose(np.asarray(outs[1][0]), np.asarray(ref[1][0]), **tol)
    np.testing.assert_allclose(np.asarray(outs[1][1]), np.asarray(ref[1][1]), **tol)
    np.testing.assert_allclose(np.asarray(outs[2]), np.asarray(ref[2]), **tol)
    np.testing.assert_allclose(np.asarray(outs[3]), np.asarray(ref[3]), **tol)
    np.testing.assert_allclose(np.asarray(outs[4]), np.asarray(ref[4]), **tol)

    print("KERNEL_OK")
</pallas_src>

<mosaic_0001>
module attributes {stable_mosaic.version = 11 : i64} {
  func.func @_decoder_kernel(%arg0: i32, %arg1: memref<8x256xbf16, #tpu.memory_space<vmem>>, %arg2: memref<8x128xf32, #tpu.memory_space<vmem>>, %arg3: memref<8x8x128xbf16, #tpu.memory_space<vmem>>, %arg4: memref<8x8x128xbf16, #tpu.memory_space<vmem>>, %arg5: memref<128x128xbf16, #tpu.memory_space<vmem>>, %arg6: memref<128x128xbf16, #tpu.memory_space<vmem>>, %arg7: memref<128x128xbf16, #tpu.memory_space<vmem>>, %arg8: memref<128x128xbf16, #tpu.memory_space<vmem>>, %arg9: memref<1x128xf32, #tpu.memory_space<vmem>>, %arg10: memref<1x128xf32, #tpu.memory_space<vmem>>, %arg11: memref<1x128xf32, #tpu.memory_space<vmem>>, %arg12: memref<3xf32, #tpu.memory_space<smem>>, %arg13: memref<256x512xbf16, #tpu.memory_space<vmem>>, %arg14: memref<128x512xbf16, #tpu.memory_space<vmem>>, %arg15: memref<1x512xf32, #tpu.memory_space<vmem>>, %arg16: memref<128x128xbf16, #tpu.memory_space<vmem>>, %arg17: memref<1x128xf32, #tpu.memory_space<vmem>>, %arg18: memref<8x128xf32, #tpu.memory_space<vmem>>, %arg19: memref<8x128xf32, #tpu.memory_space<vmem>>, %arg20: memref<8x128xf32, #tpu.memory_space<vmem>>, %arg21: memref<8x18xf32, #tpu.memory_space<vmem>>) attributes {dimension_semantics = [#tpu.dimension_semantics<parallel>], iteration_bounds = array<i64: 2>, scalar_prefetch = 0 : i64, scratch_operands = 0 : i64, tpu.core_type = #tpu.core_type<tc>, window_params = [{transform_indices = @transform_0, window_bounds = array<i64: 8, 256>}, {transform_indices = @transform_1, window_bounds = array<i64: 8, 128>}, {transform_indices = @transform_2, window_bounds = array<i64: 8, 8, 128>}, {transform_indices = @transform_3, window_bounds = array<i64: 8, 8, 128>}, {pipeline_mode = #tpu.pipeline_mode<synchronous>, transform_indices = @transform_4, window_bounds = array<i64: 128, 128>}, {pipeline_mode = #tpu.pipeline_mode<synchronous>, transform_indices = @transform_5, window_bounds = array<i64: 128, 128>}, {pipeline_mode = #tpu.pipeline_mode<synchronous>, transform_indices = @transform_6, window_bounds = array<i64: 128, 128>}, {pipeline_mode = #tpu.pipeline_mode<synchronous>, transform_indices = @transform_7, window_bounds = array<i64: 128, 128>}, {pipeline_mode = #tpu.pipeline_mode<synchronous>, transform_indices = @transform_8, window_bounds = array<i64: 1, 128>}, {pipeline_mode = #tpu.pipeline_mode<synchronous>, transform_indices = @transform_9, window_bounds = array<i64: 1, 128>}, {pipeline_mode = #tpu.pipeline_mode<synchronous>, transform_indices = @transform_10, window_bounds = array<i64: 1, 128>}, {transform_indices = @transform_11, window_bounds = array<i64: 3>}, {pipeline_mode = #tpu.pipeline_mode<synchronous>, transform_indices = @transform_12, window_bounds = array<i64: 256, 512>}, {pipeline_mode = #tpu.pipeline_mode<synchronous>, transform_indices = @transform_13, window_bounds = array<i64: 128, 512>}, {pipeline_mode = #tpu.pipeline_mode<synchronous>, transform_indices = @transform_14, window_bounds = array<i64: 1, 512>}, {pipeline_mode = #tpu.pipeline_mode<synchronous>, transform_indices = @transform_15, window_bounds = array<i64: 128, 128>}, {pipeline_mode = #tpu.pipeline_mode<synchronous>, transform_indices = @transform_16, window_bounds = array<i64: 1, 128>}, {transform_indices = @transform_17, window_bounds = array<i64: 8, 128>}, {transform_indices = @transform_18, window_bounds = array<i64: 8, 128>}, {transform_indices = @transform_19, window_bounds = array<i64: 8, 128>}, {transform_indices = @transform_20, window_bounds = array<i64: 8, 18>}]} {
    %c0 = arith.constant 0 : index
    %c0_0 = arith.constant 0 : index
    %0 = vector.load %arg1[%c0, %c0_0] : memref<8x256xbf16, #tpu.memory_space<vmem>>, vector<8x256xbf16>
    %1 = vector.extract_strided_slice %0 {offsets = [0, 128], sizes = [8, 128], strides = [1, 1]} : vector<8x256xbf16> to vector<8x128xbf16>
    %c0_1 = arith.constant 0 : index
    %c0_2 = arith.constant 0 : index
    %2 = vector.load %arg2[%c0_1, %c0_2] : memref<8x128xf32, #tpu.memory_space<vmem>>, vector<8x128xf32>
    %c0_3 = arith.constant 0 : index
    %c0_4 = arith.constant 0 : index
    %3 = vector.load %arg5[%c0_3, %c0_4] : memref<128x128xbf16, #tpu.memory_space<vmem>>, vector<128x128xbf16>
    %cst = arith.constant dense<0.000000e+00> : vector<8x128xf32>
    %4 = tpu.matmul %1, %3, %cst {dimension_numbers = #tpu.dot_dimension_numbers<[1], [0], [0], [1], [0, 0, 1, 1], [], []>} : vector<8x128xbf16>, vector<128x128xbf16>, vector<8x128xf32> -> vector<8x128xf32>
    %5 = tpu.iota {dimensions = array<i32: 1>} : vector<1x8xi32>
    %c8_i32 = arith.constant 8 : i32
    %6 = vector.broadcast %c8_i32 : i32 to vector<1x8xi32>
    %7 = arith.cmpi slt, %5, %6 : vector<1x8xi32>
    %cst_5 = arith.constant 0.000000e+00 : f32
    %cst_6 = arith.constant -1.000000e+30 : f32
    %8 = vector.broadcast %cst_5 : f32 to vector<1x8xf32>
    %9 = vector.broadcast %cst_6 : f32 to vector<1x8xf32>
    %10 = arith.select %7, %8, %9 : vector<1x8xi1>, vector<1x8xf32>
    %c0_7 = arith.constant 0 : index
    %c0_8 = arith.constant 0 : index
    %11 = vector.load %arg6[%c0_7, %c0_8] : memref<128x128xbf16, #tpu.memory_space<vmem>>, vector<128x128xbf16>
    %c0_9 = arith.constant 0 : index
    %c0_10 = arith.constant 0 : index
    %12 = vector.load %arg9[%c0_9, %c0_10] : memref<1x128xf32, #tpu.memory_space<vmem>>, vector<1x128xf32>
    %13 = vector.shape_cast %12 : vector<1x128xf32> to vector<1x1x128xf32>
    %c0_11 = arith.constant 0 : index
    %14 = memref.load %arg12[%c0_11] : memref<3xf32, #tpu.memory_space<smem>>
    %c0_12 = arith.constant 0 : index
    %c0_13 = arith.constant 0 : index
    %c0_14 = arith.constant 0 : index
    %15 = vector.load %arg3[%c0_12, %c0_13, %c0_14] : memref<8x8x128xbf16, #tpu.memory_space<vmem>>, vector<8x8x128xbf16>
    %16 = vector.shape_cast %15 : vector<8x8x128xbf16> to vector<64x128xbf16>
    %cst_15 = arith.constant dense<0.000000e+00> : vector<64x128xf32>
    %17 = tpu.matmul %16, %11, %cst_15 {dimension_numbers = #tpu.dot_dimension_numbers<[1], [0], [0], [1], [0, 0, 1, 1], [], []>} : vector<64x128xbf16>, vector<128x128xbf16>, vector<64x128xf32> -> vector<64x128xf32>
    %18 = vector.shape_cast %17 : vector<64x128xf32> to vector<8x8x128xf32>
    %19 = vector.shape_cast %4 : vector<8x128xf32> to vector<8x1x128xf32>
    %20 = vector.broadcast %19 : vector<8x1x128xf32> to vector<8x8x128xf32>
    %21 = arith.addf %20, %18 : vector<8x8x128xf32>
    %22 = math.tanh %21 : vector<8x8x128xf32>
    %23 = vector.broadcast %13 : vector<1x1x128xf32> to vector<8x8x128xf32>
    %24 = arith.mulf %22, %23 : vector<8x8x128xf32>
    %cst_16 = arith.constant dense<0.000000e+00> : vector<8x8xf32>
    %25 = vector.multi_reduction <add>, %24, %cst_16 [2] : vector<8x8x128xf32> to vector<8x8xf32>
    %26 = vector.broadcast %14 : f32 to vector<8x8xf32>
    %27 = arith.addf %25, %26 : vector<8x8xf32>
    %28 = vector.broadcast %10 : vector<1x8xf32> to vector<8x8xf32>
    %29 = arith.addf %27, %28 : vector<8x8xf32>
    %cst_17 = arith.constant dense<0xFF800000> : vector<8xf32>
    %30 = vector.multi_reduction <maximumf>, %29, %cst_17 [1] : vector<8x8xf32> to vector<8xf32>
    %31 = vector.shape_cast %30 : vector<8xf32> to vector<8x1xf32>
    %32 = vector.broadcast %31 : vector<8x1xf32> to vector<8x8xf32>
    %33 = arith.subf %29, %32 : vector<8x8xf32>
    %34 = math.exp %33 : vector<8x8xf32>
    %cst_18 = arith.constant dense<0.000000e+00> : vector<8xf32>
    %35 = vector.multi_reduction <add>, %34, %cst_18 [1] : vector<8x8xf32> to vector<8xf32>
    %36 = vector.shape_cast %35 : vector<8xf32> to vector<8x1xf32>
    %37 = tpu.reciprocal %36 {approx = true} : vector<8x1xf32> -> vector<8x1xf32>
    %38 = vector.broadcast %37 : vector<8x1xf32> to vector<8x8xf32>
    %39 = arith.mulf %34, %38 : vector<8x8xf32>
    %cst_19 = arith.constant 0.000000e+00 : f32
    %40 = vector.broadcast %cst_19 : f32 to vector<8x128xf32>
    %c0_20 = arith.constant 0 : index
    %c0_21 = arith.constant 0 : index
    %c0_22 = arith.constant 0 : index
    %41 = vector.load %arg3[%c0_20, %c0_21, %c0_22] : memref<8x8x128xbf16, #tpu.memory_space<vmem>>, vector<8x8x128xbf16>
    %42 = arith.extf %41 : vector<8x8x128xbf16> to vector<8x8x128xf32>
    %43 = vector.shape_cast %39 : vector<8x8xf32> to vector<8x8x1xf32>
    %44 = vector.broadcast %43 : vector<8x8x1xf32> to vector<8x8x128xf32>
    %45 = arith.mulf %44, %42 : vector<8x8x128xf32>
    %cst_23 = arith.constant dense<0.000000e+00> : vector<8x128xf32>
    %46 = vector.multi_reduction <add>, %45, %cst_23 [1] : vector<8x8x128xf32> to vector<8x128xf32>
    %47 = arith.addf %40, %46 : vector<8x128xf32>
    %c0_24 = arith.constant 0 : index
    %c0_25 = arith.constant 0 : index
    %48 = vector.load %arg7[%c0_24, %c0_25] : memref<128x128xbf16, #tpu.memory_space<vmem>>, vector<128x128xbf16>
    %c0_26 = arith.constant 0 : index
    %c0_27 = arith.constant 0 : index
    %49 = vector.load %arg10[%c0_26, %c0_27] : memref<1x128xf32, #tpu.memory_space<vmem>>, vector<1x128xf32>
    %50 = vector.shape_cast %49 : vector<1x128xf32> to vector<1x1x128xf32>
    %c1 = arith.constant 1 : index
    %51 = memref.load %arg12[%c1] : memref<3xf32, #tpu.memory_space<smem>>
    %c0_28 = arith.constant 0 : index
    %c0_29 = arith.constant 0 : index
    %c0_30 = arith.constant 0 : index
    %52 = vector.load %arg4[%c0_28, %c0_29, %c0_30] : memref<8x8x128xbf16, #tpu.memory_space<vmem>>, vector<8x8x128xbf16>
    %53 = vector.shape_cast %52 : vector<8x8x128xbf16> to vector<64x128xbf16>
    %cst_31 = arith.constant dense<0.000000e+00> : vector<64x128xf32>
    %54 = tpu.matmul %53, %48, %cst_31 {dimension_numbers = #tpu.dot_dimension_numbers<[1], [0], [0], [1], [0, 0, 1, 1], [], []>} : vector<64x128xbf16>, vector<128x128xbf16>, vector<64x128xf32> -> vector<64x128xf32>
    %55 = vector.shape_cast %54 : vector<64x128xf32> to vector<8x8x128xf32>
    %56 = vector.shape_cast %4 : vector<8x128xf32> to vector<8x1x128xf32>
    %57 = vector.broadcast %56 : vector<8x1x128xf32> to vector<8x8x128xf32>
    %58 = arith.addf %57, %55 : vector<8x8x128xf32>
    %59 = math.tanh %58 : vector<8x8x128xf32>
    %60 = vector.broadcast %50 : vector<1x1x128xf32> to vector<8x8x128xf32>
    %61 = arith.mulf %59, %60 : vector<8x8x128xf32>
    %cst_32 = arith.constant dense<0.000000e+00> : vector<8x8xf32>
    %62 = vector.multi_reduction <add>, %61, %cst_32 [2] : vector<8x8x128xf32> to vector<8x8xf32>
    %63 = vector.broadcast %51 : f32 to vector<8x8xf32>
    %64 = arith.addf %62, %63 : vector<8x8xf32>
    %65 = vector.broadcast %10 : vector<1x8xf32> to vector<8x8xf32>
    %66 = arith.addf %64, %65 : vector<8x8xf32>
    %cst_33 = arith.constant dense<0xFF800000> : vector<8xf32>
    %67 = vector.multi_reduction <maximumf>, %66, %cst_33 [1] : vector<8x8xf32> to vector<8xf32>
    %68 = vector.shape_cast %67 : vector<8xf32> to vector<8x1xf32>
    %69 = vector.broadcast %68 : vector<8x1xf32> to vector<8x8xf32>
    %70 = arith.subf %66, %69 : vector<8x8xf32>
    %71 = math.exp %70 : vector<8x8xf32>
    %cst_34 = arith.constant dense<0.000000e+00> : vector<8xf32>
    %72 = vector.multi_reduction <add>, %71, %cst_34 [1] : vector<8x8xf32> to vector<8xf32>
    %73 = vector.shape_cast %72 : vector<8xf32> to vector<8x1xf32>
    %74 = tpu.reciprocal %73 {approx = true} : vector<8x1xf32> -> vector<8x1xf32>
    %75 = vector.broadcast %74 : vector<8x1xf32> to vector<8x8xf32>
    %76 = arith.mulf %71, %75 : vector<8x8xf32>
    %cst_35 = arith.constant 0.000000e+00 : f32
    %77 = vector.broadcast %cst_35 : f32 to vector<8x128xf32>
    %c0_36 = arith.constant 0 : index
    %c0_37 = arith.constant 0 : index
    %c0_38 = arith.constant 0 : index
    %78 = vector.load %arg4[%c0_36, %c0_37, %c0_38] : memref<8x8x128xbf16, #tpu.memory_space<vmem>>, vector<8x8x128xbf16>
    %79 = arith.extf %78 : vector<8x8x128xbf16> to vector<8x8x128xf32>
    %80 = vector.shape_cast %76 : vector<8x8xf32> to vector<8x8x1xf32>
    %81 = vector.broadcast %80 : vector<8x8x1xf32> to vector<8x8x128xf32>
    %82 = arith.mulf %81, %79 : vector<8x8x128xf32>
    %cst_39 = arith.constant dense<0.000000e+00> : vector<8x128xf32>
    %83 = vector.multi_reduction <add>, %82, %cst_39 [1] : vector<8x8x128xf32> to vector<8x128xf32>
    %84 = arith.addf %77, %83 : vector<8x128xf32>
    %c0_40 = arith.constant 0 : index
    %c0_41 = arith.constant 0 : index
    %85 = vector.load %arg8[%c0_40, %c0_41] : memref<128x128xbf16, #tpu.memory_space<vmem>>, vector<128x128xbf16>
    %c0_42 = arith.constant 0 : index
    %c0_43 = arith.constant 0 : index
    %86 = vector.load %arg11[%c0_42, %c0_43] : memref<1x128xf32, #tpu.memory_space<vmem>>, vector<1x128xf32>
    %87 = arith.truncf %47 : vector<8x128xf32> to vector<8x128xbf16>
    %cst_44 = arith.constant dense<0.000000e+00> : vector<8x128xf32>
    %88 = tpu.matmul %87, %85, %cst_44 {dimension_numbers = #tpu.dot_dimension_numbers<[1], [0], [0], [1], [0, 0, 1, 1], [], []>} : vector<8x128xbf16>, vector<128x128xbf16>, vector<8x128xf32> -> vector<8x128xf32>
    %89 = arith.addf %4, %88 : vector<8x128xf32>
    %90 = math.tanh %89 : vector<8x128xf32>
    %91 = arith.truncf %84 : vector<8x128xf32> to vector<8x128xbf16>
    %cst_45 = arith.constant dense<0.000000e+00> : vector<8x128xf32>
    %92 = tpu.matmul %91, %85, %cst_45 {dimension_numbers = #tpu.dot_dimension_numbers<[1], [0], [0], [1], [0, 0, 1, 1], [], []>} : vector<8x128xbf16>, vector<128x128xbf16>, vector<8x128xf32> -> vector<8x128xf32>
    %93 = arith.addf %4, %92 : vector<8x128xf32>
    %94 = math.tanh %93 : vector<8x128xf32>
    %95 = vector.broadcast %86 : vector<1x128xf32> to vector<8x128xf32>
    %96 = arith.mulf %90, %95 : vector<8x128xf32>
    %cst_46 = arith.constant dense<0.000000e+00> : vector<8xf32>
    %97 = vector.multi_reduction <add>, %96, %cst_46 [1] : vector<8x128xf32> to vector<8xf32>
    %98 = vector.shape_cast %97 : vector<8xf32> to vector<8x1xf32>
    %c2 = arith.constant 2 : index
    %99 = memref.load %arg12[%c2] : memref<3xf32, #tpu.memory_space<smem>>
    %100 = vector.broadcast %99 : f32 to vector<8x1xf32>
    %101 = arith.addf %98, %100 : vector<8x1xf32>
    %102 = vector.broadcast %86 : vector<1x128xf32> to vector<8x128xf32>
    %103 = arith.mulf %94, %102 : vector<8x128xf32>
    %cst_47 = arith.constant dense<0.000000e+00> : vector<8xf32>
    %104 = vector.multi_reduction <add>, %103, %cst_47 [1] : vector<8x128xf32> to vector<8xf32>
    %105 = vector.shape_cast %104 : vector<8xf32> to vector<8x1xf32>
    %c2_48 = arith.constant 2 : index
    %106 = memref.load %arg12[%c2_48] : memref<3xf32, #tpu.memory_space<smem>>
    %107 = vector.broadcast %106 : f32 to vector<8x1xf32>
    %108 = arith.addf %105, %107 : vector<8x1xf32>
    %109 = arith.maximumf %101, %108 : vector<8x1xf32>
    %110 = arith.subf %101, %109 : vector<8x1xf32>
    %111 = math.exp %110 : vector<8x1xf32>
    %112 = arith.subf %108, %109 : vector<8x1xf32>
    %113 = math.exp %112 : vector<8x1xf32>
    %114 = arith.addf %111, %113 : vector<8x1xf32>
    %115 = tpu.reciprocal %114 {approx = true} : vector<8x1xf32> -> vector<8x1xf32>
    %116 = arith.mulf %111, %115 : vector<8x1xf32>
    %117 = arith.mulf %113, %115 : vector<8x1xf32>
    %118 = vector.broadcast %116 : vector<8x1xf32> to vector<8x128xf32>
    %119 = arith.mulf %118, %47 : vector<8x128xf32>
    %120 = vector.broadcast %117 : vector<8x1xf32> to vector<8x128xf32>
    %121 = arith.mulf %120, %84 : vector<8x128xf32>
    %122 = arith.addf %119, %121 : vector<8x128xf32>
    %c0_49 = arith.constant 0 : index
    %c0_50 = arith.constant 0 : index
    %123 = vector.load %arg13[%c0_49, %c0_50] : memref<256x512xbf16, #tpu.memory_space<vmem>>, vector<256x512xbf16>
    %cst_51 = arith.constant dense<0.000000e+00> : vector<8x512xf32>
    %124 = tpu.matmul %0, %123, %cst_51 {dimension_numbers = #tpu.dot_dimension_numbers<[1], [0], [0], [1], [0, 0, 1, 1], [], []>} : vector<8x256xbf16>, vector<256x512xbf16>, vector<8x512xf32> -> vector<8x512xf32>
    %125 = arith.truncf %122 : vector<8x128xf32> to vector<8x128xbf16>
    %c0_52 = arith.constant 0 : index
    %c0_53 = arith.constant 0 : index
    %126 = vector.load %arg14[%c0_52, %c0_53] : memref<128x512xbf16, #tpu.memory_space<vmem>>, vector<128x512xbf16>
    %cst_54 = arith.constant dense<0.000000e+00> : vector<8x512xf32>
    %127 = tpu.matmul %125, %126, %cst_54 {dimension_numbers = #tpu.dot_dimension_numbers<[1], [0], [0], [1], [0, 0, 1, 1], [], []>} : vector<8x128xbf16>, vector<128x512xbf16>, vector<8x512xf32> -> vector<8x512xf32>
    %128 = arith.addf %124, %127 : vector<8x512xf32>
    %c0_55 = arith.constant 0 : index
    %c0_56 = arith.constant 0 : index
    %129 = vector.load %arg15[%c0_55, %c0_56] : memref<1x512xf32, #tpu.memory_space<vmem>>, vector<1x512xf32>
    %130 = vector.broadcast %129 : vector<1x512xf32> to vector<8x512xf32>
    %131 = arith.addf %128, %130 : vector<8x512xf32>
    %132 = vector.extract_strided_slice %131 {offsets = [0, 0], sizes = [8, 128], strides = [1, 1]} : vector<8x512xf32> to vector<8x128xf32>
    %133 = arith.negf %132 : vector<8x128xf32>
    %134 = math.exp %133 : vector<8x128xf32>
    %cst_57 = arith.constant 1.000000e+00 : f32
    %135 = vector.broadcast %cst_57 : f32 to vector<8x128xf32>
    %136 = arith.addf %135, %134 : vector<8x128xf32>
    %137 = arith.divf %135, %136 : vector<8x128xf32>
    %138 = vector.extract_strided_slice %131 {offsets = [0, 128], sizes = [8, 128], strides = [1, 1]} : vector<8x512xf32> to vector<8x128xf32>
    %139 = arith.negf %138 : vector<8x128xf32>
    %140 = math.exp %139 : vector<8x128xf32>
    %cst_58 = arith.constant 1.000000e+00 : f32
    %141 = vector.broadcast %cst_58 : f32 to vector<8x128xf32>
    %142 = arith.addf %141, %140 : vector<8x128xf32>
    %143 = arith.divf %141, %142 : vector<8x128xf32>
    %144 = vector.extract_strided_slice %131 {offsets = [0, 256], sizes = [8, 128], strides = [1, 1]} : vector<8x512xf32> to vector<8x128xf32>
    %145 = math.tanh %144 : vector<8x128xf32>
    %146 = vector.extract_strided_slice %131 {offsets = [0, 384], sizes = [8, 128], strides = [1, 1]} : vector<8x512xf32> to vector<8x128xf32>
    %147 = arith.negf %146 : vector<8x128xf32>
    %148 = math.exp %147 : vector<8x128xf32>
    %cst_59 = arith.constant 1.000000e+00 : f32
    %149 = vector.broadcast %cst_59 : f32 to vector<8x128xf32>
    %150 = arith.addf %149, %148 : vector<8x128xf32>
    %151 = arith.divf %149, %150 : vector<8x128xf32>
    %152 = arith.mulf %143, %2 : vector<8x128xf32>
    %153 = arith.mulf %137, %145 : vector<8x128xf32>
    %154 = arith.addf %152, %153 : vector<8x128xf32>
    %155 = math.tanh %154 : vector<8x128xf32>
    %156 = arith.mulf %151, %155 : vector<8x128xf32>
    %157 = arith.truncf %156 : vector<8x128xf32> to vector<8x128xbf16>
    %c0_60 = arith.constant 0 : index
    %c0_61 = arith.constant 0 : index
    %158 = vector.load %arg16[%c0_60, %c0_61] : memref<128x128xbf16, #tpu.memory_space<vmem>>, vector<128x128xbf16>
    %cst_62 = arith.constant dense<0.000000e+00> : vector<8x128xf32>
    %159 = tpu.matmul %157, %158, %cst_62 {dimension_numbers = #tpu.dot_dimension_numbers<[1], [0], [0], [1], [0, 0, 1, 1], [], []>} : vector<8x128xbf16>, vector<128x128xbf16>, vector<8x128xf32> -> vector<8x128xf32>
    %c0_63 = arith.constant 0 : index
    %c0_64 = arith.constant 0 : index
    %160 = vector.load %arg17[%c0_63, %c0_64] : memref<1x128xf32, #tpu.memory_space<vmem>>, vector<1x128xf32>
    %161 = vector.broadcast %160 : vector<1x128xf32> to vector<8x128xf32>
    %162 = arith.addf %159, %161 : vector<8x128xf32>
    %cst_65 = arith.constant dense<0xFF800000> : vector<8xf32>
    %163 = vector.multi_reduction <maximumf>, %162, %cst_65 [1] : vector<8x128xf32> to vector<8xf32>
    %164 = vector.shape_cast %163 : vector<8xf32> to vector<8x1xf32>
    %165 = vector.broadcast %164 : vector<8x1xf32> to vector<8x128xf32>
    %166 = arith.subf %162, %165 : vector<8x128xf32>
    %167 = math.exp %166 : vector<8x128xf32>
    %cst_66 = arith.constant dense<0.000000e+00> : vector<8xf32>
    %168 = vector.multi_reduction <add>, %167, %cst_66 [1] : vector<8x128xf32> to vector<8xf32>
    %169 = vector.shape_cast %168 : vector<8xf32> to vector<8x1xf32>
    %170 = math.log %169 : vector<8x1xf32>
    %171 = vector.broadcast %170 : vector<8x1xf32> to vector<8x128xf32>
    %172 = arith.subf %166, %171 : vector<8x128xf32>
    %c0_67 = arith.constant 0 : index
    %c0_68 = arith.constant 0 : index
    %173 = vector.load %arg18[%c0_67, %c0_68] : memref<8x128xf32, #tpu.memory_space<vmem>>, vector<8x128xf32>
    tpu.vector_store %arg18[%c0_67, %c0_68], %172 {strides = array<i32>} : memref<8x128xf32, #tpu.memory_space<vmem>>, vector<8x128xf32>,
    %c0_69 = arith.constant 0 : index
    %c0_70 = arith.constant 0 : index
    %174 = vector.load %arg19[%c0_69, %c0_70] : memref<8x128xf32, #tpu.memory_space<vmem>>, vector<8x128xf32>
    tpu.vector_store %arg19[%c0_69, %c0_70], %156 {strides = array<i32>} : memref<8x128xf32, #tpu.memory_space<vmem>>, vector<8x128xf32>,
    %c0_71 = arith.constant 0 : index
    %c0_72 = arith.constant 0 : index
    %175 = vector.load %arg20[%c0_71, %c0_72] : memref<8x128xf32, #tpu.memory_space<vmem>>, vector<8x128xf32>
    tpu.vector_store %arg20[%c0_71, %c0_72], %154 {strides = array<i32>} : memref<8x128xf32, #tpu.memory_space<vmem>>, vector<8x128xf32>,
    %176 = tpu.concatenate %116, %117, %39, %76 in 1 : vector<8x1xf32>, vector<8x1xf32>, vector<8x8xf32>, vector<8x8xf32> -> vector<8x18xf32>
    %c0_73 = arith.constant 0 : index
    %c0_74 = arith.constant 0 : index
    %177 = vector.load %arg21[%c0_73, %c0_74] : memref<8x18xf32, #tpu.memory_space<vmem>>, vector<8x18xf32>
    tpu.vector_store %arg21[%c0_73, %c0_74], %176 {strides = array<i32>} : memref<8x18xf32, #tpu.memory_space<vmem>>, vector<8x18xf32>,
    return
  }
  func.func @transform_0(%arg0: i32) -> (i32, i32) {
    %c0_i32 = arith.constant 0 : i32
    %c0_i32_0 = arith.constant 0 : i32
    return %arg0, %c0_i32 : i32, i32
  }
  func.func @transform_1(%arg0: i32) -> (i32, i32) {
    %c0_i32 = arith.constant 0 : i32
    %c0_i32_0 = arith.constant 0 : i32
    return %arg0, %c0_i32 : i32, i32
  }
  func.func @transform_2(%arg0: i32) -> (i32, i32, i32) {
    %c0_i32 = arith.constant 0 : i32
    %c0_i32_0 = arith.constant 0 : i32
    %c0_i32_1 = arith.constant 0 : i32
    return %arg0, %c0_i32, %c0_i32_0 : i32, i32, i32
  }
  func.func @transform_3(%arg0: i32) -> (i32, i32, i32) {
    %c0_i32 = arith.constant 0 : i32
    %c0_i32_0 = arith.constant 0 : i32
    %c0_i32_1 = arith.constant 0 : i32
    return %arg0, %c0_i32, %c0_i32_0 : i32, i32, i32
  }
  func.func @transform_4(%arg0: i32) -> (i32, i32) {
    %c0_i32 = arith.constant 0 : i32
    %c0_i32_0 = arith.constant 0 : i32
    %c0_i32_1 = arith.constant 0 : i32
    return %c0_i32, %c0_i32_0 : i32, i32
  }
  func.func @transform_5(%arg0: i32) -> (i32, i32) {
    %c0_i32 = arith.constant 0 : i32
    %c0_i32_0 = arith.constant 0 : i32
    %c0_i32_1 = arith.constant 0 : i32
    return %c0_i32, %c0_i32_0 : i32, i32
  }
  func.func @transform_6(%arg0: i32) -> (i32, i32) {
    %c0_i32 = arith.constant 0 : i32
    %c0_i32_0 = arith.constant 0 : i32
    %c0_i32_1 = arith.constant 0 : i32
    return %c0_i32, %c0_i32_0 : i32, i32
  }
  func.func @transform_7(%arg0: i32) -> (i32, i32) {
    %c0_i32 = arith.constant 0 : i32
    %c0_i32_0 = arith.constant 0 : i32
    %c0_i32_1 = arith.constant 0 : i32
    return %c0_i32, %c0_i32_0 : i32, i32
  }
  func.func @transform_8(%arg0: i32) -> (i32, i32) {
    %c0_i32 = arith.constant 0 : i32
    %c0_i32_0 = arith.constant 0 : i32
    %c0_i32_1 = arith.constant 0 : i32
    return %c0_i32, %c0_i32_0 : i32, i32
  }
  func.func @transform_9(%arg0: i32) -> (i32, i32) {
    %c0_i32 = arith.constant 0 : i32
    %c0_i32_0 = arith.constant 0 : i32
    %c0_i32_1 = arith.constant 0 : i32
    return %c0_i32, %c0_i32_0 : i32, i32
  }
  func.func @transform_10(%arg0: i32) -> (i32, i32) {
    %c0_i32 = arith.constant 0 : i32
    %c0_i32_0 = arith.constant 0 : i32
    %c0_i32_1 = arith.constant 0 : i32
    return %c0_i32, %c0_i32_0 : i32, i32
  }
  func.func @transform_11(%arg0: i32) -> i32 {
    %c0_i32 = arith.constant 0 : i32
    %c0_i32_0 = arith.constant 0 : i32
    return %c0_i32 : i32
  }
  func.func @transform_12(%arg0: i32) -> (i32, i32) {
    %c0_i32 = arith.constant 0 : i32
    %c0_i32_0 = arith.constant 0 : i32
    %c0_i32_1 = arith.constant 0 : i32
    return %c0_i32, %c0_i32_0 : i32, i32
  }
  func.func @transform_13(%arg0: i32) -> (i32, i32) {
    %c0_i32 = arith.constant 0 : i32
    %c0_i32_0 = arith.constant 0 : i32
    %c0_i32_1 = arith.constant 0 : i32
    return %c0_i32, %c0_i32_0 : i32, i32
  }
  func.func @transform_14(%arg0: i32) -> (i32, i32) {
    %c0_i32 = arith.constant 0 : i32
    %c0_i32_0 = arith.constant 0 : i32
    %c0_i32_1 = arith.constant 0 : i32
    return %c0_i32, %c0_i32_0 : i32, i32
  }
  func.func @transform_15(%arg0: i32) -> (i32, i32) {
    %c0_i32 = arith.constant 0 : i32
    %c0_i32_0 = arith.constant 0 : i32
    %c0_i32_1 = arith.constant 0 : i32
    return %c0_i32, %c0_i32_0 : i32, i32
  }
  func.func @transform_16(%arg0: i32) -> (i32, i32) {
    %c0_i32 = arith.constant 0 : i32
    %c0_i32_0 = arith.constant 0 : i32
    %c0_i32_1 = arith.constant 0 : i32
    return %c0_i32, %c0_i32_0 : i32, i32
  }
  func.func @transform_17(%arg0: i32) -> (i32, i32) {
    %c0_i32 = arith.constant 0 : i32
    %c0_i32_0 = arith.constant 0 : i32
    return %arg0, %c0_i32 : i32, i32
  }
  func.func @transform_18(%arg0: i32) -> (i32, i32) {
    %c0_i32 = arith.constant 0 : i32
    %c0_i32_0 = arith.constant 0 : i32
    return %arg0, %c0_i32 : i32, i32
  }
  func.func @transform_19(%arg0: i32) -> (i32, i32) {
    %c0_i32 = arith.constant 0 : i32
    %c0_i32_0 = arith.constant 0 : i32
    return %arg0, %c0_i32 : i32, i32
  }
  func.func @transform_20(%arg0: i32) -> (i32, i32) {
    %c0_i32 = arith.constant 0 : i32
    %c0_i32_0 = arith.constant 0 : i32
    return %arg0, %c0_i32 : i32, i32
  }
}

module attributes {stable_mosaic.version = 11 : i64} {
  func.func @_decoder_kernel(%arg0: i32, %arg1: memref<8x256xbf16, #tpu.memory_space<vmem>>, %arg2: memref<8x128xf32, #tpu.memory_space<vmem>>, %arg3: memref<8x8x128xbf16, #tpu.memory_space<vmem>>, %arg4: memref<8x8x128xbf16, #tpu.memory_space<vmem>>, %arg5: memref<128x128xbf16, #tpu.memory_space<vmem>>, %arg6: memref<128x128xbf16, #tpu.memory_space<vmem>>, %arg7: memref<128x128xbf16, #tpu.memory_space<vmem>>, %arg8: memref<128x128xbf16, #tpu.memory_space<vmem>>, %arg9: memref<1x128xf32, #tpu.memory_space<vmem>>, %arg10: memref<1x128xf32, #tpu.memory_space<vmem>>, %arg11: memref<1x128xf32, #tpu.memory_space<vmem>>, %arg12: memref<3xf32, #tpu.memory_space<smem>>, %arg13: memref<256x512xbf16, #tpu.memory_space<vmem>>, %arg14: memref<128x512xbf16, #tpu.memory_space<vmem>>, %arg15: memref<1x512xf32, #tpu.memory_space<vmem>>, %arg16: memref<128x128xbf16, #tpu.memory_space<vmem>>, %arg17: memref<1x128xf32, #tpu.memory_space<vmem>>, %arg18: memref<8x128xf32, #tpu.memory_space<vmem>>, %arg19: memref<8x128xf32, #tpu.memory_space<vmem>>, %arg20: memref<8x128xf32, #tpu.memory_space<vmem>>, %arg21: memref<8x18xf32, #tpu.memory_space<vmem>>) attributes {dimension_semantics = [#tpu.dimension_semantics<parallel>], iteration_bounds = array<i64: 2>, scalar_prefetch = 0 : i64, scratch_operands = 0 : i64, tpu.core_type = #tpu.core_type<tc>, window_params = [{transform_indices = @transform_0, window_bounds = array<i64: 8, 256>}, {transform_indices = @transform_1, window_bounds = array<i64: 8, 128>}, {transform_indices = @transform_2, window_bounds = array<i64: 8, 8, 128>}, {transform_indices = @transform_3, window_bounds = array<i64: 8, 8, 128>}, {pipeline_mode = #tpu.pipeline_mode<synchronous>, transform_indices = @transform_4, window_bounds = array<i64: 128, 128>}, {pipeline_mode = #tpu.pipeline_mode<synchronous>, transform_indices = @transform_5, window_bounds = array<i64: 128, 128>}, {pipeline_mode = #tpu.pipeline_mode<synchronous>, transform_indices = @transform_6, window_bounds = array<i64: 128, 128>}, {pipeline_mode = #tpu.pipeline_mode<synchronous>, transform_indices = @transform_7, window_bounds = array<i64: 128, 128>}, {pipeline_mode = #tpu.pipeline_mode<synchronous>, transform_indices = @transform_8, window_bounds = array<i64: 1, 128>}, {pipeline_mode = #tpu.pipeline_mode<synchronous>, transform_indices = @transform_9, window_bounds = array<i64: 1, 128>}, {pipeline_mode = #tpu.pipeline_mode<synchronous>, transform_indices = @transform_10, window_bounds = array<i64: 1, 128>}, {transform_indices = @transform_11, window_bounds = array<i64: 3>}, {pipeline_mode = #tpu.pipeline_mode<synchronous>, transform_indices = @transform_12, window_bounds = array<i64: 256, 512>}, {pipeline_mode = #tpu.pipeline_mode<synchronous>, transform_indices = @transform_13, window_bounds = array<i64: 128, 512>}, {pipeline_mode = #tpu.pipeline_mode<synchronous>, transform_indices = @transform_14, window_bounds = array<i64: 1, 512>}, {pipeline_mode = #tpu.pipeline_mode<synchronous>, transform_indices = @transform_15, window_bounds = array<i64: 128, 128>}, {pipeline_mode = #tpu.pipeline_mode<synchronous>, transform_indices = @transform_16, window_bounds = array<i64: 1, 128>}, {transform_indices = @transform_17, window_bounds = array<i64: 8, 128>}, {transform_indices = @transform_18, window_bounds = array<i64: 8, 128>}, {transform_indices = @transform_19, window_bounds = array<i64: 8, 128>}, {transform_indices = @transform_20, window_bounds = array<i64: 8, 18>}]} {
    %c0 = arith.constant 0 : index
    %c0_0 = arith.constant 0 : index
    %0 = vector.load %arg1[%c0, %c0_0] : memref<8x256xbf16, #tpu.memory_space<vmem>>, vector<8x256xbf16>
    %1 = vector.extract_strided_slice %0 {offsets = [0, 128], sizes = [8, 128], strides = [1, 1]} : vector<8x256xbf16> to vector<8x128xbf16>
    %c0_1 = arith.constant 0 : index
    %c0_2 = arith.constant 0 : index
    %2 = vector.load %arg2[%c0_1, %c0_2] : memref<8x128xf32, #tpu.memory_space<vmem>>, vector<8x128xf32>
    %c0_3 = arith.constant 0 : index
    %c0_4 = arith.constant 0 : index
    %3 = vector.load %arg5[%c0_3, %c0_4] : memref<128x128xbf16, #tpu.memory_space<vmem>>, vector<128x128xbf16>
    %cst = arith.constant dense<0.000000e+00> : vector<8x128xf32>
    %4 = tpu.matmul %1, %3, %cst {dimension_numbers = #tpu.dot_dimension_numbers<[1], [0], [0], [1], [0, 0, 1, 1], [], []>} : vector<8x128xbf16>, vector<128x128xbf16>, vector<8x128xf32> -> vector<8x128xf32>
    %5 = tpu.iota {dimensions = array<i32: 1>} : vector<1x8xi32>
    %c8_i32 = arith.constant 8 : i32
    %6 = vector.broadcast %c8_i32 : i32 to vector<1x8xi32>
    %7 = arith.cmpi slt, %5, %6 : vector<1x8xi32>
    %cst_5 = arith.constant 0.000000e+00 : f32
    %cst_6 = arith.constant -1.000000e+30 : f32
    %8 = vector.broadcast %cst_5 : f32 to vector<1x8xf32>
    %9 = vector.broadcast %cst_6 : f32 to vector<1x8xf32>
    %10 = arith.select %7, %8, %9 : vector<1x8xi1>, vector<1x8xf32>
    %c0_7 = arith.constant 0 : index
    %c0_8 = arith.constant 0 : index
    %11 = vector.load %arg6[%c0_7, %c0_8] : memref<128x128xbf16, #tpu.memory_space<vmem>>, vector<128x128xbf16>
    %c0_9 = arith.constant 0 : index
    %c0_10 = arith.constant 0 : index
    %12 = vector.load %arg9[%c0_9, %c0_10] : memref<1x128xf32, #tpu.memory_space<vmem>>, vector<1x128xf32>
    %13 = vector.shape_cast %12 : vector<1x128xf32> to vector<1x1x128xf32>
    %c0_11 = arith.constant 0 : index
    %14 = memref.load %arg12[%c0_11] : memref<3xf32, #tpu.memory_space<smem>>
    %c0_12 = arith.constant 0 : index
    %c0_13 = arith.constant 0 : index
    %c0_14 = arith.constant 0 : index
    %15 = vector.load %arg3[%c0_12, %c0_13, %c0_14] : memref<8x8x128xbf16, #tpu.memory_space<vmem>>, vector<8x8x128xbf16>
    %16 = vector.shape_cast %15 : vector<8x8x128xbf16> to vector<64x128xbf16>
    %cst_15 = arith.constant dense<0.000000e+00> : vector<64x128xf32>
    %17 = tpu.matmul %16, %11, %cst_15 {dimension_numbers = #tpu.dot_dimension_numbers<[1], [0], [0], [1], [0, 0, 1, 1], [], []>} : vector<64x128xbf16>, vector<128x128xbf16>, vector<64x128xf32> -> vector<64x128xf32>
    %18 = vector.shape_cast %17 : vector<64x128xf32> to vector<8x8x128xf32>
    %19 = vector.shape_cast %4 : vector<8x128xf32> to vector<8x1x128xf32>
    %20 = vector.broadcast %19 : vector<8x1x128xf32> to vector<8x8x128xf32>
    %21 = arith.addf %20, %18 : vector<8x8x128xf32>
    %22 = math.tanh %21 : vector<8x8x128xf32>
    %23 = vector.broadcast %13 : vector<1x1x128xf32> to vector<8x8x128xf32>
    %24 = arith.mulf %22, %23 : vector<8x8x128xf32>
    %cst_16 = arith.constant dense<0.000000e+00> : vector<8x8xf32>
    %25 = vector.multi_reduction <add>, %24, %cst_16 [2] : vector<8x8x128xf32> to vector<8x8xf32>
    %26 = vector.broadcast %14 : f32 to vector<8x8xf32>
    %27 = arith.addf %25, %26 : vector<8x8xf32>
    %28 = vector.broadcast %10 : vector<1x8xf32> to vector<8x8xf32>
    %29 = arith.addf %27, %28 : vector<8x8xf32>
    %cst_17 = arith.constant dense<0xFF800000> : vector<8xf32>
    %30 = vector.multi_reduction <maximumf>, %29, %cst_17 [1] : vector<8x8xf32> to vector<8xf32>
    %31 = vector.shape_cast %30 : vector<8xf32> to vector<8x1xf32>
    %32 = vector.broadcast %31 : vector<8x1xf32> to vector<8x8xf32>
    %33 = arith.subf %29, %32 : vector<8x8xf32>
    %34 = math.exp %33 : vector<8x8xf32>
    %cst_18 = arith.constant dense<0.000000e+00> : vector<8xf32>
    %35 = vector.multi_reduction <add>, %34, %cst_18 [1] : vector<8x8xf32> to vector<8xf32>
    %36 = vector.shape_cast %35 : vector<8xf32> to vector<8x1xf32>
    %37 = tpu.reciprocal %36 {approx = true} : vector<8x1xf32> -> vector<8x1xf32>
    %38 = vector.broadcast %37 : vector<8x1xf32> to vector<8x8xf32>
    %39 = arith.mulf %34, %38 : vector<8x8xf32>
    %cst_19 = arith.constant 0.000000e+00 : f32
    %40 = vector.broadcast %cst_19 : f32 to vector<8x128xf32>
    %c0_20 = arith.constant 0 : index
    %c0_21 = arith.constant 0 : index
    %c0_22 = arith.constant 0 : index
    %41 = vector.load %arg3[%c0_20, %c0_21, %c0_22] : memref<8x8x128xbf16, #tpu.memory_space<vmem>>, vector<8x8x128xbf16>
    %42 = arith.extf %41 : vector<8x8x128xbf16> to vector<8x8x128xf32>
    %43 = vector.shape_cast %39 : vector<8x8xf32> to vector<8x8x1xf32>
    %44 = vector.broadcast %43 : vector<8x8x1xf32> to vector<8x8x128xf32>
    %45 = arith.mulf %44, %42 : vector<8x8x128xf32>
    %cst_23 = arith.constant dense<0.000000e+00> : vector<8x128xf32>
    %46 = vector.multi_reduction <add>, %45, %cst_23 [1] : vector<8x8x128xf32> to vector<8x128xf32>
    %47 = arith.addf %40, %46 : vector<8x128xf32>
    %c0_24 = arith.constant 0 : index
    %c0_25 = arith.constant 0 : index
    %48 = vector.load %arg7[%c0_24, %c0_25] : memref<128x128xbf16, #tpu.memory_space<vmem>>, vector<128x128xbf16>
    %c0_26 = arith.constant 0 : index
    %c0_27 = arith.constant 0 : index
    %49 = vector.load %arg10[%c0_26, %c0_27] : memref<1x128xf32, #tpu.memory_space<vmem>>, vector<1x128xf32>
    %50 = vector.shape_cast %49 : vector<1x128xf32> to vector<1x1x128xf32>
    %c1 = arith.constant 1 : index
    %51 = memref.load %arg12[%c1] : memref<3xf32, #tpu.memory_space<smem>>
    %c0_28 = arith.constant 0 : index
    %c0_29 = arith.constant 0 : index
    %c0_30 = arith.constant 0 : index
    %52 = vector.load %arg4[%c0_28, %c0_29, %c0_30] : memref<8x8x128xbf16, #tpu.memory_space<vmem>>, vector<8x8x128xbf16>
    %53 = vector.shape_cast %52 : vector<8x8x128xbf16> to vector<64x128xbf16>
    %cst_31 = arith.constant dense<0.000000e+00> : vector<64x128xf32>
    %54 = tpu.matmul %53, %48, %cst_31 {dimension_numbers = #tpu.dot_dimension_numbers<[1], [0], [0], [1], [0, 0, 1, 1], [], []>} : vector<64x128xbf16>, vector<128x128xbf16>, vector<64x128xf32> -> vector<64x128xf32>
    %55 = vector.shape_cast %54 : vector<64x128xf32> to vector<8x8x128xf32>
    %56 = vector.shape_cast %4 : vector<8x128xf32> to vector<8x1x128xf32>
    %57 = vector.broadcast %56 : vector<8x1x128xf32> to vector<8x8x128xf32>
    %58 = arith.addf %57, %55 : vector<8x8x128xf32>
    %59 = math.tanh %58 : vector<8x8x128xf32>
    %60 = vector.broadcast %50 : vector<1x1x128xf32> to vector<8x8x128xf32>
    %61 = arith.mulf %59, %60 : vector<8x8x128xf32>
    %cst_32 = arith.constant dense<0.000000e+00> : vector<8x8xf32>
    %62 = vector.multi_reduction <add>, %61, %cst_32 [2] : vector<8x8x128xf32> to vector<8x8xf32>
    %63 = vector.broadcast %51 : f32 to vector<8x8xf32>
    %64 = arith.addf %62, %63 : vector<8x8xf32>
    %65 = vector.broadcast %10 : vector<1x8xf32> to vector<8x8xf32>
    %66 = arith.addf %64, %65 : vector<8x8xf32>
    %cst_33 = arith.constant dense<0xFF800000> : vector<8xf32>
    %67 = vector.multi_reduction <maximumf>, %66, %cst_33 [1] : vector<8x8xf32> to vector<8xf32>
    %68 = vector.shape_cast %67 : vector<8xf32> to vector<8x1xf32>
    %69 = vector.broadcast %68 : vector<8x1xf32> to vector<8x8xf32>
    %70 = arith.subf %66, %69 : vector<8x8xf32>
    %71 = math.exp %70 : vector<8x8xf32>
    %cst_34 = arith.constant dense<0.000000e+00> : vector<8xf32>
    %72 = vector.multi_reduction <add>, %71, %cst_34 [1] : vector<8x8xf32> to vector<8xf32>
    %73 = vector.shape_cast %72 : vector<8xf32> to vector<8x1xf32>
    %74 = tpu.reciprocal %73 {approx = true} : vector<8x1xf32> -> vector<8x1xf32>
    %75 = vector.broadcast %74 : vector<8x1xf32> to vector<8x8xf32>
    %76 = arith.mulf %71, %75 : vector<8x8xf32>
    %cst_35 = arith.constant 0.000000e+00 : f32
    %77 = vector.broadcast %cst_35 : f32 to vector<8x128xf32>
    %c0_36 = arith.constant 0 : index
    %c0_37 = arith.constant 0 : index
    %c0_38 = arith.constant 0 : index
    %78 = vector.load %arg4[%c0_36, %c0_37, %c0_38] : memref<8x8x128xbf16, #tpu.memory_space<vmem>>, vector<8x8x128xbf16>
    %79 = arith.extf %78 : vector<8x8x128xbf16> to vector<8x8x128xf32>
    %80 = vector.shape_cast %76 : vector<8x8xf32> to vector<8x8x1xf32>
    %81 = vector.broadcast %80 : vector<8x8x1xf32> to vector<8x8x128xf32>
    %82 = arith.mulf %81, %79 : vector<8x8x128xf32>
    %cst_39 = arith.constant dense<0.000000e+00> : vector<8x128xf32>
    %83 = vector.multi_reduction <add>, %82, %cst_39 [1] : vector<8x8x128xf32> to vector<8x128xf32>
    %84 = arith.addf %77, %83 : vector<8x128xf32>
    %c0_40 = arith.constant 0 : index
    %c0_41 = arith.constant 0 : index
    %85 = vector.load %arg8[%c0_40, %c0_41] : memref<128x128xbf16, #tpu.memory_space<vmem>>, vector<128x128xbf16>
    %c0_42 = arith.constant 0 : index
    %c0_43 = arith.constant 0 : index
    %86 = vector.load %arg11[%c0_42, %c0_43] : memref<1x128xf32, #tpu.memory_space<vmem>>, vector<1x128xf32>
    %87 = arith.truncf %47 : vector<8x128xf32> to vector<8x128xbf16>
    %cst_44 = arith.constant dense<0.000000e+00> : vector<8x128xf32>
    %88 = tpu.matmul %87, %85, %cst_44 {dimension_numbers = #tpu.dot_dimension_numbers<[1], [0], [0], [1], [0, 0, 1, 1], [], []>} : vector<8x128xbf16>, vector<128x128xbf16>, vector<8x128xf32> -> vector<8x128xf32>
    %89 = arith.addf %4, %88 : vector<8x128xf32>
    %90 = math.tanh %89 : vector<8x128xf32>
    %91 = arith.truncf %84 : vector<8x128xf32> to vector<8x128xbf16>
    %cst_45 = arith.constant dense<0.000000e+00> : vector<8x128xf32>
    %92 = tpu.matmul %91, %85, %cst_45 {dimension_numbers = #tpu.dot_dimension_numbers<[1], [0], [0], [1], [0, 0, 1, 1], [], []>} : vector<8x128xbf16>, vector<128x128xbf16>, vector<8x128xf32> -> vector<8x128xf32>
    %93 = arith.addf %4, %92 : vector<8x128xf32>
    %94 = math.tanh %93 : vector<8x128xf32>
    %95 = vector.broadcast %86 : vector<1x128xf32> to vector<8x128xf32>
    %96 = arith.mulf %90, %95 : vector<8x128xf32>
    %cst_46 = arith.constant dense<0.000000e+00> : vector<8xf32>
    %97 = vector.multi_reduction <add>, %96, %cst_46 [1] : vector<8x128xf32> to vector<8xf32>
    %98 = vector.shape_cast %97 : vector<8xf32> to vector<8x1xf32>
    %c2 = arith.constant 2 : index
    %99 = memref.load %arg12[%c2] : memref<3xf32, #tpu.memory_space<smem>>
    %100 = vector.broadcast %99 : f32 to vector<8x1xf32>
    %101 = arith.addf %98, %100 : vector<8x1xf32>
    %102 = vector.broadcast %86 : vector<1x128xf32> to vector<8x128xf32>
    %103 = arith.mulf %94, %102 : vector<8x128xf32>
    %cst_47 = arith.constant dense<0.000000e+00> : vector<8xf32>
    %104 = vector.multi_reduction <add>, %103, %cst_47 [1] : vector<8x128xf32> to vector<8xf32>
    %105 = vector.shape_cast %104 : vector<8xf32> to vector<8x1xf32>
    %c2_48 = arith.constant 2 : index
    %106 = memref.load %arg12[%c2_48] : memref<3xf32, #tpu.memory_space<smem>>
    %107 = vector.broadcast %106 : f32 to vector<8x1xf32>
    %108 = arith.addf %105, %107 : vector<8x1xf32>
    %109 = arith.maximumf %101, %108 : vector<8x1xf32>
    %110 = arith.subf %101, %109 : vector<8x1xf32>
    %111 = math.exp %110 : vector<8x1xf32>
    %112 = arith.subf %108, %109 : vector<8x1xf32>
    %113 = math.exp %112 : vector<8x1xf32>
    %114 = arith.addf %111, %113 : vector<8x1xf32>
    %115 = tpu.reciprocal %114 {approx = true} : vector<8x1xf32> -> vector<8x1xf32>
    %116 = arith.mulf %111, %115 : vector<8x1xf32>
    %117 = arith.mulf %113, %115 : vector<8x1xf32>
    %118 = vector.broadcast %116 : vector<8x1xf32> to vector<8x128xf32>
    %119 = arith.mulf %118, %47 : vector<8x128xf32>
    %120 = vector.broadcast %117 : vector<8x1xf32> to vector<8x128xf32>
    %121 = arith.mulf %120, %84 : vector<8x128xf32>
    %122 = arith.addf %119, %121 : vector<8x128xf32>
    %c0_49 = arith.constant 0 : index
    %c0_50 = arith.constant 0 : index
    %123 = vector.load %arg13[%c0_49, %c0_50] : memref<256x512xbf16, #tpu.memory_space<vmem>>, vector<256x512xbf16>
    %cst_51 = arith.constant dense<0.000000e+00> : vector<8x512xf32>
    %124 = tpu.matmul %0, %123, %cst_51 {dimension_numbers = #tpu.dot_dimension_numbers<[1], [0], [0], [1], [0, 0, 1, 1], [], []>} : vector<8x256xbf16>, vector<256x512xbf16>, vector<8x512xf32> -> vector<8x512xf32>
    %125 = arith.truncf %122 : vector<8x128xf32> to vector<8x128xbf16>
    %c0_52 = arith.constant 0 : index
    %c0_53 = arith.constant 0 : index
    %126 = vector.load %arg14[%c0_52, %c0_53] : memref<128x512xbf16, #tpu.memory_space<vmem>>, vector<128x512xbf16>
    %cst_54 = arith.constant dense<0.000000e+00> : vector<8x512xf32>
    %127 = tpu.matmul %125, %126, %cst_54 {dimension_numbers = #tpu.dot_dimension_numbers<[1], [0], [0], [1], [0, 0, 1, 1], [], []>} : vector<8x128xbf16>, vector<128x512xbf16>, vector<8x512xf32> -> vector<8x512xf32>
    %128 = arith.addf %124, %127 : vector<8x512xf32>
    %c0_55 = arith.constant 0 : index
    %c0_56 = arith.constant 0 : index
    %129 = vector.load %arg15[%c0_55, %c0_56] : memref<1x512xf32, #tpu.memory_space<vmem>>, vector<1x512xf32>
    %130 = vector.broadcast %129 : vector<1x512xf32> to vector<8x512xf32>
    %131 = arith.addf %128, %130 : vector<8x512xf32>
    %132 = vector.extract_strided_slice %131 {offsets = [0, 0], sizes = [8, 128], strides = [1, 1]} : vector<8x512xf32> to vector<8x128xf32>
    %133 = arith.negf %132 : vector<8x128xf32>
    %134 = math.exp %133 : vector<8x128xf32>
    %cst_57 = arith.constant 1.000000e+00 : f32
    %135 = vector.broadcast %cst_57 : f32 to vector<8x128xf32>
    %136 = arith.addf %135, %134 : vector<8x128xf32>
    %137 = arith.divf %135, %136 : vector<8x128xf32>
    %138 = vector.extract_strided_slice %131 {offsets = [0, 128], sizes = [8, 128], strides = [1, 1]} : vector<8x512xf32> to vector<8x128xf32>
    %139 = arith.negf %138 : vector<8x128xf32>
    %140 = math.exp %139 : vector<8x128xf32>
    %cst_58 = arith.constant 1.000000e+00 : f32
    %141 = vector.broadcast %cst_58 : f32 to vector<8x128xf32>
    %142 = arith.addf %141, %140 : vector<8x128xf32>
    %143 = arith.divf %141, %142 : vector<8x128xf32>
    %144 = vector.extract_strided_slice %131 {offsets = [0, 256], sizes = [8, 128], strides = [1, 1]} : vector<8x512xf32> to vector<8x128xf32>
    %145 = math.tanh %144 : vector<8x128xf32>
    %146 = vector.extract_strided_slice %131 {offsets = [0, 384], sizes = [8, 128], strides = [1, 1]} : vector<8x512xf32> to vector<8x128xf32>
    %147 = arith.negf %146 : vector<8x128xf32>
    %148 = math.exp %147 : vector<8x128xf32>
    %cst_59 = arith.constant 1.000000e+00 : f32
    %149 = vector.broadcast %cst_59 : f32 to vector<8x128xf32>
    %150 = arith.addf %149, %148 : vector<8x128xf32>
    %151 = arith.divf %149, %150 : vector<8x128xf32>
    %152 = arith.mulf %143, %2 : vector<8x128xf32>
    %153 = arith.mulf %137, %145 : vector<8x128xf32>
    %154 = arith.addf %152, %153 : vector<8x128xf32>
    %155 = math.tanh %154 : vector<8x128xf32>
    %156 = arith.mulf %151, %155 : vector<8x128xf32>
    %157 = arith.truncf %156 : vector<8x128xf32> to vector<8x128xbf16>
    %c0_60 = arith.constant 0 : index
    %c0_61 = arith.constant 0 : index
    %158 = vector.load %arg16[%c0_60, %c0_61] : memref<128x128xbf16, #tpu.memory_space<vmem>>, vector<128x128xbf16>
    %cst_62 = arith.constant dense<0.000000e+00> : vector<8x128xf32>
    %159 = tpu.matmul %157, %158, %cst_62 {dimension_numbers = #tpu.dot_dimension_numbers<[1], [0], [0], [1], [0, 0, 1, 1], [], []>} : vector<8x128xbf16>, vector<128x128xbf16>, vector<8x128xf32> -> vector<8x128xf32>
    %c0_63 = arith.constant 0 : index
    %c0_64 = arith.constant 0 : index
    %160 = vector.load %arg17[%c0_63, %c0_64] : memref<1x128xf32, #tpu.memory_space<vmem>>, vector<1x128xf32>
    %161 = vector.broadcast %160 : vector<1x128xf32> to vector<8x128xf32>
    %162 = arith.addf %159, %161 : vector<8x128xf32>
    %cst_65 = arith.constant dense<0xFF800000> : vector<8xf32>
    %163 = vector.multi_reduction <maximumf>, %162, %cst_65 [1] : vector<8x128xf32> to vector<8xf32>
    %164 = vector.shape_cast %163 : vector<8xf32> to vector<8x1xf32>
    %165 = vector.broadcast %164 : vector<8x1xf32> to vector<8x128xf32>
    %166 = arith.subf %162, %165 : vector<8x128xf32>
    %167 = math.exp %166 : vector<8x128xf32>
    %cst_66 = arith.constant dense<0.000000e+00> : vector<8xf32>
    %168 = vector.multi_reduction <add>, %167, %cst_66 [1] : vector<8x128xf32> to vector<8xf32>
    %169 = vector.shape_cast %168 : vector<8xf32> to vector<8x1xf32>
    %170 = math.log %169 : vector<8x1xf32>
    %171 = vector.broadcast %170 : vector<8x1xf32> to vector<8x128xf32>
    %172 = arith.subf %166, %171 : vector<8x128xf32>
    %c0_67 = arith.constant 0 : index
    %c0_68 = arith.constant 0 : index
    %173 = vector.load %arg18[%c0_67, %c0_68] : memref<8x128xf32, #tpu.memory_space<vmem>>, vector<8x128xf32>
    tpu.vector_store %arg18[%c0_67, %c0_68], %172 {strides = array<i32>} : memref<8x128xf32, #tpu.memory_space<vmem>>, vector<8x128xf32>,
    %c0_69 = arith.constant 0 : index
    %c0_70 = arith.constant 0 : index
    %174 = vector.load %arg19[%c0_69, %c0_70] : memref<8x128xf32, #tpu.memory_space<vmem>>, vector<8x128xf32>
    tpu.vector_store %arg19[%c0_69, %c0_70], %156 {strides = array<i32>} : memref<8x128xf32, #tpu.memory_space<vmem>>, vector<8x128xf32>,
    %c0_71 = arith.constant 0 : index
    %c0_72 = arith.constant 0 : index
    %175 = vector.load %arg20[%c0_71, %c0_72] : memref<8x128xf32, #tpu.memory_space<vmem>>, vector<8x128xf32>
    tpu.vector_store %arg20[%c0_71, %c0_72], %154 {strides = array<i32>} : memref<8x128xf32, #tpu.memory_space<vmem>>, vector<8x128xf32>,
    %176 = tpu.concatenate %116, %117, %39, %76 in 1 : vector<8x1xf32>, vector<8x1xf32>, vector<8x8xf32>, vector<8x8xf32> -> vector<8x18xf32>
    %c0_73 = arith.constant 0 : index
    %c0_74 = arith.constant 0 : index
    %177 = vector.load %arg21[%c0_73, %c0_74] : memref<8x18xf32, #tpu.memory_space<vmem>>, vector<8x18xf32>
    tpu.vector_store %arg21[%c0_73, %c0_74], %176 {strides = array<i32>} : memref<8x18xf32, #tpu.memory_space<vmem>>, vector<8x18xf32>,
    return
  }
  func.func @transform_0(%arg0: i32) -> (i32, i32) {
    %c0_i32 = arith.constant 0 : i32
    %c0_i32_0 = arith.constant 0 : i32
    return %arg0, %c0_i32 : i32, i32
  }
  func.func @transform_1(%arg0: i32) -> (i32, i32) {
    %c0_i32 = arith.constant 0 : i32
    %c0_i32_0 = arith.constant 0 : i32
    return %arg0, %c0_i32 : i32, i32
  }
  func.func @transform_2(%arg0: i32) -> (i32, i32, i32) {
    %c0_i32 = arith.constant 0 : i32
    %c0_i32_0 = arith.constant 0 : i32
    %c0_i32_1 = arith.constant 0 : i32
    return %arg0, %c0_i32, %c0_i32_0 : i32, i32, i32
  }
  func.func @transform_3(%arg0: i32) -> (i32, i32, i32) {
    %c0_i32 = arith.constant 0 : i32
    %c0_i32_0 = arith.constant 0 : i32
    %c0_i32_1 = arith.constant 0 : i32
    return %arg0, %c0_i32, %c0_i32_0 : i32, i32, i32
  }
  func.func @transform_4(%arg0: i32) -> (i32, i32) {
    %c0_i32 = arith.constant 0 : i32
    %c0_i32_0 = arith.constant 0 : i32
    %c0_i32_1 = arith.constant 0 : i32
    return %c0_i32, %c0_i32_0 : i32, i32
  }
  func.func @transform_5(%arg0: i32) -> (i32, i32) {
    %c0_i32 = arith.constant 0 : i32
    %c0_i32_0 = arith.constant 0 : i32
    %c0_i32_1 = arith.constant 0 : i32
    return %c0_i32, %c0_i32_0 : i32, i32
  }
  func.func @transform_6(%arg0: i32) -> (i32, i32) {
    %c0_i32 = arith.constant 0 : i32
    %c0_i32_0 = arith.constant 0 : i32
    %c0_i32_1 = arith.constant 0 : i32
    return %c0_i32, %c0_i32_0 : i32, i32
  }
  func.func @transform_7(%arg0: i32) -> (i32, i32) {
    %c0_i32 = arith.constant 0 : i32
    %c0_i32_0 = arith.constant 0 : i32
    %c0_i32_1 = arith.constant 0 : i32
    return %c0_i32, %c0_i32_0 : i32, i32
  }
  func.func @transform_8(%arg0: i32) -> (i32, i32) {
    %c0_i32 = arith.constant 0 : i32
    %c0_i32_0 = arith.constant 0 : i32
    %c0_i32_1 = arith.constant 0 : i32
    return %c0_i32, %c0_i32_0 : i32, i32
  }
  func.func @transform_9(%arg0: i32) -> (i32, i32) {
    %c0_i32 = arith.constant 0 : i32
    %c0_i32_0 = arith.constant 0 : i32
    %c0_i32_1 = arith.constant 0 : i32
    return %c0_i32, %c0_i32_0 : i32, i32
  }
  func.func @transform_10(%arg0: i32) -> (i32, i32) {
    %c0_i32 = arith.constant 0 : i32
    %c0_i32_0 = arith.constant 0 : i32
    %c0_i32_1 = arith.constant 0 : i32
    return %c0_i32, %c0_i32_0 : i32, i32
  }
  func.func @transform_11(%arg0: i32) -> i32 {
    %c0_i32 = arith.constant 0 : i32
    %c0_i32_0 = arith.constant 0 : i32
    return %c0_i32 : i32
  }
  func.func @transform_12(%arg0: i32) -> (i32, i32) {
    %c0_i32 = arith.constant 0 : i32
    %c0_i32_0 = arith.constant 0 : i32
    %c0_i32_1 = arith.constant 0 : i32
    return %c0_i32, %c0_i32_0 : i32, i32
  }
  func.func @transform_13(%arg0: i32) -> (i32, i32) {
    %c0_i32 = arith.constant 0 : i32
    %c0_i32_0 = arith.constant 0 : i32
    %c0_i32_1 = arith.constant 0 : i32
    return %c0_i32, %c0_i32_0 : i32, i32
  }
  func.func @transform_14(%arg0: i32) -> (i32, i32) {
    %c0_i32 = arith.constant 0 : i32
    %c0_i32_0 = arith.constant 0 : i32
    %c0_i32_1 = arith.constant 0 : i32
    return %c0_i32, %c0_i32_0 : i32, i32
  }
  func.func @transform_15(%arg0: i32) -> (i32, i32) {
    %c0_i32 = arith.constant 0 : i32
    %c0_i32_0 = arith.constant 0 : i32
    %c0_i32_1 = arith.constant 0 : i32
    return %c0_i32, %c0_i32_0 : i32, i32
  }
  func.func @transform_16(%arg0: i32) -> (i32, i32) {
    %c0_i32 = arith.constant 0 : i32
    %c0_i32_0 = arith.constant 0 : i32
    %c0_i32_1 = arith.constant 0 : i32
    return %c0_i32, %c0_i32_0 : i32, i32
  }
  func.func @transform_17(%arg0: i32) -> (i32, i32) {
    %c0_i32 = arith.constant 0 : i32
    %c0_i32_0 = arith.constant 0 : i32
    return %arg0, %c0_i32 : i32, i32
  }
  func.func @transform_18(%arg0: i32) -> (i32, i32) {
    %c0_i32 = arith.constant 0 : i32
    %c0_i32_0 = arith.constant 0 : i32
    return %arg0, %c0_i32 : i32, i32
  }
  func.func @transform_19(%arg0: i32) -> (i32, i32) {
    %c0_i32 = arith.constant 0 : i32
    %c0_i32_0 = arith.constant 0 : i32
    return %arg0, %c0_i32 : i32, i32
  }
  func.func @transform_20(%arg0: i32) -> (i32, i32) {
    %c0_i32 = arith.constant 0 : i32
    %c0_i32_0 = arith.constant 0 : i32
    return %arg0, %c0_i32 : i32, i32
  }
}

</mosaic_0001>

<bundles_post_ra>
// kernel: tpu_custom_call.1
= control target key start
LH: loop header
LB: loop body
LE: loop exit
PB: predicated region body
PF: predicated region fallthrough
CT: control target
= control target key end

     0   :  { %s6617_s0 = inlined_call_operand.hbm [shape: bf16[16,256], index: 0, kind: input, shape index: {}]   ;;  %s6618_s1 = inlined_call_operand.hbm [shape: f32[16,128], index: 1, kind: input, shape index: {}]   ;;  %s6619_s2 = inlined_call_operand.hbm [shape: bf16[16,8,128], index: 2, kind: input, shape index: {}]   ;;  %s6620_s3 = inlined_call_operand.hbm [shape: bf16[16,8,128], index: 3, kind: input, shape index: {}]   ;;  %s6621_s4 = inlined_call_operand.hbm [shape: bf16[128,128], index: 4, kind: input, shape index: {}]   ;;  %s6622_s5 = inlined_call_operand.hbm [shape: bf16[128,128], index: 5, kind: input, shape index: {}]   ;;  %s6623_s6 = inlined_call_operand.hbm [shape: bf16[128,128], index: 6, kind: input, shape index: {}]   ;;  %s6624_s7 = inlined_call_operand.hbm [shape: bf16[128,128], index: 7, kind: input, shape index: {}]   ;;  %s6625_s8 = inlined_call_operand.vmem [shape: f32[1,128], index: 8, kind: input, shape index: {}]   ;;  %s6626_s9 = inlined_call_operand.vmem [shape: f32[1,128], index: 9, kind: input, shape index: {}]   ;;  %s6627_s10 = inlined_call_operand.vmem [shape: f32[1,128], index: 10, kind: input, shape index: {}]   ;;  %s6628_s11 = inlined_call_operand.vmem [shape: f32[3], index: 11, kind: input, shape index: {}]   ;;  %s6629_s12 = inlined_call_operand.hbm [shape: bf16[256,512], index: 12, kind: input, shape index: {}]   ;;  %s6630_s13 = inlined_call_operand.hbm [shape: bf16[128,512], index: 13, kind: input, shape index: {}]   ;;  %s6631_s14 = inlined_call_operand.vmem [shape: f32[1,512], index: 14, kind: input, shape index: {}]   ;;  %s6632_s15 = inlined_call_operand.hbm [shape: bf16[128,128], index: 15, kind: input, shape index: {}]   ;;  %s6633_s16 = inlined_call_operand.vmem [shape: f32[1,128], index: 16, kind: input, shape index: {}]   ;;  %s6634_s17 = inlined_call_operand.hbm [shape: f32[16,128], index: 17, kind: output, shape index: {0}]   ;;  %s6635_s18 = inlined_call_operand.hbm [shape: f32[16,128], index: 18, kind: output, shape index: {1}]   ;;  %s6636_s19 = inlined_call_operand.hbm [shape: f32[16,128], index: 19, kind: output, shape index: {2}]   ;;  %s6637_s20 = inlined_call_operand.hbm [shape: f32[16,18], index: 20, kind: output, shape index: {3}]  }
   0x1   :  { %6678 = sst [smem:[#allocation46_spill]] %s6617_s0 }
   0x2   :  { %6679 = sst [smem:[#allocation47_spill]] %s6618_s1 }
   0x3   :  { %6680 = sst [smem:[#allocation48_spill]] %s6619_s2 }
   0x4   :  { %6681 = sst [smem:[#allocation49_spill]] %s6620_s3 }
   0x5   :  { %6682 = sst [smem:[#allocation50_spill]] %s6621_s4 }
   0x6   :  { %6683 = sst [smem:[#allocation51_spill]] %s6622_s5 }
   0x7   :  { %6684 = sst [smem:[#allocation52_spill]] %s6623_s6 }
   0x8   :  { %6685 = sst [smem:[#allocation53_spill]] %s6624_s7 }
   0x9   :  { %6686 = sst [smem:[#allocation54_spill]] %s6626_s9 }
   0xa   :  { %6687 = sst [smem:[#allocation55_spill]] %s6627_s10 }
   0xb   :  { %6688 = sst [smem:[#allocation56_spill]] %s6628_s11 }
   0xc   :  { %6689 = sst [smem:[#allocation57_spill]] %s6630_s13 }
   0xd   :  { %6690 = sst [smem:[#allocation58_spill]] %s6631_s14 }
   0xe   :  { %6691 = sst [smem:[#allocation59_spill]] %s6633_s16 }
   0xf   :  { %6692 = sst [smem:[#allocation60_spill]] %s6634_s17 }
  0x10   :  { %6693 = sst [smem:[#allocation61_spill]] %s6635_s18 }
  0x11   :  { %6694 = sst [smem:[#allocation62_spill]] %s6636_s19 }
  0x12   :  { %6695 = sst [smem:[#allocation63_spill]] %s6637_s20 }
  0x13   :  { %26 = vsyncpa [#allocation3], 0 }
  0x14   :  { %28 = vsyncpa [#allocation3 + $0x1], 0 }
  0x15   :  { %29 = vsyncpa [#allocation7], 0 }
  0x16   :  { %31 = vsyncpa [#allocation7 + $0x1], 0 }
  0x17   :  { %32 = vsyncpa [#allocation10], 0 }
  0x18   :  { %34 = vsyncpa [#allocation10 + $0x1], 0 }
  0x19   :  { %35 = vsyncpa [#allocation13], 0 }
  0x1a   :  { %36 = vsyncpa [#allocation16], 0 }
  0x1b   :  { %37 = vsyncpa [#allocation5], 0 }
  0x1c   :  { %38 = vsyncpa [#allocation20], 0 }
  0x1d   :  { %39 = vsyncpa [#allocation4], 0 }
  0x1e   :  { %41 = vsyncpa [#allocation4 + $0x1], 0 }
  0x1f   :  { %42 = vsyncpa [#allocation24], 0 }
  0x20   :  { %44 = vsyncpa [#allocation24 + $0x1], 0 }
  0x21   :  { %45 = vsyncpa [#allocation27], 0 }
  0x22   :  { %47 = vsyncpa [#allocation27 + $0x1], 0  ;;  %s5515_s1 = smov 0   ;;  %s5517_s22 = smov 0  }
  0x23   :  { %s5519_s23 = smov 0   ;;  %s5521_s24 = smov 0  }
  0x24 LB: > { %6696 = sst [smem:[#allocation40_spill]] %s5371_s1  ;;  %s5385_s2 = smov [#allocation11]   ;;  %s5383_s24 = sphi %s5521_s24, %s6763_s24   ;;  %s5379_s23 = sphi %s5519_s23, %s6765_s23   ;;  %s5375_s22 = sphi %s5517_s22, %s6767_s22   ;;  %s5371_s1 = sphi %s5515_s1, %s6766_s1  }
  0x25   : > { %6697 = sst [smem:[#allocation41_spill]] %s5379_s23  ;;  %s551_s25 = sshll.u32 %s5385_s2, 4  ;;  %s5541_s25 = int_to_ptr.vmem [resolvable:$true] %s551_s25 }
  0x26   : > { %s5536_s3 = sadd.s32 4294967295, %s5383_s24   ;;  %p3991_p0 = scmp.ge.s32.totalorder %s5383_s24, 1 }
  0x27   : > { %p6647_p1 = scmp.eq.s32.totalorder %s5536_s3, 0  ;;  %p539_p2 = scmp.lt.s32.totalorder %s5383_s24, 3 }
  0x28   : > { %s5386_s27 = smov [#allocation12]   ;;  %s5387_s29 = smov [#allocation15]  }
  0x29   : > { %p5543_p3 = pnand %p3991_p0, %p539_p2  ;;  %s564_s28 = sshll.u32 %s5386_s27, 4  ;;  %s5556_s28 = int_to_ptr.vmem [resolvable:$true] %s564_s28 }
  0x2a   : > { %s590_s30 = sshll.u32 %s5387_s29, 4  ;;  %s6700_s2 = sld [smem:[#allocation50_spill]]  ;;  %s5558_s30 = int_to_ptr.vmem [resolvable:$true] %s590_s30 }
  0x2b   : > { %s6698_s26 = scalar_select %p5543_p3, 1, 0 }
  0x2c   : > { %p4433_p5 = pneg %p5543_p3 }
  0x2e   : > { %p5552_p6 = pnand %p4433_p5, %p6647_p1 }
  0x30   : > { %s6699_s4 = scalar_select %p5552_p6, 1, 0 }
  0x31   : > { %s4862_s17 = scalar_lea.hbm %s6700_s2, 1024  ;;  %p5568_p8 = pneg %p5552_p6 }
  0x32   : > { %p4863_p7 = scmp.ne.s32.totalorder %s6700_s2, %s4862_s17  ;;  %p4869_p11 = scmp.lt.u32.totalorder %s4862_s17, %s6700_s2 }
  0x33   : > { %s6701_s27 = scalar_select %p5568_p8, 1, 0 }
  0x34   : > { %p4865_p9 = pnand %p5568_p8, %p4863_p7 }
  0x36   : > { %p4866_p10 = pneg %p4865_p9 }
  0x38   : > { %p4871_p12 = pnand %p4869_p11, %p4866_p10 }
  0x3a   : > { %4874 = shalt.err (!%p4871_p12)
}
  0x3b   : > { %s4875_s19 = scalar_lea.vmem %s5541_s25, 1024  ;;  %p4883_p5 = scmp.lt.s32.totalorder %s5541_s25, %s5541_s25 }
  0x3c   : > { %p4876_p13 = scmp.ne.s32.totalorder %s5541_s25, %s4875_s19  ;;  %p4884_p4 = scmp.lt.s32.totalorder %s4875_s19, %s4875_s19 }
  0x3e   : > { %p4878_p0 = pnand %p4876_p13, %p5568_p8  ;;  %p4885_p7 = por %p4884_p4, %p4883_p5 }
  0x40   : > { %p4879_p2 = pneg %p4878_p0 }
  0x42   : > { %p4886_p9 = pnand %p4885_p7, %p4879_p2 }
  0x44   : > { %4889 = shalt.err (!%p4886_p9)
}
  0x45   : > { %s6652_s20 = smov 64   ;;  %s6654_s17 = smov 4  }
  0x46   : > { %4436 = dma.hbm_to_vmem [thread:$0]  (!%p5552_p6), %s6700_s2, 1024, %s5541_s25, [#allocation10], %s6652_s20, %s6652_s20, %s6654_s17  }
  0x47   : > { %s6702_s5 = sld [smem:[#allocation51_spill]] }
  0x4d   : > { %s4890_s19 = scalar_lea.hbm %s6702_s5, 1024 }
  0x4e   : > { %p4891_p4 = scmp.ne.s32.totalorder %s6702_s5, %s4890_s19  ;;  %p4897_p12 = scmp.lt.u32.totalorder %s4890_s19, %s6702_s5 }
  0x50   : > { %p4893_p10 = pnand %p4891_p4, %p5568_p8 }
  0x52   : > { %p4894_p11 = pneg %p4893_p10 }
  0x54   : > { %p4899_p13 = pnand %p4897_p12, %p4894_p11 }
  0x56   : > { %4902 = shalt.err (!%p4899_p13)
}
  0x57   : > { %s4903_s25 = scalar_lea.vmem %s5556_s28, 1024  ;;  %p4911_p7 = scmp.lt.s32.totalorder %s5556_s28, %s5556_s28 }
  0x58   : > { %p4904_p0 = scmp.ne.s32.totalorder %s5556_s28, %s4903_s25  ;;  %p4912_p9 = scmp.lt.s32.totalorder %s4903_s25, %s4903_s25 }
  0x5a   : > { %p4906_p2 = pnand %p4904_p0, %p5568_p8  ;;  %p4913_p4 = por %p4912_p9, %p4911_p7 }
  0x5c   : > { %p4907_p5 = pneg %p4906_p2 }
  0x5e   : > { %p4914_p10 = pnand %p4913_p4, %p4907_p5 }
  0x60   : > { %4917 = shalt.err (!%p4914_p10)
}
  0x61   : > { %4439 = dma.hbm_to_vmem [thread:$0]  (!%p5552_p6), %s6702_s5, 1024, %s5556_s28, [#allocation13], %s6652_s20, %s6652_s20, %s6654_s17  }
  0x62   : > { %s6703_s7 = sld [smem:[#allocation53_spill]] }
  0x68   : > { %s4918_s18 = scalar_lea.hbm %s6703_s7, 1024 }
  0x69   : > { %p4919_p11 = scmp.ne.s32.totalorder %s6703_s7, %s4918_s18  ;;  %p4925_p0 = scmp.lt.u32.totalorder %s4918_s18, %s6703_s7 }
  0x6b   : > { %p4921_p12 = pnand %p4919_p11, %p5568_p8 }
  0x6d   : > { %p4922_p13 = pneg %p4921_p12 }
  0x6f   : > { %p4927_p2 = pnand %p4925_p0, %p4922_p13 }
  0x71   : > { %4930 = shalt.err (!%p4927_p2)
}
  0x72   : > { %s4931_s28 = scalar_lea.vmem %s5558_s30, 1024  ;;  %p4939_p4 = scmp.lt.s32.totalorder %s5558_s30, %s5558_s30 }
  0x73   : > { %p4932_p5 = scmp.ne.s32.totalorder %s5558_s30, %s4931_s28  ;;  %p4940_p10 = scmp.lt.s32.totalorder %s4931_s28, %s4931_s28 }
  0x75   : > { %p4934_p7 = pnand %p4932_p5, %p5568_p8  ;;  %p4941_p11 = por %p4940_p10, %p4939_p4 }
  0x77   : > { %p4935_p9 = pneg %p4934_p7 }
  0x79   : > { %p4942_p12 = pnand %p4941_p11, %p4935_p9 }
  0x7b   : > { %4945 = shalt.err (!%p4942_p12)
}
  0x7c   : > { %4445 = dma.hbm_to_vmem [thread:$0]  (!%p5552_p6), %s6703_s7, 1024, %s5558_s30, [#allocation16], %s6652_s20, %s6652_s20, %s6654_s17  }
  0x7d   : > { %s5390_s10 = smov [#allocation19]   ;;  %s6704_s13 = sld [smem:[#allocation57_spill]] }
  0x7e   : > { %s636_s14 = sshll.u32 %s5390_s10, 4  ;;  %s637_s14 = int_to_ptr.vmem [resolvable:$true] %s636_s14 }
  0x83   : > { %s4946_s0 = scalar_lea.hbm %s6704_s13, 4096 }
  0x84   : > { %p4947_p13 = scmp.ne.s32.totalorder %s6704_s13, %s4946_s0  ;;  %p4953_p5 = scmp.lt.u32.totalorder %s4946_s0, %s6704_s13 }
  0x86   : > { %p4949_p0 = pnand %p4947_p13, %p5568_p8 }
  0x88   : > { %p4950_p2 = pneg %p4949_p0 }
  0x8a   : > { %p4955_p7 = pnand %p4953_p5, %p4950_p2 }
  0x8c   : > { %4958 = shalt.err (!%p4955_p7)
}
  0x8d   : > { %s4959_s30 = scalar_lea.vmem %s637_s14, 4096  ;;  %p4967_p11 = scmp.lt.s32.totalorder %s637_s14, %s637_s14 }
  0x8e   : > { %p4960_p9 = scmp.ne.s32.totalorder %s637_s14, %s4959_s30  ;;  %p4968_p12 = scmp.lt.s32.totalorder %s4959_s30, %s4959_s30 }
  0x90   : > { %p4962_p4 = pnand %p4960_p9, %p5568_p8  ;;  %p4969_p1 = por %p4968_p12, %p4967_p11 }
  0x92   : > { %p4963_p10 = pneg %p4962_p4 }
  0x94   : > { %p4970_p3 = pnand %p4969_p1, %p4963_p10 }
  0x96   : > { %4973 = shalt.err (!%p4970_p3)
}
  0x97   : > { %s6650_s25 = smov 256   ;;  %s6651_s9 = smov 16  }
  0x98   : > { %4454 = dma.hbm_to_vmem [thread:$0]  (!%p5552_p6), %s6704_s13, 4096, %s637_s14, [#allocation20], %s6650_s25, %s6650_s25, %s6651_s9  }
  0x99   : > { %s6649_s18 = sadd.s32 4294967294, %s5383_s24   ;;  %s5667_s0 = sadd.s32 1, %s5383_s24  }
  0x9a   : > { %6705 = sst [smem:[#allocation42_spill]] %s5667_s0  ;;  %s57_s21 = ssub.s32 %s5383_s24, %s5667_s0 }
  0x9b   : > { %s60_s29 = sadd.s32 1, %s5379_s23  ;;  %p58_p1 = scmp.eq.s32.totalorder %s57_s21, 0 }
  0x9c   : > { %p67_p3 = scmp.ne.s32.totalorder %s5379_s23, %s5375_s22  ;;  %p68_p13 = scmp.eq.s32.totalorder %s5383_s24, 0 }
  0x9d   : > { %p73_p0 = scmp.ne.s32.totalorder %s5375_s22, %s5371_s1  ;;  %p6707_p5 = scmp.eq.s32.totalorder %s5536_s3, 0 }
  0x9e   : > { %s5678_s19 = scalar_select %p58_p1, %s5379_s23, %s60_s29  }
  0x9f   : > { %p69_p2 = por %p68_p13, %p67_p3  ;;  %p5682_p7 = por %p6707_p5, %p73_p0 }
  0xa0   : > { %6706 = sst [smem:[#allocation43_spill]] %s5678_s19  ;;  %p448_p9 = scmp.eq.s32.totalorder %s5536_s3, 1 }
  0xa1   : > { %s6708_s28 = scalar_select %p5682_p7, 1, 0 }
  0xa2   : > { %p454_p4 = scmp.eq.s32.totalorder %s6649_s18, 1  ;;  %p4492_p10 = scmp.lt.s32.totalorder %s5383_s24, 2 }
  0xa3   : > { %s5691_s14 = sand.u32 1, %s5379_s23   ;;  %p5693_p11 = por %p448_p9, %p67_p3 }
  0xa4   : > { %p5697_p12 = por %p454_p4, %p73_p0  ;;  %s6657_s16 = sshll.u32 %s5691_s14, 3 }
  0xa5   : > { %s6709_s30 = scalar_select %p5693_p11, 1, 0 }
  0xa6   : > { %s6711_s10 = scalar_select %p5697_p12, 1, 0 }
  0xa7   : > { %6710 = sst [smem:[#allocation44_spill]] %s6709_s30  ;;  %s6658_s21 = sshll.u32 %s5383_s24, 7 }
  0xa8   : > { %6712 = sst [smem:[#allocation45_spill]] %s6711_s10  ;;  %p5703_p1 = pnand %p4492_p10, %p69_p2 }
  0xa9   : > { %s6660_s18 = sand.u32 1, %s5383_s24   ;;  %s6714_s20 = sld [smem:[#allocation47_spill]] }
  0xaa   : > { %s6713_s29 = scalar_select %p5703_p1, 1, 0 }
  0xab   : > { %s692_s2 = scalar_lea.vmem [#allocation6], %s6657_s16  ;;  %s5722_s13 = scalar_lea.sflag [#allocation7], %s6660_s18 }
  0xac   : > { %s699_s5 = sshll.u32 %s692_s2, 4  ;;  %p5728_p13 = pneg %p5703_p1  ;;  %s5718_s5 = int_to_ptr.vmem [resolvable:$true] %s699_s5 }
  0xae   : > { %s6715_s25 = scalar_select %p5728_p13, 1, 0 }
  0xaf   : > { %s5713_s17 = scalar_lea.hbm %s6714_s20, %s6658_s21  ;;  %s4979_s2 = scalar_lea.hbm %s6714_s20, 256 }
  0xb0   : > { %s4974_s19 = scalar_lea.hbm %s5713_s17, 128  ;;  %p4980_p5 = scmp.lt.u32.totalorder %s5713_s17, %s6714_s20 }
  0xb1   : > { %p4975_p3 = scmp.ne.s32.totalorder %s5713_s17, %s4974_s19  ;;  %p4981_p9 = scmp.lt.u32.totalorder %s4979_s2, %s4974_s19 }
  0xb2   : > { %p4983_p10 = scmp.lt.u32.totalorder %s4974_s19, %s5713_s17 }
  0xb3   : > { %p4977_p0 = pnand %p5728_p13, %p4975_p3  ;;  %p4982_p4 = por %p4981_p9, %p4980_p5 }
  0xb5   : > { %p4978_p2 = pneg %p4977_p0  ;;  %p4984_p12 = por %p4983_p10, %p4982_p4 }
  0xb7   : > { %p4985_p11 = pnand %p4984_p12, %p4978_p2 }
  0xb9   : > { %4988 = shalt.err (!%p4985_p11)
}
  0xba   : > { %s4989_s18 = scalar_lea.vmem %s5718_s5, 128  ;;  %s5393_s16 = smov [#allocation6]  }
  0xbb   : > { %p4990_p3 = scmp.ne.s32.totalorder %s5718_s5, %s4989_s18  ;;  %s4994_s9 = sshll.u32 %s5393_s16, 4  ;;  %s4995_s9 = int_to_ptr.vmem [resolvable:$false] %s4994_s9 }
  0xbc   : > { %s4996_s7 = scalar_lea.vmem %s4995_s9, 256  ;;  %p4997_p6 = scmp.lt.s32.totalorder %s5718_s5, %s4995_s9 }
  0xbd   : > { %p4992_p0 = pnand %p4990_p3, %p5728_p13  ;;  %p4998_p8 = scmp.lt.s32.totalorder %s4996_s7, %s4989_s18 }
  0xbf   : > { %p4993_p7 = pneg %p4992_p0  ;;  %p4999_p5 = por %p4998_p8, %p4997_p6 }
  0xc1   : > { %p5000_p9 = pnand %p4999_p5, %p4993_p7 }
  0xc3   : > { %5003 = shalt.err (!%p5000_p9)
}
  0xc4   : > { %4464 = dma.hbm_to_vmem [thread:$0]  (!%p5703_p1), %s5713_s17, 128, %s5718_s5, %s5722_s13  }
  0xc5   : > { %s6716_s19 = sshll.u32 %s5691_s14, 5  ;;  %s5394_s7 = smov [#allocation14]  }
  0xc6   : > { %s710_s21 = scalar_lea.vmem [#allocation8], %s6716_s19  ;;  %s6717_s16 = smov %s6716_s19 }
  0xc7   : > { %s717_s2 = sshll.u32 %s710_s21, 4  ;;  %s731_s9 = scalar_lea.vmem [#allocation9], %s6717_s16  ;;  %s5754_s2 = int_to_ptr.vmem [resolvable:$true] %s717_s2 }
  0xc8   : > { %s738_s18 = sshll.u32 %s731_s9, 4  ;;  %s577_s20 = sshll.u32 %s5394_s7, 4  ;;  %s5758_s18 = int_to_ptr.vmem [resolvable:$true] %s738_s18  ;;  %s578_s20 = int_to_ptr.vmem [resolvable:$true] %s577_s20 }
  0xc9   : > { %s6718_s11 = sld [smem:[#allocation56_spill]]  ;;  %s6719_s6 = sld [smem:[#allocation52_spill]] }
  0xca   : > { %p6720_p8 = scmp.ne.s32.totalorder %s6701_s27, 0 }
  0xcf   : > { %s613_s10 = sshll.u32 %s6718_s11, 4  ;;  %s5004_s5 = scalar_lea.hbm %s6719_s6, 1024  ;;  %s614_s10 = int_to_ptr.vmem [resolvable:$true] %s613_s10 }
  0xd0   : > { %p5005_p6 = scmp.ne.s32.totalorder %s6719_s6, %s5004_s5  ;;  %p5011_p12 = scmp.lt.u32.totalorder %s5004_s5, %s6719_s6 }
  0xd2   : > { %p5007_p7 = pnand %p5005_p6, %p6720_p8 }
  0xd4   : > { %p5008_p11 = pneg %p5007_p7 }
  0xd6   : > { %p5013_p2 = pnand %p5011_p12, %p5008_p11 }
  0xd8   : > { %5016 = shalt.err (!%p5013_p2)
}
  0xd9   : > { %s5017_s9 = scalar_lea.vmem %s578_s20, 1024  ;;  %p5025_p0 = scmp.lt.s32.totalorder %s578_s20, %s578_s20 }
  0xda   : > { %p5018_p4 = scmp.ne.s32.totalorder %s578_s20, %s5017_s9  ;;  %p5026_p5 = scmp.lt.s32.totalorder %s5017_s9, %s5017_s9 }
  0xdc   : > { %p5020_p10 = pnand %p5018_p4, %p6720_p8  ;;  %p5027_p9 = por %p5026_p5, %p5025_p0 }
  0xde   : > { %p5021_p3 = pneg %p5020_p10 }
  0xe0   : > { %p5028_p1 = pnand %p5027_p9, %p5021_p3 }
  0xe2   : > { %5031 = shalt.err (!%p5028_p1)
}
  0xe3   : > { %p6721_p6 = scmp.ne.s32.totalorder %s6699_s4, 0  ;;  %s6722_s1 = smov 4  }
  0xe4   : > { %s6723_s23 = smov 64   ;;  %s5032_s7 = scalar_lea.vmem %s614_s10, 16 }
  0xe5   : > { %4442 = dma.hbm_to_vmem [thread:$0]  (!%p6721_p6), %s6719_s6, 1024, %s578_s20, [#allocation13], %s6723_s23, %s6723_s23, %s6722_s1  }
  0xe6   : > { %p5033_p7 = scmp.ne.s32.totalorder %s614_s10, %s5032_s7  ;;  %p5040_p2 = scmp.lt.s32.totalorder %s614_s10, %s614_s10 }
  0xe7   : > { %p5041_p4 = scmp.lt.s32.totalorder %s5032_s7, %s5032_s7 }
  0xe8   : > { %p5035_p11 = pnand %p5033_p7, %p6720_p8 }
  0xe9   : > { %p5042_p10 = por %p5041_p4, %p5040_p2 }
  0xea   : > { %p5036_p12 = pneg %p5035_p11 }
  0xec   : > { %p5043_p1 = pnand %p5042_p10, %p5036_p12 }
  0xee   : > { %5046 = shalt.err (!%p5043_p1)
}
  0xef   : > { %s5395_s5 = smov [#allocation17]   ;;  %s5396_s17 = smov [#allocation18]  }
  0xf0   : > { %4448 = dma.vmem_to_smem (!%p6721_p6), %s614_s10, 16, %s5395_s5, [#allocation5]  }
  0xf1   : > { %s623_s19 = sshll.u32 %s5396_s17, 4  ;;  %s5397_s21 = smov [#allocation21]   ;;  %s624_s19 = int_to_ptr.vmem [resolvable:$true] %s623_s19 }
  0xf2   : > { %s652_s20 = sshll.u32 %s5397_s21, 4  ;;  %s5047_s0 = scalar_lea.hbm %s6629_s12, 8192  ;;  %s5788_s20 = int_to_ptr.vmem [resolvable:$true] %s652_s20 }
  0xf3   : > { %p5048_p3 = scmp.ne.s32.totalorder %s6629_s12, %s5047_s0  ;;  %p5054_p9 = scmp.lt.u32.totalorder %s5047_s0, %s6629_s12 }
  0xf5   : > { %p5050_p0 = pnand %p5048_p3, %p6720_p8 }
  0xf7   : > { %p5051_p5 = pneg %p5050_p0 }
  0xf9   : > { %p5056_p7 = pnand %p5054_p9, %p5051_p5 }
  0xfb   : > { %5059 = shalt.err (!%p5056_p7)
}
  0xfc   : > { %s5060_s5 = scalar_lea.vmem %s624_s19, 8192  ;;  %p5068_p4 = scmp.lt.s32.totalorder %s624_s19, %s624_s19 }
  0xfd   : > { %p5061_p11 = scmp.ne.s32.totalorder %s624_s19, %s5060_s5  ;;  %p5069_p10 = scmp.lt.s32.totalorder %s5060_s5, %s5060_s5 }
  0xff   : > { %p5063_p12 = pnand %p5061_p11, %p6720_p8  ;;  %p5070_p1 = por %p5069_p10, %p5068_p4 }
 0x101   : > { %p5064_p2 = pneg %p5063_p12 }
 0x103   : > { %p5071_p13 = pnand %p5070_p1, %p5064_p2 }
 0x105   : > { %5074 = shalt.err (!%p5071_p13)
}
 0x106   : > { %s6724_s17 = smov 16   ;;  %s6725_s21 = smov 256  }
 0x107   : > { %4451 = dma.hbm_to_vmem [thread:$0]  (!%p6721_p6), %s6629_s12, 8192, %s624_s19, [#allocation16], %s6725_s21, %s6725_s21, %s6724_s17  }
 0x108   : > { %s5075_s30 = scalar_lea.hbm %s6632_s15, 1024 }
 0x109   : > { %p5076_p3 = scmp.ne.s32.totalorder %s6632_s15, %s5075_s30  ;;  %p5082_p5 = scmp.lt.u32.totalorder %s5075_s30, %s6632_s15 }
 0x10b   : > { %p5078_p13 = pnand %p5076_p3, %p6720_p8 }
 0x10d   : > { %p5079_p0 = pneg %p5078_p13 }
 0x10f   : > { %p5084_p9 = pnand %p5082_p5, %p5079_p0 }
 0x111   : > { %5087 = shalt.err (!%p5084_p9)
}
 0x112   : > { %s5088_s19 = scalar_lea.vmem %s5788_s20, 1024  ;;  %p5096_p2 = scmp.lt.s32.totalorder %s5788_s20, %s5788_s20 }
 0x113   : > { %p5089_p7 = scmp.ne.s32.totalorder %s5788_s20, %s5088_s19  ;;  %p5097_p4 = scmp.lt.s32.totalorder %s5088_s19, %s5088_s19 }
 0x115   : > { %p5091_p11 = pnand %p5089_p7, %p6720_p8  ;;  %p5098_p10 = por %p5097_p4, %p5096_p2 }
 0x117   : > { %p5092_p12 = pneg %p5091_p11 }
 0x119   : > { %p5099_p1 = pnand %p5098_p10, %p5092_p12 }
 0x11b   : > { %5102 = shalt.err (!%p5099_p1)
}
 0x11c   : > { %4457 = dma.hbm_to_vmem [thread:$0]  (!%p6721_p6), %s6632_s15, 1024, %s5788_s20, [#allocation20], %s6723_s23, %s6723_s23, %s6722_s1  }
 0x11d   : > { %s6726_s27 = sshll.u32 %s5383_s24, 7  ;;  %s6727_s16 = sld [smem:[#allocation46_spill]] }
 0x11e   : > { %s6728_s4 = sshll.u32 %s5691_s14, 3  ;;  %s4195_s7 = sshll.u32 %s5383_s24, 9 }
 0x11f   : > { %s673_s0 = scalar_lea.vmem [#allocation2], %s6728_s4  ;;  %s670_s10 = scalar_lea.sflag [#allocation3], %s5691_s14 }
 0x120   : > { %s681_s30 = sshll.u32 %s673_s0, 4  ;;  %p6729_p6 = scmp.ne.s32.totalorder %s6715_s25, 0  ;;  %s5846_s30 = int_to_ptr.vmem [resolvable:$true] %s681_s30 }
 0x123   : > { %s5842_s9 = scalar_lea.hbm %s6727_s16, %s6726_s27  ;;  %s5108_s11 = scalar_lea.hbm %s6727_s16, 256 }
 0x124   : > { %s5103_s5 = scalar_lea.hbm %s5842_s9, 128  ;;  %p5109_p0 = scmp.lt.u32.totalorder %s5842_s9, %s6727_s16 }
 0x125   : > { %p5104_p8 = scmp.ne.s32.totalorder %s5842_s9, %s5103_s5  ;;  %p5110_p5 = scmp.lt.u32.totalorder %s5108_s11, %s5103_s5 }
 0x126   : > { %p5112_p7 = scmp.lt.u32.totalorder %s5103_s5, %s5842_s9 }
 0x127   : > { %p5106_p3 = pnand %p5104_p8, %p6729_p6  ;;  %p5111_p9 = por %p5110_p5, %p5109_p0 }
 0x129   : > { %p5107_p13 = pneg %p5106_p3  ;;  %p5113_p11 = por %p5112_p7, %p5111_p9 }
 0x12b   : > { %p5114_p12 = pnand %p5113_p11, %p5107_p13 }
 0x12d   : > { %5117 = shalt.err (!%p5114_p12)
}
 0x12e   : > { %s5118_s14 = scalar_lea.vmem %s5846_s30, 128  ;;  %s5398_s21 = smov [#allocation2]  }
 0x12f   : > { %p5119_p2 = scmp.ne.s32.totalorder %s5846_s30, %s5118_s14  ;;  %s5123_s6 = sshll.u32 %s5398_s21, 4  ;;  %s5124_s6 = int_to_ptr.vmem [resolvable:$false] %s5123_s6 }
 0x130   : > { %s5125_s4 = scalar_lea.vmem %s5124_s6, 256  ;;  %p5126_p1 = scmp.lt.s32.totalorder %s5846_s30, %s5124_s6 }
 0x131   : > { %p5121_p4 = pnand %p5119_p2, %p6729_p6  ;;  %p5127_p8 = scmp.lt.s32.totalorder %s5125_s4, %s5118_s14 }
 0x133   : > { %p5122_p10 = pneg %p5121_p4  ;;  %p5128_p3 = por %p5127_p8, %p5126_p1 }
 0x135   : > { %p5129_p0 = pnand %p5128_p3, %p5122_p10 }
 0x137   : > { %5132 = shalt.err (!%p5129_p0)
}
 0x138   : > { %p6730_p13 = scmp.ne.s32.totalorder %s6713_s29, 0  ;;  %s6731_s20 = sld [smem:[#allocation48_spill]] }
 0x139   : > { %s6732_s27 = sld [smem:[#allocation49_spill]] }
 0x13a   : > { %4461 = dma.hbm_to_vmem [thread:$0]  (!%p6730_p13), %s5842_s9, 128, %s5846_s30, %s670_s10  }
 0x13e   : > { %s5876_s19 = scalar_lea.hbm %s6731_s20, %s4195_s7  ;;  %s5138_s10 = scalar_lea.hbm %s6731_s20, 1024 }
 0x13f   : > { %s5883_s14 = scalar_lea.hbm %s6732_s27, %s4195_s7  ;;  %s5133_s21 = scalar_lea.hbm %s5876_s19, 512 }
 0x140   : > { %p5134_p5 = scmp.ne.s32.totalorder %s5876_s19, %s5133_s21  ;;  %p5139_p11 = scmp.lt.u32.totalorder %s5876_s19, %s6731_s20 }
 0x141   : > { %p5140_p12 = scmp.lt.u32.totalorder %s5138_s10, %s5133_s21  ;;  %p5142_p4 = scmp.lt.u32.totalorder %s5133_s21, %s5876_s19 }
 0x142   : > { %p5136_p9 = pnand %p5134_p5, %p6729_p6 }
 0x143   : > { %p5141_p2 = por %p5140_p12, %p5139_p11 }
 0x144   : > { %p5137_p7 = pneg %p5136_p9 }
 0x145   : > { %p5143_p10 = por %p5142_p4, %p5141_p2 }
 0x147   : > { %p5144_p1 = pnand %p5143_p10, %p5137_p7 }
 0x149   : > { %5147 = shalt.err (!%p5144_p1)
}
 0x14a   : > { %s5148_s7 = scalar_lea.vmem %s5754_s2, 512  ;;  %s5399_s0 = smov [#allocation8]  }
 0x14b   : > { %p5149_p8 = scmp.ne.s32.totalorder %s5754_s2, %s5148_s7  ;;  %s5153_s5 = sshll.u32 %s5399_s0, 4  ;;  %s5154_s5 = int_to_ptr.vmem [resolvable:$false] %s5153_s5 }
 0x14c   : > { %s5155_s11 = scalar_lea.vmem %s5154_s5, 1024  ;;  %p5156_p5 = scmp.lt.s32.totalorder %s5754_s2, %s5154_s5 }
 0x14d   : > { %p5151_p3 = pnand %p5149_p8, %p6729_p6  ;;  %p5157_p9 = scmp.lt.s32.totalorder %s5155_s11, %s5148_s7 }
 0x14f   : > { %p5152_p0 = pneg %p5151_p3  ;;  %p5158_p11 = por %p5157_p9, %p5156_p5 }
 0x151   : > { %p5159_p12 = pnand %p5158_p11, %p5152_p0 }
 0x153   : > { %5162 = shalt.err (!%p5159_p12)
}
 0x154   : > { %4467 = dma.hbm_to_vmem [thread:$0]  (!%p6730_p13), %s5876_s19, 512, %s5754_s2, %s5722_s13, %s6723_s23, %s6723_s23, %s6722_s1  }
 0x155   : > { %s6733_s17 = sand.u32 1, %s5383_s24   ;;  %s5163_s9 = scalar_lea.hbm %s5883_s14, 512 }
 0x156   : > { %s5912_s21 = scalar_lea.sflag [#allocation10], %s6733_s17  ;;  %p5164_p7 = scmp.ne.s32.totalorder %s5883_s14, %s5163_s9 }
 0x157   : > { %s5168_s6 = scalar_lea.hbm %s6732_s27, 1024  ;;  %p5169_p10 = scmp.lt.u32.totalorder %s5883_s14, %s6732_s27 }
 0x158   : > { %p5166_p2 = pnand %p5164_p7, %p6729_p6  ;;  %p5170_p1 = scmp.lt.u32.totalorder %s5168_s6, %s5163_s9 }
 0x159   : > { %p5172_p3 = scmp.lt.u32.totalorder %s5163_s9, %s5883_s14 }
 0x15a   : > { %p5167_p4 = pneg %p5166_p2  ;;  %p5171_p8 = por %p5170_p1, %p5169_p10 }
 0x15c   : > { %p5173_p0 = por %p5172_p3, %p5171_p8 }
 0x15e   : > { %p5174_p5 = pnand %p5173_p0, %p5167_p4 }
 0x160   : > { %5177 = shalt.err (!%p5174_p5)
}
 0x161   : > { %s5178_s13 = scalar_lea.vmem %s5758_s18, 512  ;;  %s5400_s2 = smov [#allocation9]  }
 0x162   : > { %p5179_p9 = scmp.ne.s32.totalorder %s5758_s18, %s5178_s13  ;;  %s5183_s19 = sshll.u32 %s5400_s2, 4  ;;  %s5184_s19 = int_to_ptr.vmem [resolvable:$false] %s5183_s19 }
 0x163   : > { %s5185_s0 = scalar_lea.vmem %s5184_s19, 1024  ;;  %p5186_p7 = scmp.lt.s32.totalorder %s5758_s18, %s5184_s19 }
 0x164   : > { %p5181_p11 = pnand %p5179_p9, %p6729_p6  ;;  %p5187_p2 = scmp.lt.s32.totalorder %s5185_s0, %s5178_s13 }
 0x166   : > { %p5182_p12 = pneg %p5181_p11  ;;  %p5188_p10 = por %p5187_p2, %p5186_p7 }
 0x168   : > { %p5189_p1 = pnand %p5188_p10, %p5182_p12 }
 0x16a   : > { %5192 = shalt.err (!%p5189_p1)
}
 0x16b   : > { %4470 = dma.hbm_to_vmem [thread:$0]  (!%p6730_p13), %s5883_s14, 512, %s5758_s18, %s5912_s21, %s6723_s23, %s6723_s23, %s6722_s1  }
 0x16c   : > { %p6734_p6 = scmp.ne.s32.totalorder %s6698_s26, 0 }
 0x16d   : > { %s5942_s25 = sand.u32 (!%p6734_p6), 1, %s5375_s22   ;;  %p6735_p4 = scmp.ne.s32.totalorder (!%p6734_p6), %s6708_s28, 0 }
 0x16e   : > { %750 = sbr.rel (%p6734_p6) target bundleno = 2943 (0xb7f), region = 88  ;;  %s5945_s5 = sshll.u32 (!%p6734_p6), %s5942_s25, 3 }
 0x16f   : > { %s753_s29 = scalar_lea.sflag (!%p6734_p6), [#allocation3], %s5942_s25  ;;  %s756_s11 = scalar_lea.vmem (!%p6734_p6), [#allocation2], %s5945_s5 }
 0x175   : > { %5322 = dma.done.wait (%p6735_p4), %s753_s29, 128  }
 0x176   : > { %5324 = vsyncadd (%p6735_p4), %s753_s29, 4294967168  ;;  %s5954_s26 = sand.u32 1, %s5536_s3   ;;  %s765_s1 = scalar_lea.vmem [#allocation6], %s5945_s5 }
 0x177   : > { %s762_s18 = scalar_lea.sflag [#allocation7], %s5954_s26 }
 0x178   : > { %5326 = dma.done.wait (%p6735_p4), %s762_s18, 640  }
 0x179   : > { %5328 = vsyncadd (%p6735_p4), %s762_s18, 4294966656  ;;  %s4015_s23 = sshll.u32 %s5942_s25, 5  ;;  %s780_s17 = scalar_lea.sflag [#allocation10], %s5954_s26 }
 0x17a   : > { %s5963_s14 = scalar_lea.vmem [#allocation8], %s4015_s23  ;;  %s5966_s21 = scalar_lea.vmem [#allocation9], %s4015_s23 }
 0x17b   : > { %5330 = dma.done.wait (%p6735_p4), %s780_s17, 512  }
 0x17c   : > { %5332 = vsyncadd (%p6735_p4), %s780_s17, 4294966784  ;;  %p6736_p13 = scmp.eq.s32.totalorder %s5536_s3, 0 }
 0x17e   : > { %5334 = dma.done.wait (%p6736_p13), [#allocation10], 1024   ;;  %p6737_p8 = pmov %p6736_p13 }
 0x180   : > { %5336 = vsyncadd (%p6737_p8), [#allocation10], 4294966272  ;;  %p6738_p3 = pmov %p6737_p8 }
 0x182   : > { %5338 = dma.done.wait (%p6738_p3), [#allocation13], 2048   ;;  %p6739_p0 = pmov %p6738_p3 }
 0x184   : > { %5340 = vsyncadd (%p6739_p0), [#allocation13], 4294965248  ;;  %p6740_p5 = pmov %p6739_p0 }
 0x185   : > { %p6741_p9 = pmov %p6739_p0 }
 0x186   : > { %5342 = dma.done.wait (%p6740_p5), [#allocation16], 1024  }
 0x187   : > { %5344 = vsyncadd (%p6741_p9), [#allocation16], 4294966272  ;;  %p6742_p11 = pmov %p6739_p0 }
 0x188   : > { %p6743_p12 = pmov %p6739_p0 }
 0x189   : > { %5346 = dma.done.wait (%p6742_p11), [#allocation5], 16  }
 0x18a   : > { %5348 = vsyncadd (%p6743_p12), [#allocation5], 4294967280  ;;  %p6744_p7 = pmov %p6739_p0 }
 0x18b   : > { %p6745_p2 = pmov %p6739_p0 }
 0x18c   : > { %5350 = dma.done.wait (%p6744_p7), [#allocation16], 8192  }
 0x18d   : > { %5352 = vsyncadd (%p6745_p2), [#allocation16], 4294959104  ;;  %p6746_p10 = pmov %p6739_p0 }
 0x18e   : > { %p6747_p1 = pmov %p6739_p0 }
 0x18f   : > { %5354 = dma.done.wait (%p6746_p10), [#allocation20], 5120  }
 0x190   : > { %5356 = vsyncadd (%p6747_p1), [#allocation20], 4294962176 }
 0x191   : > { %820 = sfence }
 0x192   : > { %v4553_v0 = vld [vmem:[#allocation11] sm:$0xff]   ;;  %v5401_v1 = vmov 0.0   ;;  %v4555_v3 = vld [vmem:[#allocation11 + $0x8] sm:$0xff]   ;;  %vm5402_vm0 = vmmov 0   ;;  %v4558_v5 = vld [vmem:[#allocation12 + $0x10] sm:$0xff]   ;;  %v1016_v35 = vlaneseq  ;;  %s6748_s6 = sld [smem:[#allocation54_spill]] }
 0x193   : > { %4257 = vmatprep.subr.bf16.mxu0 %v5401_v1  ;;  %v4554_v2 = vld [vmem:[#allocation12] sm:$0xff]   ;;  %4273 = vmatprep.mubr.msk.bf16.mxu0 %vm5402_vm0, %v5401_v1  ;;  %v4556_v4 = vld [vmem:[#allocation12 + $0x8] sm:$0xff]   ;;  %v4557_v6 = vld [vmem:[#allocation11 + $0x10] sm:$0xff]   ;;  %v5403_v36 = vmov 1966171168   ;;  %s1037_s4 = sld [smem:[#allocation17]] }
 0x194   : > { %4258 = vmatpush3.bf16.msra.mxu0 %v4553_v0  ;;  %4277 = vmatprep.subr.bf16.mxu1 %v4554_v2  ;;  %v4560_v7 = vld [vmem:[#allocation12 + $0x18] sm:$0xff]   ;;  %v4562_v9 = vld [vmem:[#allocation12 + $0x20] sm:$0xff]   ;;  %v4564_v12 = vld [vmem:[#allocation12 + $0x28] sm:$0xff]   ;;  %v1186_v37 = vunpack.c.l.s4 %v5403_v36  ;;  %v6026_v39 = vshrl.u32 %v1016_v35, 7  ;;  %s4051_s7 = sld [smem:[#allocation17 + $0x1]]  ;;  %vm1405_vm2 = vcmask 1041409  }
 0x195   : > { %4259 = vmatprep.subr.bf16.mxu0 %v5401_v1  ;;  %4278 = vmatpush3.bf16.msra.mxu1 %v4554_v2  ;;  %v4559_v8 = vld [vmem:[#allocation11 + $0x18] sm:$0xff]   ;;  %v4561_v10 = vld [vmem:[#allocation11 + $0x20] sm:$0xff]   ;;  %v4563_v13 = vld [vmem:[#allocation11 + $0x28] sm:$0xff]   ;;  %vm1407_vm3 = vcmask 1042434   ;;  %vm1409_vm4 = vcmask 1043459   ;;  %vm1411_vm5 = vcmask 1044484  }
 0x196   : > { %4279 = vmatprep.subr.bf16.mxu1 %v4556_v4  ;;  %v1038_v11 = vld [vmem:[%s5963_s14] sm:$0xff]   ;;  %v4566_v14 = vld [vmem:[#allocation12 + $0x30] sm:$0xff]   ;;  %v4567_v16 = vld [vmem:[#allocation11 + $0x38] sm:$0xff]   ;;  %v1187_v38 = vunpack.c.0.s8 %v1186_v37  ;;  %v6035_v45 = vsub.s32 0, %v6026_v39  ;;  %vm1413_vm6 = vcmask 1045509   ;;  %vm1415_vm7 = vcmask 1046534  }
 0x197   : > { %4293 = vmatprep.mubr.bf16.mxu1 %v1038_v11  ;;  %v4565_v15 = vld [vmem:[#allocation11 + $0x30] sm:$0xff]   ;;  %v4568_v17 = vld [vmem:[#allocation12 + $0x38] sm:$0xff]   ;;  %v906_v18 = vld [vmem:[%s756_s11] sm:$0xff]  ;;  %vm1417_vm8 = vcmask 1047559   ;;  %vm1420_vm9 = vcmask 64512   ;;  %s6749_s19 = sld [smem:[#allocation55_spill]] }
 0x198   : > { %4260 = vmatpush3.bf16.msra.mxu0 %v4555_v3  ;;  %v4572_v19 = vld [vmem:[#allocation14] sm:$0xff]   ;;  %v1040_v20 = vld [vmem:[%s5963_s14 + $0x8] sm:$0xff]   ;;  %v1042_v22 = vld [vmem:[%s5963_s14 + $0x10] sm:$0xff]   ;;  %v6012_v23 = vcombine.high %v906_v18, %v906_v18  ;;  %v1190_v40 = vsub.s32 %v1187_v38, %v6026_v39  ;;  %s4074_s0 = sld [smem:[#allocation17 + $0x2]]  ;;  %vm3607_vm10 = vcmask 7168   ;;  %vm3609_vm11 = vcmask 15360  }
 0x199   : > { %4261 = vmatprep.subr.bf16.mxu0 %v5401_v1  ;;  %4280 = vmatpush3.bf16.msra.mxu1 %v4556_v4  ;;  %v1744_v21 = vld [vmem:[%s5966_s21] sm:$0xff]   ;;  %v4574_v24 = vld [vmem:[#allocation14 + $0x8] sm:$0xff]   ;;  %v4576_v25 = vld [vmem:[#allocation14 + $0x10] sm:$0xff]   ;;  %vm3611_vm12 = vcmask 80896   ;;  %vm3613_vm13 = vcmask 146432   ;;  %s902_s29 = scalar_lea.vmem [#allocation26], %s5945_s5 }
 0x19a   : > { %4281 = vmatprep.subr.bf16.mxu1 %v4558_v5  ;;  %v1044_v26 = vld [vmem:[%s5963_s14 + $0x18] sm:$0xff]   ;;  %v4579_v28 = vld [vmem:[#allocation14 + $0x20] sm:$0xff]   ;;  %v4580_v29 = vld [vmem:[#allocation14 + $0x28] sm:$0xff]   ;;  %s6750_s23 = sld [smem:[#allocation58_spill]]  ;;  %s888_s17 = scalar_lea.vmem [#allocation23], %s5945_s5 }
 0x19b   : > { %v4578_v27 = vld [vmem:[#allocation14 + $0x18] sm:$0xff]   ;;  %v4581_v30 = vld [vmem:[#allocation14 + $0x30] sm:$0xff]   ;;  %v1746_v32 = vld [vmem:[%s5966_s21 + $0x8] sm:$0xff]   ;;  %s6751_s28 = sld [smem:[#allocation59_spill]]  ;;  %s6752_s9 = sld [smem:[#allocation44_spill]] }
 0x19c   : > { %4262 = vmatpush3.bf16.msra.mxu0 %v4557_v6  ;;  %v4582_v31 = vld [vmem:[#allocation14 + $0x38] sm:$0xff]   ;;  %v1748_v33 = vld [vmem:[%s5966_s21 + $0x10] sm:$0xff]   ;;  %s6484_s30 = sshll.u32 %s5536_s3, 7  ;;  %s3657_s13 = sshll.u32 %s888_s17, 4  ;;  %s3658_s13 = int_to_ptr.vmem [resolvable:$true] %s3657_s13 }
 0x19d   : > { %4263 = vmatprep.subr.bf16.mxu0 %v5401_v1  ;;  %4282 = vmatpush3.bf16.msra.mxu1 %v4558_v5  ;;  %v1750_v34 = vld [vmem:[%s5966_s21 + $0x18] sm:$0xff]   ;;  %s3621_s2 = scalar_lea.sflag [#allocation24], %s5954_s26 }
 0x19e   : > { %4283 = vmatprep.subr.bf16.mxu1 %v4560_v7 }
 0x1a0   : > { %4264 = vmatpush3.bf16.msra.mxu0 %v4559_v8 }
 0x1a1   : > { %4265 = vmatprep.subr.bf16.mxu0 %v5401_v1  ;;  %4284 = vmatpush3.bf16.msra.mxu1 %v4560_v7  ;;  %p6754_p4 = scmp.ne.s32.totalorder %s6752_s9, 0 }
 0x1a2   : > { %4285 = vmatprep.subr.bf16.mxu1 %v4562_v9 }
 0x1a4   : > { %4266 = vmatpush3.bf16.msra.mxu0 %v4561_v10 }
 0x1a5   : > { %4267 = vmatprep.subr.bf16.mxu0 %v5401_v1  ;;  %4286 = vmatpush3.bf16.msra.mxu1 %v4562_v9 }
 0x1a6   : > { %4287 = vmatprep.subr.bf16.mxu1 %v4564_v12 }
 0x1a8   : > { %4268 = vmatpush3.bf16.msra.mxu0 %v4563_v13 }
 0x1a9   : > { %4269 = vmatprep.subr.bf16.mxu0 %v5401_v1  ;;  %4288 = vmatpush3.bf16.msra.mxu1 %v4564_v12 }
 0x1aa   : > { %4289 = vmatprep.subr.bf16.mxu1 %v4566_v14 }
 0x1ac   : > { %4270 = vmatpush3.bf16.msra.mxu0 %v4565_v15 }
 0x1ad   : > { %4271 = vmatprep.subr.bf16.mxu0 %v5401_v1  ;;  %4290 = vmatpush3.bf16.msra.mxu1 %v4566_v14 }
 0x1ae   : > { %4291 = vmatprep.subr.bf16.mxu1 %v4568_v17 }
 0x1b0   : > { %4272 = vmatpush3.bf16.msra.mxu0 %v4567_v16 }
 0x1b1   : > { %4301 = vmatprep.subr.bf16.mxu0 %v4572_v19  ;;  %4292 = vmatpush3.bf16.msra.mxu1 %v4568_v17 }
 0x1b2   : > { %4325 = vmatprep.subr.bf16.mxu1 %v5401_v1 }
 0x1b3   : > { %4274 = vmatmul.mubr.bf16.vlgmr.msra.gmra.mrb[0].mxu0 %v6012_v23 }
 0x1b4   : > { %4302 = vmatpush3.bf16.msra.mxu0 %v4572_v19  ;;  %4317 = vmatprep.mubr.bf16.mxu0 %v1744_v21 }
 0x1b5   : > { %4294 = vmatmul.mubr.bf16.vlgmr.msra.gmra.mrb[0].mxu1 %v1040_v20  ;;  %4303 = vmatprep.subr.bf16.mxu0 %v4574_v24  ;;  %v4050_v20 = vld [vmem:[%s6625_s8] ss:$0 sm:$0xff] }
 0x1b6   : > { %4297 = vmatprep.mubr.bf16.mxu1 %v1042_v22 }
 0x1b8   : > { %4304 = vmatpush3.bf16.msra.mxu0 %v4574_v24 }
 0x1b9   : > { %4305 = vmatprep.subr.bf16.mxu0 %v4576_v25 }
 0x1bc   : > { %4306 = vmatpush3.bf16.msra.mxu0 %v4576_v25 }
 0x1bd   : > { %4298 = vmatmul.mubr.bf16.gmra.mrb[4].mxu1 %v1044_v26  ;;  %4307 = vmatprep.subr.bf16.mxu0 %v4578_v27 }
 0x1be   : > { %4341 = vmatprep.mubr.msk.bf16.mxu1 %vm5402_vm0, %v5401_v1 }
 0x1c0   : > { %4308 = vmatpush3.bf16.msra.mxu0 %v4578_v27 }
 0x1c1   : > { %4309 = vmatprep.subr.bf16.mxu0 %v4579_v28 }
 0x1c4   : > { %4310 = vmatpush3.bf16.msra.mxu0 %v4579_v28 }
 0x1c5   : > { %4311 = vmatprep.subr.bf16.mxu0 %v4580_v29 }
 0x1c8   : > { %4312 = vmatpush3.bf16.msra.mxu0 %v4580_v29 }
 0x1c9   : > { %4313 = vmatprep.subr.bf16.mxu0 %v4581_v30 }
 0x1cc   : > { %4314 = vmatpush3.bf16.msra.mxu0 %v4581_v30 }
 0x1cd   : > { %4315 = vmatprep.subr.bf16.mxu0 %v4582_v31 }
 0x1d0   : > { %4316 = vmatpush3.bf16.msra.mxu0 %v4582_v31 }
 0x1d1   : > { %4345 = vmatprep.subr.bf16.mxu0 %v5401_v1 }
 0x1d3   : > { %4318 = vmatmul.mubr.bf16.vlgmr.msra.gmra.mrb[4].mxu0 %v1746_v32 }
 0x1d4   : > { %4321 = vmatprep.mubr.bf16.mxu0 %v1748_v33 }
 0x1db   : > { %4322 = vmatmul.mubr.bf16.gmra.mrb[8].mxu0 %v1750_v34 }
 0x1dc   : > { %4361 = vmatprep.mubr.msk.bf16.mxu0 %vm5402_vm0, %v5401_v1 }
 0x286   : > { %v6029_v41 = vpop.f32.mrb[0].mxu0 }
 0x287   : > { %v1184_v42 = vcombine.high %v6029_v41, %v6029_v41  ;;  %v1191_v43 = vrot.slane %v6029_v41, %v1190_v40  ;;  %v4275_v44 = vpop.f32.mrb[1].mxu0 }
 0x288   : > { %v1013_v46 = vpop.f32.mrb[2].mxu0  ;;  %v4295_v47 = vpop.f32.mrb[0].mxu1 }
 0x289   : > { %v1198_v48 = vrot.slane %v1184_v42, %v1190_v40  ;;  %v1199_v49 = vcombine.high %v1191_v43, %v1191_v43  ;;  %v1207_v50 = vrot.slane %v1191_v43, %v1190_v40  ;;  %v4276_v51 = vpop.f32.mrb[3].mxu0  ;;  %v1152_v52 = vpop.f32.mrb[1].mxu1 }
 0x28a   : > { %v4296_v53 = vpop.f32.mrb[2].mxu1 }
 0x28b   : > { %v1229_v54 = vcombine.high %v1207_v50, %v1207_v50  ;;  %v1236_v55 = vrot.slane %v1207_v50, %v6035_v45  ;;  %v1221_v56 = vrot.slane %v1199_v49, %v1190_v40  ;;  %v1155_v57 = vpop.f32.mrb[3].mxu1  ;;  %v1214_v58 = vrot.slane %v1198_v48, %v1190_v40 }
 0x28c   : > { %v1200_v59 = vcombine.high %v1198_v48, %v1198_v48 }
 0x28d   : > { %v1244_v60 = vrot.slane %v1229_v54, %v6035_v45  ;;  %v1273_v61 = vadd.f32 %v1236_v55, %v1152_v52  ;;  %v1231_v62 = vcombine.high %v1221_v56, %v1221_v56  ;;  %v1240_v63 = vrot.slane %v1221_v56, %v6035_v45  ;;  %v4064_v54 = vld [vmem:[%s6748_s6] ss:$0 sm:$0xff] }
 0x28e   : > { %v1230_v0 = vcombine.high %v1214_v58, %v1214_v58  ;;  %v1228_v2 = vrot.slane %v1200_v59, %v1190_v40  ;;  %v1252_v8 = vrot.slane %v1214_v58, %v6035_v45 }
 0x28f   : > { %v1275_v3 = vadd.f32 %v4295_v47, %v1244_v60  ;;  %4755 = vtanh.f32 %v1273_v61  ;;  %v1248_v4 = vrot.slane %v1231_v62, %v6035_v45  ;;  %v1274_v5 = vadd.f32 %v1240_v63, %v1155_v57 }
 0x290   : > { %v4299_v6 = vpop.f32.mrb[4].mxu1  ;;  %v1260_v7 = vrot.slane %v1230_v0, %v6035_v45  ;;  %v1232_v9 = vcombine.high %v1228_v2, %v1228_v2  ;;  %v1256_v12 = vrot.slane %v1228_v2, %v6035_v45 }
 0x291   : > { %v1276_v10 = vadd.f32 %v4296_v53, %v1248_v4  ;;  %v1168_v11 = vpop.f32.mrb[5].mxu1  ;;  %4757 = vtanh.f32 %v1274_v5 }
 0x292   : > { %v1279_v13 = vadd.f32 %v4299_v6, %v1260_v7  ;;  %v1277_v14 = vadd.f32 %v1252_v8, %v1168_v11  ;;  %v4300_v15 = vpop.f32.mrb[6].mxu1  ;;  %v1264_v16 = vrot.slane %v1232_v9, %v6035_v45  ;;  %4759 = vtanh.f32 %v1275_v3 }
 0x293   : > { %v1171_v17 = vpop.f32.mrb[7].mxu1  ;;  %4761 = vtanh.f32 %v1276_v10  ;;  %v6052_v6 = vand.u32 127, %v1016_v35  ;;  %v5404_v10 = vmov 0   ;;  %v5405_v11 = vmov -1e+30  }
 0x294   : > { %v1280_v18 = vadd.f32 %v4300_v15, %v1264_v16  ;;  %v1278_v19 = vadd.f32 %v1256_v12, %v1171_v17  ;;  %4763 = vtanh.f32 %v1277_v14  ;;  %4552 = vset.pattern.permute.xlu0 %v5404_v10  ;;  %4551 = vset.pattern.permute.xlu1 %v5404_v10 }
 0x295   : > { %4765 = vtanh.f32 %v1279_v13  ;;  %vm1018_vm1 = vcmp.lt.s32.totalorder %v6052_v6, 8 }
 0x296   : > { %4767 = vtanh.f32 %v1278_v19 }
 0x297   : > { %4769 = vtanh.f32 %v1280_v18 }
 0x299   : > { %v4756_v21 = vpop.eup %4755 }
 0x29a   : > { %v1295_v22 = vmul.f32 %v4756_v21, %v4050_v20 }
 0x29b   : > { %v4758_v24 = vpop.eup %4757 }
 0x29c   : > { %1303 = vadd.xlane.f32.xlu0 %v1295_v22  ;;  %v1296_v25 = vmul.f32 %v4758_v24, %v4050_v20  ;;  %v4760_v26 = vpop.eup %4759  ;;  %v1319_v24 = vstv %s1037_s4  ;;  %s6753_s4 = sld [smem:[#allocation61_spill]] }
 0x29d   : > { %v1297_v27 = vmul.f32 %v4760_v26, %v4050_v20  ;;  %v4762_v28 = vpop.eup %4761 }
 0x29e   : > { %v1298_v30 = vmul.f32 %v4762_v28, %v4050_v20  ;;  %v4764_v31 = vpop.eup %4763 }
 0x29f   : > { %v1299_v42 = vmul.f32 %v4764_v31, %v4050_v20  ;;  %v4766_v43 = vpop.eup %4765 }
 0x2a0   : > { %1305 = vadd.xlane.f32.xlu0 %v1296_v25  ;;  %v1301_v46 = vmul.f32 %v4766_v43, %v4050_v20  ;;  %v4768_v47 = vpop.eup %4767  ;;  %v1935_v43 = vstv %s4051_s7 }
 0x2a1   : > { %v1300_v57 = vmul.f32 %v4768_v47, %v4050_v20 }
 0x2a2   : > { %s6490_s7 = scalar_lea.hbm %s6753_s4, %s6484_s30 }
 0x2a4   : > { %1307 = vadd.xlane.f32.xlu0 %v1297_v27 }
 0x2a6   : > { %v4319_v29 = vpop.f32.mrb[4].mxu0 }
 0x2a7   : > { %v1891_v32 = vadd.f32 %v4319_v29, %v1244_v60  ;;  %v1858_v33 = vpop.f32.mrb[5].mxu0 }
 0x2a8   : > { %v1889_v34 = vadd.f32 %v1858_v33, %v1236_v55  ;;  %1309 = vadd.xlane.f32.xlu0 %v1298_v30  ;;  %v4320_v36 = vpop.f32.mrb[6].mxu0  ;;  %v4770_v55 = vpop.eup %4769 }
 0x2a9   : > { %4771 = vtanh.f32 %v1891_v32  ;;  %v1892_v37 = vadd.f32 %v4320_v36, %v1248_v4  ;;  %v1861_v38 = vpop.f32.mrb[7].mxu0  ;;  %v1302_v61 = vmul.f32 %v4770_v55, %v4050_v20 }
 0x2aa   : > { %v1890_v40 = vadd.f32 %v1861_v38, %v1240_v63  ;;  %4773 = vtanh.f32 %v1889_v34 }
 0x2ab   : > { %4775 = vtanh.f32 %v1892_v37 }
 0x2ac   : > { %1311 = vadd.xlane.f32.xlu0 %v1299_v42  ;;  %4777 = vtanh.f32 %v1890_v40 }
 0x2ae   : > { %v4323_v44 = vpop.f32.mrb[8].mxu0 }
 0x2af   : > { %v1895_v48 = vadd.f32 %v4323_v44, %v1260_v7  ;;  %v1874_v49 = vpop.f32.mrb[9].mxu0 }
 0x2b0   : > { %v1893_v50 = vadd.f32 %v1874_v49, %v1252_v8  ;;  %1315 = vadd.xlane.f32.xlu0 %v1301_v46  ;;  %v4324_v51 = vpop.f32.mrb[10].mxu0 }
 0x2b1   : > { %v1896_v52 = vadd.f32 %v4324_v51, %v1264_v16  ;;  %v1877_v53 = vpop.f32.mrb[11].mxu0  ;;  %4779 = vtanh.f32 %v1895_v48 }
 0x2b2   : > { %v1894_v56 = vadd.f32 %v1877_v53, %v1256_v12  ;;  %4781 = vtanh.f32 %v1893_v50  ;;  %v1019_v12 = vsel %vm1018_vm1, 0.0, %v5405_v11 }
 0x2b3   : > { %v4772_v58 = vpop.eup %4771 }
 0x2b4   : > { %1313 = vadd.xlane.f32.xlu0 %v1300_v57  ;;  %v1913_v59 = vmul.f32 %v4772_v58, %v4064_v54  ;;  %v4774_v60 = vpop.eup %4773  ;;  %4783 = vtanh.f32 %v1894_v56 }
 0x2b5   : > { %v1911_v62 = vmul.f32 %v4774_v60, %v4064_v54  ;;  %v4776_v63 = vpop.eup %4775  ;;  %4785 = vtanh.f32 %v1896_v52 }
 0x2b6   : > { %1923 = vadd.xlane.f32.xlu1 %v1913_v59  ;;  %v1914_v0 = vmul.f32 %v4776_v63, %v4064_v54  ;;  %v4778_v2 = vpop.eup %4777 }
 0x2b7   : > { %v1912_v3 = vmul.f32 %v4778_v2, %v4064_v54 }
 0x2b8   : > { %1317 = vadd.xlane.f32.xlu0 %v1302_v61 }
 0x2ba   : > { %1919 = vadd.xlane.f32.xlu1 %v1911_v62 }
 0x2bb   : > { %v4780_v4 = vpop.eup %4779 }
 0x2bc   : > { %v1917_v5 = vmul.f32 %v4780_v4, %v4064_v54  ;;  %v4782_v7 = vpop.eup %4781 }
 0x2bd   : > { %v1915_v8 = vmul.f32 %v4782_v7, %v4064_v54 }
 0x2be   : > { %1925 = vadd.xlane.f32.xlu1 %v1914_v0  ;;  %v4784_v9 = vpop.eup %4783 }
 0x2bf   : > { %v1916_v13 = vmul.f32 %v4784_v9, %v4064_v54  ;;  %v4786_v14 = vpop.eup %4785 }
 0x2c0   : > { %v1918_v35 = vmul.f32 %v4786_v14, %v4064_v54  ;;  %v6107_v14 = vsub.s32 %v6052_v6, %v6026_v39 }
 0x2c2   : > { %1921 = vadd.xlane.f32.xlu1 %v1912_v3 }
 0x2c6   : > { %1931 = vadd.xlane.f32.xlu1 %v1917_v5 }
 0x2ca   : > { %1927 = vadd.xlane.f32.xlu1 %v1915_v8 }
 0x2ce   : > { %1929 = vadd.xlane.f32.xlu1 %v1916_v13  ;;  %1330 = vbcast.lane.b32.xlu0 %v1019_v12, 256 }
 0x2d2   : > { %1933 = vadd.xlane.f32.xlu1 %v1918_v35 }
 0x329   : > { %v1304_v15 = vpop.xlane.xlu0 %1303 }
 0x32a   : > { %v1320_v27 = vadd.f32 %v1319_v24, %v1304_v15 }
 0x32d   : > { %v1306_v16 = vpop.xlane.xlu0 %1305 }
 0x32e   : > { %v1321_v33 = vadd.f32 %v1319_v24, %v1306_v16 }
 0x331   : > { %v1308_v17 = vpop.xlane.xlu0 %1307 }
 0x332   : > { %v1322_v40 = vadd.f32 %v1319_v24, %v1308_v17 }
 0x335   : > { %v1310_v18 = vpop.xlane.xlu0 %1309 }
 0x336   : > { %v1323_v28 = vadd.f32 %v1319_v24, %v1310_v18 }
 0x339   : > { %v1312_v19 = vpop.xlane.xlu0 %1311 }
 0x33a   : > { %v1324_v34 = vadd.f32 %v1319_v24, %v1312_v19 }
 0x33d   : > { %v1316_v20 = vpop.xlane.xlu0 %1315 }
 0x33e   : > { %v1326_v53 = vadd.f32 %v1319_v24, %v1316_v20 }
 0x341   : > { %v1314_v21 = vpop.xlane.xlu0 %1313 }
 0x342   : > { %v1325_v42 = vadd.f32 %v1319_v24, %v1314_v21 }
 0x343   : > { %v1924_v22 = vpop.xlane.xlu1 %1923 }
 0x344   : > { %v1938_v48 = vadd.f32 %v1935_v43, %v1924_v22 }
 0x345   : > { %v1318_v25 = vpop.xlane.xlu0 %1317 }
 0x346   : > { %v1327_v58 = vadd.f32 %v1319_v24, %v1318_v25 }
 0x347   : > { %v1920_v26 = vpop.xlane.xlu1 %1919 }
 0x348   : > { %v1936_v50 = vadd.f32 %v1935_v43, %v1920_v26 }
 0x349   : > { %v1331_v29 = vpop.permute.xlu0 %1330 }
 0x34a   : > { %v6057_v30 = vadd.f32 %v1331_v29, %v1323_v28  ;;  %v6059_v31 = vadd.f32 %v1331_v29, %v1320_v27  ;;  %v6063_v36 = vadd.f32 %v1331_v29, %v1324_v34  ;;  %v6065_v37 = vadd.f32 %v1331_v29, %v1321_v33 }
 0x34b   : > { %v1926_v32 = vpop.xlane.xlu1 %1925  ;;  %v6069_v46 = vadd.f32 %v1331_v29, %v1325_v42  ;;  %v6071_v47 = vadd.f32 %v1331_v29, %v1322_v40  ;;  %v6077_v52 = vadd.f32 %v1938_v48, %v1331_v29  ;;  %v6081_v55 = vadd.f32 %v1331_v29, %v1326_v53 }
 0x34c   : > { %1359 = vperm.xlu0 %4552, %v6057_v30   ;;  %1350 = vperm.xlu1 %4551, %v6059_v31   ;;  %v1939_v54 = vadd.f32 %v1935_v43, %v1926_v32  ;;  %v6083_v56 = vadd.f32 %v1936_v50, %v1331_v29  ;;  %v6089_v61 = vadd.f32 %v1331_v29, %v1327_v58 }
 0x34e   : > { %v6087_v59 = vadd.f32 %v1939_v54, %v1331_v29 }
 0x34f   : > { %v1922_v38 = vpop.xlane.xlu1 %1921 }
 0x350   : > { %1362 = vperm.xlu0 %4552, %v6063_v36   ;;  %1353 = vperm.xlu1 %4551, %v6065_v37   ;;  %v1937_v44 = vadd.f32 %v1935_v43, %v1922_v38 }
 0x352   : > { %v6075_v51 = vadd.f32 %v1937_v44, %v1331_v29 }
 0x353   : > { %v1932_v49 = vpop.xlane.xlu1 %1931 }
 0x354   : > { %1365 = vperm.xlu0 %4552, %v6069_v46   ;;  %1356 = vperm.xlu1 %4551, %v6071_v47   ;;  %v1942_v60 = vadd.f32 %v1935_v43, %v1932_v49 }
 0x356   : > { %v6093_v63 = vadd.f32 %v1942_v60, %v1331_v29 }
 0x357   : > { %v1928_v57 = vpop.xlane.xlu1 %1927 }
 0x358   : > { %1964 = vperm.xlu0 %4552, %v6075_v51   ;;  %1967 = vperm.xlu1 %4551, %v6077_v52   ;;  %v1940_v0 = vadd.f32 %v1935_v43, %v1928_v57 }
 0x35a   : > { %v6096_v2 = vadd.f32 %v1940_v0, %v1331_v29 }
 0x35b   : > { %v1930_v62 = vpop.xlane.xlu1 %1929 }
 0x35c   : > { %1368 = vperm.xlu0 %4552, %v6081_v55   ;;  %1961 = vperm.xlu1 %4551, %v6083_v56   ;;  %v1941_v3 = vadd.f32 %v1935_v43, %v1930_v62 }
 0x35e   : > { %v6099_v5 = vadd.f32 %v1941_v3, %v1331_v29 }
 0x35f   : > { %v1934_v4 = vpop.xlane.xlu1 %1933 }
 0x360   : > { %1371 = vperm.xlu0 %4552, %v6089_v61   ;;  %1970 = vperm.xlu1 %4551, %v6087_v59   ;;  %v1943_v7 = vadd.f32 %v1935_v43, %v1934_v4 }
 0x362   : > { %v6102_v8 = vadd.f32 %v1943_v7, %v1331_v29 }
 0x364   : > { %1979 = vperm.xlu1 %4551, %v6093_v63  }
 0x368   : > { %1973 = vperm.xlu1 %4551, %v6096_v2  }
 0x36c   : > { %1976 = vperm.xlu1 %4551, %v6099_v5  }
 0x370   : > { %1982 = vperm.xlu1 %4551, %v6102_v8  }
 0x3cb   : > { %v1360_v9 = vpop.permute.xlu0 %1359  ;;  %v1351_v11 = vpop.permute.xlu1 %1350 }
 0x3cc   : > { %v1376_v17 = vrot.slane %v1351_v11, %v6107_v14  ;;  %v1388_v24 = vrot.slane %v1360_v9, %v6107_v14 }
 0x3cf   : > { %v1363_v12 = vpop.permute.xlu0 %1362  ;;  %v1354_v13 = vpop.permute.xlu1 %1353 }
 0x3d0   : > { %v1380_v35 = vrot.slane %v1354_v13, %v6107_v14  ;;  %v1392_v26 = vrot.slane %v1363_v12, %v6107_v14 }
 0x3d2   : > { %v1406_v19 = vsel %vm1405_vm2, %v1380_v35, %v1376_v17 }
 0x3d3   : > { %v1366_v15 = vpop.permute.xlu0 %1365  ;;  %v1357_v16 = vpop.permute.xlu1 %1356 }
 0x3d4   : > { %v1384_v18 = vrot.slane %v1357_v16, %v6107_v14  ;;  %v1396_v33 = vrot.slane %v1366_v15, %v6107_v14 }
 0x3d6   : > { %v1408_v20 = vsel %vm1407_vm3, %v1384_v18, %v1406_v19  ;;  %v6142_v18 = vsub.s32 1, %v6026_v39  ;;  %v6145_v19 = vsub.s32 2, %v6026_v39 }
 0x3d7   : > { %v1965_v21 = vpop.permute.xlu0 %1964  ;;  %v1968_v22 = vpop.permute.xlu1 %1967  ;;  %v1410_v25 = vsel %vm1409_vm4, %v1388_v24, %v1408_v20  ;;  %v6148_v20 = vsub.s32 3, %v6026_v39 }
 0x3d8   : > { %v1412_v32 = vsel %vm1411_vm5, %v1392_v26, %v1410_v25  ;;  %v1991_v53 = vrot.slane %v1965_v21, %v6107_v14  ;;  %v1995_v60 = vrot.slane %v1968_v22, %v6107_v14  ;;  %v6154_v26 = vsub.s32 4, %v6026_v39 }
 0x3d9   : > { %v1414_v42 = vsel %vm1413_vm6, %v1396_v33, %v1412_v32 }
 0x3db   : > { %v1369_v27 = vpop.permute.xlu0 %1368  ;;  %v1962_v28 = vpop.permute.xlu1 %1961 }
 0x3dc   : > { %v1400_v29 = vrot.slane %v1369_v27, %v6107_v14  ;;  %v1987_v50 = vrot.slane %v1962_v28, %v6107_v14 }
 0x3de   : > { %v1416_v43 = vsel %vm1415_vm7, %v1400_v29, %v1414_v42  ;;  %v2016_v57 = vsel %vm1405_vm2, %v1991_v53, %v1987_v50 }
 0x3df   : > { %v1372_v34 = vpop.permute.xlu0 %1371  ;;  %v1971_v38 = vpop.permute.xlu1 %1970  ;;  %v2017_v0 = vsel %vm1407_vm3, %v1995_v60, %v2016_v57 }
 0x3e0   : > { %v1404_v40 = vrot.slane %v1372_v34, %v6107_v14  ;;  %v1999_v58 = vrot.slane %v1971_v38, %v6107_v14  ;;  %v6161_v38 = vsub.s32 5, %v6026_v39 }
 0x3e2   : > { %v1418_v44 = vsel %vm1417_vm8, %v1404_v40, %v1416_v43  ;;  %v2018_v4 = vsel %vm1409_vm4, %v1999_v58, %v2017_v0 }
 0x3e3   : > { %v1980_v48 = vpop.permute.xlu1 %1979  ;;  %v1421_v49 = vsel %vm1420_vm9, %v1418_v44, -inf }
 0x3e4   : > { %1422 = vmax.xlane.f32.xlu0 %v1421_v49  ;;  %v2011_v12 = vrot.slane %v1980_v48, %v6107_v14 }
 0x3e7   : > { %v1974_v54 = vpop.permute.xlu1 %1973 }
 0x3e8   : > { %v2003_v62 = vrot.slane %v1974_v54, %v6107_v14 }
 0x3ea   : > { %v2019_v9 = vsel %vm1411_vm5, %v2003_v62, %v2018_v4 }
 0x3eb   : > { %v1977_v3 = vpop.permute.xlu1 %1976 }
 0x3ec   : > { %v2007_v7 = vrot.slane %v1977_v3, %v6107_v14 }
 0x3ee   : > { %v2020_v11 = vsel %vm1413_vm6, %v2007_v7, %v2019_v9 }
 0x3ef   : > { %v1983_v13 = vpop.permute.xlu1 %1982  ;;  %v2021_v15 = vsel %vm1415_vm7, %v2011_v12, %v2020_v11 }
 0x3f0   : > { %v2015_v35 = vrot.slane %v1983_v13, %v6107_v14 }
 0x3f2   : > { %v2022_v16 = vsel %vm1417_vm8, %v2015_v35, %v2021_v15 }
 0x3f3   : > { %v2024_v17 = vsel %vm1420_vm9, %v2022_v16, -inf }
 0x3f4   : > { %2025 = vmax.xlane.f32.xlu1 %v2024_v17 }
 0x471   : > { %v1423_v21 = vpop.xlane.xlu0 %1422 }
 0x472   : > { %v1428_v22 = vrot.slane %v1423_v21, %v6035_v45  ;;  %v1432_v24 = vrot.slane %v1423_v21, %v6142_v18  ;;  %v1436_v25 = vrot.slane %v1423_v21, %v6145_v19  ;;  %v1440_v27 = vrot.slane %v1423_v21, %v6148_v20 }
 0x473   : > { %v1444_v40 = vrot.slane %v1423_v21, %v6154_v26  ;;  %v1448_v44 = vrot.slane %v1423_v21, %v6161_v38 }
 0x474   : > { %v1465_v28 = vsub.f32 %v6059_v31, %v1428_v22  ;;  %v1466_v29 = vsub.f32 %v6065_v37, %v1432_v24  ;;  %v1467_v32 = vsub.f32 %v6071_v47, %v1436_v25  ;;  %v1468_v42 = vsub.f32 %v6057_v30, %v1440_v27 }
 0x475   : > { %v1469_v31 = vsub.f32 %v6063_v36, %v1444_v40  ;;  %v6168_v47 = vsub.s32 6, %v6026_v39  ;;  %v1470_v48 = vsub.f32 %v6069_v46, %v1448_v44  ;;  %v6179_v36 = vsub.s32 7, %v6026_v39 }
 0x476   : > { %v1473_v33 = vmul.f32 1.442695, %v1465_v28  ;;  %v1475_v34 = vmul.f32 1.442695, %v1466_v29  ;;  %v1477_v43 = vmul.f32 1.442695, %v1467_v32 }
 0x477   : > { %v1479_v37 = vmul.f32 1.442695, %v1468_v42  ;;  %v1481_v49 = vmul.f32 1.442695, %v1469_v31  ;;  %v1452_v60 = vrot.slane %v1423_v21, %v6168_v47  ;;  %v1483_v46 = vmul.f32 1.442695, %v1470_v48 }
 0x478   : > { %4787 = vpow2.f32 %v1473_v33  ;;  %v1456_v11 = vrot.slane %v1423_v21, %v6179_v36 }
 0x479   : > { %4789 = vpow2.f32 %v1475_v34  ;;  %v1471_v12 = vsub.f32 %v6081_v55, %v1452_v60 }
 0x47a   : > { %4791 = vpow2.f32 %v1477_v43 }
 0x47b   : > { %4793 = vpow2.f32 %v1479_v37  ;;  %v1485_v16 = vmul.f32 1.442695, %v1471_v12 }
 0x47c   : > { %4795 = vpow2.f32 %v1481_v49 }
 0x47d   : > { %4797 = vpow2.f32 %v1483_v46 }
 0x481   : > { %v2026_v50 = vpop.xlane.xlu1 %2025 }
 0x482   : > { %v6171_v53 = vpop.eup %4787  ;;  %v2031_v30 = vrot.slane %v2026_v50, %v6035_v45  ;;  %v2035_v54 = vrot.slane %v2026_v50, %v6142_v18  ;;  %v2039_v57 = vrot.slane %v2026_v50, %v6145_v19  ;;  %v2043_v3 = vrot.slane %v2026_v50, %v6148_v20 }
 0x483   : > { %v6176_v58 = vpop.eup %4789  ;;  %1498 = vperm.xlu0 %4552, %v6171_v53   ;;  %v2051_v17 = vrot.slane %v2026_v50, %v6161_v38  ;;  %v2055_v24 = vrot.slane %v2026_v50, %v6168_v47 }
 0x484   : > { %v2068_v62 = vsub.f32 %v6083_v56, %v2031_v30  ;;  %v2069_v0 = vsub.f32 %v6075_v51, %v2035_v54  ;;  %1501 = vperm.xlu1 %4551, %v6176_v58   ;;  %v2070_v4 = vsub.f32 %v6077_v52, %v2039_v57  ;;  %v6188_v7 = vpop.eup %4791  ;;  %v2047_v56 = vrot.slane %v2026_v50, %v6154_v26 }
 0x485   : > { %v2071_v51 = vsub.f32 %v6087_v59, %v2043_v3  ;;  %v6195_v15 = vpop.eup %4793  ;;  %v1472_v52 = vsub.f32 %v6089_v61, %v1456_v11  ;;  %v2073_v25 = vsub.f32 %v6099_v5, %v2051_v17  ;;  %v2074_v29 = vsub.f32 %v6093_v63, %v2055_v24 }
 0x486   : > { %v2078_v9 = vmul.f32 1.442695, %v2069_v0  ;;  %v2076_v13 = vmul.f32 1.442695, %v2068_v62  ;;  %v2080_v35 = vmul.f32 1.442695, %v2070_v4  ;;  %v2072_v55 = vsub.f32 %v6096_v2, %v2047_v56  ;;  %v6201_v22 = vpop.eup %4795 }
 0x487   : > { %1504 = vperm.xlu0 %4552, %v6188_v7   ;;  %v2082_v21 = vmul.f32 1.442695, %v2071_v51  ;;  %v1487_v59 = vmul.f32 1.442695, %v1472_v52  ;;  %v6206_v27 = vpop.eup %4797  ;;  %v2059_v2 = vrot.slane %v2026_v50, %v6179_v36  ;;  %v2086_v32 = vmul.f32 1.442695, %v2073_v25 }
 0x488   : > { %4799 = vpow2.f32 %v2078_v9  ;;  %v2084_v61 = vmul.f32 1.442695, %v2072_v55  ;;  %v2088_v40 = vmul.f32 1.442695, %v2074_v29 }
 0x489   : > { %4801 = vpow2.f32 %v2076_v13  ;;  %v2075_v34 = vsub.f32 %v6102_v8, %v2059_v2 }
 0x48a   : > { %4803 = vpow2.f32 %v2080_v35 }
 0x48b   : > { %1507 = vperm.xlu0 %4552, %v6195_v15   ;;  %4805 = vpow2.f32 %v1485_v16  ;;  %v2090_v63 = vmul.f32 1.442695, %v2075_v34 }
 0x48c   : > { %4807 = vpow2.f32 %v2082_v21 }
 0x48d   : > { %4809 = vpow2.f32 %v1487_v59 }
 0x48e   : > { %4811 = vpow2.f32 %v2084_v61 }
 0x48f   : > { %1510 = vperm.xlu0 %4552, %v6201_v22   ;;  %4813 = vpow2.f32 %v2086_v32 }
 0x490   : > { %4815 = vpow2.f32 %v2088_v40 }
 0x491   : > { %4817 = vpow2.f32 %v2090_v63 }
 0x492   : > { %v6208_v28 = vpop.eup %4799 }
 0x493   : > { %1513 = vperm.xlu0 %4552, %v6206_v27   ;;  %2104 = vperm.xlu1 %4551, %v6208_v28   ;;  %v6214_v33 = vpop.eup %4801 }
 0x494   : > { %v6216_v5 = vpop.eup %4803 }
 0x495   : > { %v6221_v42 = vpop.eup %4805 }
 0x496   : > { %v6223_v43 = vpop.eup %4807 }
 0x497   : > { %2101 = vperm.xlu0 %4552, %v6214_v33   ;;  %2107 = vperm.xlu1 %4551, %v6216_v5   ;;  %v6227_v44 = vpop.eup %4809 }
 0x498   : > { %v6229_v31 = vpop.eup %4811 }
 0x499   : > { %v6233_v8 = vpop.eup %4813 }
 0x49a   : > { %v6236_v37 = vpop.eup %4815 }
 0x49b   : > { %1516 = vperm.xlu0 %4552, %v6221_v42   ;;  %2110 = vperm.xlu1 %4551, %v6223_v43   ;;  %v6239_v48 = vpop.eup %4817 }
 0x49f   : > { %1519 = vperm.xlu0 %4552, %v6227_v44   ;;  %2113 = vperm.xlu1 %4551, %v6229_v31  }
 0x4a3   : > { %2116 = vperm.xlu1 %4551, %v6233_v8  }
 0x4a7   : > { %2119 = vperm.xlu1 %4551, %v6236_v37  }
 0x4ab   : > { %2122 = vperm.xlu1 %4551, %v6239_v48  }
 0x502   : > { %v1499_v49 = vpop.permute.xlu0 %1498 }
 0x503   : > { %v1502_v57 = vpop.permute.xlu1 %1501  ;;  %v1524_v0 = vrot.slane %v1499_v49, %v6107_v14 }
 0x504   : > { %v1528_v3 = vrot.slane %v1502_v57, %v6107_v14 }
 0x506   : > { %v1505_v50 = vpop.permute.xlu0 %1504  ;;  %v1553_v56 = vsel %vm1405_vm2, %v1528_v3, %v1524_v0 }
 0x507   : > { %v1532_v9 = vrot.slane %v1505_v50, %v6107_v14 }
 0x509   : > { %v1554_v52 = vsel %vm1407_vm3, %v1532_v9, %v1553_v56 }
 0x50a   : > { %v1508_v30 = vpop.permute.xlu0 %1507 }
 0x50b   : > { %v1536_v11 = vrot.slane %v1508_v30, %v6107_v14 }
 0x50d   : > { %v1555_v17 = vsel %vm1409_vm4, %v1536_v11, %v1554_v52 }
 0x50e   : > { %v1511_v54 = vpop.permute.xlu0 %1510 }
 0x50f   : > { %v1540_v12 = vrot.slane %v1511_v54, %v6107_v14 }
 0x511   : > { %v1556_v55 = vsel %vm1411_vm5, %v1540_v12, %v1555_v17 }
 0x512   : > { %v1514_v60 = vpop.permute.xlu0 %1513  ;;  %v2105_v46 = vpop.permute.xlu1 %2104 }
 0x513   : > { %v1544_v51 = vrot.slane %v1514_v60, %v6107_v14  ;;  %v2131_v40 = vrot.slane %v2105_v46, %v6107_v14 }
 0x515   : > { %v1557_v59 = vsel %vm1413_vm6, %v1544_v51, %v1556_v55 }
 0x516   : > { %v2102_v62 = vpop.permute.xlu0 %2101  ;;  %v2108_v4 = vpop.permute.xlu1 %2107 }
 0x517   : > { %v2127_v29 = vrot.slane %v2102_v62, %v6107_v14  ;;  %v2135_v63 = vrot.slane %v2108_v4, %v6107_v14 }
 0x519   : > { %v2156_v49 = vsel %vm1405_vm2, %v2131_v40, %v2127_v29 }
 0x51a   : > { %v1517_v13 = vpop.permute.xlu0 %1516  ;;  %v2111_v35 = vpop.permute.xlu1 %2110  ;;  %v2157_v60 = vsel %vm1407_vm3, %v2135_v63, %v2156_v49 }
 0x51b   : > { %v1548_v16 = vrot.slane %v1517_v13, %v6107_v14  ;;  %v2139_v50 = vrot.slane %v2111_v35, %v6107_v14 }
 0x51d   : > { %v1558_v61 = vsel %vm1415_vm7, %v1548_v16, %v1557_v59  ;;  %v2158_v0 = vsel %vm1409_vm4, %v2139_v50, %v2157_v60  ;;  %v3525_v60 = vadd.s32 4294967294, %v6052_v6 }
 0x51e   : > { %v1520_v21 = vpop.permute.xlu0 %1519  ;;  %v2114_v25 = vpop.permute.xlu1 %2113 }
 0x51f   : > { %v1552_v24 = vrot.slane %v1520_v21, %v6107_v14  ;;  %v2143_v30 = vrot.slane %v2114_v25, %v6107_v14 }
 0x521   : > { %v1559_v2 = vsel %vm1417_vm8, %v1552_v24, %v1558_v61  ;;  %v2159_v3 = vsel %vm1411_vm5, %v2143_v30, %v2158_v0 }
 0x522   : > { %v1561_v32 = vsel %vm1420_vm9, %v1559_v2, 0.0  ;;  %v2117_v34 = vpop.permute.xlu1 %2116 }
 0x523   : > { %1562 = vadd.xlane.f32.xlu0 %v1561_v32  ;;  %v2147_v57 = vrot.slane %v2117_v34, %v6107_v14 }
 0x525   : > { %v2160_v4 = vsel %vm1413_vm6, %v2147_v57, %v2159_v3  ;;  %v4594_v57 = vld [vmem:[#allocation15 + $0x38] sm:$0xff]  }
 0x526   : > { %v2120_v54 = vpop.permute.xlu1 %2119 }
 0x527   : > { %v2151_v62 = vrot.slane %v2120_v54, %v6107_v14  ;;  %v4587_v54 = vld [vmem:[#allocation15] sm:$0xff]  }
 0x528   : > { %4326 = vmatpush3.bf16.msra.mxu1 %v4587_v54  ;;  %4346 = vmatpush3.bf16.msra.mxu0 %v4587_v54 }
 0x529   : > { %v2161_v11 = vsel %vm1415_vm7, %v2151_v62, %v2160_v4  ;;  %4327 = vmatprep.subr.bf16.mxu1 %v5401_v1  ;;  %4347 = vmatprep.subr.bf16.mxu0 %v5401_v1  ;;  %v4853_v62 = vld [vmem:[%s5963_s14] sm:$0xff]  }
 0x52a   : > { %v2123_v46 = vpop.permute.xlu1 %2122  ;;  %v1614_v0 = vunpack.c.l.bf16 %v4853_v62  ;;  %v1615_v3 = vunpack.c.h.bf16 %v4853_v62 }
 0x52b   : > { %v2155_v9 = vrot.slane %v2123_v46, %v6107_v14  ;;  %v6323_v46 = vsub.s32 %v3525_v60, %v6026_v39 }
 0x52d   : > { %v2162_v12 = vsel %vm1417_vm8, %v2155_v9, %v2161_v11  ;;  %v4854_v11 = vld [vmem:[%s5963_s14 + $0x8] sm:$0xff]  }
 0x52e   : > { %v2164_v13 = vsel %vm1420_vm9, %v2162_v12, 0.0  ;;  %v1616_v12 = vunpack.c.l.bf16 %v4854_v11 }
 0x52f   : > { %2165 = vadd.xlane.f32.xlu1 %v2164_v13 }
 0x5b0   : > { %v1563_v56 = vpop.xlane.xlu0 %1562 }
 0x5b1   : > { %4819 = vrcp.f32 %v1563_v56 }
 0x5bb   : > { %v4820_v51 = vpop.eup %4819 }
 0x5bc   : > { %v1569_v35 = vrot.slane %v4820_v51, %v6035_v45  ;;  %v1573_v52 = vrot.slane %v4820_v51, %v6142_v18  ;;  %v2166_v16 = vpop.xlane.xlu1 %2165  ;;  %v1577_v55 = vrot.slane %v4820_v51, %v6145_v19  ;;  %v1581_v59 = vrot.slane %v4820_v51, %v6148_v20 }
 0x5bd   : > { %4821 = vrcp.f32 %v2166_v16  ;;  %v1585_v25 = vrot.slane %v4820_v51, %v6154_v26  ;;  %v1593_v63 = vrot.slane %v4820_v51, %v6168_v47  ;;  %v1597_v50 = vrot.slane %v4820_v51, %v6179_v36 }
 0x5be   : > { %v1606_v17 = vmul.f32 %v6171_v53, %v1569_v35  ;;  %v1607_v14 = vmul.f32 %v6176_v58, %v1573_v52  ;;  %v1608_v21 = vmul.f32 %v6188_v7, %v1577_v55  ;;  %v1609_v24 = vmul.f32 %v6195_v15, %v1581_v59 }
 0x5bf   : > { %v1610_v53 = vmul.f32 %v6201_v22, %v1585_v25  ;;  %v1589_v58 = vrot.slane %v4820_v51, %v6161_v38  ;;  %v1617_v55 = vunpack.c.h.bf16 %v4854_v11 }
 0x5c0   : > { %1624 = vperm.xlu0 %4552, %v1606_v17   ;;  %1629 = vperm.xlu1 %4551, %v1607_v14  }
 0x5c1   : > { %v1611_v7 = vmul.f32 %v6206_v27, %v1589_v58  ;;  %v1612_v27 = vmul.f32 %v6221_v42, %v1593_v63  ;;  %v4588_v42 = vld [vmem:[#allocation15 + $0x8] sm:$0xff]  }
 0x5c2   : > { %4328 = vmatpush3.bf16.msra.mxu1 %v4588_v42  ;;  %4348 = vmatpush3.bf16.msra.mxu0 %v4588_v42  ;;  %v6340_v42 = vld [vmem:[%s5966_s21 + $0x8] sm:$0xff]  }
 0x5c3   : > { %4329 = vmatprep.subr.bf16.mxu1 %v5401_v1  ;;  %4349 = vmatprep.subr.bf16.mxu0 %v5401_v1 }
 0x5c4   : > { %1634 = vperm.xlu0 %4552, %v1608_v21  }
 0x5c7   : > { %v4822_v61 = vpop.eup %4821 }
 0x5c8   : > { %1639 = vperm.xlu0 %4552, %v1609_v24   ;;  %v2176_v2 = vrot.slane %v4822_v61, %v6142_v18  ;;  %v2180_v32 = vrot.slane %v4822_v61, %v6145_v19  ;;  %v2172_v15 = vrot.slane %v4822_v61, %v6035_v45  ;;  %v2184_v40 = vrot.slane %v4822_v61, %v6148_v20 }
 0x5c9   : > { %v2188_v49 = vrot.slane %v4822_v61, %v6154_v26  ;;  %v2192_v30 = vrot.slane %v4822_v61, %v6161_v38 }
 0x5ca   : > { %v2210_v29 = vmul.f32 %v6208_v28, %v2176_v2  ;;  %v2211_v34 = vmul.f32 %v6216_v5, %v2180_v32  ;;  %v2209_v22 = vmul.f32 %v6214_v33, %v2172_v15  ;;  %v2212_v28 = vmul.f32 %v6223_v43, %v2184_v40 }
 0x5cb   : > { %v2213_v5 = vmul.f32 %v6229_v31, %v2188_v49  ;;  %v1613_v33 = vmul.f32 %v6227_v44, %v1597_v50  ;;  %v2214_v26 = vmul.f32 %v6233_v8, %v2192_v30  ;;  %v2196_v43 = vrot.slane %v4822_v61, %v6168_v47  ;;  %v4589_v44 = vld [vmem:[#allocation15 + $0x10] sm:$0xff]   ;;  %v4590_v47 = vld [vmem:[#allocation15 + $0x18] sm:$0xff]  }
 0x5cc   : > { %1644 = vperm.xlu0 %4552, %v1610_v53   ;;  %2232 = vperm.xlu1 %4551, %v2210_v29   ;;  %v2200_v31 = vrot.slane %v4822_v61, %v6179_v36  ;;  %v4591_v36 = vld [vmem:[#allocation15 + $0x20] sm:$0xff]   ;;  %v3566_v61 = vadd.s32 4294967286, %v6052_v6 }
 0x5cd   : > { %v2215_v38 = vmul.f32 %v6236_v37, %v2196_v43  ;;  %4330 = vmatpush3.bf16.msra.mxu1 %v4589_v44  ;;  %4350 = vmatpush3.bf16.msra.mxu0 %v4589_v44  ;;  %v4592_v37 = vld [vmem:[#allocation15 + $0x28] sm:$0xff]  }
 0x5ce   : > { %v2216_v8 = vmul.f32 %v6239_v48, %v2200_v31  ;;  %4331 = vmatprep.subr.bf16.mxu1 %v5401_v1  ;;  %4351 = vmatprep.subr.bf16.mxu0 %v5401_v1  ;;  %v4593_v48 = vld [vmem:[#allocation15 + $0x30] sm:$0xff]  }
 0x5d0   : > { %1649 = vperm.xlu0 %4552, %v1611_v7   ;;  %2237 = vperm.xlu1 %4551, %v2211_v34  }
 0x5d1   : > { %4332 = vmatpush3.bf16.msra.mxu1 %v4590_v47  ;;  %4352 = vmatpush3.bf16.msra.mxu0 %v4590_v47 }
 0x5d2   : > { %4333 = vmatprep.subr.bf16.mxu1 %v5401_v1  ;;  %4353 = vmatprep.subr.bf16.mxu0 %v5401_v1 }
 0x5d4   : > { %2227 = vperm.xlu0 %4552, %v2209_v22   ;;  %2242 = vperm.xlu1 %4551, %v2212_v28   ;;  %v6333_v22 = vsub.s32 %v3566_v61, %v6026_v39  ;;  %v4855_v28 = vld [vmem:[%s5963_s14 + $0x10] sm:$0xff]  }
 0x5d5   : > { %4334 = vmatpush3.bf16.msra.mxu1 %v4591_v36  ;;  %4354 = vmatpush3.bf16.msra.mxu0 %v4591_v36  ;;  %v1618_v49 = vunpack.c.l.bf16 %v4855_v28  ;;  %v1619_v43 = vunpack.c.h.bf16 %v4855_v28 }
 0x5d6   : > { %4335 = vmatprep.subr.bf16.mxu1 %v5401_v1  ;;  %4355 = vmatprep.subr.bf16.mxu0 %v5401_v1 }
 0x5d8   : > { %1654 = vperm.xlu0 %4552, %v1612_v27   ;;  %2247 = vperm.xlu1 %4551, %v2213_v5   ;;  %v4856_v27 = vld [vmem:[%s5966_s21] sm:$0xff]  }
 0x5d9   : > { %4336 = vmatpush3.bf16.msra.mxu1 %v4592_v37  ;;  %4356 = vmatpush3.bf16.msra.mxu0 %v4592_v37  ;;  %v2218_v6 = vunpack.c.h.bf16 %v4856_v27 }
 0x5da   : > { %4337 = vmatprep.subr.bf16.mxu1 %v5401_v1  ;;  %4357 = vmatprep.subr.bf16.mxu0 %v5401_v1 }
 0x5dc   : > { %1659 = vperm.xlu0 %4552, %v1613_v33   ;;  %2252 = vperm.xlu1 %4551, %v2214_v26  }
 0x5dd   : > { %4338 = vmatpush3.bf16.msra.mxu1 %v4593_v48  ;;  %4358 = vmatpush3.bf16.msra.mxu0 %v4593_v48 }
 0x5de   : > { %4339 = vmatprep.subr.bf16.mxu1 %v5401_v1  ;;  %4359 = vmatprep.subr.bf16.mxu0 %v5401_v1 }
 0x5e0   : > { %2257 = vperm.xlu1 %4551, %v2215_v38   ;;  %v2219_v38 = vunpack.c.l.bf16 %v6340_v42 }
 0x5e1   : > { %4340 = vmatpush3.bf16.msra.mxu1 %v4594_v57  ;;  %4360 = vmatpush3.bf16.msra.mxu0 %v4594_v57 }
 0x5e4   : > { %2262 = vperm.xlu1 %4551, %v2216_v8  }
 0x63f   : > { %v1625_v4 = vpop.permute.xlu0 %1624  ;;  %v1630_v9 = vpop.permute.xlu1 %1629 }
 0x640   : > { %v1662_v13 = vmul.f32 %v1625_v4, %v1614_v0  ;;  %v3529_v56 = vrot.slane %v1625_v4, %v6323_v46  ;;  %v1663_v51 = vmul.f32 %v1630_v9, %v1615_v3  ;;  %v3533_v35 = vrot.slane %v1630_v9, %v6323_v46 }
 0x641   : > { %v2217_v0 = vunpack.c.l.bf16 %v4856_v27  ;;  %v2220_v3 = vunpack.c.h.bf16 %v6340_v42 }
 0x642   : > { %v1670_v52 = vrot.slane %v1662_v13, 4  ;;  %v1676_v16 = vrot.slane %v1663_v51, 4  ;;  %v3558_v17 = vsel %vm1405_vm2, %v3533_v35, %v3529_v56 }
 0x643   : > { %v1635_v14 = vpop.permute.xlu0 %1634 }
 0x644   : > { %v1671_v21 = vadd.f32 %v1670_v52, %v1662_v13  ;;  %v1677_v59 = vadd.f32 %v1676_v16, %v1663_v51  ;;  %v1664_v24 = vmul.f32 %v1635_v14, %v1616_v12  ;;  %v3537_v25 = vrot.slane %v1635_v14, %v6323_v46  ;;  %v6349_v52 = vld [vmem:[%s5963_s14 + $0x18] sm:$0xff]   ;;  %s895_s14 = scalar_lea.vmem [#allocation25], %s5945_s5 }
 0x645   : > { %v1620_v16 = vunpack.c.l.bf16 %v6349_v52 }
 0x646   : > { %v1672_v2 = vrot.slane %v1671_v21, 2  ;;  %v1678_v53 = vrot.slane %v1677_v59, 2  ;;  %v1682_v58 = vrot.slane %v1664_v24, 4  ;;  %v3559_v29 = vsel %vm1407_vm3, %v3537_v25, %v3558_v17  ;;  %v6353_v17 = vld [vmem:[%s5966_s21 + $0x10] sm:$0xff]  }
 0x647   : > { %v1640_v32 = vpop.permute.xlu0 %1639  ;;  %v2221_v14 = vunpack.c.l.bf16 %v6353_v17 }
 0x648   : > { %v1673_v7 = vadd.f32 %v1672_v2, %v1671_v21  ;;  %v1679_v15 = vadd.f32 %v1678_v53, %v1677_v59  ;;  %v1683_v34 = vadd.f32 %v1682_v58, %v1664_v24  ;;  %v1665_v40 = vmul.f32 %v1640_v32, %v1617_v55 }
 0x649   : > { %v3541_v63 = vrot.slane %v1640_v32, %v6323_v46  ;;  %v1621_v53 = vunpack.c.h.bf16 %v6349_v52 }
 0x64a   : > { %v1674_v50 = vrot.slane %v1673_v7, 1  ;;  %v1680_v5 = vrot.slane %v1679_v15, 1  ;;  %v1684_v30 = vrot.slane %v1683_v34, 2  ;;  %v1688_v54 = vrot.slane %v1665_v40, 4 }
 0x64b   : > { %v3560_v33 = vsel %vm1409_vm4, %v3541_v63, %v3559_v29  ;;  %v1645_v26 = vpop.permute.xlu0 %1644  ;;  %v2233_v47 = vpop.permute.xlu1 %2232 }
 0x64c   : > { %v1675_v39 = vadd.f32 %v1674_v50, %v1673_v7  ;;  %v1681_v31 = vadd.f32 %v1680_v5, %v1679_v15  ;;  %v1685_v44 = vadd.f32 %v1684_v30, %v1683_v34  ;;  %v1689_v8 = vadd.f32 %v1688_v54, %v1665_v40 }
 0x64d   : > { %v1666_v36 = vmul.f32 %v1645_v26, %v1618_v49  ;;  %v3545_v37 = vrot.slane %v1645_v26, %v6323_v46  ;;  %v2266_v48 = vmul.f32 %v2233_v47, %v2218_v6  ;;  %v3574_v57 = vrot.slane %v2233_v47, %v6333_v22 }
 0x64e   : > { %v2579_v60 = vsel %vm1405_vm2, %v1681_v31, %v1675_v39  ;;  %v1686_v62 = vrot.slane %v1685_v44, 1  ;;  %v1690_v4 = vrot.slane %v1689_v8, 2  ;;  %v2346_v25 = vpack.c.bf16 %v1675_v39, %v1675_v39 }
 0x64f   : > { %v1694_v9 = vrot.slane %v1666_v36, 4  ;;  %v3561_v11 = vsel %vm1411_vm5, %v3545_v37, %v3560_v33  ;;  %v2279_v12 = vrot.slane %v2266_v48, 4  ;;  %v1650_v13 = vpop.permute.xlu0 %1649  ;;  %v2238_v35 = vpop.permute.xlu1 %2237  ;;  %v2222_v49 = vunpack.c.h.bf16 %v6353_v17 }
 0x650   : > { %v1687_v56 = vadd.f32 %v1686_v62, %v1685_v44  ;;  %v1667_v51 = vmul.f32 %v1650_v13, %v1619_v43  ;;  %v1691_v55 = vadd.f32 %v1690_v4, %v1689_v8  ;;  %v3549_v24 = vrot.slane %v1650_v13, %v6323_v46 }
 0x651   : > { %v1695_v21 = vadd.f32 %v1694_v9, %v1666_v36  ;;  %v2280_v59 = vadd.f32 %v2279_v12, %v2266_v48  ;;  %v2267_v40 = vmul.f32 %v2238_v35, %v2219_v38  ;;  %v3578_v63 = vrot.slane %v2238_v35, %v6333_v22  ;;  %v6370_v35 = vld [vmem:[%s5966_s21 + $0x18] sm:$0xff]  }
 0x652   : > { %v2580_v61 = vsel %vm1407_vm3, %v1687_v56, %v2579_v60  ;;  %v1700_v2 = vrot.slane %v1667_v51, 4  ;;  %v1692_v58 = vrot.slane %v1691_v55, 1  ;;  %v6360_v7 = vsel %vm1413_vm6, %v3549_v24, %v3561_v11 }
 0x653   : > { %v1696_v29 = vrot.slane %v1695_v21, 2  ;;  %v2281_v32 = vrot.slane %v2280_v59, 2  ;;  %v2228_v15 = vpop.permute.xlu0 %2227  ;;  %v2243_v28 = vpop.permute.xlu1 %2242  ;;  %v2347_v27 = vpack.c.bf16 %v1681_v31, %v1681_v31  ;;  %v2362_v30 = vunpack.c.l.b16 %v2346_v25 }
 0x654   : > { %v1701_v34 = vadd.f32 %v1700_v2, %v1667_v51  ;;  %v1693_v6 = vadd.f32 %v1692_v58, %v1691_v55  ;;  %v2265_v5 = vmul.f32 %v2228_v15, %v2217_v0  ;;  %v2285_v33 = vrot.slane %v2267_v40, 4 }
 0x655   : > { %v1697_v50 = vadd.f32 %v1696_v29, %v1695_v21  ;;  %v3570_v26 = vrot.slane %v2228_v15, %v6333_v22  ;;  %v2348_v43 = vpack.c.bf16 %v1687_v56, %v1687_v56  ;;  %v2282_v44 = vadd.f32 %v2281_v32, %v2280_v59 }
 0x656   : > { %v1702_v54 = vrot.slane %v1701_v34, 2  ;;  %v2581_v42 = vsel %vm1409_vm4, %v1693_v6, %v2580_v61  ;;  %v2286_v8 = vadd.f32 %v2285_v33, %v2267_v40  ;;  %v2273_v47 = vrot.slane %v2265_v5, 4 }
 0x657   : > { %v1698_v39 = vrot.slane %v1697_v50, 1  ;;  %v3599_v36 = vsel %vm1405_vm2, %v3574_v57, %v3570_v26  ;;  %v2248_v31 = vpop.permute.xlu1 %2247  ;;  %v2363_v37 = vunpack.c.l.b16 %v2347_v27  ;;  %v2349_v48 = vpack.c.bf16 %v1693_v6, %v1693_v6  ;;  %v1655_v12 = vpop.permute.xlu0 %1654 }
 0x658   : > { %v1703_v38 = vadd.f32 %v1702_v54, %v1701_v34  ;;  %v3600_v62 = vsel %vm1407_vm3, %v3578_v63, %v3599_v36  ;;  %v2287_v4 = vrot.slane %v2286_v8, 2  ;;  %v2274_v9 = vadd.f32 %v2273_v47, %v2265_v5 }
 0x659   : > { %v1699_v60 = vadd.f32 %v1698_v39, %v1697_v50  ;;  %v2268_v11 = vmul.f32 %v2243_v28, %v2220_v3  ;;  %v2364_v13 = vunpack.c.l.b16 %v2348_v43  ;;  %v2283_v51 = vrot.slane %v2282_v44, 1 }
 0x65a   : > { %v1704_v0 = vrot.slane %v1703_v38, 1  ;;  %v2223_v55 = vunpack.c.l.bf16 %v6370_v35  ;;  %v2288_v21 = vadd.f32 %v2287_v4, %v2286_v8  ;;  %v2275_v59 = vrot.slane %v2274_v9, 2 }
 0x65b   : > { %v2582_v56 = vsel %vm1411_vm5, %v1699_v60, %v2581_v42  ;;  %v2291_v24 = vrot.slane %v2268_v11, 4  ;;  %v2370_v25 = vsel %vm1405_vm2, %v2363_v37, %v2362_v30  ;;  %v3582_v61 = vrot.slane %v2243_v28, %v6333_v22  ;;  %v2253_v34 = vpop.permute.xlu1 %2252  ;;  %v1660_v43 = vpop.permute.xlu0 %1659 }
 0x65c   : > { %v6373_v57 = vadd.f32 %v1704_v0, %v1703_v38  ;;  %v1668_v2 = vmul.f32 %v1655_v12, %v1620_v16  ;;  %v2224_v3 = vunpack.c.h.bf16 %v6370_v35  ;;  %v2365_v58 = vunpack.c.l.b16 %v2349_v48 }
 0x65d   : > { %v2289_v32 = vrot.slane %v2288_v21, 1  ;;  %v2276_v15 = vadd.f32 %v2275_v59, %v2274_v9  ;;  %v2371_v40 = vsel %vm1407_vm3, %v2364_v13, %v2370_v25  ;;  %v2292_v63 = vadd.f32 %v2291_v24, %v2268_v11 }
 0x65e   : > { %v2583_v29 = vsel %vm1413_vm6, %v6373_v57, %v2582_v56  ;;  %v3601_v27 = vsel %vm1409_vm4, %v3582_v61, %v3600_v62  ;;  %v1706_v6 = vrot.slane %v1668_v2, 4  ;;  %v2350_v50 = vpack.c.bf16 %v1699_v60, %v1699_v60 }
 0x65f   : > { %v2284_v5 = vadd.f32 %v2283_v51, %v2282_v44  ;;  %v2277_v30 = vrot.slane %v2276_v15, 1  ;;  %v3553_v16 = vrot.slane %v1655_v12, %v6323_v46  ;;  %v2293_v28 = vrot.slane %v2292_v63, 2 }
 0x660   : > { %v1707_v54 = vadd.f32 %v1706_v6, %v1668_v2  ;;  %v2269_v33 = vmul.f32 %v2248_v31, %v2221_v14  ;;  %v3586_v26 = vrot.slane %v2248_v31, %v6333_v22  ;;  %v2372_v42 = vsel %vm1409_vm4, %v2365_v58, %v2371_v40  ;;  %v2258_v31 = vpop.permute.xlu1 %2257 }
 0x661   : > { %v2290_v39 = vadd.f32 %v2289_v32, %v2288_v21  ;;  %v2278_v38 = vadd.f32 %v2277_v30, %v2276_v15  ;;  %v3563_v8 = vsel %vm1415_vm7, %v3553_v16, %v6360_v7  ;;  %v2294_v47 = vadd.f32 %v2293_v28, %v2292_v63 }
 0x662   : > { %v1708_v44 = vrot.slane %v1707_v54, 2  ;;  %v2297_v36 = vrot.slane %v2269_v33, 4  ;;  %v3602_v37 = vsel %vm1411_vm5, %v3586_v26, %v3601_v27  ;;  %v2366_v48 = vunpack.c.l.b16 %v2350_v50 }
 0x663   : > { %v2470_v60 = vpack.c.bf16 %v2284_v5, %v2284_v5  ;;  %v2596_v62 = vsel %vm1405_vm2, %v2284_v5, %v2278_v38  ;;  %v1669_v14 = vmul.f32 %v1660_v43, %v1621_v53  ;;  %v2295_v4 = vrot.slane %v2294_v47, 1 }
 0x664   : > { %v2597_v0 = vsel %vm1407_vm3, %v2290_v39, %v2596_v62  ;;  %v1709_v9 = vadd.f32 %v1708_v44, %v1707_v54  ;;  %v2298_v11 = vadd.f32 %v2297_v36, %v2269_v33  ;;  %v2469_v12 = vpack.c.bf16 %v2278_v38, %v2278_v38 }
 0x665   : > { %v1712_v7 = vrot.slane %v1669_v14, 4  ;;  %v3557_v13 = vrot.slane %v1660_v43, %v6323_v46  ;;  %v2270_v56 = vmul.f32 %v2253_v34, %v2222_v49  ;;  %v2296_v51 = vadd.f32 %v2295_v4, %v2294_v47 }
 0x666   : > { %v1710_v21 = vrot.slane %v1709_v9, 1  ;;  %v2299_v59 = vrot.slane %v2298_v11, 2  ;;  %v3590_v24 = vrot.slane %v2253_v34, %v6333_v22  ;;  %v2486_v52 = vunpack.c.l.b16 %v2470_v60  ;;  %v2263_v34 = vpop.permute.xlu1 %2262 }
 0x667   : > { %v1713_v53 = vadd.f32 %v1712_v7, %v1669_v14  ;;  %v6399_v25 = vsel %vm1417_vm8, %v3557_v13, %v3563_v8  ;;  %v2303_v61 = vrot.slane %v2270_v56, 4  ;;  %v2373_v2 = vsel %vm1411_vm5, %v2366_v48, %v2372_v42 }
 0x668   : > { %v2351_v58 = vpack.c.bf16 %v6373_v57, %v6373_v57  ;;  %v2598_v46 = vsel %vm1409_vm4, %v2296_v51, %v2597_v0  ;;  %v1711_v17 = vadd.f32 %v1710_v21, %v1709_v9  ;;  %v2300_v49 = vadd.f32 %v2299_v59, %v2298_v11 }
 0x669   : > { %v1714_v32 = vrot.slane %v1713_v53, 2  ;;  %v2304_v15 = vadd.f32 %v2303_v61, %v2270_v56  ;;  %v3603_v40 = vsel %vm1413_vm6, %v3590_v24, %v3602_v37  ;;  %v2471_v63 = vpack.c.bf16 %v2290_v39, %v2290_v39 }
 0x66a   : > { %v2485_v27 = vunpack.c.l.b16 %v2469_v12  ;;  %v2584_v6 = vsel %vm1415_vm7, %v1711_v17, %v2583_v29  ;;  %v2271_v50 = vmul.f32 %v2258_v31, %v2223_v55  ;;  %v2301_v5 = vrot.slane %v2300_v49, 1 }
 0x66b   : > { %v1715_v30 = vadd.f32 %v1714_v32, %v1713_v53  ;;  %v2305_v16 = vrot.slane %v2304_v15, 2  ;;  %v3594_v57 = vrot.slane %v2258_v31, %v6333_v22  ;;  %v2367_v28 = vunpack.c.l.b16 %v2351_v58 }
 0x66c   : > { %v2352_v54 = vpack.c.bf16 %v1711_v17, %v1711_v17  ;;  %v2309_v33 = vrot.slane %v2271_v50, 4  ;;  %v2272_v26 = vmul.f32 %v2263_v34, %v2224_v3  ;;  %v2302_v43 = vadd.f32 %v2301_v5, %v2300_v49 }
 0x66d   : > { %v1716_v42 = vrot.slane %v1715_v30, 1  ;;  %v2306_v39 = vadd.f32 %v2305_v16, %v2304_v15  ;;  %v3604_v38 = vsel %vm1415_vm7, %v3594_v57, %v3603_v40  ;;  %v2487_v29 = vunpack.c.l.b16 %v2471_v63 }
 0x66e   : > { %v2310_v8 = vadd.f32 %v2309_v33, %v2271_v50  ;;  %v2315_v47 = vrot.slane %v2272_v26, 4  ;;  %v3598_v55 = vrot.slane %v2263_v34, %v6333_v22  ;;  %v2493_v44 = vsel %vm1405_vm2, %v2486_v52, %v2485_v27 }
 0x66f   : > { %v2599_v36 = vsel %vm1411_vm5, %v2302_v43, %v2598_v46  ;;  %v1717_v37 = vadd.f32 %v1716_v42, %v1715_v30  ;;  %v2307_v48 = vrot.slane %v2306_v39, 1  ;;  %v2368_v60 = vunpack.c.l.b16 %v2352_v54 }
 0x670   : > { %v2311_v62 = vrot.slane %v2310_v8, 2  ;;  %v2316_v35 = vadd.f32 %v2315_v47, %v2272_v26  ;;  %v6417_v3 = vsel %vm1417_vm8, %v3598_v55, %v3604_v38  ;;  %v2472_v14 = vpack.c.bf16 %v2296_v51, %v2296_v51 }
 0x671   : > { %v2353_v31 = vpack.c.bf16 %v1717_v37, %v1717_v37  ;;  %v2308_v0 = vadd.f32 %v2307_v48, %v2306_v39  ;;  %v6420_v4 = vsel %vm1417_vm8, %v1717_v37, %v2584_v6  ;;  %v2374_v22 = vsel %vm1413_vm6, %v2367_v28, %v2373_v2  ;;  %v4597_v37 = vld [vmem:[#allocation19 + $0x4] ss:$16 sps:$4 sm:$0xff]   ;;  %v4600_v48 = vld [vmem:[#allocation19 + $0xc] ss:$16 sps:$4 sm:$0xff]  }
 0x672   : > { %v2312_v9 = vadd.f32 %v2311_v62, %v2310_v8  ;;  %v2317_v11 = vrot.slane %v2316_v35, 2  ;;  %v2494_v12 = vsel %vm1407_vm3, %v2487_v29, %v2493_v44  ;;  %v2473_v7 = vpack.c.bf16 %v2302_v43, %v2302_v43  ;;  %v4073_v8 = vld [vmem:[%s6749_s19] ss:$0 sm:$0xff]  ;;  %v4598_v62 = vld [vmem:[#allocation19 + $0x8] ss:$16 sps:$4 sm:$0xff]   ;;  %2863 = vmatprep.subr.bf16.mxu1 %v4597_v37  ;;  %2904 = vmatprep.subr.bf16.mxu0 %v4600_v48  ;;  %s5193_s19 = scalar_lea.vmem %s3658_s13, 128 }
 0x673   : > { %v2369_v13 = vunpack.c.l.b16 %v2353_v31  ;;  %v2600_v56 = vsel %vm1413_vm6, %v2308_v0, %v2599_v36  ;;  %v2474_v21 = vpack.c.bf16 %v2308_v0, %v2308_v0  ;;  %v2375_v51 = vsel %vm1415_vm7, %v2368_v60, %v2374_v22  ;;  %v4595_v60 = vld [vmem:[#allocation19] ss:$16 sps:$4 sm:$0xff]   ;;  %v4604_v31 = vld [vmem:[#allocation19 + $0x28] ss:$16 sps:$4 sm:$0xff]   ;;  %v4609_v0 = vld [vmem:[#allocation19 + $0x44] ss:$16 sps:$4 sm:$0xff]   ;;  %p5194_p6 = scmp.ne.s32.totalorder %s3658_s13, %s5193_s19 }
 0x674   : > { %v2313_v59 = vrot.slane %v2312_v9, 1  ;;  %v2318_v24 = vadd.f32 %v2317_v11, %v2316_v35  ;;  %v2488_v52 = vunpack.c.l.b16 %v2472_v14  ;;  %v2489_v17 = vunpack.c.l.b16 %v2473_v7  ;;  %v4606_v35 = vld [vmem:[#allocation19 + $0x2c] ss:$16 sps:$4 sm:$0xff]   ;;  %v4601_v14 = vld [vmem:[#allocation19 + $0x20] ss:$16 sps:$4 sm:$0xff]  }
 0x675   : > { %v2376_v53 = vsel %vm1417_vm8, %v2369_v13, %v2375_v51  ;;  %v2490_v49 = vunpack.c.l.b16 %v2474_v21  ;;  %v4612_v22 = vld [vmem:[#allocation19 + $0x4c] ss:$16 sps:$4 sm:$0xff]   ;;  %v4610_v11 = vld [vmem:[#allocation19 + $0x48] ss:$16 sps:$4 sm:$0xff]   ;;  %v4613_v13 = vld [vmem:[#allocation19 + $0x60] ss:$16 sps:$4 sm:$0xff]   ;;  %p5195_p13 = pnand %p5194_p6, %p6754_p4 }
 0x676   : > { %v2314_v61 = vadd.f32 %v2313_v59, %v2312_v9  ;;  %v2319_v58 = vrot.slane %v2318_v24, 1  ;;  %v2377_v46 = vpack.c.b16 %v2376_v53, %v2376_v53  ;;  %v2495_v2 = vsel %vm1409_vm4, %v2488_v52, %v2494_v12  ;;  %v4607_v9 = vld [vmem:[#allocation19 + $0x40] ss:$16 sps:$4 sm:$0xff]   ;;  %v4615_v12 = vld [vmem:[#allocation19 + $0x64] ss:$16 sps:$4 sm:$0xff]  }
 0x677   : > { %v2496_v6 = vsel %vm1411_vm5, %v2489_v17, %v2495_v2  ;;  %v4618_v7 = vld [vmem:[#allocation19 + $0x6c] ss:$16 sps:$4 sm:$0xff]   ;;  %v4621_v21 = vld [vmem:[#allocation19 + $0x84] ss:$16 sps:$4 sm:$0xff]   ;;  %v4619_v59 = vld [vmem:[#allocation19 + $0x80] ss:$16 sps:$4 sm:$0xff]   ;;  %p5196_p8 = pneg %p5195_p13 }
 0x678   : > { %v2475_v32 = vpack.c.bf16 %v2314_v61, %v2314_v61  ;;  %v2601_v15 = vsel %vm1415_vm7, %v2314_v61, %v2600_v56  ;;  %v2320_v40 = vadd.f32 %v2319_v58, %v2318_v24  ;;  %4342 = vmatmul.mubr.bf16.vlgmr.msra.gmra.mrb[8].mxu1 %v2377_v46  ;;  %v2497_v50 = vsel %vm1413_vm6, %v2490_v49, %v2496_v6  ;;  %v4616_v56 = vld [vmem:[#allocation19 + $0x68] ss:$16 sps:$4 sm:$0xff]   ;;  %v4624_v51 = vld [vmem:[#allocation19 + $0x8c] ss:$16 sps:$4 sm:$0xff]   ;;  %v4627_v52 = vld [vmem:[#allocation19 + $0xa4] ss:$16 sps:$4 sm:$0xff]  }
 0x679   : > { %2895 = vmatprep.mubr.bf16.mxu1 %v5404_v10  ;;  %2864 = vmatpush1.bf16.msra.mxu1 %v4595_v60  ;;  %v4622_v24 = vld [vmem:[#allocation19 + $0x88] ss:$16 sps:$4 sm:$0xff]   ;;  %v4630_v53 = vld [vmem:[#allocation19 + $0xac] ss:$16 sps:$4 sm:$0xff]   ;;  %v4625_v61 = vld [vmem:[#allocation19 + $0xa0] ss:$16 sps:$4 sm:$0xff]  }
 0x67a   : > { %v2491_v34 = vunpack.c.l.b16 %v2475_v32  ;;  %v2476_v63 = vpack.c.bf16 %v2320_v40, %v2320_v40  ;;  %v6431_v27 = vsel %vm1417_vm8, %v2320_v40, %v2601_v15  ;;  %v4628_v58 = vld [vmem:[#allocation19 + $0xa8] ss:$16 sps:$4 sm:$0xff]   ;;  %v4633_v46 = vld [vmem:[#allocation19 + $0xc4] ss:$16 sps:$4 sm:$0xff]   ;;  %v4636_v2 = vld [vmem:[#allocation19 + $0xcc] ss:$16 sps:$4 sm:$0xff]  }
 0x67b   : > { %v4631_v17 = vld [vmem:[#allocation19 + $0xc0] ss:$16 sps:$4 sm:$0xff]   ;;  %v4634_v49 = vld [vmem:[#allocation19 + $0xc8] ss:$16 sps:$4 sm:$0xff]   ;;  %v4639_v32 = vld [vmem:[#allocation19 + $0xe4] ss:$16 sps:$4 sm:$0xff]  }
 0x67c   : > { %v2492_v5 = vunpack.c.l.b16 %v2476_v63  ;;  %v2498_v30 = vsel %vm1415_vm7, %v2491_v34, %v2497_v50  ;;  %v4642_v15 = vld [vmem:[#allocation19 + $0xec] ss:$16 sps:$4 sm:$0xff]   ;;  %v4637_v40 = vld [vmem:[#allocation19 + $0xe0] ss:$16 sps:$4 sm:$0xff]   ;;  %v4640_v34 = vld [vmem:[#allocation19 + $0xe8] ss:$16 sps:$4 sm:$0xff]   ;;  %v2554_v50 = vstv %s4074_s0 }
 0x67d   : > { %v4645_v63 = vld [vmem:[#allocation18 + $0x4] ss:$16 sps:$4 sm:$0xff]   ;;  %v4648_v6 = vld [vmem:[#allocation18 + $0xc] ss:$16 sps:$4 sm:$0xff]   ;;  %v4643_v60 = vld [vmem:[#allocation18] ss:$16 sps:$4 sm:$0xff]  }
 0x67e   : > { %v2499_v16 = vsel %vm1417_vm8, %v2492_v5, %v2498_v30  ;;  %s5406_s0 = smov [#allocation23]  }
 0x67f   : > { %v2500_v57 = vpack.c.b16 %v2499_v16, %v2499_v16 }
 0x681   : > { %4362 = vmatmul.mubr.bf16.vlgmr.msra.gmra.mrb[12].mxu0 %v2500_v57 }
 0x682   : > { %2936 = vmatprep.mubr.bf16.mxu0 %v5404_v10  ;;  %2905 = vmatpush1.bf16.msra.mxu0 %v4598_v62  ;;  %v4646_v62 = vld [vmem:[#allocation18 + $0x8] ss:$16 sps:$4 sm:$0xff]  }
 0x683   : > { %2906 = vmatprep.subr.bf16.mxu0 %v4606_v35  ;;  %v4651_v35 = vld [vmem:[#allocation18 + $0x24] ss:$16 sps:$4 sm:$0xff]  }
 0x686   : > { %2907 = vmatpush1.bf16.msra.mxu0 %v4604_v31  ;;  %v4660_v31 = vld [vmem:[#allocation18 + $0x4c] ss:$16 sps:$4 sm:$0xff]  }
 0x687   : > { %2908 = vmatprep.subr.bf16.mxu0 %v4612_v22  ;;  %v4663_v22 = vld [vmem:[#allocation18 + $0x64] ss:$16 sps:$4 sm:$0xff]  }
 0x68a   : > { %2909 = vmatpush1.bf16.msra.mxu0 %v4610_v11  ;;  %v4661_v11 = vld [vmem:[#allocation18 + $0x60] ss:$16 sps:$4 sm:$0xff]  }
 0x68b   : > { %2910 = vmatprep.subr.bf16.mxu0 %v4618_v7  ;;  %v4669_v7 = vld [vmem:[#allocation18 + $0x84] ss:$16 sps:$4 sm:$0xff]  }
 0x68e   : > { %2911 = vmatpush1.bf16.msra.mxu0 %v4616_v56  ;;  %v4667_v56 = vld [vmem:[#allocation18 + $0x80] ss:$16 sps:$4 sm:$0xff]  }
 0x68f   : > { %2912 = vmatprep.subr.bf16.mxu0 %v4624_v51  ;;  %v4676_v51 = vld [vmem:[#allocation18 + $0xa8] ss:$16 sps:$4 sm:$0xff]  }
 0x692   : > { %2913 = vmatpush1.bf16.msra.mxu0 %v4622_v24  ;;  %v4673_v24 = vld [vmem:[#allocation18 + $0xa0] ss:$16 sps:$4 sm:$0xff]  }
 0x693   : > { %2914 = vmatprep.subr.bf16.mxu0 %v4630_v53  ;;  %v4684_v53 = vld [vmem:[#allocation18 + $0xcc] ss:$16 sps:$4 sm:$0xff]  }
 0x696   : > { %2915 = vmatpush1.bf16.msra.mxu0 %v4628_v58  ;;  %v4682_v58 = vld [vmem:[#allocation18 + $0xc8] ss:$16 sps:$4 sm:$0xff]  }
 0x697   : > { %2916 = vmatprep.subr.bf16.mxu0 %v4636_v2  ;;  %v4690_v2 = vld [vmem:[#allocation18 + $0xec] ss:$16 sps:$4 sm:$0xff]  }
 0x69a   : > { %2917 = vmatpush1.bf16.msra.mxu0 %v4634_v49  ;;  %v4688_v49 = vld [vmem:[#allocation18 + $0xe8] ss:$16 sps:$4 sm:$0xff]  }
 0x69b   : > { %2918 = vmatprep.subr.bf16.mxu0 %v4642_v15  ;;  %v4696_v15 = vld [vmem:[#allocation18 + $0x10c] ss:$16 sps:$4 sm:$0xff]  }
 0x69e   : > { %2919 = vmatpush1.bf16.msra.mxu0 %v4640_v34  ;;  %v4694_v34 = vld [vmem:[#allocation18 + $0x108] ss:$16 sps:$4 sm:$0xff]  }
 0x69f   : > { %3309 = vmatprep.subr.bf16.mxu0 %v4648_v6  ;;  %v4702_v6 = vld [vmem:[#allocation18 + $0x12c] ss:$16 sps:$4 sm:$0xff]  }
 0x74b   : > { %v2461_v28 = vpop.f32.mrb[8].mxu1 }
 0x74c   : > { %v2467_v54 = vadd.f32 %v2461_v28, %v6029_v41  ;;  %v4343_v33 = vpop.f32.mrb[9].mxu1 }
 0x74d   : > { %v2464_v26 = vpop.f32.mrb[10].mxu1 }
 0x74e   : > { %4823 = vtanh.f32 %v2467_v54  ;;  %v4344_v43 = vpop.f32.mrb[11].mxu1 }
 0x754   : > { %v2536_v42 = vpop.f32.mrb[12].mxu0 }
 0x755   : > { %v2542_v39 = vadd.f32 %v2536_v42, %v6029_v41  ;;  %v4363_v38 = vpop.f32.mrb[13].mxu0  ;;  %v4603_v41 = vld [vmem:[#allocation19 + $0x24] ss:$16 sps:$4 sm:$0xff]  }
 0x756   : > { %v2539_v29 = vpop.f32.mrb[14].mxu0  ;;  %2865 = vmatprep.subr.bf16.mxu1 %v4603_v41 }
 0x757   : > { %4825 = vtanh.f32 %v2542_v39  ;;  %v4364_v47 = vpop.f32.mrb[15].mxu0  ;;  %2866 = vmatpush1.bf16.msra.mxu1 %v4601_v14  ;;  %v4654_v14 = vld [vmem:[#allocation18 + $0x2c] ss:$16 sps:$4 sm:$0xff]  }
 0x758   : > { %v4824_v55 = vpop.eup %4823  ;;  %2867 = vmatprep.subr.bf16.mxu1 %v4609_v0  ;;  %v4658_v0 = vld [vmem:[#allocation18 + $0x48] ss:$16 sps:$4 sm:$0xff]  }
 0x759   : > { %v2550_v10 = vmul.f32 %v4824_v55, %v4073_v8 }
 0x75b   : > { %2551 = vadd.xlane.f32.xlu0 %v2550_v10  ;;  %2868 = vmatpush1.bf16.msra.mxu1 %v4607_v9  ;;  %v4666_v9 = vld [vmem:[#allocation18 + $0x6c] ss:$16 sps:$4 sm:$0xff]  }
 0x75c   : > { %2869 = vmatprep.subr.bf16.mxu1 %v4615_v12  ;;  %v4664_v12 = vld [vmem:[#allocation18 + $0x68] ss:$16 sps:$4 sm:$0xff]  }
 0x75f   : > { %2870 = vmatpush1.bf16.msra.mxu1 %v4613_v13  ;;  %v4672_v13 = vld [vmem:[#allocation18 + $0x8c] ss:$16 sps:$4 sm:$0xff]  }
 0x760   : > { %2871 = vmatprep.subr.bf16.mxu1 %v4621_v21  ;;  %v4675_v21 = vld [vmem:[#allocation18 + $0xa4] ss:$16 sps:$4 sm:$0xff]  }
 0x761   : > { %v4826_v44 = vpop.eup %4825 }
 0x762   : > { %v2556_v36 = vmul.f32 %v4826_v44, %v4073_v8 }
 0x763   : > { %2872 = vmatpush1.bf16.msra.mxu1 %v4619_v59  ;;  %v4678_v59 = vld [vmem:[#allocation18 + $0xac] ss:$16 sps:$4 sm:$0xff]  }
 0x764   : > { %2557 = vadd.xlane.f32.xlu1 %v2556_v36  ;;  %2873 = vmatprep.subr.bf16.mxu1 %v4627_v52  ;;  %v4681_v52 = vld [vmem:[#allocation18 + $0xc4] ss:$16 sps:$4 sm:$0xff]  }
 0x767   : > { %2874 = vmatpush1.bf16.msra.mxu1 %v4625_v61  ;;  %v4679_v61 = vld [vmem:[#allocation18 + $0xc0] ss:$16 sps:$4 sm:$0xff]  }
 0x768   : > { %2875 = vmatprep.subr.bf16.mxu1 %v4633_v46  ;;  %v4687_v46 = vld [vmem:[#allocation18 + $0xe4] ss:$16 sps:$4 sm:$0xff]  }
 0x76b   : > { %2876 = vmatpush1.bf16.msra.mxu1 %v4631_v17  ;;  %v4685_v17 = vld [vmem:[#allocation18 + $0xe0] ss:$16 sps:$4 sm:$0xff]  }
 0x76c   : > { %2877 = vmatprep.subr.bf16.mxu1 %v4639_v32  ;;  %v4693_v32 = vld [vmem:[#allocation18 + $0x104] ss:$16 sps:$4 sm:$0xff]  }
 0x76f   : > { %2878 = vmatpush1.bf16.msra.mxu1 %v4637_v40  ;;  %v4691_v40 = vld [vmem:[#allocation18 + $0x100] ss:$16 sps:$4 sm:$0xff]  }
 0x770   : > { %3268 = vmatprep.subr.bf16.mxu1 %v4645_v63  ;;  %v4699_v63 = vld [vmem:[#allocation18 + $0x124] ss:$16 sps:$4 sm:$0xff]  }
 0x7e8   : > { %v2552_v5 = vpop.xlane.xlu0 %2551 }
 0x7e9   : > { %v2555_v16 = vadd.f32 %v2554_v50, %v2552_v5  ;;  %v4700_v5 = vld [vmem:[#allocation18 + $0x128] ss:$16 sps:$4 sm:$0xff]  }
 0x7f1   : > { %v2558_v30 = vpop.xlane.xlu1 %2557 }
 0x7f2   : > { %v2559_v57 = vadd.f32 %v2558_v30, %v2554_v50  ;;  %v4697_v50 = vld [vmem:[#allocation18 + $0x120] ss:$16 sps:$4 sm:$0xff]   ;;  %v4705_v30 = vld [vmem:[#allocation18 + $0x144] ss:$16 sps:$4 sm:$0xff]  }
 0x7f4   : > { %v2560_v28 = vmax.f32 %v2555_v16, %v2559_v57 }
 0x7f6   : > { %v2561_v54 = vsub.f32 %v2555_v16, %v2560_v28  ;;  %v2564_v33 = vsub.f32 %v2559_v57, %v2560_v28  ;;  %v4708_v16 = vld [vmem:[#allocation18 + $0x14c] ss:$16 sps:$4 sm:$0xff]   ;;  %v4703_v57 = vld [vmem:[#allocation18 + $0x140] ss:$16 sps:$4 sm:$0xff]   ;;  %v4706_v28 = vld [vmem:[#allocation18 + $0x148] ss:$16 sps:$4 sm:$0xff]  }
 0x7f8   : > { %v2562_v26 = vmul.f32 1.442695, %v2561_v54  ;;  %v2565_v43 = vmul.f32 1.442695, %v2564_v33  ;;  %v4711_v54 = vld [vmem:[#allocation18 + $0x164] ss:$16 sps:$4 sm:$0xff]  }
 0x7f9   : > { %v4714_v33 = vld [vmem:[#allocation18 + $0x16c] ss:$16 sps:$4 sm:$0xff]  }
 0x7fa   : > { %4827 = vpow2.f32 %v2562_v26  ;;  %v4709_v26 = vld [vmem:[#allocation18 + $0x160] ss:$16 sps:$4 sm:$0xff]  }
 0x7fb   : > { %4829 = vpow2.f32 %v2565_v43  ;;  %v4712_v43 = vld [vmem:[#allocation18 + $0x168] ss:$16 sps:$4 sm:$0xff]  }
 0x804   : > { %v4828_v42 = vpop.eup %4827 }
 0x805   : > { %v4830_v39 = vpop.eup %4829 }
 0x806   : > { %v2567_v38 = vadd.f32 %v4830_v39, %v4828_v42 }
 0x808   : > { %4831 = vrcp.f32 %v2567_v38  ;;  %v4715_v38 = vld [vmem:[#allocation18 + $0x180] ss:$16 sps:$4 sm:$0xff]  }
 0x812   : > { %v4832_v29 = vpop.eup %4831 }
 0x813   : > { %v2569_v8 = vmul.f32 %v4832_v29, %v4828_v42  ;;  %v2570_v47 = vmul.f32 %v4832_v29, %v4830_v39  ;;  %v4717_v42 = vld [vmem:[#allocation18 + $0x184] ss:$16 sps:$4 sm:$0xff]   ;;  %v4720_v39 = vld [vmem:[#allocation18 + $0x18c] ss:$16 sps:$4 sm:$0xff]   ;;  %v4718_v29 = vld [vmem:[#allocation18 + $0x188] ss:$16 sps:$4 sm:$0xff]  }
 0x815   : > { %v2587_v55 = vmul.f32 %v6420_v4, %v2569_v8  ;;  %v2604_v10 = vmul.f32 %v6431_v27, %v2570_v47  ;;  %v3608_v44 = vsel %vm3607_vm10, %v2569_v8, %v2570_v47  ;;  %v4649_v4 = vld [vmem:[#allocation18 + $0x20] ss:$16 sps:$4 sm:$0xff]   ;;  %v4652_v27 = vld [vmem:[#allocation18 + $0x28] ss:$16 sps:$4 sm:$0xff]   ;;  %v4723_v8 = vld [vmem:[#allocation18 + $0x1a4] ss:$16 sps:$4 sm:$0xff]  }
 0x816   : > { %v3610_v36 = vsel %vm3609_vm11, %v3608_v44, %v6399_v25  ;;  %v4657_v25 = vld [vmem:[#allocation18 + $0x44] ss:$16 sps:$4 sm:$0xff]   ;;  %v4726_v47 = vld [vmem:[#allocation18 + $0x1ac] ss:$16 sps:$4 sm:$0xff]  }
 0x817   : > { %v2605_v37 = vadd.f32 %v2604_v10, %v2587_v55  ;;  %v3612_v48 = vsel %vm3611_vm12, %v3610_v36, %v6417_v3  ;;  %v4655_v3 = vld [vmem:[#allocation18 + $0x40] ss:$16 sps:$4 sm:$0xff]   ;;  %v4724_v10 = vld [vmem:[#allocation18 + $0x1a8] ss:$16 sps:$4 sm:$0xff]   ;;  %v4729_v44 = vld [vmem:[#allocation18 + $0x1c4] ss:$16 sps:$4 sm:$0xff]  }
 0x818   : > { %3614 = vst.msk [vmem:[%s902_s29] sm:$0xff] %vm3613_vm13, %v3612_v48  ;;  %v4721_v55 = vld [vmem:[#allocation18 + $0x1a0] ss:$16 sps:$4 sm:$0xff]   ;;  %v4732_v36 = vld [vmem:[#allocation18 + $0x1cc] ss:$16 sps:$4 sm:$0xff]  }
 0x819   : > { %v2670_v41 = vpack.c.bf16 %v2605_v37, %v2605_v37  ;;  %v4727_v37 = vld [vmem:[#allocation18 + $0x1c0] ss:$16 sps:$4 sm:$0xff]   ;;  %v4730_v48 = vld [vmem:[#allocation18 + $0x1c8] ss:$16 sps:$4 sm:$0xff]  }
 0x81b   : > { %2896 = vmatmul.mubr.bf16.vlgmr.msra.gmra.mrb[12].mxu1 %v2670_v41  ;;  %2937 = vmatmul.mubr.bf16.vlgmr.msra.gmra.mrb[16].mxu0 %v2670_v41  ;;  %v4733_v41 = vld [vmem:[#allocation18 + $0x1e0] ss:$16 sps:$4 sm:$0xff]  }
 0x81c   : > { %3269 = vmatpush1.bf16.msra.mxu1 %v4643_v60  ;;  %3310 = vmatpush1.bf16.msra.mxu0 %v4646_v62  ;;  %v4735_v60 = vld [vmem:[#allocation18 + $0x1e4] ss:$16 sps:$4 sm:$0xff]   ;;  %v4738_v62 = vld [vmem:[#allocation18 + $0x1ec] ss:$16 sps:$4 sm:$0xff]  }
 0x81d   : > { %3270 = vmatprep.subr.bf16.mxu1 %v4651_v35  ;;  %3311 = vmatprep.subr.bf16.mxu0 %v4654_v14  ;;  %v4736_v35 = vld [vmem:[#allocation18 + $0x1e8] ss:$16 sps:$4 sm:$0xff]  }
 0x81e   : > { %3300 = vmatprep.mubr.bf16.mxu1 %v6012_v23  ;;  %3341 = vmatprep.mubr.bf16.mxu0 %v6012_v23  ;;  %v4670_v23 = vld [vmem:[#allocation18 + $0x88] ss:$16 sps:$4 sm:$0xff]  }
 0x81f   : > { %v4861_v14 = vld [vmem:[%s756_s11] sm:$0xff]  ;;  %s5197_s11 = sshll.u32 %s5406_s0, 4  ;;  %s5198_s11 = int_to_ptr.vmem [resolvable:$false] %s5197_s11 }
 0x820   : > { %3271 = vmatpush1.bf16.msra.mxu1 %v4649_v4  ;;  %3312 = vmatpush1.bf16.msra.mxu0 %v4652_v27  ;;  %v4107_v4 = vcombine.low %v4861_v14, %v4861_v14  ;;  %v4739_v27 = vld [vmem:[#allocation21] sm:$0xff]   ;;  %s5199_s18 = scalar_lea.vmem %s5198_s11, 256  ;;  %p5200_p3 = scmp.lt.s32.totalorder %s3658_s13, %s5198_s11 }
 0x821   : > { %3272 = vmatprep.subr.bf16.mxu1 %v4657_v25  ;;  %3313 = vmatprep.subr.bf16.mxu0 %v4660_v31  ;;  %v4740_v25 = vld [vmem:[#allocation21 + $0x8] sm:$0xff]   ;;  %v4741_v31 = vld [vmem:[#allocation21 + $0x10] sm:$0xff]   ;;  %p5201_p0 = scmp.lt.s32.totalorder %s5199_s18, %s5193_s19 }
 0x823   : > { %p5202_p5 = por %p5201_p0, %p5200_p3 }
 0x824   : > { %3273 = vmatpush1.bf16.msra.mxu1 %v4655_v3  ;;  %3314 = vmatpush1.bf16.msra.mxu0 %v4658_v0  ;;  %v4742_v3 = vld [vmem:[#allocation21 + $0x18] sm:$0xff]   ;;  %v4743_v0 = vld [vmem:[#allocation21 + $0x20] sm:$0xff]  }
 0x825   : > { %3274 = vmatprep.subr.bf16.mxu1 %v4663_v22  ;;  %3315 = vmatprep.subr.bf16.mxu0 %v4666_v9  ;;  %v4744_v22 = vld [vmem:[#allocation21 + $0x28] sm:$0xff]   ;;  %v4745_v9 = vld [vmem:[#allocation21 + $0x30] sm:$0xff]   ;;  %p5203_p9 = pnand %p5202_p5, %p5196_p8 }
 0x828   : > { %3275 = vmatpush1.bf16.msra.mxu1 %v4661_v11  ;;  %3316 = vmatpush1.bf16.msra.mxu0 %v4664_v12  ;;  %v4746_v11 = vld [vmem:[#allocation21 + $0x38] sm:$0xff]  }
 0x829   : > { %3276 = vmatprep.subr.bf16.mxu1 %v4669_v7  ;;  %3317 = vmatprep.subr.bf16.mxu0 %v4672_v13 }
 0x82c   : > { %3277 = vmatpush1.bf16.msra.mxu1 %v4667_v56  ;;  %3318 = vmatpush1.bf16.msra.mxu0 %v4670_v23 }
 0x82d   : > { %3278 = vmatprep.subr.bf16.mxu1 %v4675_v21  ;;  %3319 = vmatprep.subr.bf16.mxu0 %v4678_v59 }
 0x830   : > { %3279 = vmatpush1.bf16.msra.mxu1 %v4673_v24  ;;  %3320 = vmatpush1.bf16.msra.mxu0 %v4676_v51  ;;  %v3350_v51 = vld [vmem:[%s6750_s23] sm:$0xf] }
 0x831   : > { %3280 = vmatprep.subr.bf16.mxu1 %v4681_v52  ;;  %3321 = vmatprep.subr.bf16.mxu0 %v4684_v53  ;;  %v3355_v52 = vrot.slane %v3350_v51, %v6035_v45  ;;  %v3367_v45 = vrot.slane %v3350_v51, %v6148_v20 }
 0x834   : > { %3281 = vmatpush1.bf16.msra.mxu1 %v4679_v61  ;;  %3322 = vmatpush1.bf16.msra.mxu0 %v4682_v58  ;;  %v3359_v58 = vrot.slane %v3350_v51, %v6142_v18 }
 0x835   : > { %3282 = vmatprep.subr.bf16.mxu1 %v4687_v46  ;;  %3323 = vmatprep.subr.bf16.mxu0 %v4690_v2 }
 0x838   : > { %3283 = vmatpush1.bf16.msra.mxu1 %v4685_v17  ;;  %3324 = vmatpush1.bf16.msra.mxu0 %v4688_v49 }
 0x839   : > { %3284 = vmatprep.subr.bf16.mxu1 %v4693_v32  ;;  %3325 = vmatprep.subr.bf16.mxu0 %v4696_v15 }
 0x83c   : > { %3285 = vmatpush1.bf16.msra.mxu1 %v4691_v40  ;;  %3326 = vmatpush1.bf16.msra.mxu0 %v4694_v34 }
 0x83d   : > { %3286 = vmatprep.subr.bf16.mxu1 %v4699_v63  ;;  %3327 = vmatprep.subr.bf16.mxu0 %v4702_v6 }
 0x840   : > { %3287 = vmatpush1.bf16.msra.mxu1 %v4697_v50  ;;  %3328 = vmatpush1.bf16.msra.mxu0 %v4700_v5 }
 0x841   : > { %3288 = vmatprep.subr.bf16.mxu1 %v4705_v30  ;;  %3329 = vmatprep.subr.bf16.mxu0 %v4708_v16  ;;  %v3363_v16 = vrot.slane %v3350_v51, %v6145_v19 }
 0x844   : > { %3289 = vmatpush1.bf16.msra.mxu1 %v4703_v57  ;;  %3330 = vmatpush1.bf16.msra.mxu0 %v4706_v28 }
 0x845   : > { %3290 = vmatprep.subr.bf16.mxu1 %v4711_v54  ;;  %3331 = vmatprep.subr.bf16.mxu0 %v4714_v33 }
 0x848   : > { %3291 = vmatpush1.bf16.msra.mxu1 %v4709_v26  ;;  %3332 = vmatpush1.bf16.msra.mxu0 %v4712_v43 }
 0x849   : > { %3292 = vmatprep.subr.bf16.mxu1 %v4717_v42  ;;  %3333 = vmatprep.subr.bf16.mxu0 %v4720_v39  ;;  %v907_v39 = vld [vmem:[%s765_s1] sm:$0xff] }
 0x84c   : > { %3293 = vmatpush1.bf16.msra.mxu1 %v4715_v38  ;;  %3334 = vmatpush1.bf16.msra.mxu0 %v4718_v29 }
 0x84d   : > { %3294 = vmatprep.subr.bf16.mxu1 %v4723_v8  ;;  %3335 = vmatprep.subr.bf16.mxu0 %v4726_v47 }
 0x850   : > { %3295 = vmatpush1.bf16.msra.mxu1 %v4721_v55  ;;  %3336 = vmatpush1.bf16.msra.mxu0 %v4724_v10 }
 0x851   : > { %3296 = vmatprep.subr.bf16.mxu1 %v4729_v44  ;;  %3337 = vmatprep.subr.bf16.mxu0 %v4732_v36 }
 0x854   : > { %3297 = vmatpush1.bf16.msra.mxu1 %v4727_v37  ;;  %3338 = vmatpush1.bf16.msra.mxu0 %v4730_v48  ;;  %v4175_v48 = vld [vmem:[%s6751_s28] ss:$0 sm:$0xff] }
 0x855   : > { %3298 = vmatprep.subr.bf16.mxu1 %v4735_v60  ;;  %3339 = vmatprep.subr.bf16.mxu0 %v4738_v62 }
 0x858   : > { %3299 = vmatpush1.bf16.msra.mxu1 %v4733_v41  ;;  %3340 = vmatpush1.bf16.msra.mxu0 %v4736_v35 }
 0x859   : > { %4365 = vmatprep.subr.bf16.mxu1 %v5401_v1 }
 0x85b   : > { %3301 = vmatmul.mubr.bf16.vlgmr.msra.gmra.mrb[16].mxu1 %v4107_v4  ;;  %3342 = vmatmul.mubr.bf16.vlgmr.msra.gmra.mrb[20].mxu0 %v4107_v4 }
 0x85c   : > { %4381 = vmatprep.mubr.msk.bf16.mxu1 %vm5402_vm0, %v5401_v1  ;;  %4366 = vmatpush3.bf16.msra.mxu1 %v4739_v27 }
 0x85d   : > { %4367 = vmatprep.subr.bf16.mxu1 %v5401_v1 }
 0x860   : > { %4368 = vmatpush3.bf16.msra.mxu1 %v4740_v25 }
 0x861   : > { %4369 = vmatprep.subr.bf16.mxu1 %v5401_v1 }
 0x864   : > { %4370 = vmatpush3.bf16.msra.mxu1 %v4741_v31 }
 0x865   : > { %4371 = vmatprep.subr.bf16.mxu1 %v5401_v1 }
 0x868   : > { %4372 = vmatpush3.bf16.msra.mxu1 %v4742_v3 }
 0x869   : > { %4373 = vmatprep.subr.bf16.mxu1 %v5401_v1 }
 0x86c   : > { %4374 = vmatpush3.bf16.msra.mxu1 %v4743_v0 }
 0x86d   : > { %4375 = vmatprep.subr.bf16.mxu1 %v5401_v1 }
 0x870   : > { %4376 = vmatpush3.bf16.msra.mxu1 %v4744_v22 }
 0x871   : > { %4377 = vmatprep.subr.bf16.mxu1 %v5401_v1 }
 0x874   : > { %4378 = vmatpush3.bf16.msra.mxu1 %v4745_v9 }
 0x875   : > { %4379 = vmatprep.subr.bf16.mxu1 %v5401_v1 }
 0x878   : > { %4380 = vmatpush3.bf16.msra.mxu1 %v4746_v11 }
 0x8ee   : > { %v2897_v12 = vpop.f32.mrb[12].mxu1  ;;  %v2938_v7 = vpop.f32.mrb[16].mxu0 }
 0x8ef   : > { %v2899_v13 = vpop.f32.mrb[13].mxu1  ;;  %v2940_v56 = vpop.f32.mrb[17].mxu0 }
 0x8f0   : > { %v2901_v23 = vpop.f32.mrb[14].mxu1  ;;  %v2942_v21 = vpop.f32.mrb[18].mxu0 }
 0x8f1   : > { %v2902_v59 = vpop.f32.mrb[15].mxu1  ;;  %v2943_v24 = vpop.f32.mrb[19].mxu0 }
 0x92e   : > { %v3302_v53 = vpop.f32.mrb[16].mxu1  ;;  %v3343_v61 = vpop.f32.mrb[20].mxu0 }
 0x92f   : > { %v3303_v1 = vadd.f32 %v3302_v53, %v2897_v12  ;;  %v3344_v46 = vadd.f32 %v3343_v61, %v2938_v7  ;;  %v3304_v2 = vpop.f32.mrb[17].mxu1  ;;  %v3345_v17 = vpop.f32.mrb[21].mxu0 }
 0x930   : > { %v3305_v49 = vadd.f32 %v3304_v2, %v2899_v13  ;;  %v3346_v32 = vadd.f32 %v3345_v17, %v2940_v56  ;;  %v3306_v15 = vpop.f32.mrb[18].mxu1  ;;  %v3347_v40 = vpop.f32.mrb[22].mxu0 }
 0x931   : > { %v3372_v34 = vadd.f32 %v3355_v52, %v3303_v1  ;;  %v3307_v63 = vpop.f32.mrb[19].mxu1  ;;  %v3348_v6 = vpop.f32.mrb[23].mxu0  ;;  %v3374_v28 = vadd.f32 %v3363_v16, %v3344_v46 }
 0x932   : > { %v3373_v50 = vadd.f32 %v3359_v58, %v3305_v49  ;;  %v3375_v18 = vadd.f32 %v3367_v45, %v3346_v32 }
 0x933   : > { %v4172_v5 = vmul.f32 -1.442695, %v3372_v34 }
 0x934   : > { %v4173_v30 = vmul.f32 -1.442695, %v3373_v50  ;;  %v4174_v57 = vmul.f32 -1.442695, %v3375_v18 }
 0x935   : > { %4833 = vpow2.f32 %v4172_v5 }
 0x936   : > { %4835 = vpow2.f32 %v4173_v30 }
 0x937   : > { %4837 = vpow2.f32 %v4174_v57 }
 0x938   : > { %4839 = vtanh.f32 %v3374_v28 }
 0x93f   : > { %v4834_v54 = vpop.eup %4833 }
 0x940   : > { %v4836_v33 = vpop.eup %4835  ;;  %v3379_v26 = vadd.f32 1.0, %v4834_v54 }
 0x941   : > { %v3385_v43 = vadd.f32 1.0, %v4836_v33  ;;  %v4838_v42 = vpop.eup %4837 }
 0x942   : > { %4841 = vrcp.f32 %v3379_v26  ;;  %v4840_v20 = vpop.eup %4839  ;;  %v3392_v8 = vadd.f32 1.0, %v4838_v42 }
 0x943   : > { %4843 = vrcp.f32 %v3385_v43 }
 0x944   : > { %4845 = vrcp.f32 %v3392_v8 }
 0x94c   : > { %v4842_v38 = vpop.eup %4841 }
 0x94d   : > { %v4844_v29 = vpop.eup %4843  ;;  %v3396_v19 = vmul.f32 %v4842_v38, %v4840_v20 }
 0x94e   : > { %v3395_v47 = vmul.f32 %v4844_v29, %v907_v39  ;;  %v4846_v10 = vpop.eup %4845 }
 0x950   : > { %v3397_v55 = vadd.f32 %v3396_v19, %v3395_v47 }
 0x952   : > { %4847 = vtanh.f32 %v3397_v55  ;;  %3524 = vst [vmem:[%s895_s14] sm:$0xff] %v3397_v55 }
 0x95c   : > { %v4848_v44 = vpop.eup %4847 }
 0x95d   : > { %v3399_v36 = vmul.f32 %v4848_v44, %v4846_v10 }
 0x95f   : > { %v3400_v37 = vpack.c.bf16 %v3399_v36, %v3399_v36  ;;  %3523 = vst [vmem:[%s888_s17] sm:$0xff] %v3399_v36 }
 0x961   : > { %4382 = vmatmul.mubr.bf16.vlgmr.msra.gmra.mrb[20].mxu1 %v3400_v37 }
 0xa34   : > { %v3506_v60 = vpop.f32.mrb[20].mxu1 }
 0xa35   : > { %v3507_v62 = vadd.f32 %v4175_v48, %v3506_v60  ;;  %v4383_v41 = vpop.f32.mrb[21].mxu1 }
 0xa36   : > { %v3509_v35 = vpop.f32.mrb[22].mxu1 }
 0xa37   : > { %3512 = vmax.xlane.f32.xlu0 %v3507_v62  ;;  %v4384_v14 = vpop.f32.mrb[23].mxu1 }
 0xac4   : > { %v3513_v4 = vpop.xlane.xlu0 %3512 }
 0xac5   : > { %v6480_v27 = vsub.f32 %v3507_v62, %v3513_v4 }
 0xac7   : > { %v3515_v25 = vmul.f32 1.442695, %v6480_v27 }
 0xac9   : > { %4849 = vpow2.f32 %v3515_v25 }
 0xad3   : > { %v4850_v31 = vpop.eup %4849 }
 0xad4   : > { %3517 = vadd.xlane.f32.xlu0 %v4850_v31 }
 0xad5   : > { %5206 = shalt.err (!%p5203_p9)
}
 0xad6   : > { %s5207_s3 = scalar_lea.hbm %s6490_s7, 128  ;;  %s5211_s1 = scalar_lea.hbm %s6753_s4, 256 }
 0xad7   : > { %p5208_p11 = scmp.ne.s32.totalorder %s6490_s7, %s5207_s3  ;;  %p5212_p2 = scmp.lt.u32.totalorder %s6490_s7, %s6753_s4 }
 0xad8   : > { %p5213_p10 = scmp.lt.u32.totalorder %s5211_s1, %s5207_s3  ;;  %p5215_p6 = scmp.lt.u32.totalorder %s5207_s3, %s6490_s7 }
 0xad9   : > { %p5209_p12 = pnand %p5208_p11, %p6754_p4 }
 0xada   : > { %p5214_p1 = por %p5213_p10, %p5212_p2 }
 0xadb   : > { %p5210_p7 = pneg %p5209_p12 }
 0xadc   : > { %p5216_p13 = por %p5215_p6, %p5214_p1 }
 0xade   : > { %p5217_p8 = pnand %p5216_p13, %p5210_p7 }
 0xae0   : > { %5220 = shalt.err (!%p5217_p8)
}
 0xae1   : > { %4426 = dma.vmem_to_hbm [thread:$0]  (%p6754_p4), %s3658_s13, 128, %s6490_s7, %s3621_s2  }
 0xae2   : > { %s6755_s19 = sld [smem:[#allocation62_spill]]  ;;  %s3670_s11 = sshll.u32 %s895_s14, 4  ;;  %s3671_s11 = int_to_ptr.vmem [resolvable:$true] %s3670_s11 }
 0xae3   : > { %s5221_s18 = scalar_lea.vmem %s3671_s11, 128  ;;  %s5407_s3 = smov [#allocation25]  }
 0xae4   : > { %p5222_p3 = scmp.ne.s32.totalorder %s3671_s11, %s5221_s18  ;;  %s5225_s23 = sshll.u32 %s5407_s3, 4  ;;  %s5226_s23 = int_to_ptr.vmem [resolvable:$false] %s5225_s23 }
 0xae5   : > { %s5227_s17 = scalar_lea.vmem %s5226_s23, 256  ;;  %p5228_p9 = scmp.lt.s32.totalorder %s3671_s11, %s5226_s23 }
 0xae6   : > { %p5223_p0 = pnand %p5222_p3, %p6754_p4  ;;  %p5229_p11 = scmp.lt.s32.totalorder %s5227_s17, %s5221_s18 }
 0xae8   : > { %s6516_s0 = scalar_lea.hbm %s6755_s19, %s6484_s30  ;;  %p5224_p5 = pneg %p5223_p0 }
 0xae9   : > { %p5230_p12 = por %p5229_p11, %p5228_p9 }
 0xaeb   : > { %p5231_p7 = pnand %p5230_p12, %p5224_p5 }
 0xaed   : > { %5234 = shalt.err (!%p5231_p7)
}
 0xaee   : > { %s5235_s14 = scalar_lea.hbm %s6516_s0, 128  ;;  %s5239_s1 = scalar_lea.hbm %s6755_s19, 256 }
 0xaef   : > { %p5236_p2 = scmp.ne.s32.totalorder %s6516_s0, %s5235_s14  ;;  %p5240_p6 = scmp.lt.u32.totalorder %s6516_s0, %s6755_s19 }
 0xaf0   : > { %p5241_p13 = scmp.lt.u32.totalorder %s5239_s1, %s5235_s14  ;;  %p5243_p3 = scmp.lt.u32.totalorder %s5235_s14, %s6516_s0 }
 0xaf1   : > { %p5237_p10 = pnand %p5236_p2, %p6754_p4 }
 0xaf2   : > { %p5242_p8 = por %p5241_p13, %p5240_p6 }
 0xaf3   : > { %p5238_p1 = pneg %p5237_p10 }
 0xaf4   : > { %p5244_p0 = por %p5243_p3, %p5242_p8 }
 0xaf6   : > { %p5245_p5 = pnand %p5244_p0, %p5238_p1 }
 0xaf8   : > { %5248 = shalt.err (!%p5245_p5)
}
 0xaf9   : > { %4427 = dma.vmem_to_hbm [thread:$0]  (%p6754_p4), %s3671_s11, 128, %s6516_s0, %s3621_s2  }
 0xafa   : > { %s6756_s18 = sld [smem:[#allocation63_spill]]  ;;  %s3683_s23 = sshll.u32 %s902_s29, 4  ;;  %s3684_s23 = int_to_ptr.vmem [resolvable:$true] %s3683_s23 }
 0xafb   : > { %s3631_s17 = scalar_lea.sflag [#allocation27], %s5942_s25  ;;  %s5249_s14 = scalar_lea.vmem %s3684_s23, 128 }
 0xafc   : > { %p5250_p9 = scmp.ne.s32.totalorder %s3684_s23, %s5249_s14  ;;  %s5408_s26 = smov [#allocation26]  }
 0xafd   : > { %s5253_s7 = sshll.u32 %s5408_s26, 4  ;;  %s5254_s7 = int_to_ptr.vmem [resolvable:$false] %s5253_s7 }
 0xafe   : > { %p5251_p11 = pnand %p5250_p9, %p6754_p4  ;;  %s5255_s13 = scalar_lea.vmem %s5254_s7, 256 }
 0xaff   : > { %p5256_p7 = scmp.lt.s32.totalorder %s3684_s23, %s5254_s7  ;;  %p5257_p2 = scmp.lt.s32.totalorder %s5255_s13, %s5249_s14 }
 0xb00   : > { %s6543_s3 = scalar_lea.hbm %s6756_s18, %s6484_s30  ;;  %p5252_p12 = pneg %p5251_p11 }
 0xb01   : > { %p5258_p10 = por %p5257_p2, %p5256_p7 }
 0xb03   : > { %p5259_p1 = pnand %p5258_p10, %p5252_p12 }
 0xb05   : > { %5262 = shalt.err (!%p5259_p1)
}
 0xb06   : > { %s5263_s29 = scalar_lea.hbm %s6543_s3, 128  ;;  %s5267_s11 = scalar_lea.hbm %s6756_s18, 256 }
 0xb07   : > { %p5264_p6 = scmp.ne.s32.totalorder %s6543_s3, %s5263_s29  ;;  %p5268_p3 = scmp.lt.u32.totalorder %s6543_s3, %s6756_s18 }
 0xb08   : > { %p5269_p0 = scmp.lt.u32.totalorder %s5267_s11, %s5263_s29  ;;  %p5271_p9 = scmp.lt.u32.totalorder %s5263_s29, %s6543_s3 }
 0xb09   : > { %p5265_p13 = pnand %p5264_p6, %p6754_p4 }
 0xb0a   : > { %p5270_p5 = por %p5269_p0, %p5268_p3 }
 0xb0b   : > { %p5266_p8 = pneg %p5265_p13 }
 0xb0c   : > { %p5272_p11 = por %p5271_p9, %p5270_p5 }
 0xb0e   : > { %p5273_p12 = pnand %p5272_p11, %p5266_p8 }
 0xb10   : > { %5276 = shalt.err (!%p5273_p12)
}
 0xb11   : > { %4428 = dma.vmem_to_hbm [thread:$0]  (%p6754_p4), %s3684_s23, 128, %s6543_s3, %s3631_s17  }
 0xb12   : > { %s881_s28 = scalar_lea.vmem [#allocation22], %s5945_s5  ;;  %s6757_s26 = sld [smem:[#allocation60_spill]] }
 0xb13   : > { %s3644_s10 = sshll.u32 %s881_s28, 4  ;;  %s3616_s3 = scalar_lea.sflag [#allocation4], %s5942_s25  ;;  %s6573_s10 = int_to_ptr.vmem [resolvable:$true] %s3644_s10 }
 0xb14   : > { %s5277_s23 = scalar_lea.vmem %s6573_s10, 128  ;;  %s5409_s5 = smov [#allocation22]  }
 0xb15   : > { %p5278_p7 = scmp.ne.s32.totalorder %s6573_s10, %s5277_s23  ;;  %s5281_s17 = sshll.u32 %s5409_s5, 4  ;;  %s5282_s17 = int_to_ptr.vmem [resolvable:$false] %s5281_s17 }
 0xb16   : > { %s5283_s13 = scalar_lea.vmem %s5282_s17, 256  ;;  %p5284_p1 = scmp.lt.s32.totalorder %s6573_s10, %s5282_s17 }
 0xb17   : > { %p5279_p2 = pnand %p5278_p7, %p6754_p4  ;;  %p5285_p6 = scmp.lt.s32.totalorder %s5283_s13, %s5277_s23 }
 0xb18   : > { %s6571_s7 = scalar_lea.hbm %s6757_s26, %s6484_s30 }
 0xb19   : > { %p5280_p10 = pneg %p5279_p2  ;;  %p5286_p13 = por %p5285_p6, %p5284_p1 }
 0xb1b   : > { %p5287_p8 = pnand %p5286_p13, %p5280_p10 }
 0xb61   : > { %v3518_v3 = vpop.xlane.xlu0 %3517 }
 0xb62   : > { %4851 = vlog2.f32 %v3518_v3 }
 0xb6c   : > { %v4852_v0 = vpop.eup %4851 }
 0xb6d   : > { %v3520_v22 = vmul.f32 0.6931472, %v4852_v0 }
 0xb6f   : > { %v3521_v9 = vsub.f32 %v6480_v27, %v3520_v22 }
 0xb71   : > { %3522 = vst [vmem:[%s881_s28] sm:$0xff] %v3521_v9 }
 0xb72   : > { %5290 = shalt.err (!%p5287_p8)
}
 0xb73   : > { %s5291_s25 = scalar_lea.hbm %s6571_s7, 128  ;;  %s5295_s2 = scalar_lea.hbm %s6757_s26, 256 }
 0xb74   : > { %p5292_p3 = scmp.ne.s32.totalorder %s6571_s7, %s5291_s25  ;;  %p5296_p9 = scmp.lt.u32.totalorder %s6571_s7, %s6757_s26 }
 0xb75   : > { %p5297_p11 = scmp.lt.u32.totalorder %s5295_s2, %s5291_s25  ;;  %p5299_p7 = scmp.lt.u32.totalorder %s5291_s25, %s6571_s7 }
 0xb76   : > { %p5293_p0 = pnand %p5292_p3, %p6754_p4 }
 0xb77   : > { %p5298_p12 = por %p5297_p11, %p5296_p9 }
 0xb78   : > { %p5294_p5 = pneg %p5293_p0 }
 0xb79   : > { %p5300_p2 = por %p5299_p7, %p5298_p12 }
 0xb7b   : > { %p5301_p10 = pnand %p5300_p2, %p5294_p5 }
 0xb7d   : > { %5304 = shalt.err (!%p5301_p10)
}
 0xb7e   : > { %4425 = dma.vmem_to_hbm [thread:$0]  (%p6754_p4), %s6573_s10, 128, %s6571_s7, %s3616_s3  }
 0xb7f PF: > { %s6758_s1 = sld [smem:[#allocation40_spill]]  ;;  %s6759_s21 = sld [smem:[#allocation45_spill]] }
 0xb80   : > { %p6761_p6 = scmp.ge.s32.totalorder %s5383_s24, 2 }
 0xb85   : > { %s3695_s28 = sand.u32 1, %s6758_s1   ;;  %p6760_p1 = scmp.ne.s32.totalorder %s6759_s21, 0 }
 0xb86   : > { %s3696_s6 = scalar_lea.sflag [#allocation4], %s3695_s28 }
 0xb87   : > { %p4472_p13 = pnand %p6761_p6, %p6760_p1 }
 0xb89   : > { %5358 = dma.done.wait (!%p4472_p13), %s3696_s6, 128  }
 0xb8a   : > { %5360 = vsyncadd (!%p4472_p13), %s3696_s6, 4294967168  ;;  %s6762_s14 = sadd.s32 4294967294, %s5383_s24  }
 0xb8b   : > { %s3704_s23 = sand.u32 1, %s6762_s14  }
 0xb8c   : > { %s3705_s5 = scalar_lea.sflag [#allocation24], %s3704_s23 }
 0xb8d   : > { %5362 = dma.done.wait (!%p4472_p13), %s3705_s5, 256  }
 0xb8e   : > { %5364 = vsyncadd (!%p4472_p13), %s3705_s5, 4294967040  ;;  %s3723_s9 = scalar_lea.sflag [#allocation27], %s3695_s28 }
 0xb8f   : > { %5366 = dma.done.wait (!%p4472_p13), %s3723_s9, 128  }
 0xb90   : > { %5368 = vsyncadd (!%p4472_p13), %s3723_s9, 4294967168  ;;  %s6763_s24 = sld [smem:[#allocation42_spill]]  ;;  %s6764_s10 = sld [smem:[#allocation41_spill]] }
 0xb91   : > { %s6765_s23 = sld [smem:[#allocation43_spill]]  ;;  %s6766_s1 = smov %s5375_s22 }
 0xb96   : > { %p50_p4 = scmp.ge.s32.totalorder %s6763_s24, 4   ;;  %s6767_s22 = smov %s6764_s10 }
 0xb98   :  { %52 = sbr.rel (!%p50_p4) target bundleno = 36 (0x24), region = 252 }
 0xb9f   :  { %3728 = vsyncpa [#allocation3], 1 }
 0xba0   :  { %3730 = vsyncpa [#allocation3 + $0x1], 1 }
 0xba1   :  { %3731 = vsyncpa [#allocation7], 1 }
 0xba2   :  { %3733 = vsyncpa [#allocation7 + $0x1], 1 }
 0xba3   :  { %3734 = vsyncpa [#allocation10], 1 }
 0xba4   :  { %3736 = vsyncpa [#allocation10 + $0x1], 1 }
 0xba5   :  { %3737 = vsyncpa [#allocation13], 1 }
 0xba6   :  { %3738 = vsyncpa [#allocation16], 1 }
 0xba7   :  { %3739 = vsyncpa [#allocation20], 1 }
 0xba8   :  { %3740 = vsyncpa [#allocation4], 1 }
 0xba9   :  { %3742 = vsyncpa [#allocation4 + $0x1], 1 }
 0xbaa   :  { %3743 = vsyncpa [#allocation24], 1 }
 0xbab   :  { %3745 = vsyncpa [#allocation24 + $0x1], 1 }
 0xbac   :  { %3746 = vsyncpa [#allocation27], 1 }
 0xbad   :  { %3748 = vsyncpa [#allocation27 + $0x1], 1 }
 0xbae   :  { %3749 = vsyncpa [#allocation5], 1 }
 0xbaf   :  { %3751 = vsyncpa [#allocation5 + $0x1], 1 }

// kernel: tpu_custom_call.1
= control target key start
LH: loop header
LB: loop body
LE: loop exit
PB: predicated region body
PF: predicated region fallthrough
CT: control target
= control target key end

     0   :  { %s6617_s0 = inlined_call_operand.hbm [shape: bf16[16,256], index: 0, kind: input, shape index: {}]   ;;  %s6618_s1 = inlined_call_operand.hbm [shape: f32[16,128], index: 1, kind: input, shape index: {}]   ;;  %s6619_s2 = inlined_call_operand.hbm [shape: bf16[16,8,128], index: 2, kind: input, shape index: {}]   ;;  %s6620_s3 = inlined_call_operand.hbm [shape: bf16[16,8,128], index: 3, kind: input, shape index: {}]   ;;  %s6621_s4 = inlined_call_operand.hbm [shape: bf16[128,128], index: 4, kind: input, shape index: {}]   ;;  %s6622_s5 = inlined_call_operand.hbm [shape: bf16[128,128], index: 5, kind: input, shape index: {}]   ;;  %s6623_s6 = inlined_call_operand.hbm [shape: bf16[128,128], index: 6, kind: input, shape index: {}]   ;;  %s6624_s7 = inlined_call_operand.hbm [shape: bf16[128,128], index: 7, kind: input, shape index: {}]   ;;  %s6625_s8 = inlined_call_operand.vmem [shape: f32[1,128], index: 8, kind: input, shape index: {}]   ;;  %s6626_s9 = inlined_call_operand.vmem [shape: f32[1,128], index: 9, kind: input, shape index: {}]   ;;  %s6627_s10 = inlined_call_operand.vmem [shape: f32[1,128], index: 10, kind: input, shape index: {}]   ;;  %s6628_s11 = inlined_call_operand.vmem [shape: f32[3], index: 11, kind: input, shape index: {}]   ;;  %s6629_s12 = inlined_call_operand.hbm [shape: bf16[256,512], index: 12, kind: input, shape index: {}]   ;;  %s6630_s13 = inlined_call_operand.hbm [shape: bf16[128,512], index: 13, kind: input, shape index: {}]   ;;  %s6631_s14 = inlined_call_operand.vmem [shape: f32[1,512], index: 14, kind: input, shape index: {}]   ;;  %s6632_s15 = inlined_call_operand.hbm [shape: bf16[128,128], index: 15, kind: input, shape index: {}]   ;;  %s6633_s16 = inlined_call_operand.vmem [shape: f32[1,128], index: 16, kind: input, shape index: {}]   ;;  %s6634_s17 = inlined_call_operand.hbm [shape: f32[16,128], index: 17, kind: output, shape index: {0}]   ;;  %s6635_s18 = inlined_call_operand.hbm [shape: f32[16,128], index: 18, kind: output, shape index: {1}]   ;;  %s6636_s19 = inlined_call_operand.hbm [shape: f32[16,128], index: 19, kind: output, shape index: {2}]   ;;  %s6637_s20 = inlined_call_operand.hbm [shape: f32[16,18], index: 20, kind: output, shape index: {3}]  }
   0x1   :  { %6678 = sst [smem:[#allocation46_spill]] %s6617_s0 }
   0x2   :  { %6679 = sst [smem:[#allocation47_spill]] %s6618_s1 }
   0x3   :  { %6680 = sst [smem:[#allocation48_spill]] %s6619_s2 }
   0x4   :  { %6681 = sst [smem:[#allocation49_spill]] %s6620_s3 }
   0x5   :  { %6682 = sst [smem:[#allocation50_spill]] %s6621_s4 }
   0x6   :  { %6683 = sst [smem:[#allocation51_spill]] %s6622_s5 }
   0x7   :  { %6684 = sst [smem:[#allocation52_spill]] %s6623_s6 }
   0x8   :  { %6685 = sst [smem:[#allocation53_spill]] %s6624_s7 }
   0x9   :  { %6686 = sst [smem:[#allocation54_spill]] %s6626_s9 }
   0xa   :  { %6687 = sst [smem:[#allocation55_spill]] %s6627_s10 }
   0xb   :  { %6688 = sst [smem:[#allocation56_spill]] %s6628_s11 }
   0xc   :  { %6689 = sst [smem:[#allocation57_spill]] %s6630_s13 }
   0xd   :  { %6690 = sst [smem:[#allocation58_spill]] %s6631_s14 }
   0xe   :  { %6691 = sst [smem:[#allocation59_spill]] %s6633_s16 }
   0xf   :  { %6692 = sst [smem:[#allocation60_spill]] %s6634_s17 }
  0x10   :  { %6693 = sst [smem:[#allocation61_spill]] %s6635_s18 }
  0x11   :  { %6694 = sst [smem:[#allocation62_spill]] %s6636_s19 }
  0x12   :  { %6695 = sst [smem:[#allocation63_spill]] %s6637_s20 }
  0x13   :  { %26 = vsyncpa [#allocation3], 0 }
  0x14   :  { %28 = vsyncpa [#allocation3 + $0x1], 0 }
  0x15   :  { %29 = vsyncpa [#allocation7], 0 }
  0x16   :  { %31 = vsyncpa [#allocation7 + $0x1], 0 }
  0x17   :  { %32 = vsyncpa [#allocation10], 0 }
  0x18   :  { %34 = vsyncpa [#allocation10 + $0x1], 0 }
  0x19   :  { %35 = vsyncpa [#allocation13], 0 }
  0x1a   :  { %36 = vsyncpa [#allocation16], 0 }
  0x1b   :  { %37 = vsyncpa [#allocation5], 0 }
  0x1c   :  { %38 = vsyncpa [#allocation20], 0 }
  0x1d   :  { %39 = vsyncpa [#allocation4], 0 }
  0x1e   :  { %41 = vsyncpa [#allocation4 + $0x1], 0 }
  0x1f   :  { %42 = vsyncpa [#allocation24], 0 }
  0x20   :  { %44 = vsyncpa [#allocation24 + $0x1], 0 }
  0x21   :  { %45 = vsyncpa [#allocation27], 0 }
  0x22   :  { %47 = vsyncpa [#allocation27 + $0x1], 0  ;;  %s5515_s1 = smov 0   ;;  %s5517_s22 = smov 0  }
  0x23   :  { %s5519_s23 = smov 0   ;;  %s5521_s24 = smov 0  }
  0x24 LB: > { %6696 = sst [smem:[#allocation40_spill]] %s5371_s1  ;;  %s5385_s2 = smov [#allocation11]   ;;  %s5383_s24 = sphi %s5521_s24, %s6763_s24   ;;  %s5379_s23 = sphi %s5519_s23, %s6765_s23   ;;  %s5375_s22 = sphi %s5517_s22, %s6767_s22   ;;  %s5371_s1 = sphi %s5515_s1, %s6766_s1  }
  0x25   : > { %6697 = sst [smem:[#allocation41_spill]] %s5379_s23  ;;  %s551_s25 = sshll.u32 %s5385_s2, 4  ;;  %s5541_s25 = int_to_ptr.vmem [resolvable:$true] %s551_s25 }
  0x26   : > { %s5536_s3 = sadd.s32 4294967295, %s5383_s24   ;;  %p3991_p0 = scmp.ge.s32.totalorder %s5383_s24, 1 }
  0x27   : > { %p6647_p1 = scmp.eq.s32.totalorder %s5536_s3, 0  ;;  %p539_p2 = scmp.lt.s32.totalorder %s5383_s24, 3 }
  0x28   : > { %s5386_s27 = smov [#allocation12]   ;;  %s5387_s29 = smov [#allocation15]  }
  0x29   : > { %p5543_p3 = pnand %p3991_p0, %p539_p2  ;;  %s564_s28 = sshll.u32 %s5386_s27, 4  ;;  %s5556_s28 = int_to_ptr.vmem [resolvable:$true] %s564_s28 }
  0x2a   : > { %s590_s30 = sshll.u32 %s5387_s29, 4  ;;  %s6700_s2 = sld [smem:[#allocation50_spill]]  ;;  %s5558_s30 = int_to_ptr.vmem [resolvable:$true] %s590_s30 }
  0x2b   : > { %s6698_s26 = scalar_select %p5543_p3, 1, 0 }
  0x2c   : > { %p4433_p5 = pneg %p5543_p3 }
  0x2e   : > { %p5552_p6 = pnand %p4433_p5, %p6647_p1 }
  0x30   : > { %s6699_s4 = scalar_select %p5552_p6, 1, 0 }
  0x31   : > { %s4862_s17 = scalar_lea.hbm %s6700_s2, 1024  ;;  %p5568_p8 = pneg %p5552_p6 }
  0x32   : > { %p4863_p7 = scmp.ne.s32.totalorder %s6700_s2, %s4862_s17  ;;  %p4869_p11 = scmp.lt.u32.totalorder %s4862_s17, %s6700_s2 }
  0x33   : > { %s6701_s27 = scalar_select %p5568_p8, 1, 0 }
  0x34   : > { %p4865_p9 = pnand %p5568_p8, %p4863_p7 }
  0x36   : > { %p4866_p10 = pneg %p4865_p9 }
  0x38   : > { %p4871_p12 = pnand %p4869_p11, %p4866_p10 }
  0x3a   : > { %4874 = shalt.err (!%p4871_p12)
}
  0x3b   : > { %s4875_s19 = scalar_lea.vmem %s5541_s25, 1024  ;;  %p4883_p5 = scmp.lt.s32.totalorder %s5541_s25, %s5541_s25 }
  0x3c   : > { %p4876_p13 = scmp.ne.s32.totalorder %s5541_s25, %s4875_s19  ;;  %p4884_p4 = scmp.lt.s32.totalorder %s4875_s19, %s4875_s19 }
  0x3e   : > { %p4878_p0 = pnand %p4876_p13, %p5568_p8  ;;  %p4885_p7 = por %p4884_p4, %p4883_p5 }
  0x40   : > { %p4879_p2 = pneg %p4878_p0 }
  0x42   : > { %p4886_p9 = pnand %p4885_p7, %p4879_p2 }
  0x44   : > { %4889 = shalt.err (!%p4886_p9)
}
  0x45   : > { %s6652_s20 = smov 64   ;;  %s6654_s17 = smov 4  }
  0x46   : > { %4436 = dma.hbm_to_vmem [thread:$0]  (!%p5552_p6), %s6700_s2, 1024, %s5541_s25, [#allocation10], %s6652_s20, %s6652_s20, %s6654_s17  }
  0x47   : > { %s6702_s5 = sld [smem:[#allocation51_spill]] }
  0x4d   : > { %s4890_s19 = scalar_lea.hbm %s6702_s5, 1024 }
  0x4e   : > { %p4891_p4 = scmp.ne.s32.totalorder %s6702_s5, %s4890_s19  ;;  %p4897_p12 = scmp.lt.u32.totalorder %s4890_s19, %s6702_s5 }
  0x50   : > { %p4893_p10 = pnand %p4891_p4, %p5568_p8 }
  0x52   : > { %p4894_p11 = pneg %p4893_p10 }
  0x54   : > { %p4899_p13 = pnand %p4897_p12, %p4894_p11 }
  0x56   : > { %4902 = shalt.err (!%p4899_p13)
}
  0x57   : > { %s4903_s25 = scalar_lea.vmem %s5556_s28, 1024  ;;  %p4911_p7 = scmp.lt.s32.totalorder %s5556_s28, %s5556_s28 }
  0x58   : > { %p4904_p0 = scmp.ne.s32.totalorder %s5556_s28, %s4903_s25  ;;  %p4912_p9 = scmp.lt.s32.totalorder %s4903_s25, %s4903_s25 }
  0x5a   : > { %p4906_p2 = pnand %p4904_p0, %p5568_p8  ;;  %p4913_p4 = por %p4912_p9, %p4911_p7 }
  0x5c   : > { %p4907_p5 = pneg %p4906_p2 }
  0x5e   : > { %p4914_p10 = pnand %p4913_p4, %p4907_p5 }
  0x60   : > { %4917 = shalt.err (!%p4914_p10)
}
  0x61   : > { %4439 = dma.hbm_to_vmem [thread:$0]  (!%p5552_p6), %s6702_s5, 1024, %s5556_s28, [#allocation13], %s6652_s20, %s6652_s20, %s6654_s17  }
  0x62   : > { %s6703_s7 = sld [smem:[#allocation53_spill]] }
  0x68   : > { %s4918_s18 = scalar_lea.hbm %s6703_s7, 1024 }
  0x69   : > { %p4919_p11 = scmp.ne.s32.totalorder %s6703_s7, %s4918_s18  ;;  %p4925_p0 = scmp.lt.u32.totalorder %s4918_s18, %s6703_s7 }
  0x6b   : > { %p4921_p12 = pnand %p4919_p11, %p5568_p8 }
  0x6d   : > { %p4922_p13 = pneg %p4921_p12 }
  0x6f   : > { %p4927_p2 = pnand %p4925_p0, %p4922_p13 }
  0x71   : > { %4930 = shalt.err (!%p4927_p2)
}
  0x72   : > { %s4931_s28 = scalar_lea.vmem %s5558_s30, 1024  ;;  %p4939_p4 = scmp.lt.s32.totalorder %s5558_s30, %s5558_s30 }
  0x73   : > { %p4932_p5 = scmp.ne.s32.totalorder %s5558_s30, %s4931_s28  ;;  %p4940_p10 = scmp.lt.s32.totalorder %s4931_s28, %s4931_s28 }
  0x75   : > { %p4934_p7 = pnand %p4932_p5, %p5568_p8  ;;  %p4941_p11 = por %p4940_p10, %p4939_p4 }
  0x77   : > { %p4935_p9 = pneg %p4934_p7 }
  0x79   : > { %p4942_p12 = pnand %p4941_p11, %p4935_p9 }
  0x7b   : > { %4945 = shalt.err (!%p4942_p12)
}
  0x7c   : > { %4445 = dma.hbm_to_vmem [thread:$0]  (!%p5552_p6), %s6703_s7, 1024, %s5558_s30, [#allocation16], %s6652_s20, %s6652_s20, %s6654_s17  }
  0x7d   : > { %s5390_s10 = smov [#allocation19]   ;;  %s6704_s13 = sld [smem:[#allocation57_spill]] }
  0x7e   : > { %s636_s14 = sshll.u32 %s5390_s10, 4  ;;  %s637_s14 = int_to_ptr.vmem [resolvable:$true] %s636_s14 }
  0x83   : > { %s4946_s0 = scalar_lea.hbm %s6704_s13, 4096 }
  0x84   : > { %p4947_p13 = scmp.ne.s32.totalorder %s6704_s13, %s4946_s0  ;;  %p4953_p5 = scmp.lt.u32.totalorder %s4946_s0, %s6704_s13 }
  0x86   : > { %p4949_p0 = pnand %p4947_p13, %p5568_p8 }
  0x88   : > { %p4950_p2 = pneg %p4949_p0 }
  0x8a   : > { %p4955_p7 = pnand %p4953_p5, %p4950_p2 }
  0x8c   : > { %4958 = shalt.err (!%p4955_p7)
}
  0x8d   : > { %s4959_s30 = scalar_lea.vmem %s637_s14, 4096  ;;  %p4967_p11 = scmp.lt.s32.totalorder %s637_s14, %s637_s14 }
  0x8e   : > { %p4960_p9 = scmp.ne.s32.totalorder %s637_s14, %s4959_s30  ;;  %p4968_p12 = scmp.lt.s32.totalorder %s4959_s30, %s4959_s30 }
  0x90   : > { %p4962_p4 = pnand %p4960_p9, %p5568_p8  ;;  %p4969_p1 = por %p4968_p12, %p4967_p11 }
  0x92   : > { %p4963_p10 = pneg %p4962_p4 }
  0x94   : > { %p4970_p3 = pnand %p4969_p1, %p4963_p10 }
  0x96   : > { %4973 = shalt.err (!%p4970_p3)
}
  0x97   : > { %s6650_s25 = smov 256   ;;  %s6651_s9 = smov 16  }
  0x98   : > { %4454 = dma.hbm_to_vmem [thread:$0]  (!%p5552_p6), %s6704_s13, 4096, %s637_s14, [#allocation20], %s6650_s25, %s6650_s25, %s6651_s9  }
  0x99   : > { %s6649_s18 = sadd.s32 4294967294, %s5383_s24   ;;  %s5667_s0 = sadd.s32 1, %s5383_s24  }
  0x9a   : > { %6705 = sst [smem:[#allocation42_spill]] %s5667_s0  ;;  %s57_s21 = ssub.s32 %s5383_s24, %s5667_s0 }
  0x9b   : > { %s60_s29 = sadd.s32 1, %s5379_s23  ;;  %p58_p1 = scmp.eq.s32.totalorder %s57_s21, 0 }
  0x9c   : > { %p67_p3 = scmp.ne.s32.totalorder %s5379_s23, %s5375_s22  ;;  %p68_p13 = scmp.eq.s32.totalorder %s5383_s24, 0 }
  0x9d   : > { %p73_p0 = scmp.ne.s32.totalorder %s5375_s22, %s5371_s1  ;;  %p6707_p5 = scmp.eq.s32.totalorder %s5536_s3, 0 }
  0x9e   : > { %s5678_s19 = scalar_select %p58_p1, %s5379_s23, %s60_s29  }
  0x9f   : > { %p69_p2 = por %p68_p13, %p67_p3  ;;  %p5682_p7 = por %p6707_p5, %p73_p0 }
  0xa0   : > { %6706 = sst [smem:[#allocation43_spill]] %s5678_s19  ;;  %p448_p9 = scmp.eq.s32.totalorder %s5536_s3, 1 }
  0xa1   : > { %s6708_s28 = scalar_select %p5682_p7, 1, 0 }
  0xa2   : > { %p454_p4 = scmp.eq.s32.totalorder %s6649_s18, 1  ;;  %p4492_p10 = scmp.lt.s32.totalorder %s5383_s24, 2 }
  0xa3   : > { %s5691_s14 = sand.u32 1, %s5379_s23   ;;  %p5693_p11 = por %p448_p9, %p67_p3 }
  0xa4   : > { %p5697_p12 = por %p454_p4, %p73_p0  ;;  %s6657_s16 = sshll.u32 %s5691_s14, 3 }
  0xa5   : > { %s6709_s30 = scalar_select %p5693_p11, 1, 0 }
  0xa6   : > { %s6711_s10 = scalar_select %p5697_p12, 1, 0 }
  0xa7   : > { %6710 = sst [smem:[#allocation44_spill]] %s6709_s30  ;;  %s6658_s21 = sshll.u32 %s5383_s24, 7 }
  0xa8   : > { %6712 = sst [smem:[#allocation45_spill]] %s6711_s10  ;;  %p5703_p1 = pnand %p4492_p10, %p69_p2 }
  0xa9   : > { %s6660_s18 = sand.u32 1, %s5383_s24   ;;  %s6714_s20 = sld [smem:[#allocation47_spill]] }
  0xaa   : > { %s6713_s29 = scalar_select %p5703_p1, 1, 0 }
  0xab   : > { %s692_s2 = scalar_lea.vmem [#allocation6], %s6657_s16  ;;  %s5722_s13 = scalar_lea.sflag [#allocation7], %s6660_s18 }
  0xac   : > { %s699_s5 = sshll.u32 %s692_s2, 4  ;;  %p5728_p13 = pneg %p5703_p1  ;;  %s5718_s5 = int_to_ptr.vmem [resolvable:$true] %s699_s5 }
  0xae   : > { %s6715_s25 = scalar_select %p5728_p13, 1, 0 }
  0xaf   : > { %s5713_s17 = scalar_lea.hbm %s6714_s20, %s6658_s21  ;;  %s4979_s2 = scalar_lea.hbm %s6714_s20, 256 }
  0xb0   : > { %s4974_s19 = scalar_lea.hbm %s5713_s17, 128  ;;  %p4980_p5 = scmp.lt.u32.totalorder %s5713_s17, %s6714_s20 }
  0xb1   : > { %p4975_p3 = scmp.ne.s32.totalorder %s5713_s17, %s4974_s19  ;;  %p4981_p9 = scmp.lt.u32.totalorder %s4979_s2, %s4974_s19 }
  0xb2   : > { %p4983_p10 = scmp.lt.u32.totalorder %s4974_s19, %s5713_s17 }
  0xb3   : > { %p4977_p0 = pnand %p5728_p13, %p4975_p3  ;;  %p4982_p4 = por %p4981_p9, %p4980_p5 }
  0xb5   : > { %p4978_p2 = pneg %p4977_p0  ;;  %p4984_p12 = por %p4983_p10, %p4982_p4 }
  0xb7   : > { %p4985_p11 = pnand %p4984_p12, %p4978_p2 }
  0xb9   : > { %4988 = shalt.err (!%p4985_p11)
}
  0xba   : > { %s4989_s18 = scalar_lea.vmem %s5718_s5, 128  ;;  %s5393_s16 = smov [#allocation6]  }
  0xbb   : > { %p4990_p3 = scmp.ne.s32.totalorder %s5718_s5, %s4989_s18  ;;  %s4994_s9 = sshll.u32 %s5393_s16, 4  ;;  %s4995_s9 = int_to_ptr.vmem [resolvable:$false] %s4994_s9 }
  0xbc   : > { %s4996_s7 = scalar_lea.vmem %s4995_s9, 256  ;;  %p4997_p6 = scmp.lt.s32.totalorder %s5718_s5, %s4995_s9 }
  0xbd   : > { %p4992_p0 = pnand %p4990_p3, %p5728_p13  ;;  %p4998_p8 = scmp.lt.s32.totalorder %s4996_s7, %s4989_s18 }
  0xbf   : > { %p4993_p7 = pneg %p4992_p0  ;;  %p4999_p5 = por %p4998_p8, %p4997_p6 }
  0xc1   : > { %p5000_p9 = pnand %p4999_p5, %p4993_p7 }
  0xc3   : > { %5003 = shalt.err (!%p5000_p9)
}
  0xc4   : > { %4464 = dma.hbm_to_vmem [thread:$0]  (!%p5703_p1), %s5713_s17, 128, %s5718_s5, %s5722_s13  }
  0xc5   : > { %s6716_s19 = sshll.u32 %s5691_s14, 5  ;;  %s5394_s7 = smov [#allocation14]  }
  0xc6   : > { %s710_s21 = scalar_lea.vmem [#allocation8], %s6716_s19  ;;  %s6717_s16 = smov %s6716_s19 }
  0xc7   : > { %s717_s2 = sshll.u32 %s710_s21, 4  ;;  %s731_s9 = scalar_lea.vmem [#allocation9], %s6717_s16  ;;  %s5754_s2 = int_to_ptr.vmem [resolvable:$true] %s717_s2 }
  0xc8   : > { %s738_s18 = sshll.u32 %s731_s9, 4  ;;  %s577_s20 = sshll.u32 %s5394_s7, 4  ;;  %s5758_s18 = int_to_ptr.vmem [resolvable:$true] %s738_s18  ;;  %s578_s20 = int_to_ptr.vmem [resolvable:$true] %s577_s20 }
  0xc9   : > { %s6718_s11 = sld [smem:[#allocation56_spill]]  ;;  %s6719_s6 = sld [smem:[#allocation52_spill]] }
  0xca   : > { %p6720_p8 = scmp.ne.s32.totalorder %s6701_s27, 0 }
  0xcf   : > { %s613_s10 = sshll.u32 %s6718_s11, 4  ;;  %s5004_s5 = scalar_lea.hbm %s6719_s6, 1024  ;;  %s614_s10 = int_to_ptr.vmem [resolvable:$true] %s613_s10 }
  0xd0   : > { %p5005_p6 = scmp.ne.s32.totalorder %s6719_s6, %s5004_s5  ;;  %p5011_p12 = scmp.lt.u32.totalorder %s5004_s5, %s6719_s6 }
  0xd2   : > { %p5007_p7 = pnand %p5005_p6, %p6720_p8 }
  0xd4   : > { %p5008_p11 = pneg %p5007_p7 }
  0xd6   : > { %p5013_p2 = pnand %p5011_p12, %p5008_p11 }
  0xd8   : > { %5016 = shalt.err (!%p5013_p2)
}
  0xd9   : > { %s5017_s9 = scalar_lea.vmem %s578_s20, 1024  ;;  %p5025_p0 = scmp.lt.s32.totalorder %s578_s20, %s578_s20 }
  0xda   : > { %p5018_p4 = scmp.ne.s32.totalorder %s578_s20, %s5017_s9  ;;  %p5026_p5 = scmp.lt.s32.totalorder %s5017_s9, %s5017_s9 }
  0xdc   : > { %p5020_p10 = pnand %p5018_p4, %p6720_p8  ;;  %p5027_p9 = por %p5026_p5, %p5025_p0 }
  0xde   : > { %p5021_p3 = pneg %p5020_p10 }
  0xe0   : > { %p5028_p1 = pnand %p5027_p9, %p5021_p3 }
  0xe2   : > { %5031 = shalt.err (!%p5028_p1)
}
  0xe3   : > { %p6721_p6 = scmp.ne.s32.totalorder %s6699_s4, 0  ;;  %s6722_s1 = smov 4  }
  0xe4   : > { %s6723_s23 = smov 64   ;;  %s5032_s7 = scalar_lea.vmem %s614_s10, 16 }
  0xe5   : > { %4442 = dma.hbm_to_vmem [thread:$0]  (!%p6721_p6), %s6719_s6, 1024, %s578_s20, [#allocation13], %s6723_s23, %s6723_s23, %s6722_s1  }
  0xe6   : > { %p5033_p7 = scmp.ne.s32.totalorder %s614_s10, %s5032_s7  ;;  %p5040_p2 = scmp.lt.s32.totalorder %s614_s10, %s614_s10 }
  0xe7   : > { %p5041_p4 = scmp.lt.s32.totalorder %s5032_s7, %s5032_s7 }
  0xe8   : > { %p5035_p11 = pnand %p5033_p7, %p6720_p8 }
  0xe9   : > { %p5042_p10 = por %p5041_p4, %p5040_p2 }
  0xea   : > { %p5036_p12 = pneg %p5035_p11 }
  0xec   : > { %p5043_p1 = pnand %p5042_p10, %p5036_p12 }
  0xee   : > { %5046 = shalt.err (!%p5043_p1)
}
  0xef   : > { %s5395_s5 = smov [#allocation17]   ;;  %s5396_s17 = smov [#allocation18]  }
  0xf0   : > { %4448 = dma.vmem_to_smem (!%p6721_p6), %s614_s10, 16, %s5395_s5, [#allocation5]  }
  0xf1   : > { %s623_s19 = sshll.u32 %s5396_s17, 4  ;;  %s5397_s21 = smov [#allocation21]   ;;  %s624_s19 = int_to_ptr.vmem [resolvable:$true] %s623_s19 }
  0xf2   : > { %s652_s20 = sshll.u32 %s5397_s21, 4  ;;  %s5047_s0 = scalar_lea.hbm %s6629_s12, 8192  ;;  %s5788_s20 = int_to_ptr.vmem [resolvable:$true] %s652_s20 }
  0xf3   : > { %p5048_p3 = scmp.ne.s32.totalorder %s6629_s12, %s5047_s0  ;;  %p5054_p9 = scmp.lt.u32.totalorder %s5047_s0, %s6629_s12 }
  0xf5   : > { %p5050_p0 = pnand %p5048_p3, %p6720_p8 }
  0xf7   : > { %p5051_p5 = pneg %p5050_p0 }
  0xf9   : > { %p5056_p7 = pnand %p5054_p9, %p5051_p5 }
  0xfb   : > { %5059 = shalt.err (!%p5056_p7)
}
  0xfc   : > { %s5060_s5 = scalar_lea.vmem %s624_s19, 8192  ;;  %p5068_p4 = scmp.lt.s32.totalorder %s624_s19, %s624_s19 }
  0xfd   : > { %p5061_p11 = scmp.ne.s32.totalorder %s624_s19, %s5060_s5  ;;  %p5069_p10 = scmp.lt.s32.totalorder %s5060_s5, %s5060_s5 }
  0xff   : > { %p5063_p12 = pnand %p5061_p11, %p6720_p8  ;;  %p5070_p1 = por %p5069_p10, %p5068_p4 }
 0x101   : > { %p5064_p2 = pneg %p5063_p12 }
 0x103   : > { %p5071_p13 = pnand %p5070_p1, %p5064_p2 }
 0x105   : > { %5074 = shalt.err (!%p5071_p13)
}
 0x106   : > { %s6724_s17 = smov 16   ;;  %s6725_s21 = smov 256  }
 0x107   : > { %4451 = dma.hbm_to_vmem [thread:$0]  (!%p6721_p6), %s6629_s12, 8192, %s624_s19, [#allocation16], %s6725_s21, %s6725_s21, %s6724_s17  }
 0x108   : > { %s5075_s30 = scalar_lea.hbm %s6632_s15, 1024 }
 0x109   : > { %p5076_p3 = scmp.ne.s32.totalorder %s6632_s15, %s5075_s30  ;;  %p5082_p5 = scmp.lt.u32.totalorder %s5075_s30, %s6632_s15 }
 0x10b   : > { %p5078_p13 = pnand %p5076_p3, %p6720_p8 }
 0x10d   : > { %p5079_p0 = pneg %p5078_p13 }
 0x10f   : > { %p5084_p9 = pnand %p5082_p5, %p5079_p0 }
 0x111   : > { %5087 = shalt.err (!%p5084_p9)
}
 0x112   : > { %s5088_s19 = scalar_lea.vmem %s5788_s20, 1024  ;;  %p5096_p2 = scmp.lt.s32.totalorder %s5788_s20, %s5788_s20 }
 0x113   : > { %p5089_p7 = scmp.ne.s32.totalorder %s5788_s20, %s5088_s19  ;;  %p5097_p4 = scmp.lt.s32.totalorder %s5088_s19, %s5088_s19 }
 0x115   : > { %p5091_p11 = pnand %p5089_p7, %p6720_p8  ;;  %p5098_p10 = por %p5097_p4, %p5096_p2 }
 0x117   : > { %p5092_p12 = pneg %p5091_p11 }
 0x119   : > { %p5099_p1 = pnand %p5098_p10, %p5092_p12 }
 0x11b   : > { %5102 = shalt.err (!%p5099_p1)
}
 0x11c   : > { %4457 = dma.hbm_to_vmem [thread:$0]  (!%p6721_p6), %s6632_s15, 1024, %s5788_s20, [#allocation20], %s6723_s23, %s6723_s23, %s6722_s1  }
 0x11d   : > { %s6726_s27 = sshll.u32 %s5383_s24, 7  ;;  %s6727_s16 = sld [smem:[#allocation46_spill]] }
 0x11e   : > { %s6728_s4 = sshll.u32 %s5691_s14, 3  ;;  %s4195_s7 = sshll.u32 %s5383_s24, 9 }
 0x11f   : > { %s673_s0 = scalar_lea.vmem [#allocation2], %s6728_s4  ;;  %s670_s10 = scalar_lea.sflag [#allocation3], %s5691_s14 }
 0x120   : > { %s681_s30 = sshll.u32 %s673_s0, 4  ;;  %p6729_p6 = scmp.ne.s32.totalorder %s6715_s25, 0  ;;  %s5846_s30 = int_to_ptr.vmem [resolvable:$true] %s681_s30 }
 0x123   : > { %s5842_s9 = scalar_lea.hbm %s6727_s16, %s6726_s27  ;;  %s5108_s11 = scalar_lea.hbm %s6727_s16, 256 }
 0x124   : > { %s5103_s5 = scalar_lea.hbm %s5842_s9, 128  ;;  %p5109_p0 = scmp.lt.u32.totalorder %s5842_s9, %s6727_s16 }
 0x125   : > { %p5104_p8 = scmp.ne.s32.totalorder %s5842_s9, %s5103_s5  ;;  %p5110_p5 = scmp.lt.u32.totalorder %s5108_s11, %s5103_s5 }
 0x126   : > { %p5112_p7 = scmp.lt.u32.totalorder %s5103_s5, %s5842_s9 }
 0x127   : > { %p5106_p3 = pnand %p5104_p8, %p6729_p6  ;;  %p5111_p9 = por %p5110_p5, %p5109_p0 }
 0x129   : > { %p5107_p13 = pneg %p5106_p3  ;;  %p5113_p11 = por %p5112_p7, %p5111_p9 }
 0x12b   : > { %p5114_p12 = pnand %p5113_p11, %p5107_p13 }
 0x12d   : > { %5117 = shalt.err (!%p5114_p12)
}
 0x12e   : > { %s5118_s14 = scalar_lea.vmem %s5846_s30, 128  ;;  %s5398_s21 = smov [#allocation2]  }
 0x12f   : > { %p5119_p2 = scmp.ne.s32.totalorder %s5846_s30, %s5118_s14  ;;  %s5123_s6 = sshll.u32 %s5398_s21, 4  ;;  %s5124_s6 = int_to_ptr.vmem [resolvable:$false] %s5123_s6 }
 0x130   : > { %s5125_s4 = scalar_lea.vmem %s5124_s6, 256  ;;  %p5126_p1 = scmp.lt.s32.totalorder %s5846_s30, %s5124_s6 }
 0x131   : > { %p5121_p4 = pnand %p5119_p2, %p6729_p6  ;;  %p5127_p8 = scmp.lt.s32.totalorder %s5125_s4, %s5118_s14 }
 0x133   : > { %p5122_p10 = pneg %p5121_p4  ;;  %p5128_p3 = por %p5127_p8, %p5126_p1 }
 0x135   : > { %p5129_p0 = pnand %p5128_p3, %p5122_p10 }
 0x137   : > { %5132 = shalt.err (!%p5129_p0)
}
 0x138   : > { %p6730_p13 = scmp.ne.s32.totalorder %s6713_s29, 0  ;;  %s6731_s20 = sld [smem:[#allocation48_spill]] }
 0x139   : > { %s6732_s27 = sld [smem:[#allocation49_spill]] }
 0x13a   : > { %4461 = dma.hbm_to_vmem [thread:$0]  (!%p6730_p13), %s5842_s9, 128, %s5846_s30, %s670_s10  }
 0x13e   : > { %s5876_s19 = scalar_lea.hbm %s6731_s20, %s4195_s7  ;;  %s5138_s10 = scalar_lea.hbm %s6731_s20, 1024 }
 0x13f   : > { %s5883_s14 = scalar_lea.hbm %s6732_s27, %s4195_s7  ;;  %s5133_s21 = scalar_lea.hbm %s5876_s19, 512 }
 0x140   : > { %p5134_p5 = scmp.ne.s32.totalorder %s5876_s19, %s5133_s21  ;;  %p5139_p11 = scmp.lt.u32.totalorder %s5876_s19, %s6731_s20 }
 0x141   : > { %p5140_p12 = scmp.lt.u32.totalorder %s5138_s10, %s5133_s21  ;;  %p5142_p4 = scmp.lt.u32.totalorder %s5133_s21, %s5876_s19 }
 0x142   : > { %p5136_p9 = pnand %p5134_p5, %p6729_p6 }
 0x143   : > { %p5141_p2 = por %p5140_p12, %p5139_p11 }
 0x144   : > { %p5137_p7 = pneg %p5136_p9 }
 0x145   : > { %p5143_p10 = por %p5142_p4, %p5141_p2 }
 0x147   : > { %p5144_p1 = pnand %p5143_p10, %p5137_p7 }
 0x149   : > { %5147 = shalt.err (!%p5144_p1)
}
 0x14a   : > { %s5148_s7 = scalar_lea.vmem %s5754_s2, 512  ;;  %s5399_s0 = smov [#allocation8]  }
 0x14b   : > { %p5149_p8 = scmp.ne.s32.totalorder %s5754_s2, %s5148_s7  ;;  %s5153_s5 = sshll.u32 %s5399_s0, 4  ;;  %s5154_s5 = int_to_ptr.vmem [resolvable:$false] %s5153_s5 }
 0x14c   : > { %s5155_s11 = scalar_lea.vmem %s5154_s5, 1024  ;;  %p5156_p5 = scmp.lt.s32.totalorder %s5754_s2, %s5154_s5 }
 0x14d   : > { %p5151_p3 = pnand %p5149_p8, %p6729_p6  ;;  %p5157_p9 = scmp.lt.s32.totalorder %s5155_s11, %s5148_s7 }
 0x14f   : > { %p5152_p0 = pneg %p5151_p3  ;;  %p5158_p11 = por %p5157_p9, %p5156_p5 }
 0x151   : > { %p5159_p12 = pnand %p5158_p11, %p5152_p0 }
 0x153   : > { %5162 = shalt.err (!%p5159_p12)
}
 0x154   : > { %4467 = dma.hbm_to_vmem [thread:$0]  (!%p6730_p13), %s5876_s19, 512, %s5754_s2, %s5722_s13, %s6723_s23, %s6723_s23, %s6722_s1  }
 0x155   : > { %s6733_s17 = sand.u32 1, %s5383_s24   ;;  %s5163_s9 = scalar_lea.hbm %s5883_s14, 512 }
 0x156   : > { %s5912_s21 = scalar_lea.sflag [#allocation10], %s6733_s17  ;;  %p5164_p7 = scmp.ne.s32.totalorder %s5883_s14, %s5163_s9 }
 0x157   : > { %s5168_s6 = scalar_lea.hbm %s6732_s27, 1024  ;;  %p5169_p10 = scmp.lt.u32.totalorder %s5883_s14, %s6732_s27 }
 0x158   : > { %p5166_p2 = pnand %p5164_p7, %p6729_p6  ;;  %p5170_p1 = scmp.lt.u32.totalorder %s5168_s6, %s5163_s9 }
 0x159   : > { %p5172_p3 = scmp.lt.u32.totalorder %s5163_s9, %s5883_s14 }
 0x15a   : > { %p5167_p4 = pneg %p5166_p2  ;;  %p5171_p8 = por %p5170_p1, %p5169_p10 }
 0x15c   : > { %p5173_p0 = por %p5172_p3, %p5171_p8 }
 0x15e   : > { %p5174_p5 = pnand %p5173_p0, %p5167_p4 }
 0x160   : > { %5177 = shalt.err (!%p5174_p5)
}
 0x161   : > { %s5178_s13 = scalar_lea.vmem %s5758_s18, 512  ;;  %s5400_s2 = smov [#allocation9]  }
 0x162   : > { %p5179_p9 = scmp.ne.s32.totalorder %s5758_s18, %s5178_s13  ;;  %s5183_s19 = sshll.u32 %s5400_s2, 4  ;;  %s5184_s19 = int_to_ptr.vmem [resolvable:$false] %s5183_s19 }
 0x163   : > { %s5185_s0 = scalar_lea.vmem %s5184_s19, 1024  ;;  %p5186_p7 = scmp.lt.s32.totalorder %s5758_s18, %s5184_s19 }
 0x164   : > { %p5181_p11 = pnand %p5179_p9, %p6729_p6  ;;  %p5187_p2 = scmp.lt.s32.totalorder %s5185_s0, %s5178_s13 }
 0x166   : > { %p5182_p12 = pneg %p5181_p11  ;;  %p5188_p10 = por %p5187_p2, %p5186_p7 }
 0x168   : > { %p5189_p1 = pnand %p5188_p10, %p5182_p12 }
 0x16a   : > { %5192 = shalt.err (!%p5189_p1)
}
 0x16b   : > { %4470 = dma.hbm_to_vmem [thread:$0]  (!%p6730_p13), %s5883_s14, 512, %s5758_s18, %s5912_s21, %s6723_s23, %s6723_s23, %s6722_s1  }
 0x16c   : > { %p6734_p6 = scmp.ne.s32.totalorder %s6698_s26, 0 }
 0x16d   : > { %s5942_s25 = sand.u32 (!%p6734_p6), 1, %s5375_s22   ;;  %p6735_p4 = scmp.ne.s32.totalorder (!%p6734_p6), %s6708_s28, 0 }
 0x16e   : > { %750 = sbr.rel (%p6734_p6) target bundleno = 2943 (0xb7f), region = 88  ;;  %s5945_s5 = sshll.u32 (!%p6734_p6), %s5942_s25, 3 }
 0x16f   : > { %s753_s29 = scalar_lea.sflag (!%p6734_p6), [#allocation3], %s5942_s25  ;;  %s756_s11 = scalar_lea.vmem (!%p6734_p6), [#allocation2], %s5945_s5 }
 0x175   : > { %5322 = dma.done.wait (%p6735_p4), %s753_s29, 128  }
 0x176   : > { %5324 = vsyncadd (%p6735_p4), %s753_s29, 4294967168  ;;  %s5954_s26 = sand.u32 1, %s5536_s3   ;;  %s765_s1 = scalar_lea.vmem [#allocation6], %s5945_s5 }
 0x177   : > { %s762_s18 = scalar_lea.sflag [#allocation7], %s5954_s26 }
 0x178   : > { %5326 = dma.done.wait (%p6735_p4), %s762_s18, 640  }
 0x179   : > { %5328 = vsyncadd (%p6735_p4), %s762_s18, 4294966656  ;;  %s4015_s23 = sshll.u32 %s5942_s25, 5  ;;  %s780_s17 = scalar_lea.sflag [#allocation10], %s5954_s26 }
 0x17a   : > { %s5963_s14 = scalar_lea.vmem [#allocation8], %s4015_s23  ;;  %s5966_s21 = scalar_lea.vmem [#allocation9], %s4015_s23 }
 0x17b   : > { %5330 = dma.done.wait (%p6735_p4), %s780_s17, 512  }
 0x17c   : > { %5332 = vsyncadd (%p6735_p4), %s780_s17, 4294966784  ;;  %p6736_p13 = scmp.eq.s32.totalorder %s5536_s3, 0 }
 0x17e   : > { %5334 = dma.done.wait (%p6736_p13), [#allocation10], 1024   ;;  %p6737_p8 = pmov %p6736_p13 }
 0x180   : > { %5336 = vsyncadd (%p6737_p8), [#allocation10], 4294966272  ;;  %p6738_p3 = pmov %p6737_p8 }
 0x182   : > { %5338 = dma.done.wait (%p6738_p3), [#allocation13], 2048   ;;  %p6739_p0 = pmov %p6738_p3 }
 0x184   : > { %5340 = vsyncadd (%p6739_p0), [#allocation13], 4294965248  ;;  %p6740_p5 = pmov %p6739_p0 }
 0x185   : > { %p6741_p9 = pmov %p6739_p0 }
 0x186   : > { %5342 = dma.done.wait (%p6740_p5), [#allocation16], 1024  }
 0x187   : > { %5344 = vsyncadd (%p6741_p9), [#allocation16], 4294966272  ;;  %p6742_p11 = pmov %p6739_p0 }
 0x188   : > { %p6743_p12 = pmov %p6739_p0 }
 0x189   : > { %5346 = dma.done.wait (%p6742_p11), [#allocation5], 16  }
 0x18a   : > { %5348 = vsyncadd (%p6743_p12), [#allocation5], 4294967280  ;;  %p6744_p7 = pmov %p6739_p0 }
 0x18b   : > { %p6745_p2 = pmov %p6739_p0 }
 0x18c   : > { %5350 = dma.done.wait (%p6744_p7), [#allocation16], 8192  }
 0x18d   : > { %5352 = vsyncadd (%p6745_p2), [#allocation16], 4294959104  ;;  %p6746_p10 = pmov %p6739_p0 }
 0x18e   : > { %p6747_p1 = pmov %p6739_p0 }
 0x18f   : > { %5354 = dma.done.wait (%p6746_p10), [#allocation20], 5120  }
 0x190   : > { %5356 = vsyncadd (%p6747_p1), [#allocation20], 4294962176 }
 0x191   : > { %820 = sfence }
 0x192   : > { %v4553_v0 = vld [vmem:[#allocation11] sm:$0xff]   ;;  %v5401_v1 = vmov 0.0   ;;  %v4555_v3 = vld [vmem:[#allocation11 + $0x8] sm:$0xff]   ;;  %vm5402_vm0 = vmmov 0   ;;  %v4558_v5 = vld [vmem:[#allocation12 + $0x10] sm:$0xff]   ;;  %v1016_v35 = vlaneseq  ;;  %s6748_s6 = sld [smem:[#allocation54_spill]] }
 0x193   : > { %4257 = vmatprep.subr.bf16.mxu0 %v5401_v1  ;;  %v4554_v2 = vld [vmem:[#allocation12] sm:$0xff]   ;;  %4273 = vmatprep.mubr.msk.bf16.mxu0 %vm5402_vm0, %v5401_v1  ;;  %v4556_v4 = vld [vmem:[#allocation12 + $0x8] sm:$0xff]   ;;  %v4557_v6 = vld [vmem:[#allocation11 + $0x10] sm:$0xff]   ;;  %v5403_v36 = vmov 1966171168   ;;  %s1037_s4 = sld [smem:[#allocation17]] }
 0x194   : > { %4258 = vmatpush3.bf16.msra.mxu0 %v4553_v0  ;;  %4277 = vmatprep.subr.bf16.mxu1 %v4554_v2  ;;  %v4560_v7 = vld [vmem:[#allocation12 + $0x18] sm:$0xff]   ;;  %v4562_v9 = vld [vmem:[#allocation12 + $0x20] sm:$0xff]   ;;  %v4564_v12 = vld [vmem:[#allocation12 + $0x28] sm:$0xff]   ;;  %v1186_v37 = vunpack.c.l.s4 %v5403_v36  ;;  %v6026_v39 = vshrl.u32 %v1016_v35, 7  ;;  %s4051_s7 = sld [smem:[#allocation17 + $0x1]]  ;;  %vm1405_vm2 = vcmask 1041409  }
 0x195   : > { %4259 = vmatprep.subr.bf16.mxu0 %v5401_v1  ;;  %4278 = vmatpush3.bf16.msra.mxu1 %v4554_v2  ;;  %v4559_v8 = vld [vmem:[#allocation11 + $0x18] sm:$0xff]   ;;  %v4561_v10 = vld [vmem:[#allocation11 + $0x20] sm:$0xff]   ;;  %v4563_v13 = vld [vmem:[#allocation11 + $0x28] sm:$0xff]   ;;  %vm1407_vm3 = vcmask 1042434   ;;  %vm1409_vm4 = vcmask 1043459   ;;  %vm1411_vm5 = vcmask 1044484  }
 0x196   : > { %4279 = vmatprep.subr.bf16.mxu1 %v4556_v4  ;;  %v1038_v11 = vld [vmem:[%s5963_s14] sm:$0xff]   ;;  %v4566_v14 = vld [vmem:[#allocation12 + $0x30] sm:$0xff]   ;;  %v4567_v16 = vld [vmem:[#allocation11 + $0x38] sm:$0xff]   ;;  %v1187_v38 = vunpack.c.0.s8 %v1186_v37  ;;  %v6035_v45 = vsub.s32 0, %v6026_v39  ;;  %vm1413_vm6 = vcmask 1045509   ;;  %vm1415_vm7 = vcmask 1046534  }
 0x197   : > { %4293 = vmatprep.mubr.bf16.mxu1 %v1038_v11  ;;  %v4565_v15 = vld [vmem:[#allocation11 + $0x30] sm:$0xff]   ;;  %v4568_v17 = vld [vmem:[#allocation12 + $0x38] sm:$0xff]   ;;  %v906_v18 = vld [vmem:[%s756_s11] sm:$0xff]  ;;  %vm1417_vm8 = vcmask 1047559   ;;  %vm1420_vm9 = vcmask 64512   ;;  %s6749_s19 = sld [smem:[#allocation55_spill]] }
 0x198   : > { %4260 = vmatpush3.bf16.msra.mxu0 %v4555_v3  ;;  %v4572_v19 = vld [vmem:[#allocation14] sm:$0xff]   ;;  %v1040_v20 = vld [vmem:[%s5963_s14 + $0x8] sm:$0xff]   ;;  %v1042_v22 = vld [vmem:[%s5963_s14 + $0x10] sm:$0xff]   ;;  %v6012_v23 = vcombine.high %v906_v18, %v906_v18  ;;  %v1190_v40 = vsub.s32 %v1187_v38, %v6026_v39  ;;  %s4074_s0 = sld [smem:[#allocation17 + $0x2]]  ;;  %vm3607_vm10 = vcmask 7168   ;;  %vm3609_vm11 = vcmask 15360  }
 0x199   : > { %4261 = vmatprep.subr.bf16.mxu0 %v5401_v1  ;;  %4280 = vmatpush3.bf16.msra.mxu1 %v4556_v4  ;;  %v1744_v21 = vld [vmem:[%s5966_s21] sm:$0xff]   ;;  %v4574_v24 = vld [vmem:[#allocation14 + $0x8] sm:$0xff]   ;;  %v4576_v25 = vld [vmem:[#allocation14 + $0x10] sm:$0xff]   ;;  %vm3611_vm12 = vcmask 80896   ;;  %vm3613_vm13 = vcmask 146432   ;;  %s902_s29 = scalar_lea.vmem [#allocation26], %s5945_s5 }
 0x19a   : > { %4281 = vmatprep.subr.bf16.mxu1 %v4558_v5  ;;  %v1044_v26 = vld [vmem:[%s5963_s14 + $0x18] sm:$0xff]   ;;  %v4579_v28 = vld [vmem:[#allocation14 + $0x20] sm:$0xff]   ;;  %v4580_v29 = vld [vmem:[#allocation14 + $0x28] sm:$0xff]   ;;  %s6750_s23 = sld [smem:[#allocation58_spill]]  ;;  %s888_s17 = scalar_lea.vmem [#allocation23], %s5945_s5 }
 0x19b   : > { %v4578_v27 = vld [vmem:[#allocation14 + $0x18] sm:$0xff]   ;;  %v4581_v30 = vld [vmem:[#allocation14 + $0x30] sm:$0xff]   ;;  %v1746_v32 = vld [vmem:[%s5966_s21 + $0x8] sm:$0xff]   ;;  %s6751_s28 = sld [smem:[#allocation59_spill]]  ;;  %s6752_s9 = sld [smem:[#allocation44_spill]] }
 0x19c   : > { %4262 = vmatpush3.bf16.msra.mxu0 %v4557_v6  ;;  %v4582_v31 = vld [vmem:[#allocation14 + $0x38] sm:$0xff]   ;;  %v1748_v33 = vld [vmem:[%s5966_s21 + $0x10] sm:$0xff]   ;;  %s6484_s30 = sshll.u32 %s5536_s3, 7  ;;  %s3657_s13 = sshll.u32 %s888_s17, 4  ;;  %s3658_s13 = int_to_ptr.vmem [resolvable:$true] %s3657_s13 }
 0x19d   : > { %4263 = vmatprep.subr.bf16.mxu0 %v5401_v1  ;;  %4282 = vmatpush3.bf16.msra.mxu1 %v4558_v5  ;;  %v1750_v34 = vld [vmem:[%s5966_s21 + $0x18] sm:$0xff]   ;;  %s3621_s2 = scalar_lea.sflag [#allocation24], %s5954_s26 }
 0x19e   : > { %4283 = vmatprep.subr.bf16.mxu1 %v4560_v7 }
 0x1a0   : > { %4264 = vmatpush3.bf16.msra.mxu0 %v4559_v8 }
 0x1a1   : > { %4265 = vmatprep.subr.bf16.mxu0 %v5401_v1  ;;  %4284 = vmatpush3.bf16.msra.mxu1 %v4560_v7  ;;  %p6754_p4 = scmp.ne.s32.totalorder %s6752_s9, 0 }
 0x1a2   : > { %4285 = vmatprep.subr.bf16.mxu1 %v4562_v9 }
 0x1a4   : > { %4266 = vmatpush3.bf16.msra.mxu0 %v4561_v10 }
 0x1a5   : > { %4267 = vmatprep.subr.bf16.mxu0 %v5401_v1  ;;  %4286 = vmatpush3.bf16.msra.mxu1 %v4562_v9 }
 0x1a6   : > { %4287 = vmatprep.subr.bf16.mxu1 %v4564_v12 }
 0x1a8   : > { %4268 = vmatpush3.bf16.msra.mxu0 %v4563_v13 }
 0x1a9   : > { %4269 = vmatprep.subr.bf16.mxu0 %v5401_v1  ;;  %4288 = vmatpush3.bf16.msra.mxu1 %v4564_v12 }
 0x1aa   : > { %4289 = vmatprep.subr.bf16.mxu1 %v4566_v14 }
 0x1ac   : > { %4270 = vmatpush3.bf16.msra.mxu0 %v4565_v15 }
 0x1ad   : > { %4271 = vmatprep.subr.bf16.mxu0 %v5401_v1  ;;  %4290 = vmatpush3.bf16.msra.mxu1 %v4566_v14 }
 0x1ae   : > { %4291 = vmatprep.subr.bf16.mxu1 %v4568_v17 }
 0x1b0   : > { %4272 = vmatpush3.bf16.msra.mxu0 %v4567_v16 }
 0x1b1   : > { %4301 = vmatprep.subr.bf16.mxu0 %v4572_v19  ;;  %4292 = vmatpush3.bf16.msra.mxu1 %v4568_v17 }
 0x1b2   : > { %4325 = vmatprep.subr.bf16.mxu1 %v5401_v1 }
 0x1b3   : > { %4274 = vmatmul.mubr.bf16.vlgmr.msra.gmra.mrb[0].mxu0 %v6012_v23 }
 0x1b4   : > { %4302 = vmatpush3.bf16.msra.mxu0 %v4572_v19  ;;  %4317 = vmatprep.mubr.bf16.mxu0 %v1744_v21 }
 0x1b5   : > { %4294 = vmatmul.mubr.bf16.vlgmr.msra.gmra.mrb[0].mxu1 %v1040_v20  ;;  %4303 = vmatprep.subr.bf16.mxu0 %v4574_v24  ;;  %v4050_v20 = vld [vmem:[%s6625_s8] ss:$0 sm:$0xff] }
 0x1b6   : > { %4297 = vmatprep.mubr.bf16.mxu1 %v1042_v22 }
 0x1b8   : > { %4304 = vmatpush3.bf16.msra.mxu0 %v4574_v24 }
 0x1b9   : > { %4305 = vmatprep.subr.bf16.mxu0 %v4576_v25 }
 0x1bc   : > { %4306 = vmatpush3.bf16.msra.mxu0 %v4576_v25 }
 0x1bd   : > { %4298 = vmatmul.mubr.bf16.gmra.mrb[4].mxu1 %v1044_v26  ;;  %4307 = vmatprep.subr.bf16.mxu0 %v4578_v27 }
 0x1be   : > { %4341 = vmatprep.mubr.msk.bf16.mxu1 %vm5402_vm0, %v5401_v1 }
 0x1c0   : > { %4308 = vmatpush3.bf16.msra.mxu0 %v4578_v27 }
 0x1c1   : > { %4309 = vmatprep.subr.bf16.mxu0 %v4579_v28 }
 0x1c4   : > { %4310 = vmatpush3.bf16.msra.mxu0 %v4579_v28 }
 0x1c5   : > { %4311 = vmatprep.subr.bf16.mxu0 %v4580_v29 }
 0x1c8   : > { %4312 = vmatpush3.bf16.msra.mxu0 %v4580_v29 }
 0x1c9   : > { %4313 = vmatprep.subr.bf16.mxu0 %v4581_v30 }
 0x1cc   : > { %4314 = vmatpush3.bf16.msra.mxu0 %v4581_v30 }
 0x1cd   : > { %4315 = vmatprep.subr.bf16.mxu0 %v4582_v31 }
 0x1d0   : > { %4316 = vmatpush3.bf16.msra.mxu0 %v4582_v31 }
 0x1d1   : > { %4345 = vmatprep.subr.bf16.mxu0 %v5401_v1 }
 0x1d3   : > { %4318 = vmatmul.mubr.bf16.vlgmr.msra.gmra.mrb[4].mxu0 %v1746_v32 }
 0x1d4   : > { %4321 = vmatprep.mubr.bf16.mxu0 %v1748_v33 }
 0x1db   : > { %4322 = vmatmul.mubr.bf16.gmra.mrb[8].mxu0 %v1750_v34 }
 0x1dc   : > { %4361 = vmatprep.mubr.msk.bf16.mxu0 %vm5402_vm0, %v5401_v1 }
 0x286   : > { %v6029_v41 = vpop.f32.mrb[0].mxu0 }
 0x287   : > { %v1184_v42 = vcombine.high %v6029_v41, %v6029_v41  ;;  %v1191_v43 = vrot.slane %v6029_v41, %v1190_v40  ;;  %v4275_v44 = vpop.f32.mrb[1].mxu0 }
 0x288   : > { %v1013_v46 = vpop.f32.mrb[2].mxu0  ;;  %v4295_v47 = vpop.f32.mrb[0].mxu1 }
 0x289   : > { %v1198_v48 = vrot.slane %v1184_v42, %v1190_v40  ;;  %v1199_v49 = vcombine.high %v1191_v43, %v1191_v43  ;;  %v1207_v50 = vrot.slane %v1191_v43, %v1190_v40  ;;  %v4276_v51 = vpop.f32.mrb[3].mxu0  ;;  %v1152_v52 = vpop.f32.mrb[1].mxu1 }
 0x28a   : > { %v4296_v53 = vpop.f32.mrb[2].mxu1 }
 0x28b   : > { %v1229_v54 = vcombine.high %v1207_v50, %v1207_v50  ;;  %v1236_v55 = vrot.slane %v1207_v50, %v6035_v45  ;;  %v1221_v56 = vrot.slane %v1199_v49, %v1190_v40  ;;  %v1155_v57 = vpop.f32.mrb[3].mxu1  ;;  %v1214_v58 = vrot.slane %v1198_v48, %v1190_v40 }
 0x28c   : > { %v1200_v59 = vcombine.high %v1198_v48, %v1198_v48 }
 0x28d   : > { %v1244_v60 = vrot.slane %v1229_v54, %v6035_v45  ;;  %v1273_v61 = vadd.f32 %v1236_v55, %v1152_v52  ;;  %v1231_v62 = vcombine.high %v1221_v56, %v1221_v56  ;;  %v1240_v63 = vrot.slane %v1221_v56, %v6035_v45  ;;  %v4064_v54 = vld [vmem:[%s6748_s6] ss:$0 sm:$0xff] }
 0x28e   : > { %v1230_v0 = vcombine.high %v1214_v58, %v1214_v58  ;;  %v1228_v2 = vrot.slane %v1200_v59, %v1190_v40  ;;  %v1252_v8 = vrot.slane %v1214_v58, %v6035_v45 }
 0x28f   : > { %v1275_v3 = vadd.f32 %v4295_v47, %v1244_v60  ;;  %4755 = vtanh.f32 %v1273_v61  ;;  %v1248_v4 = vrot.slane %v1231_v62, %v6035_v45  ;;  %v1274_v5 = vadd.f32 %v1240_v63, %v1155_v57 }
 0x290   : > { %v4299_v6 = vpop.f32.mrb[4].mxu1  ;;  %v1260_v7 = vrot.slane %v1230_v0, %v6035_v45  ;;  %v1232_v9 = vcombine.high %v1228_v2, %v1228_v2  ;;  %v1256_v12 = vrot.slane %v1228_v2, %v6035_v45 }
 0x291   : > { %v1276_v10 = vadd.f32 %v4296_v53, %v1248_v4  ;;  %v1168_v11 = vpop.f32.mrb[5].mxu1  ;;  %4757 = vtanh.f32 %v1274_v5 }
 0x292   : > { %v1279_v13 = vadd.f32 %v4299_v6, %v1260_v7  ;;  %v1277_v14 = vadd.f32 %v1252_v8, %v1168_v11  ;;  %v4300_v15 = vpop.f32.mrb[6].mxu1  ;;  %v1264_v16 = vrot.slane %v1232_v9, %v6035_v45  ;;  %4759 = vtanh.f32 %v1275_v3 }
 0x293   : > { %v1171_v17 = vpop.f32.mrb[7].mxu1  ;;  %4761 = vtanh.f32 %v1276_v10  ;;  %v6052_v6 = vand.u32 127, %v1016_v35  ;;  %v5404_v10 = vmov 0   ;;  %v5405_v11 = vmov -1e+30  }
 0x294   : > { %v1280_v18 = vadd.f32 %v4300_v15, %v1264_v16  ;;  %v1278_v19 = vadd.f32 %v1256_v12, %v1171_v17  ;;  %4763 = vtanh.f32 %v1277_v14  ;;  %4552 = vset.pattern.permute.xlu0 %v5404_v10  ;;  %4551 = vset.pattern.permute.xlu1 %v5404_v10 }
 0x295   : > { %4765 = vtanh.f32 %v1279_v13  ;;  %vm1018_vm1 = vcmp.lt.s32.totalorder %v6052_v6, 8 }
 0x296   : > { %4767 = vtanh.f32 %v1278_v19 }
 0x297   : > { %4769 = vtanh.f32 %v1280_v18 }
 0x299   : > { %v4756_v21 = vpop.eup %4755 }
 0x29a   : > { %v1295_v22 = vmul.f32 %v4756_v21, %v4050_v20 }
 0x29b   : > { %v4758_v24 = vpop.eup %4757 }
 0x29c   : > { %1303 = vadd.xlane.f32.xlu0 %v1295_v22  ;;  %v1296_v25 = vmul.f32 %v4758_v24, %v4050_v20  ;;  %v4760_v26 = vpop.eup %4759  ;;  %v1319_v24 = vstv %s1037_s4  ;;  %s6753_s4 = sld [smem:[#allocation61_spill]] }
 0x29d   : > { %v1297_v27 = vmul.f32 %v4760_v26, %v4050_v20  ;;  %v4762_v28 = vpop.eup %4761 }
 0x29e   : > { %v1298_v30 = vmul.f32 %v4762_v28, %v4050_v20  ;;  %v4764_v31 = vpop.eup %4763 }
 0x29f   : > { %v1299_v42 = vmul.f32 %v4764_v31, %v4050_v20  ;;  %v4766_v43 = vpop.eup %4765 }
 0x2a0   : > { %1305 = vadd.xlane.f32.xlu0 %v1296_v25  ;;  %v1301_v46 = vmul.f32 %v4766_v43, %v4050_v20  ;;  %v4768_v47 = vpop.eup %4767  ;;  %v1935_v43 = vstv %s4051_s7 }
 0x2a1   : > { %v1300_v57 = vmul.f32 %v4768_v47, %v4050_v20 }
 0x2a2   : > { %s6490_s7 = scalar_lea.hbm %s6753_s4, %s6484_s30 }
 0x2a4   : > { %1307 = vadd.xlane.f32.xlu0 %v1297_v27 }
 0x2a6   : > { %v4319_v29 = vpop.f32.mrb[4].mxu0 }
 0x2a7   : > { %v1891_v32 = vadd.f32 %v4319_v29, %v1244_v60  ;;  %v1858_v33 = vpop.f32.mrb[5].mxu0 }
 0x2a8   : > { %v1889_v34 = vadd.f32 %v1858_v33, %v1236_v55  ;;  %1309 = vadd.xlane.f32.xlu0 %v1298_v30  ;;  %v4320_v36 = vpop.f32.mrb[6].mxu0  ;;  %v4770_v55 = vpop.eup %4769 }
 0x2a9   : > { %4771 = vtanh.f32 %v1891_v32  ;;  %v1892_v37 = vadd.f32 %v4320_v36, %v1248_v4  ;;  %v1861_v38 = vpop.f32.mrb[7].mxu0  ;;  %v1302_v61 = vmul.f32 %v4770_v55, %v4050_v20 }
 0x2aa   : > { %v1890_v40 = vadd.f32 %v1861_v38, %v1240_v63  ;;  %4773 = vtanh.f32 %v1889_v34 }
 0x2ab   : > { %4775 = vtanh.f32 %v1892_v37 }
 0x2ac   : > { %1311 = vadd.xlane.f32.xlu0 %v1299_v42  ;;  %4777 = vtanh.f32 %v1890_v40 }
 0x2ae   : > { %v4323_v44 = vpop.f32.mrb[8].mxu0 }
 0x2af   : > { %v1895_v48 = vadd.f32 %v4323_v44, %v1260_v7  ;;  %v1874_v49 = vpop.f32.mrb[9].mxu0 }
 0x2b0   : > { %v1893_v50 = vadd.f32 %v1874_v49, %v1252_v8  ;;  %1315 = vadd.xlane.f32.xlu0 %v1301_v46  ;;  %v4324_v51 = vpop.f32.mrb[10].mxu0 }
 0x2b1   : > { %v1896_v52 = vadd.f32 %v4324_v51, %v1264_v16  ;;  %v1877_v53 = vpop.f32.mrb[11].mxu0  ;;  %4779 = vtanh.f32 %v1895_v48 }
 0x2b2   : > { %v1894_v56 = vadd.f32 %v1877_v53, %v1256_v12  ;;  %4781 = vtanh.f32 %v1893_v50  ;;  %v1019_v12 = vsel %vm1018_vm1, 0.0, %v5405_v11 }
 0x2b3   : > { %v4772_v58 = vpop.eup %4771 }
 0x2b4   : > { %1313 = vadd.xlane.f32.xlu0 %v1300_v57  ;;  %v1913_v59 = vmul.f32 %v4772_v58, %v4064_v54  ;;  %v4774_v60 = vpop.eup %4773  ;;  %4783 = vtanh.f32 %v1894_v56 }
 0x2b5   : > { %v1911_v62 = vmul.f32 %v4774_v60, %v4064_v54  ;;  %v4776_v63 = vpop.eup %4775  ;;  %4785 = vtanh.f32 %v1896_v52 }
 0x2b6   : > { %1923 = vadd.xlane.f32.xlu1 %v1913_v59  ;;  %v1914_v0 = vmul.f32 %v4776_v63, %v4064_v54  ;;  %v4778_v2 = vpop.eup %4777 }
 0x2b7   : > { %v1912_v3 = vmul.f32 %v4778_v2, %v4064_v54 }
 0x2b8   : > { %1317 = vadd.xlane.f32.xlu0 %v1302_v61 }
 0x2ba   : > { %1919 = vadd.xlane.f32.xlu1 %v1911_v62 }
 0x2bb   : > { %v4780_v4 = vpop.eup %4779 }
 0x2bc   : > { %v1917_v5 = vmul.f32 %v4780_v4, %v4064_v54  ;;  %v4782_v7 = vpop.eup %4781 }
 0x2bd   : > { %v1915_v8 = vmul.f32 %v4782_v7, %v4064_v54 }
 0x2be   : > { %1925 = vadd.xlane.f32.xlu1 %v1914_v0  ;;  %v4784_v9 = vpop.eup %4783 }
 0x2bf   : > { %v1916_v13 = vmul.f32 %v4784_v9, %v4064_v54  ;;  %v4786_v14 = vpop.eup %4785 }
 0x2c0   : > { %v1918_v35 = vmul.f32 %v4786_v14, %v4064_v54  ;;  %v6107_v14 = vsub.s32 %v6052_v6, %v6026_v39 }
 0x2c2   : > { %1921 = vadd.xlane.f32.xlu1 %v1912_v3 }
 0x2c6   : > { %1931 = vadd.xlane.f32.xlu1 %v1917_v5 }
 0x2ca   : > { %1927 = vadd.xlane.f32.xlu1 %v1915_v8 }
 0x2ce   : > { %1929 = vadd.xlane.f32.xlu1 %v1916_v13  ;;  %1330 = vbcast.lane.b32.xlu0 %v1019_v12, 256 }
 0x2d2   : > { %1933 = vadd.xlane.f32.xlu1 %v1918_v35 }
 0x329   : > { %v1304_v15 = vpop.xlane.xlu0 %1303 }
 0x32a   : > { %v1320_v27 = vadd.f32 %v1319_v24, %v1304_v15 }
 0x32d   : > { %v1306_v16 = vpop.xlane.xlu0 %1305 }
 0x32e   : > { %v1321_v33 = vadd.f32 %v1319_v24, %v1306_v16 }
 0x331   : > { %v1308_v17 = vpop.xlane.xlu0 %1307 }
 0x332   : > { %v1322_v40 = vadd.f32 %v1319_v24, %v1308_v17 }
 0x335   : > { %v1310_v18 = vpop.xlane.xlu0 %1309 }
 0x336   : > { %v1323_v28 = vadd.f32 %v1319_v24, %v1310_v18 }
 0x339   : > { %v1312_v19 = vpop.xlane.xlu0 %1311 }
 0x33a   : > { %v1324_v34 = vadd.f32 %v1319_v24, %v1312_v19 }
 0x33d   : > { %v1316_v20 = vpop.xlane.xlu0 %1315 }
 0x33e   : > { %v1326_v53 = vadd.f32 %v1319_v24, %v1316_v20 }
 0x341   : > { %v1314_v21 = vpop.xlane.xlu0 %1313 }
 0x342   : > { %v1325_v42 = vadd.f32 %v1319_v24, %v1314_v21 }
 0x343   : > { %v1924_v22 = vpop.xlane.xlu1 %1923 }
 0x344   : > { %v1938_v48 = vadd.f32 %v1935_v43, %v1924_v22 }
 0x345   : > { %v1318_v25 = vpop.xlane.xlu0 %1317 }
 0x346   : > { %v1327_v58 = vadd.f32 %v1319_v24, %v1318_v25 }
 0x347   : > { %v1920_v26 = vpop.xlane.xlu1 %1919 }
 0x348   : > { %v1936_v50 = vadd.f32 %v1935_v43, %v1920_v26 }
 0x349   : > { %v1331_v29 = vpop.permute.xlu0 %1330 }
 0x34a   : > { %v6057_v30 = vadd.f32 %v1331_v29, %v1323_v28  ;;  %v6059_v31 = vadd.f32 %v1331_v29, %v1320_v27  ;;  %v6063_v36 = vadd.f32 %v1331_v29, %v1324_v34  ;;  %v6065_v37 = vadd.f32 %v1331_v29, %v1321_v33 }
 0x34b   : > { %v1926_v32 = vpop.xlane.xlu1 %1925  ;;  %v6069_v46 = vadd.f32 %v1331_v29, %v1325_v42  ;;  %v6071_v47 = vadd.f32 %v1331_v29, %v1322_v40  ;;  %v6077_v52 = vadd.f32 %v1938_v48, %v1331_v29  ;;  %v6081_v55 = vadd.f32 %v1331_v29, %v1326_v53 }
 0x34c   : > { %1359 = vperm.xlu0 %4552, %v6057_v30   ;;  %1350 = vperm.xlu1 %4551, %v6059_v31   ;;  %v1939_v54 = vadd.f32 %v1935_v43, %v1926_v32  ;;  %v6083_v56 = vadd.f32 %v1936_v50, %v1331_v29  ;;  %v6089_v61 = vadd.f32 %v1331_v29, %v1327_v58 }
 0x34e   : > { %v6087_v59 = vadd.f32 %v1939_v54, %v1331_v29 }
 0x34f   : > { %v1922_v38 = vpop.xlane.xlu1 %1921 }
 0x350   : > { %1362 = vperm.xlu0 %4552, %v6063_v36   ;;  %1353 = vperm.xlu1 %4551, %v6065_v37   ;;  %v1937_v44 = vadd.f32 %v1935_v43, %v1922_v38 }
 0x352   : > { %v6075_v51 = vadd.f32 %v1937_v44, %v1331_v29 }
 0x353   : > { %v1932_v49 = vpop.xlane.xlu1 %1931 }
 0x354   : > { %1365 = vperm.xlu0 %4552, %v6069_v46   ;;  %1356 = vperm.xlu1 %4551, %v6071_v47   ;;  %v1942_v60 = vadd.f32 %v1935_v43, %v1932_v49 }
 0x356   : > { %v6093_v63 = vadd.f32 %v1942_v60, %v1331_v29 }
 0x357   : > { %v1928_v57 = vpop.xlane.xlu1 %1927 }
 0x358   : > { %1964 = vperm.xlu0 %4552, %v6075_v51   ;;  %1967 = vperm.xlu1 %4551, %v6077_v52   ;;  %v1940_v0 = vadd.f32 %v1935_v43, %v1928_v57 }
 0x35a   : > { %v6096_v2 = vadd.f32 %v1940_v0, %v1331_v29 }
 0x35b   : > { %v1930_v62 = vpop.xlane.xlu1 %1929 }
 0x35c   : > { %1368 = vperm.xlu0 %4552, %v6081_v55   ;;  %1961 = vperm.xlu1 %4551, %v6083_v56   ;;  %v1941_v3 = vadd.f32 %v1935_v43, %v1930_v62 }
 0x35e   : > { %v6099_v5 = vadd.f32 %v1941_v3, %v1331_v29 }
 0x35f   : > { %v1934_v4 = vpop.xlane.xlu1 %1933 }
 0x360   : > { %1371 = vperm.xlu0 %4552, %v6089_v61   ;;  %1970 = vperm.xlu1 %4551, %v6087_v59   ;;  %v1943_v7 = vadd.f32 %v1935_v43, %v1934_v4 }
 0x362   : > { %v6102_v8 = vadd.f32 %v1943_v7, %v1331_v29 }
 0x364   : > { %1979 = vperm.xlu1 %4551, %v6093_v63  }
 0x368   : > { %1973 = vperm.xlu1 %4551, %v6096_v2  }
 0x36c   : > { %1976 = vperm.xlu1 %4551, %v6099_v5  }
 0x370   : > { %1982 = vperm.xlu1 %4551, %v6102_v8  }
 0x3cb   : > { %v1360_v9 = vpop.permute.xlu0 %1359  ;;  %v1351_v11 = vpop.permute.xlu1 %1350 }
 0x3cc   : > { %v1376_v17 = vrot.slane %v1351_v11, %v6107_v14  ;;  %v1388_v24 = vrot.slane %v1360_v9, %v6107_v14 }
 0x3cf   : > { %v1363_v12 = vpop.permute.xlu0 %1362  ;;  %v1354_v13 = vpop.permute.xlu1 %1353 }
 0x3d0   : > { %v1380_v35 = vrot.slane %v1354_v13, %v6107_v14  ;;  %v1392_v26 = vrot.slane %v1363_v12, %v6107_v14 }
 0x3d2   : > { %v1406_v19 = vsel %vm1405_vm2, %v1380_v35, %v1376_v17 }
 0x3d3   : > { %v1366_v15 = vpop.permute.xlu0 %1365  ;;  %v1357_v16 = vpop.permute.xlu1 %1356 }
 0x3d4   : > { %v1384_v18 = vrot.slane %v1357_v16, %v6107_v14  ;;  %v1396_v33 = vrot.slane %v1366_v15, %v6107_v14 }
 0x3d6   : > { %v1408_v20 = vsel %vm1407_vm3, %v1384_v18, %v1406_v19  ;;  %v6142_v18 = vsub.s32 1, %v6026_v39  ;;  %v6145_v19 = vsub.s32 2, %v6026_v39 }
 0x3d7   : > { %v1965_v21 = vpop.permute.xlu0 %1964  ;;  %v1968_v22 = vpop.permute.xlu1 %1967  ;;  %v1410_v25 = vsel %vm1409_vm4, %v1388_v24, %v1408_v20  ;;  %v6148_v20 = vsub.s32 3, %v6026_v39 }
 0x3d8   : > { %v1412_v32 = vsel %vm1411_vm5, %v1392_v26, %v1410_v25  ;;  %v1991_v53 = vrot.slane %v1965_v21, %v6107_v14  ;;  %v1995_v60 = vrot.slane %v1968_v22, %v6107_v14  ;;  %v6154_v26 = vsub.s32 4, %v6026_v39 }
 0x3d9   : > { %v1414_v42 = vsel %vm1413_vm6, %v1396_v33, %v1412_v32 }
 0x3db   : > { %v1369_v27 = vpop.permute.xlu0 %1368  ;;  %v1962_v28 = vpop.permute.xlu1 %1961 }
 0x3dc   : > { %v1400_v29 = vrot.slane %v1369_v27, %v6107_v14  ;;  %v1987_v50 = vrot.slane %v1962_v28, %v6107_v14 }
 0x3de   : > { %v1416_v43 = vsel %vm1415_vm7, %v1400_v29, %v1414_v42  ;;  %v2016_v57 = vsel %vm1405_vm2, %v1991_v53, %v1987_v50 }
 0x3df   : > { %v1372_v34 = vpop.permute.xlu0 %1371  ;;  %v1971_v38 = vpop.permute.xlu1 %1970  ;;  %v2017_v0 = vsel %vm1407_vm3, %v1995_v60, %v2016_v57 }
 0x3e0   : > { %v1404_v40 = vrot.slane %v1372_v34, %v6107_v14  ;;  %v1999_v58 = vrot.slane %v1971_v38, %v6107_v14  ;;  %v6161_v38 = vsub.s32 5, %v6026_v39 }
 0x3e2   : > { %v1418_v44 = vsel %vm1417_vm8, %v1404_v40, %v1416_v43  ;;  %v2018_v4 = vsel %vm1409_vm4, %v1999_v58, %v2017_v0 }
 0x3e3   : > { %v1980_v48 = vpop.permute.xlu1 %1979  ;;  %v1421_v49 = vsel %vm1420_vm9, %v1418_v44, -inf }
 0x3e4   : > { %1422 = vmax.xlane.f32.xlu0 %v1421_v49  ;;  %v2011_v12 = vrot.slane %v1980_v48, %v6107_v14 }
 0x3e7   : > { %v1974_v54 = vpop.permute.xlu1 %1973 }
 0x3e8   : > { %v2003_v62 = vrot.slane %v1974_v54, %v6107_v14 }
 0x3ea   : > { %v2019_v9 = vsel %vm1411_vm5, %v2003_v62, %v2018_v4 }
 0x3eb   : > { %v1977_v3 = vpop.permute.xlu1 %1976 }
 0x3ec   : > { %v2007_v7 = vrot.slane %v1977_v3, %v6107_v14 }
 0x3ee   : > { %v2020_v11 = vsel %vm1413_vm6, %v2007_v7, %v2019_v9 }
 0x3ef   : > { %v1983_v13 = vpop.permute.xlu1 %1982  ;;  %v2021_v15 = vsel %vm1415_vm7, %v2011_v12, %v2020_v11 }
 0x3f0   : > { %v2015_v35 = vrot.slane %v1983_v13, %v6107_v14 }
 0x3f2   : > { %v2022_v16 = vsel %vm1417_vm8, %v2015_v35, %v2021_v15 }
 0x3f3   : > { %v2024_v17 = vsel %vm1420_vm9, %v2022_v16, -inf }
 0x3f4   : > { %2025 = vmax.xlane.f32.xlu1 %v2024_v17 }
 0x471   : > { %v1423_v21 = vpop.xlane.xlu0 %1422 }
 0x472   : > { %v1428_v22 = vrot.slane %v1423_v21, %v6035_v45  ;;  %v1432_v24 = vrot.slane %v1423_v21, %v6142_v18  ;;  %v1436_v25 = vrot.slane %v1423_v21, %v6145_v19  ;;  %v1440_v27 = vrot.slane %v1423_v21, %v6148_v20 }
 0x473   : > { %v1444_v40 = vrot.slane %v1423_v21, %v6154_v26  ;;  %v1448_v44 = vrot.slane %v1423_v21, %v6161_v38 }
 0x474   : > { %v1465_v28 = vsub.f32 %v6059_v31, %v1428_v22  ;;  %v1466_v29 = vsub.f32 %v6065_v37, %v1432_v24  ;;  %v1467_v32 = vsub.f32 %v6071_v47, %v1436_v25  ;;  %v1468_v42 = vsub.f32 %v6057_v30, %v1440_v27 }
 0x475   : > { %v1469_v31 = vsub.f32 %v6063_v36, %v1444_v40  ;;  %v6168_v47 = vsub.s32 6, %v6026_v39  ;;  %v1470_v48 = vsub.f32 %v6069_v46, %v1448_v44  ;;  %v6179_v36 = vsub.s32 7, %v6026_v39 }
 0x476   : > { %v1473_v33 = vmul.f32 1.442695, %v1465_v28  ;;  %v1475_v34 = vmul.f32 1.442695, %v1466_v29  ;;  %v1477_v43 = vmul.f32 1.442695, %v1467_v32 }
 0x477   : > { %v1479_v37 = vmul.f32 1.442695, %v1468_v42  ;;  %v1481_v49 = vmul.f32 1.442695, %v1469_v31  ;;  %v1452_v60 = vrot.slane %v1423_v21, %v6168_v47  ;;  %v1483_v46 = vmul.f32 1.442695, %v1470_v48 }
 0x478   : > { %4787 = vpow2.f32 %v1473_v33  ;;  %v1456_v11 = vrot.slane %v1423_v21, %v6179_v36 }
 0x479   : > { %4789 = vpow2.f32 %v1475_v34  ;;  %v1471_v12 = vsub.f32 %v6081_v55, %v1452_v60 }
 0x47a   : > { %4791 = vpow2.f32 %v1477_v43 }
 0x47b   : > { %4793 = vpow2.f32 %v1479_v37  ;;  %v1485_v16 = vmul.f32 1.442695, %v1471_v12 }
 0x47c   : > { %4795 = vpow2.f32 %v1481_v49 }
 0x47d   : > { %4797 = vpow2.f32 %v1483_v46 }
 0x481   : > { %v2026_v50 = vpop.xlane.xlu1 %2025 }
 0x482   : > { %v6171_v53 = vpop.eup %4787  ;;  %v2031_v30 = vrot.slane %v2026_v50, %v6035_v45  ;;  %v2035_v54 = vrot.slane %v2026_v50, %v6142_v18  ;;  %v2039_v57 = vrot.slane %v2026_v50, %v6145_v19  ;;  %v2043_v3 = vrot.slane %v2026_v50, %v6148_v20 }
 0x483   : > { %v6176_v58 = vpop.eup %4789  ;;  %1498 = vperm.xlu0 %4552, %v6171_v53   ;;  %v2051_v17 = vrot.slane %v2026_v50, %v6161_v38  ;;  %v2055_v24 = vrot.slane %v2026_v50, %v6168_v47 }
 0x484   : > { %v2068_v62 = vsub.f32 %v6083_v56, %v2031_v30  ;;  %v2069_v0 = vsub.f32 %v6075_v51, %v2035_v54  ;;  %1501 = vperm.xlu1 %4551, %v6176_v58   ;;  %v2070_v4 = vsub.f32 %v6077_v52, %v2039_v57  ;;  %v6188_v7 = vpop.eup %4791  ;;  %v2047_v56 = vrot.slane %v2026_v50, %v6154_v26 }
 0x485   : > { %v2071_v51 = vsub.f32 %v6087_v59, %v2043_v3  ;;  %v6195_v15 = vpop.eup %4793  ;;  %v1472_v52 = vsub.f32 %v6089_v61, %v1456_v11  ;;  %v2073_v25 = vsub.f32 %v6099_v5, %v2051_v17  ;;  %v2074_v29 = vsub.f32 %v6093_v63, %v2055_v24 }
 0x486   : > { %v2078_v9 = vmul.f32 1.442695, %v2069_v0  ;;  %v2076_v13 = vmul.f32 1.442695, %v2068_v62  ;;  %v2080_v35 = vmul.f32 1.442695, %v2070_v4  ;;  %v2072_v55 = vsub.f32 %v6096_v2, %v2047_v56  ;;  %v6201_v22 = vpop.eup %4795 }
 0x487   : > { %1504 = vperm.xlu0 %4552, %v6188_v7   ;;  %v2082_v21 = vmul.f32 1.442695, %v2071_v51  ;;  %v1487_v59 = vmul.f32 1.442695, %v1472_v52  ;;  %v6206_v27 = vpop.eup %4797  ;;  %v2059_v2 = vrot.slane %v2026_v50, %v6179_v36  ;;  %v2086_v32 = vmul.f32 1.442695, %v2073_v25 }
 0x488   : > { %4799 = vpow2.f32 %v2078_v9  ;;  %v2084_v61 = vmul.f32 1.442695, %v2072_v55  ;;  %v2088_v40 = vmul.f32 1.442695, %v2074_v29 }
 0x489   : > { %4801 = vpow2.f32 %v2076_v13  ;;  %v2075_v34 = vsub.f32 %v6102_v8, %v2059_v2 }
 0x48a   : > { %4803 = vpow2.f32 %v2080_v35 }
 0x48b   : > { %1507 = vperm.xlu0 %4552, %v6195_v15   ;;  %4805 = vpow2.f32 %v1485_v16  ;;  %v2090_v63 = vmul.f32 1.442695, %v2075_v34 }
 0x48c   : > { %4807 = vpow2.f32 %v2082_v21 }
 0x48d   : > { %4809 = vpow2.f32 %v1487_v59 }
 0x48e   : > { %4811 = vpow2.f32 %v2084_v61 }
 0x48f   : > { %1510 = vperm.xlu0 %4552, %v6201_v22   ;;  %4813 = vpow2.f32 %v2086_v32 }
 0x490   : > { %4815 = vpow2.f32 %v2088_v40 }
 0x491   : > { %4817 = vpow2.f32 %v2090_v63 }
 0x492   : > { %v6208_v28 = vpop.eup %4799 }
 0x493   : > { %1513 = vperm.xlu0 %4552, %v6206_v27   ;;  %2104 = vperm.xlu1 %4551, %v6208_v28   ;;  %v6214_v33 = vpop.eup %4801 }
 0x494   : > { %v6216_v5 = vpop.eup %4803 }
 0x495   : > { %v6221_v42 = vpop.eup %4805 }
 0x496   : > { %v6223_v43 = vpop.eup %4807 }
 0x497   : > { %2101 = vperm.xlu0 %4552, %v6214_v33   ;;  %2107 = vperm.xlu1 %4551, %v6216_v5   ;;  %v6227_v44 = vpop.eup %4809 }
 0x498   : > { %v6229_v31 = vpop.eup %4811 }
 0x499   : > { %v6233_v8 = vpop.eup %4813 }
 0x49a   : > { %v6236_v37 = vpop.eup %4815 }
 0x49b   : > { %1516 = vperm.xlu0 %4552, %v6221_v42   ;;  %2110 = vperm.xlu1 %4551, %v6223_v43   ;;  %v6239_v48 = vpop.eup %4817 }
 0x49f   : > { %1519 = vperm.xlu0 %4552, %v6227_v44   ;;  %2113 = vperm.xlu1 %4551, %v6229_v31  }
 0x4a3   : > { %2116 = vperm.xlu1 %4551, %v6233_v8  }
 0x4a7   : > { %2119 = vperm.xlu1 %4551, %v6236_v37  }
 0x4ab   : > { %2122 = vperm.xlu1 %4551, %v6239_v48  }
 0x502   : > { %v1499_v49 = vpop.permute.xlu0 %1498 }
 0x503   : > { %v1502_v57 = vpop.permute.xlu1 %1501  ;;  %v1524_v0 = vrot.slane %v1499_v49, %v6107_v14 }
 0x504   : > { %v1528_v3 = vrot.slane %v1502_v57, %v6107_v14 }
 0x506   : > { %v1505_v50 = vpop.permute.xlu0 %1504  ;;  %v1553_v56 = vsel %vm1405_vm2, %v1528_v3, %v1524_v0 }
 0x507   : > { %v1532_v9 = vrot.slane %v1505_v50, %v6107_v14 }
 0x509   : > { %v1554_v52 = vsel %vm1407_vm3, %v1532_v9, %v1553_v56 }
 0x50a   : > { %v1508_v30 = vpop.permute.xlu0 %1507 }
 0x50b   : > { %v1536_v11 = vrot.slane %v1508_v30, %v6107_v14 }
 0x50d   : > { %v1555_v17 = vsel %vm1409_vm4, %v1536_v11, %v1554_v52 }
 0x50e   : > { %v1511_v54 = vpop.permute.xlu0 %1510 }
 0x50f   : > { %v1540_v12 = vrot.slane %v1511_v54, %v6107_v14 }
 0x511   : > { %v1556_v55 = vsel %vm1411_vm5, %v1540_v12, %v1555_v17 }
 0x512   : > { %v1514_v60 = vpop.permute.xlu0 %1513  ;;  %v2105_v46 = vpop.permute.xlu1 %2104 }
 0x513   : > { %v1544_v51 = vrot.slane %v1514_v60, %v6107_v14  ;;  %v2131_v40 = vrot.slane %v2105_v46, %v6107_v14 }
 0x515   : > { %v1557_v59 = vsel %vm1413_vm6, %v1544_v51, %v1556_v55 }
 0x516   : > { %v2102_v62 = vpop.permute.xlu0 %2101  ;;  %v2108_v4 = vpop.permute.xlu1 %2107 }
 0x517   : > { %v2127_v29 = vrot.slane %v2102_v62, %v6107_v14  ;;  %v2135_v63 = vrot.slane %v2108_v4, %v6107_v14 }
 0x519   : > { %v2156_v49 = vsel %vm1405_vm2, %v2131_v40, %v2127_v29 }
 0x51a   : > { %v1517_v13 = vpop.permute.xlu0 %1516  ;;  %v2111_v35 = vpop.permute.xlu1 %2110  ;;  %v2157_v60 = vsel %vm1407_vm3, %v2135_v63, %v2156_v49 }
 0x51b   : > { %v1548_v16 = vrot.slane %v1517_v13, %v6107_v14  ;;  %v2139_v50 = vrot.slane %v2111_v35, %v6107_v14 }
 0x51d   : > { %v1558_v61 = vsel %vm1415_vm7, %v1548_v16, %v1557_v59  ;;  %v2158_v0 = vsel %vm1409_vm4, %v2139_v50, %v2157_v60  ;;  %v3525_v60 = vadd.s32 4294967294, %v6052_v6 }
 0x51e   : > { %v1520_v21 = vpop.permute.xlu0 %1519  ;;  %v2114_v25 = vpop.permute.xlu1 %2113 }
 0x51f   : > { %v1552_v24 = vrot.slane %v1520_v21, %v6107_v14  ;;  %v2143_v30 = vrot.slane %v2114_v25, %v6107_v14 }
 0x521   : > { %v1559_v2 = vsel %vm1417_vm8, %v1552_v24, %v1558_v61  ;;  %v2159_v3 = vsel %vm1411_vm5, %v2143_v30, %v2158_v0 }
 0x522   : > { %v1561_v32 = vsel %vm1420_vm9, %v1559_v2, 0.0  ;;  %v2117_v34 = vpop.permute.xlu1 %2116 }
 0x523   : > { %1562 = vadd.xlane.f32.xlu0 %v1561_v32  ;;  %v2147_v57 = vrot.slane %v2117_v34, %v6107_v14 }
 0x525   : > { %v2160_v4 = vsel %vm1413_vm6, %v2147_v57, %v2159_v3  ;;  %v4594_v57 = vld [vmem:[#allocation15 + $0x38] sm:$0xff]  }
 0x526   : > { %v2120_v54 = vpop.permute.xlu1 %2119 }
 0x527   : > { %v2151_v62 = vrot.slane %v2120_v54, %v6107_v14  ;;  %v4587_v54 = vld [vmem:[#allocation15] sm:$0xff]  }
 0x528   : > { %4326 = vmatpush3.bf16.msra.mxu1 %v4587_v54  ;;  %4346 = vmatpush3.bf16.msra.mxu0 %v4587_v54 }
 0x529   : > { %v2161_v11 = vsel %vm1415_vm7, %v2151_v62, %v2160_v4  ;;  %4327 = vmatprep.subr.bf16.mxu1 %v5401_v1  ;;  %4347 = vmatprep.subr.bf16.mxu0 %v5401_v1  ;;  %v4853_v62 = vld [vmem:[%s5963_s14] sm:$0xff]  }
 0x52a   : > { %v2123_v46 = vpop.permute.xlu1 %2122  ;;  %v1614_v0 = vunpack.c.l.bf16 %v4853_v62  ;;  %v1615_v3 = vunpack.c.h.bf16 %v4853_v62 }
 0x52b   : > { %v2155_v9 = vrot.slane %v2123_v46, %v6107_v14  ;;  %v6323_v46 = vsub.s32 %v3525_v60, %v6026_v39 }
 0x52d   : > { %v2162_v12 = vsel %vm1417_vm8, %v2155_v9, %v2161_v11  ;;  %v4854_v11 = vld [vmem:[%s5963_s14 + $0x8] sm:$0xff]  }
 0x52e   : > { %v2164_v13 = vsel %vm1420_vm9, %v2162_v12, 0.0  ;;  %v1616_v12 = vunpack.c.l.bf16 %v4854_v11 }
 0x52f   : > { %2165 = vadd.xlane.f32.xlu1 %v2164_v13 }
 0x5b0   : > { %v1563_v56 = vpop.xlane.xlu0 %1562 }
 0x5b1   : > { %4819 = vrcp.f32 %v1563_v56 }
 0x5bb   : > { %v4820_v51 = vpop.eup %4819 }
 0x5bc   : > { %v1569_v35 = vrot.slane %v4820_v51, %v6035_v45  ;;  %v1573_v52 = vrot.slane %v4820_v51, %v6142_v18  ;;  %v2166_v16 = vpop.xlane.xlu1 %2165  ;;  %v1577_v55 = vrot.slane %v4820_v51, %v6145_v19  ;;  %v1581_v59 = vrot.slane %v4820_v51, %v6148_v20 }
 0x5bd   : > { %4821 = vrcp.f32 %v2166_v16  ;;  %v1585_v25 = vrot.slane %v4820_v51, %v6154_v26  ;;  %v1593_v63 = vrot.slane %v4820_v51, %v6168_v47  ;;  %v1597_v50 = vrot.slane %v4820_v51, %v6179_v36 }
 0x5be   : > { %v1606_v17 = vmul.f32 %v6171_v53, %v1569_v35  ;;  %v1607_v14 = vmul.f32 %v6176_v58, %v1573_v52  ;;  %v1608_v21 = vmul.f32 %v6188_v7, %v1577_v55  ;;  %v1609_v24 = vmul.f32 %v6195_v15, %v1581_v59 }
 0x5bf   : > { %v1610_v53 = vmul.f32 %v6201_v22, %v1585_v25  ;;  %v1589_v58 = vrot.slane %v4820_v51, %v6161_v38  ;;  %v1617_v55 = vunpack.c.h.bf16 %v4854_v11 }
 0x5c0   : > { %1624 = vperm.xlu0 %4552, %v1606_v17   ;;  %1629 = vperm.xlu1 %4551, %v1607_v14  }
 0x5c1   : > { %v1611_v7 = vmul.f32 %v6206_v27, %v1589_v58  ;;  %v1612_v27 = vmul.f32 %v6221_v42, %v1593_v63  ;;  %v4588_v42 = vld [vmem:[#allocation15 + $0x8] sm:$0xff]  }
 0x5c2   : > { %4328 = vmatpush3.bf16.msra.mxu1 %v4588_v42  ;;  %4348 = vmatpush3.bf16.msra.mxu0 %v4588_v42  ;;  %v6340_v42 = vld [vmem:[%s5966_s21 + $0x8] sm:$0xff]  }
 0x5c3   : > { %4329 = vmatprep.subr.bf16.mxu1 %v5401_v1  ;;  %4349 = vmatprep.subr.bf16.mxu0 %v5401_v1 }
 0x5c4   : > { %1634 = vperm.xlu0 %4552, %v1608_v21  }
 0x5c7   : > { %v4822_v61 = vpop.eup %4821 }
 0x5c8   : > { %1639 = vperm.xlu0 %4552, %v1609_v24   ;;  %v2176_v2 = vrot.slane %v4822_v61, %v6142_v18  ;;  %v2180_v32 = vrot.slane %v4822_v61, %v6145_v19  ;;  %v2172_v15 = vrot.slane %v4822_v61, %v6035_v45  ;;  %v2184_v40 = vrot.slane %v4822_v61, %v6148_v20 }
 0x5c9   : > { %v2188_v49 = vrot.slane %v4822_v61, %v6154_v26  ;;  %v2192_v30 = vrot.slane %v4822_v61, %v6161_v38 }
 0x5ca   : > { %v2210_v29 = vmul.f32 %v6208_v28, %v2176_v2  ;;  %v2211_v34 = vmul.f32 %v6216_v5, %v2180_v32  ;;  %v2209_v22 = vmul.f32 %v6214_v33, %v2172_v15  ;;  %v2212_v28 = vmul.f32 %v6223_v43, %v2184_v40 }
 0x5cb   : > { %v2213_v5 = vmul.f32 %v6229_v31, %v2188_v49  ;;  %v1613_v33 = vmul.f32 %v6227_v44, %v1597_v50  ;;  %v2214_v26 = vmul.f32 %v6233_v8, %v2192_v30  ;;  %v2196_v43 = vrot.slane %v4822_v61, %v6168_v47  ;;  %v4589_v44 = vld [vmem:[#allocation15 + $0x10] sm:$0xff]   ;;  %v4590_v47 = vld [vmem:[#allocation15 + $0x18] sm:$0xff]  }
 0x5cc   : > { %1644 = vperm.xlu0 %4552, %v1610_v53   ;;  %2232 = vperm.xlu1 %4551, %v2210_v29   ;;  %v2200_v31 = vrot.slane %v4822_v61, %v6179_v36  ;;  %v4591_v36 = vld [vmem:[#allocation15 + $0x20] sm:$0xff]   ;;  %v3566_v61 = vadd.s32 4294967286, %v6052_v6 }
 0x5cd   : > { %v2215_v38 = vmul.f32 %v6236_v37, %v2196_v43  ;;  %4330 = vmatpush3.bf16.msra.mxu1 %v4589_v44  ;;  %4350 = vmatpush3.bf16.msra.mxu0 %v4589_v44  ;;  %v4592_v37 = vld [vmem:[#allocation15 + $0x28] sm:$0xff]  }
 0x5ce   : > { %v2216_v8 = vmul.f32 %v6239_v48, %v2200_v31  ;;  %4331 = vmatprep.subr.bf16.mxu1 %v5401_v1  ;;  %4351 = vmatprep.subr.bf16.mxu0 %v5401_v1  ;;  %v4593_v48 = vld [vmem:[#allocation15 + $0x30] sm:$0xff]  }
 0x5d0   : > { %1649 = vperm.xlu0 %4552, %v1611_v7   ;;  %2237 = vperm.xlu1 %4551, %v2211_v34  }
 0x5d1   : > { %4332 = vmatpush3.bf16.msra.mxu1 %v4590_v47  ;;  %4352 = vmatpush3.bf16.msra.mxu0 %v4590_v47 }
 0x5d2   : > { %4333 = vmatprep.subr.bf16.mxu1 %v5401_v1  ;;  %4353 = vmatprep.subr.bf16.mxu0 %v5401_v1 }
 0x5d4   : > { %2227 = vperm.xlu0 %4552, %v2209_v22   ;;  %2242 = vperm.xlu1 %4551, %v2212_v28   ;;  %v6333_v22 = vsub.s32 %v3566_v61, %v6026_v39  ;;  %v4855_v28 = vld [vmem:[%s5963_s14 + $0x10] sm:$0xff]  }
 0x5d5   : > { %4334 = vmatpush3.bf16.msra.mxu1 %v4591_v36  ;;  %4354 = vmatpush3.bf16.msra.mxu0 %v4591_v36  ;;  %v1618_v49 = vunpack.c.l.bf16 %v4855_v28  ;;  %v1619_v43 = vunpack.c.h.bf16 %v4855_v28 }
 0x5d6   : > { %4335 = vmatprep.subr.bf16.mxu1 %v5401_v1  ;;  %4355 = vmatprep.subr.bf16.mxu0 %v5401_v1 }
 0x5d8   : > { %1654 = vperm.xlu0 %4552, %v1612_v27   ;;  %2247 = vperm.xlu1 %4551, %v2213_v5   ;;  %v4856_v27 = vld [vmem:[%s5966_s21] sm:$0xff]  }
 0x5d9   : > { %4336 = vmatpush3.bf16.msra.mxu1 %v4592_v37  ;;  %4356 = vmatpush3.bf16.msra.mxu0 %v4592_v37  ;;  %v2218_v6 = vunpack.c.h.bf16 %v4856_v27 }
 0x5da   : > { %4337 = vmatprep.subr.bf16.mxu1 %v5401_v1  ;;  %4357 = vmatprep.subr.bf16.mxu0 %v5401_v1 }
 0x5dc   : > { %1659 = vperm.xlu0 %4552, %v1613_v33   ;;  %2252 = vperm.xlu1 %4551, %v2214_v26  }
 0x5dd   : > { %4338 = vmatpush3.bf16.msra.mxu1 %v4593_v48  ;;  %4358 = vmatpush3.bf16.msra.mxu0 %v4593_v48 }
 0x5de   : > { %4339 = vmatprep.subr.bf16.mxu1 %v5401_v1  ;;  %4359 = vmatprep.subr.bf16.mxu0 %v5401_v1 }
 0x5e0   : > { %2257 = vperm.xlu1 %4551, %v2215_v38   ;;  %v2219_v38 = vunpack.c.l.bf16 %v6340_v42 }
 0x5e1   : > { %4340 = vmatpush3.bf16.msra.mxu1 %v4594_v57  ;;  %4360 = vmatpush3.bf16.msra.mxu0 %v4594_v57 }
 0x5e4   : > { %2262 = vperm.xlu1 %4551, %v2216_v8  }
 0x63f   : > { %v1625_v4 = vpop.permute.xlu0 %1624  ;;  %v1630_v9 = vpop.permute.xlu1 %1629 }
 0x640   : > { %v1662_v13 = vmul.f32 %v1625_v4, %v1614_v0  ;;  %v3529_v56 = vrot.slane %v1625_v4, %v6323_v46  ;;  %v1663_v51 = vmul.f32 %v1630_v9, %v1615_v3  ;;  %v3533_v35 = vrot.slane %v1630_v9, %v6323_v46 }
 0x641   : > { %v2217_v0 = vunpack.c.l.bf16 %v4856_v27  ;;  %v2220_v3 = vunpack.c.h.bf16 %v6340_v42 }
 0x642   : > { %v1670_v52 = vrot.slane %v1662_v13, 4  ;;  %v1676_v16 = vrot.slane %v1663_v51, 4  ;;  %v3558_v17 = vsel %vm1405_vm2, %v3533_v35, %v3529_v56 }
 0x643   : > { %v1635_v14 = vpop.permute.xlu0 %1634 }
 0x644   : > { %v1671_v21 = vadd.f32 %v1670_v52, %v1662_v13  ;;  %v1677_v59 = vadd.f32 %v1676_v16, %v1663_v51  ;;  %v1664_v24 = vmul.f32 %v1635_v14, %v1616_v12  ;;  %v3537_v25 = vrot.slane %v1635_v14, %v6323_v46  ;;  %v6349_v52 = vld [vmem:[%s5963_s14 + $0x18] sm:$0xff]   ;;  %s895_s14 = scalar_lea.vmem [#allocation25], %s5945_s5 }
 0x645   : > { %v1620_v16 = vunpack.c.l.bf16 %v6349_v52 }
 0x646   : > { %v1672_v2 = vrot.slane %v1671_v21, 2  ;;  %v1678_v53 = vrot.slane %v1677_v59, 2  ;;  %v1682_v58 = vrot.slane %v1664_v24, 4  ;;  %v3559_v29 = vsel %vm1407_vm3, %v3537_v25, %v3558_v17  ;;  %v6353_v17 = vld [vmem:[%s5966_s21 + $0x10] sm:$0xff]  }
 0x647   : > { %v1640_v32 = vpop.permute.xlu0 %1639  ;;  %v2221_v14 = vunpack.c.l.bf16 %v6353_v17 }
 0x648   : > { %v1673_v7 = vadd.f32 %v1672_v2, %v1671_v21  ;;  %v1679_v15 = vadd.f32 %v1678_v53, %v1677_v59  ;;  %v1683_v34 = vadd.f32 %v1682_v58, %v1664_v24  ;;  %v1665_v40 = vmul.f32 %v1640_v32, %v1617_v55 }
 0x649   : > { %v3541_v63 = vrot.slane %v1640_v32, %v6323_v46  ;;  %v1621_v53 = vunpack.c.h.bf16 %v6349_v52 }
 0x64a   : > { %v1674_v50 = vrot.slane %v1673_v7, 1  ;;  %v1680_v5 = vrot.slane %v1679_v15, 1  ;;  %v1684_v30 = vrot.slane %v1683_v34, 2  ;;  %v1688_v54 = vrot.slane %v1665_v40, 4 }
 0x64b   : > { %v3560_v33 = vsel %vm1409_vm4, %v3541_v63, %v3559_v29  ;;  %v1645_v26 = vpop.permute.xlu0 %1644  ;;  %v2233_v47 = vpop.permute.xlu1 %2232 }
 0x64c   : > { %v1675_v39 = vadd.f32 %v1674_v50, %v1673_v7  ;;  %v1681_v31 = vadd.f32 %v1680_v5, %v1679_v15  ;;  %v1685_v44 = vadd.f32 %v1684_v30, %v1683_v34  ;;  %v1689_v8 = vadd.f32 %v1688_v54, %v1665_v40 }
 0x64d   : > { %v1666_v36 = vmul.f32 %v1645_v26, %v1618_v49  ;;  %v3545_v37 = vrot.slane %v1645_v26, %v6323_v46  ;;  %v2266_v48 = vmul.f32 %v2233_v47, %v2218_v6  ;;  %v3574_v57 = vrot.slane %v2233_v47, %v6333_v22 }
 0x64e   : > { %v2579_v60 = vsel %vm1405_vm2, %v1681_v31, %v1675_v39  ;;  %v1686_v62 = vrot.slane %v1685_v44, 1  ;;  %v1690_v4 = vrot.slane %v1689_v8, 2  ;;  %v2346_v25 = vpack.c.bf16 %v1675_v39, %v1675_v39 }
 0x64f   : > { %v1694_v9 = vrot.slane %v1666_v36, 4  ;;  %v3561_v11 = vsel %vm1411_vm5, %v3545_v37, %v3560_v33  ;;  %v2279_v12 = vrot.slane %v2266_v48, 4  ;;  %v1650_v13 = vpop.permute.xlu0 %1649  ;;  %v2238_v35 = vpop.permute.xlu1 %2237  ;;  %v2222_v49 = vunpack.c.h.bf16 %v6353_v17 }
 0x650   : > { %v1687_v56 = vadd.f32 %v1686_v62, %v1685_v44  ;;  %v1667_v51 = vmul.f32 %v1650_v13, %v1619_v43  ;;  %v1691_v55 = vadd.f32 %v1690_v4, %v1689_v8  ;;  %v3549_v24 = vrot.slane %v1650_v13, %v6323_v46 }
 0x651   : > { %v1695_v21 = vadd.f32 %v1694_v9, %v1666_v36  ;;  %v2280_v59 = vadd.f32 %v2279_v12, %v2266_v48  ;;  %v2267_v40 = vmul.f32 %v2238_v35, %v2219_v38  ;;  %v3578_v63 = vrot.slane %v2238_v35, %v6333_v22  ;;  %v6370_v35 = vld [vmem:[%s5966_s21 + $0x18] sm:$0xff]  }
 0x652   : > { %v2580_v61 = vsel %vm1407_vm3, %v1687_v56, %v2579_v60  ;;  %v1700_v2 = vrot.slane %v1667_v51, 4  ;;  %v1692_v58 = vrot.slane %v1691_v55, 1  ;;  %v6360_v7 = vsel %vm1413_vm6, %v3549_v24, %v3561_v11 }
 0x653   : > { %v1696_v29 = vrot.slane %v1695_v21, 2  ;;  %v2281_v32 = vrot.slane %v2280_v59, 2  ;;  %v2228_v15 = vpop.permute.xlu0 %2227  ;;  %v2243_v28 = vpop.permute.xlu1 %2242  ;;  %v2347_v27 = vpack.c.bf16 %v1681_v31, %v1681_v31  ;;  %v2362_v30 = vunpack.c.l.b16 %v2346_v25 }
 0x654   : > { %v1701_v34 = vadd.f32 %v1700_v2, %v1667_v51  ;;  %v1693_v6 = vadd.f32 %v1692_v58, %v1691_v55  ;;  %v2265_v5 = vmul.f32 %v2228_v15, %v2217_v0  ;;  %v2285_v33 = vrot.slane %v2267_v40, 4 }
 0x655   : > { %v1697_v50 = vadd.f32 %v1696_v29, %v1695_v21  ;;  %v3570_v26 = vrot.slane %v2228_v15, %v6333_v22  ;;  %v2348_v43 = vpack.c.bf16 %v1687_v56, %v1687_v56  ;;  %v2282_v44 = vadd.f32 %v2281_v32, %v2280_v59 }
 0x656   : > { %v1702_v54 = vrot.slane %v1701_v34, 2  ;;  %v2581_v42 = vsel %vm1409_vm4, %v1693_v6, %v2580_v61  ;;  %v2286_v8 = vadd.f32 %v2285_v33, %v2267_v40  ;;  %v2273_v47 = vrot.slane %v2265_v5, 4 }
 0x657   : > { %v1698_v39 = vrot.slane %v1697_v50, 1  ;;  %v3599_v36 = vsel %vm1405_vm2, %v3574_v57, %v3570_v26  ;;  %v2248_v31 = vpop.permute.xlu1 %2247  ;;  %v2363_v37 = vunpack.c.l.b16 %v2347_v27  ;;  %v2349_v48 = vpack.c.bf16 %v1693_v6, %v1693_v6  ;;  %v1655_v12 = vpop.permute.xlu0 %1654 }
 0x658   : > { %v1703_v38 = vadd.f32 %v1702_v54, %v1701_v34  ;;  %v3600_v62 = vsel %vm1407_vm3, %v3578_v63, %v3599_v36  ;;  %v2287_v4 = vrot.slane %v2286_v8, 2  ;;  %v2274_v9 = vadd.f32 %v2273_v47, %v2265_v5 }
 0x659   : > { %v1699_v60 = vadd.f32 %v1698_v39, %v1697_v50  ;;  %v2268_v11 = vmul.f32 %v2243_v28, %v2220_v3  ;;  %v2364_v13 = vunpack.c.l.b16 %v2348_v43  ;;  %v2283_v51 = vrot.slane %v2282_v44, 1 }
 0x65a   : > { %v1704_v0 = vrot.slane %v1703_v38, 1  ;;  %v2223_v55 = vunpack.c.l.bf16 %v6370_v35  ;;  %v2288_v21 = vadd.f32 %v2287_v4, %v2286_v8  ;;  %v2275_v59 = vrot.slane %v2274_v9, 2 }
 0x65b   : > { %v2582_v56 = vsel %vm1411_vm5, %v1699_v60, %v2581_v42  ;;  %v2291_v24 = vrot.slane %v2268_v11, 4  ;;  %v2370_v25 = vsel %vm1405_vm2, %v2363_v37, %v2362_v30  ;;  %v3582_v61 = vrot.slane %v2243_v28, %v6333_v22  ;;  %v2253_v34 = vpop.permute.xlu1 %2252  ;;  %v1660_v43 = vpop.permute.xlu0 %1659 }
 0x65c   : > { %v6373_v57 = vadd.f32 %v1704_v0, %v1703_v38  ;;  %v1668_v2 = vmul.f32 %v1655_v12, %v1620_v16  ;;  %v2224_v3 = vunpack.c.h.bf16 %v6370_v35  ;;  %v2365_v58 = vunpack.c.l.b16 %v2349_v48 }
 0x65d   : > { %v2289_v32 = vrot.slane %v2288_v21, 1  ;;  %v2276_v15 = vadd.f32 %v2275_v59, %v2274_v9  ;;  %v2371_v40 = vsel %vm1407_vm3, %v2364_v13, %v2370_v25  ;;  %v2292_v63 = vadd.f32 %v2291_v24, %v2268_v11 }
 0x65e   : > { %v2583_v29 = vsel %vm1413_vm6, %v6373_v57, %v2582_v56  ;;  %v3601_v27 = vsel %vm1409_vm4, %v3582_v61, %v3600_v62  ;;  %v1706_v6 = vrot.slane %v1668_v2, 4  ;;  %v2350_v50 = vpack.c.bf16 %v1699_v60, %v1699_v60 }
 0x65f   : > { %v2284_v5 = vadd.f32 %v2283_v51, %v2282_v44  ;;  %v2277_v30 = vrot.slane %v2276_v15, 1  ;;  %v3553_v16 = vrot.slane %v1655_v12, %v6323_v46  ;;  %v2293_v28 = vrot.slane %v2292_v63, 2 }
 0x660   : > { %v1707_v54 = vadd.f32 %v1706_v6, %v1668_v2  ;;  %v2269_v33 = vmul.f32 %v2248_v31, %v2221_v14  ;;  %v3586_v26 = vrot.slane %v2248_v31, %v6333_v22  ;;  %v2372_v42 = vsel %vm1409_vm4, %v2365_v58, %v2371_v40  ;;  %v2258_v31 = vpop.permute.xlu1 %2257 }
 0x661   : > { %v2290_v39 = vadd.f32 %v2289_v32, %v2288_v21  ;;  %v2278_v38 = vadd.f32 %v2277_v30, %v2276_v15  ;;  %v3563_v8 = vsel %vm1415_vm7, %v3553_v16, %v6360_v7  ;;  %v2294_v47 = vadd.f32 %v2293_v28, %v2292_v63 }
 0x662   : > { %v1708_v44 = vrot.slane %v1707_v54, 2  ;;  %v2297_v36 = vrot.slane %v2269_v33, 4  ;;  %v3602_v37 = vsel %vm1411_vm5, %v3586_v26, %v3601_v27  ;;  %v2366_v48 = vunpack.c.l.b16 %v2350_v50 }
 0x663   : > { %v2470_v60 = vpack.c.bf16 %v2284_v5, %v2284_v5  ;;  %v2596_v62 = vsel %vm1405_vm2, %v2284_v5, %v2278_v38  ;;  %v1669_v14 = vmul.f32 %v1660_v43, %v1621_v53  ;;  %v2295_v4 = vrot.slane %v2294_v47, 1 }
 0x664   : > { %v2597_v0 = vsel %vm1407_vm3, %v2290_v39, %v2596_v62  ;;  %v1709_v9 = vadd.f32 %v1708_v44, %v1707_v54  ;;  %v2298_v11 = vadd.f32 %v2297_v36, %v2269_v33  ;;  %v2469_v12 = vpack.c.bf16 %v2278_v38, %v2278_v38 }
 0x665   : > { %v1712_v7 = vrot.slane %v1669_v14, 4  ;;  %v3557_v13 = vrot.slane %v1660_v43, %v6323_v46  ;;  %v2270_v56 = vmul.f32 %v2253_v34, %v2222_v49  ;;  %v2296_v51 = vadd.f32 %v2295_v4, %v2294_v47 }
 0x666   : > { %v1710_v21 = vrot.slane %v1709_v9, 1  ;;  %v2299_v59 = vrot.slane %v2298_v11, 2  ;;  %v3590_v24 = vrot.slane %v2253_v34, %v6333_v22  ;;  %v2486_v52 = vunpack.c.l.b16 %v2470_v60  ;;  %v2263_v34 = vpop.permute.xlu1 %2262 }
 0x667   : > { %v1713_v53 = vadd.f32 %v1712_v7, %v1669_v14  ;;  %v6399_v25 = vsel %vm1417_vm8, %v3557_v13, %v3563_v8  ;;  %v2303_v61 = vrot.slane %v2270_v56, 4  ;;  %v2373_v2 = vsel %vm1411_vm5, %v2366_v48, %v2372_v42 }
 0x668   : > { %v2351_v58 = vpack.c.bf16 %v6373_v57, %v6373_v57  ;;  %v2598_v46 = vsel %vm1409_vm4, %v2296_v51, %v2597_v0  ;;  %v1711_v17 = vadd.f32 %v1710_v21, %v1709_v9  ;;  %v2300_v49 = vadd.f32 %v2299_v59, %v2298_v11 }
 0x669   : > { %v1714_v32 = vrot.slane %v1713_v53, 2  ;;  %v2304_v15 = vadd.f32 %v2303_v61, %v2270_v56  ;;  %v3603_v40 = vsel %vm1413_vm6, %v3590_v24, %v3602_v37  ;;  %v2471_v63 = vpack.c.bf16 %v2290_v39, %v2290_v39 }
 0x66a   : > { %v2485_v27 = vunpack.c.l.b16 %v2469_v12  ;;  %v2584_v6 = vsel %vm1415_vm7, %v1711_v17, %v2583_v29  ;;  %v2271_v50 = vmul.f32 %v2258_v31, %v2223_v55  ;;  %v2301_v5 = vrot.slane %v2300_v49, 1 }
 0x66b   : > { %v1715_v30 = vadd.f32 %v1714_v32, %v1713_v53  ;;  %v2305_v16 = vrot.slane %v2304_v15, 2  ;;  %v3594_v57 = vrot.slane %v2258_v31, %v6333_v22  ;;  %v2367_v28 = vunpack.c.l.b16 %v2351_v58 }
 0x66c   : > { %v2352_v54 = vpack.c.bf16 %v1711_v17, %v1711_v17  ;;  %v2309_v33 = vrot.slane %v2271_v50, 4  ;;  %v2272_v26 = vmul.f32 %v2263_v34, %v2224_v3  ;;  %v2302_v43 = vadd.f32 %v2301_v5, %v2300_v49 }
 0x66d   : > { %v1716_v42 = vrot.slane %v1715_v30, 1  ;;  %v2306_v39 = vadd.f32 %v2305_v16, %v2304_v15  ;;  %v3604_v38 = vsel %vm1415_vm7, %v3594_v57, %v3603_v40  ;;  %v2487_v29 = vunpack.c.l.b16 %v2471_v63 }
 0x66e   : > { %v2310_v8 = vadd.f32 %v2309_v33, %v2271_v50  ;;  %v2315_v47 = vrot.slane %v2272_v26, 4  ;;  %v3598_v55 = vrot.slane %v2263_v34, %v6333_v22  ;;  %v2493_v44 = vsel %vm1405_vm2, %v2486_v52, %v2485_v27 }
 0x66f   : > { %v2599_v36 = vsel %vm1411_vm5, %v2302_v43, %v2598_v46  ;;  %v1717_v37 = vadd.f32 %v1716_v42, %v1715_v30  ;;  %v2307_v48 = vrot.slane %v2306_v39, 1  ;;  %v2368_v60 = vunpack.c.l.b16 %v2352_v54 }
 0x670   : > { %v2311_v62 = vrot.slane %v2310_v8, 2  ;;  %v2316_v35 = vadd.f32 %v2315_v47, %v2272_v26  ;;  %v6417_v3 = vsel %vm1417_vm8, %v3598_v55, %v3604_v38  ;;  %v2472_v14 = vpack.c.bf16 %v2296_v51, %v2296_v51 }
 0x671   : > { %v2353_v31 = vpack.c.bf16 %v1717_v37, %v1717_v37  ;;  %v2308_v0 = vadd.f32 %v2307_v48, %v2306_v39  ;;  %v6420_v4 = vsel %vm1417_vm8, %v1717_v37, %v2584_v6  ;;  %v2374_v22 = vsel %vm1413_vm6, %v2367_v28, %v2373_v2  ;;  %v4597_v37 = vld [vmem:[#allocation19 + $0x4] ss:$16 sps:$4 sm:$0xff]   ;;  %v4600_v48 = vld [vmem:[#allocation19 + $0xc] ss:$16 sps:$4 sm:$0xff]  }
 0x672   : > { %v2312_v9 = vadd.f32 %v2311_v62, %v2310_v8  ;;  %v2317_v11 = vrot.slane %v2316_v35, 2  ;;  %v2494_v12 = vsel %vm1407_vm3, %v2487_v29, %v2493_v44  ;;  %v2473_v7 = vpack.c.bf16 %v2302_v43, %v2302_v43  ;;  %v4073_v8 = vld [vmem:[%s6749_s19] ss:$0 sm:$0xff]  ;;  %v4598_v62 = vld [vmem:[#allocation19 + $0x8] ss:$16 sps:$4 sm:$0xff]   ;;  %2863 = vmatprep.subr.bf16.mxu1 %v4597_v37  ;;  %2904 = vmatprep.subr.bf16.mxu0 %v4600_v48  ;;  %s5193_s19 = scalar_lea.vmem %s3658_s13, 128 }
 0x673   : > { %v2369_v13 = vunpack.c.l.b16 %v2353_v31  ;;  %v2600_v56 = vsel %vm1413_vm6, %v2308_v0, %v2599_v36  ;;  %v2474_v21 = vpack.c.bf16 %v2308_v0, %v2308_v0  ;;  %v2375_v51 = vsel %vm1415_vm7, %v2368_v60, %v2374_v22  ;;  %v4595_v60 = vld [vmem:[#allocation19] ss:$16 sps:$4 sm:$0xff]   ;;  %v4604_v31 = vld [vmem:[#allocation19 + $0x28] ss:$16 sps:$4 sm:$0xff]   ;;  %v4609_v0 = vld [vmem:[#allocation19 + $0x44] ss:$16 sps:$4 sm:$0xff]   ;;  %p5194_p6 = scmp.ne.s32.totalorder %s3658_s13, %s5193_s19 }
 0x674   : > { %v2313_v59 = vrot.slane %v2312_v9, 1  ;;  %v2318_v24 = vadd.f32 %v2317_v11, %v2316_v35  ;;  %v2488_v52 = vunpack.c.l.b16 %v2472_v14  ;;  %v2489_v17 = vunpack.c.l.b16 %v2473_v7  ;;  %v4606_v35 = vld [vmem:[#allocation19 + $0x2c] ss:$16 sps:$4 sm:$0xff]   ;;  %v4601_v14 = vld [vmem:[#allocation19 + $0x20] ss:$16 sps:$4 sm:$0xff]  }
 0x675   : > { %v2376_v53 = vsel %vm1417_vm8, %v2369_v13, %v2375_v51  ;;  %v2490_v49 = vunpack.c.l.b16 %v2474_v21  ;;  %v4612_v22 = vld [vmem:[#allocation19 + $0x4c] ss:$16 sps:$4 sm:$0xff]   ;;  %v4610_v11 = vld [vmem:[#allocation19 + $0x48] ss:$16 sps:$4 sm:$0xff]   ;;  %v4613_v13 = vld [vmem:[#allocation19 + $0x60] ss:$16 sps:$4 sm:$0xff]   ;;  %p5195_p13 = pnand %p5194_p6, %p6754_p4 }
 0x676   : > { %v2314_v61 = vadd.f32 %v2313_v59, %v2312_v9  ;;  %v2319_v58 = vrot.slane %v2318_v24, 1  ;;  %v2377_v46 = vpack.c.b16 %v2376_v53, %v2376_v53  ;;  %v2495_v2 = vsel %vm1409_vm4, %v2488_v52, %v2494_v12  ;;  %v4607_v9 = vld [vmem:[#allocation19 + $0x40] ss:$16 sps:$4 sm:$0xff]   ;;  %v4615_v12 = vld [vmem:[#allocation19 + $0x64] ss:$16 sps:$4 sm:$0xff]  }
 0x677   : > { %v2496_v6 = vsel %vm1411_vm5, %v2489_v17, %v2495_v2  ;;  %v4618_v7 = vld [vmem:[#allocation19 + $0x6c] ss:$16 sps:$4 sm:$0xff]   ;;  %v4621_v21 = vld [vmem:[#allocation19 + $0x84] ss:$16 sps:$4 sm:$0xff]   ;;  %v4619_v59 = vld [vmem:[#allocation19 + $0x80] ss:$16 sps:$4 sm:$0xff]   ;;  %p5196_p8 = pneg %p5195_p13 }
 0x678   : > { %v2475_v32 = vpack.c.bf16 %v2314_v61, %v2314_v61  ;;  %v2601_v15 = vsel %vm1415_vm7, %v2314_v61, %v2600_v56  ;;  %v2320_v40 = vadd.f32 %v2319_v58, %v2318_v24  ;;  %4342 = vmatmul.mubr.bf16.vlgmr.msra.gmra.mrb[8].mxu1 %v2377_v46  ;;  %v2497_v50 = vsel %vm1413_vm6, %v2490_v49, %v2496_v6  ;;  %v4616_v56 = vld [vmem:[#allocation19 + $0x68] ss:$16 sps:$4 sm:$0xff]   ;;  %v4624_v51 = vld [vmem:[#allocation19 + $0x8c] ss:$16 sps:$4 sm:$0xff]   ;;  %v4627_v52 = vld [vmem:[#allocation19 + $0xa4] ss:$16 sps:$4 sm:$0xff]  }
 0x679   : > { %2895 = vmatprep.mubr.bf16.mxu1 %v5404_v10  ;;  %2864 = vmatpush1.bf16.msra.mxu1 %v4595_v60  ;;  %v4622_v24 = vld [vmem:[#allocation19 + $0x88] ss:$16 sps:$4 sm:$0xff]   ;;  %v4630_v53 = vld [vmem:[#allocation19 + $0xac] ss:$16 sps:$4 sm:$0xff]   ;;  %v4625_v61 = vld [vmem:[#allocation19 + $0xa0] ss:$16 sps:$4 sm:$0xff]  }
 0x67a   : > { %v2491_v34 = vunpack.c.l.b16 %v2475_v32  ;;  %v2476_v63 = vpack.c.bf16 %v2320_v40, %v2320_v40  ;;  %v6431_v27 = vsel %vm1417_vm8, %v2320_v40, %v2601_v15  ;;  %v4628_v58 = vld [vmem:[#allocation19 + $0xa8] ss:$16 sps:$4 sm:$0xff]   ;;  %v4633_v46 = vld [vmem:[#allocation19 + $0xc4] ss:$16 sps:$4 sm:$0xff]   ;;  %v4636_v2 = vld [vmem:[#allocation19 + $0xcc] ss:$16 sps:$4 sm:$0xff]  }
 0x67b   : > { %v4631_v17 = vld [vmem:[#allocation19 + $0xc0] ss:$16 sps:$4 sm:$0xff]   ;;  %v4634_v49 = vld [vmem:[#allocation19 + $0xc8] ss:$16 sps:$4 sm:$0xff]   ;;  %v4639_v32 = vld [vmem:[#allocation19 + $0xe4] ss:$16 sps:$4 sm:$0xff]  }
 0x67c   : > { %v2492_v5 = vunpack.c.l.b16 %v2476_v63  ;;  %v2498_v30 = vsel %vm1415_vm7, %v2491_v34, %v2497_v50  ;;  %v4642_v15 = vld [vmem:[#allocation19 + $0xec] ss:$16 sps:$4 sm:$0xff]   ;;  %v4637_v40 = vld [vmem:[#allocation19 + $0xe0] ss:$16 sps:$4 sm:$0xff]   ;;  %v4640_v34 = vld [vmem:[#allocation19 + $0xe8] ss:$16 sps:$4 sm:$0xff]   ;;  %v2554_v50 = vstv %s4074_s0 }
 0x67d   : > { %v4645_v63 = vld [vmem:[#allocation18 + $0x4] ss:$16 sps:$4 sm:$0xff]   ;;  %v4648_v6 = vld [vmem:[#allocation18 + $0xc] ss:$16 sps:$4 sm:$0xff]   ;;  %v4643_v60 = vld [vmem:[#allocation18] ss:$16 sps:$4 sm:$0xff]  }
 0x67e   : > { %v2499_v16 = vsel %vm1417_vm8, %v2492_v5, %v2498_v30  ;;  %s5406_s0 = smov [#allocation23]  }
 0x67f   : > { %v2500_v57 = vpack.c.b16 %v2499_v16, %v2499_v16 }
 0x681   : > { %4362 = vmatmul.mubr.bf16.vlgmr.msra.gmra.mrb[12].mxu0 %v2500_v57 }
 0x682   : > { %2936 = vmatprep.mubr.bf16.mxu0 %v5404_v10  ;;  %2905 = vmatpush1.bf16.msra.mxu0 %v4598_v62  ;;  %v4646_v62 = vld [vmem:[#allocation18 + $0x8] ss:$16 sps:$4 sm:$0xff]  }
 0x683   : > { %2906 = vmatprep.subr.bf16.mxu0 %v4606_v35  ;;  %v4651_v35 = vld [vmem:[#allocation18 + $0x24] ss:$16 sps:$4 sm:$0xff]  }
 0x686   : > { %2907 = vmatpush1.bf16.msra.mxu0 %v4604_v31  ;;  %v4660_v31 = vld [vmem:[#allocation18 + $0x4c] ss:$16 sps:$4 sm:$0xff]  }
 0x687   : > { %2908 = vmatprep.subr.bf16.mxu0 %v4612_v22  ;;  %v4663_v22 = vld [vmem:[#allocation18 + $0x64] ss:$16 sps:$4 sm:$0xff]  }
 0x68a   : > { %2909 = vmatpush1.bf16.msra.mxu0 %v4610_v11  ;;  %v4661_v11 = vld [vmem:[#allocation18 + $0x60] ss:$16 sps:$4 sm:$0xff]  }
 0x68b   : > { %2910 = vmatprep.subr.bf16.mxu0 %v4618_v7  ;;  %v4669_v7 = vld [vmem:[#allocation18 + $0x84] ss:$16 sps:$4 sm:$0xff]  }
 0x68e   : > { %2911 = vmatpush1.bf16.msra.mxu0 %v4616_v56  ;;  %v4667_v56 = vld [vmem:[#allocation18 + $0x80] ss:$16 sps:$4 sm:$0xff]  }
 0x68f   : > { %2912 = vmatprep.subr.bf16.mxu0 %v4624_v51  ;;  %v4676_v51 = vld [vmem:[#allocation18 + $0xa8] ss:$16 sps:$4 sm:$0xff]  }
 0x692   : > { %2913 = vmatpush1.bf16.msra.mxu0 %v4622_v24  ;;  %v4673_v24 = vld [vmem:[#allocation18 + $0xa0] ss:$16 sps:$4 sm:$0xff]  }
 0x693   : > { %2914 = vmatprep.subr.bf16.mxu0 %v4630_v53  ;;  %v4684_v53 = vld [vmem:[#allocation18 + $0xcc] ss:$16 sps:$4 sm:$0xff]  }
 0x696   : > { %2915 = vmatpush1.bf16.msra.mxu0 %v4628_v58  ;;  %v4682_v58 = vld [vmem:[#allocation18 + $0xc8] ss:$16 sps:$4 sm:$0xff]  }
 0x697   : > { %2916 = vmatprep.subr.bf16.mxu0 %v4636_v2  ;;  %v4690_v2 = vld [vmem:[#allocation18 + $0xec] ss:$16 sps:$4 sm:$0xff]  }
 0x69a   : > { %2917 = vmatpush1.bf16.msra.mxu0 %v4634_v49  ;;  %v4688_v49 = vld [vmem:[#allocation18 + $0xe8] ss:$16 sps:$4 sm:$0xff]  }
 0x69b   : > { %2918 = vmatprep.subr.bf16.mxu0 %v4642_v15  ;;  %v4696_v15 = vld [vmem:[#allocation18 + $0x10c] ss:$16 sps:$4 sm:$0xff]  }
 0x69e   : > { %2919 = vmatpush1.bf16.msra.mxu0 %v4640_v34  ;;  %v4694_v34 = vld [vmem:[#allocation18 + $0x108] ss:$16 sps:$4 sm:$0xff]  }
 0x69f   : > { %3309 = vmatprep.subr.bf16.mxu0 %v4648_v6  ;;  %v4702_v6 = vld [vmem:[#allocation18 + $0x12c] ss:$16 sps:$4 sm:$0xff]  }
 0x74b   : > { %v2461_v28 = vpop.f32.mrb[8].mxu1 }
 0x74c   : > { %v2467_v54 = vadd.f32 %v2461_v28, %v6029_v41  ;;  %v4343_v33 = vpop.f32.mrb[9].mxu1 }
 0x74d   : > { %v2464_v26 = vpop.f32.mrb[10].mxu1 }
 0x74e   : > { %4823 = vtanh.f32 %v2467_v54  ;;  %v4344_v43 = vpop.f32.mrb[11].mxu1 }
 0x754   : > { %v2536_v42 = vpop.f32.mrb[12].mxu0 }
 0x755   : > { %v2542_v39 = vadd.f32 %v2536_v42, %v6029_v41  ;;  %v4363_v38 = vpop.f32.mrb[13].mxu0  ;;  %v4603_v41 = vld [vmem:[#allocation19 + $0x24] ss:$16 sps:$4 sm:$0xff]  }
 0x756   : > { %v2539_v29 = vpop.f32.mrb[14].mxu0  ;;  %2865 = vmatprep.subr.bf16.mxu1 %v4603_v41 }
 0x757   : > { %4825 = vtanh.f32 %v2542_v39  ;;  %v4364_v47 = vpop.f32.mrb[15].mxu0  ;;  %2866 = vmatpush1.bf16.msra.mxu1 %v4601_v14  ;;  %v4654_v14 = vld [vmem:[#allocation18 + $0x2c] ss:$16 sps:$4 sm:$0xff]  }
 0x758   : > { %v4824_v55 = vpop.eup %4823  ;;  %2867 = vmatprep.subr.bf16.mxu1 %v4609_v0  ;;  %v4658_v0 = vld [vmem:[#allocation18 + $0x48] ss:$16 sps:$4 sm:$0xff]  }
 0x759   : > { %v2550_v10 = vmul.f32 %v4824_v55, %v4073_v8 }
 0x75b   : > { %2551 = vadd.xlane.f32.xlu0 %v2550_v10  ;;  %2868 = vmatpush1.bf16.msra.mxu1 %v4607_v9  ;;  %v4666_v9 = vld [vmem:[#allocation18 + $0x6c] ss:$16 sps:$4 sm:$0xff]  }
 0x75c   : > { %2869 = vmatprep.subr.bf16.mxu1 %v4615_v12  ;;  %v4664_v12 = vld [vmem:[#allocation18 + $0x68] ss:$16 sps:$4 sm:$0xff]  }
 0x75f   : > { %2870 = vmatpush1.bf16.msra.mxu1 %v4613_v13  ;;  %v4672_v13 = vld [vmem:[#allocation18 + $0x8c] ss:$16 sps:$4 sm:$0xff]  }
 0x760   : > { %2871 = vmatprep.subr.bf16.mxu1 %v4621_v21  ;;  %v4675_v21 = vld [vmem:[#allocation18 + $0xa4] ss:$16 sps:$4 sm:$0xff]  }
 0x761   : > { %v4826_v44 = vpop.eup %4825 }
 0x762   : > { %v2556_v36 = vmul.f32 %v4826_v44, %v4073_v8 }
 0x763   : > { %2872 = vmatpush1.bf16.msra.mxu1 %v4619_v59  ;;  %v4678_v59 = vld [vmem:[#allocation18 + $0xac] ss:$16 sps:$4 sm:$0xff]  }
 0x764   : > { %2557 = vadd.xlane.f32.xlu1 %v2556_v36  ;;  %2873 = vmatprep.subr.bf16.mxu1 %v4627_v52  ;;  %v4681_v52 = vld [vmem:[#allocation18 + $0xc4] ss:$16 sps:$4 sm:$0xff]  }
 0x767   : > { %2874 = vmatpush1.bf16.msra.mxu1 %v4625_v61  ;;  %v4679_v61 = vld [vmem:[#allocation18 + $0xc0] ss:$16 sps:$4 sm:$0xff]  }
 0x768   : > { %2875 = vmatprep.subr.bf16.mxu1 %v4633_v46  ;;  %v4687_v46 = vld [vmem:[#allocation18 + $0xe4] ss:$16 sps:$4 sm:$0xff]  }
 0x76b   : > { %2876 = vmatpush1.bf16.msra.mxu1 %v4631_v17  ;;  %v4685_v17 = vld [vmem:[#allocation18 + $0xe0] ss:$16 sps:$4 sm:$0xff]  }
 0x76c   : > { %2877 = vmatprep.subr.bf16.mxu1 %v4639_v32  ;;  %v4693_v32 = vld [vmem:[#allocation18 + $0x104] ss:$16 sps:$4 sm:$0xff]  }
 0x76f   : > { %2878 = vmatpush1.bf16.msra.mxu1 %v4637_v40  ;;  %v4691_v40 = vld [vmem:[#allocation18 + $0x100] ss:$16 sps:$4 sm:$0xff]  }
 0x770   : > { %3268 = vmatprep.subr.bf16.mxu1 %v4645_v63  ;;  %v4699_v63 = vld [vmem:[#allocation18 + $0x124] ss:$16 sps:$4 sm:$0xff]  }
 0x7e8   : > { %v2552_v5 = vpop.xlane.xlu0 %2551 }
 0x7e9   : > { %v2555_v16 = vadd.f32 %v2554_v50, %v2552_v5  ;;  %v4700_v5 = vld [vmem:[#allocation18 + $0x128] ss:$16 sps:$4 sm:$0xff]  }
 0x7f1   : > { %v2558_v30 = vpop.xlane.xlu1 %2557 }
 0x7f2   : > { %v2559_v57 = vadd.f32 %v2558_v30, %v2554_v50  ;;  %v4697_v50 = vld [vmem:[#allocation18 + $0x120] ss:$16 sps:$4 sm:$0xff]   ;;  %v4705_v30 = vld [vmem:[#allocation18 + $0x144] ss:$16 sps:$4 sm:$0xff]  }
 0x7f4   : > { %v2560_v28 = vmax.f32 %v2555_v16, %v2559_v57 }
 0x7f6   : > { %v2561_v54 = vsub.f32 %v2555_v16, %v2560_v28  ;;  %v2564_v33 = vsub.f32 %v2559_v57, %v2560_v28  ;;  %v4708_v16 = vld [vmem:[#allocation18 + $0x14c] ss:$16 sps:$4 sm:$0xff]   ;;  %v4703_v57 = vld [vmem:[#allocation18 + $0x140] ss:$16 sps:$4 sm:$0xff]   ;;  %v4706_v28 = vld [vmem:[#allocation18 + $0x148] ss:$16 sps:$4 sm:$0xff]  }
 0x7f8   : > { %v2562_v26 = vmul.f32 1.442695, %v2561_v54  ;;  %v2565_v43 = vmul.f32 1.442695, %v2564_v33  ;;  %v4711_v54 = vld [vmem:[#allocation18 + $0x164] ss:$16 sps:$4 sm:$0xff]  }
 0x7f9   : > { %v4714_v33 = vld [vmem:[#allocation18 + $0x16c] ss:$16 sps:$4 sm:$0xff]  }
 0x7fa   : > { %4827 = vpow2.f32 %v2562_v26  ;;  %v4709_v26 = vld [vmem:[#allocation18 + $0x160] ss:$16 sps:$4 sm:$0xff]  }
 0x7fb   : > { %4829 = vpow2.f32 %v2565_v43  ;;  %v4712_v43 = vld [vmem:[#allocation18 + $0x168] ss:$16 sps:$4 sm:$0xff]  }
 0x804   : > { %v4828_v42 = vpop.eup %4827 }
 0x805   : > { %v4830_v39 = vpop.eup %4829 }
 0x806   : > { %v2567_v38 = vadd.f32 %v4830_v39, %v4828_v42 }
 0x808   : > { %4831 = vrcp.f32 %v2567_v38  ;;  %v4715_v38 = vld [vmem:[#allocation18 + $0x180] ss:$16 sps:$4 sm:$0xff]  }
 0x812   : > { %v4832_v29 = vpop.eup %4831 }
 0x813   : > { %v2569_v8 = vmul.f32 %v4832_v29, %v4828_v42  ;;  %v2570_v47 = vmul.f32 %v4832_v29, %v4830_v39  ;;  %v4717_v42 = vld [vmem:[#allocation18 + $0x184] ss:$16 sps:$4 sm:$0xff]   ;;  %v4720_v39 = vld [vmem:[#allocation18 + $0x18c] ss:$16 sps:$4 sm:$0xff]   ;;  %v4718_v29 = vld [vmem:[#allocation18 + $0x188] ss:$16 sps:$4 sm:$0xff]  }
 0x815   : > { %v2587_v55 = vmul.f32 %v6420_v4, %v2569_v8  ;;  %v2604_v10 = vmul.f32 %v6431_v27, %v2570_v47  ;;  %v3608_v44 = vsel %vm3607_vm10, %v2569_v8, %v2570_v47  ;;  %v4649_v4 = vld [vmem:[#allocation18 + $0x20] ss:$16 sps:$4 sm:$0xff]   ;;  %v4652_v27 = vld [vmem:[#allocation18 + $0x28] ss:$16 sps:$4 sm:$0xff]   ;;  %v4723_v8 = vld [vmem:[#allocation18 + $0x1a4] ss:$16 sps:$4 sm:$0xff]  }
 0x816   : > { %v3610_v36 = vsel %vm3609_vm11, %v3608_v44, %v6399_v25  ;;  %v4657_v25 = vld [vmem:[#allocation18 + $0x44] ss:$16 sps:$4 sm:$0xff]   ;;  %v4726_v47 = vld [vmem:[#allocation18 + $0x1ac] ss:$16 sps:$4 sm:$0xff]  }
 0x817   : > { %v2605_v37 = vadd.f32 %v2604_v10, %v2587_v55  ;;  %v3612_v48 = vsel %vm3611_vm12, %v3610_v36, %v6417_v3  ;;  %v4655_v3 = vld [vmem:[#allocation18 + $0x40] ss:$16 sps:$4 sm:$0xff]   ;;  %v4724_v10 = vld [vmem:[#allocation18 + $0x1a8] ss:$16 sps:$4 sm:$0xff]   ;;  %v4729_v44 = vld [vmem:[#allocation18 + $0x1c4] ss:$16 sps:$4 sm:$0xff]  }
 0x818   : > { %3614 = vst.msk [vmem:[%s902_s29] sm:$0xff] %vm3613_vm13, %v3612_v48  ;;  %v4721_v55 = vld [vmem:[#allocation18 + $0x1a0] ss:$16 sps:$4 sm:$0xff]   ;;  %v4732_v36 = vld [vmem:[#allocation18 + $0x1cc] ss:$16 sps:$4 sm:$0xff]  }
 0x819   : > { %v2670_v41 = vpack.c.bf16 %v2605_v37, %v2605_v37  ;;  %v4727_v37 = vld [vmem:[#allocation18 + $0x1c0] ss:$16 sps:$4 sm:$0xff]   ;;  %v4730_v48 = vld [vmem:[#allocation18 + $0x1c8] ss:$16 sps:$4 sm:$0xff]  }
 0x81b   : > { %2896 = vmatmul.mubr.bf16.vlgmr.msra.gmra.mrb[12].mxu1 %v2670_v41  ;;  %2937 = vmatmul.mubr.bf16.vlgmr.msra.gmra.mrb[16].mxu0 %v2670_v41  ;;  %v4733_v41 = vld [vmem:[#allocation18 + $0x1e0] ss:$16 sps:$4 sm:$0xff]  }
 0x81c   : > { %3269 = vmatpush1.bf16.msra.mxu1 %v4643_v60  ;;  %3310 = vmatpush1.bf16.msra.mxu0 %v4646_v62  ;;  %v4735_v60 = vld [vmem:[#allocation18 + $0x1e4] ss:$16 sps:$4 sm:$0xff]   ;;  %v4738_v62 = vld [vmem:[#allocation18 + $0x1ec] ss:$16 sps:$4 sm:$0xff]  }
 0x81d   : > { %3270 = vmatprep.subr.bf16.mxu1 %v4651_v35  ;;  %3311 = vmatprep.subr.bf16.mxu0 %v4654_v14  ;;  %v4736_v35 = vld [vmem:[#allocation18 + $0x1e8] ss:$16 sps:$4 sm:$0xff]  }
 0x81e   : > { %3300 = vmatprep.mubr.bf16.mxu1 %v6012_v23  ;;  %3341 = vmatprep.mubr.bf16.mxu0 %v6012_v23  ;;  %v4670_v23 = vld [vmem:[#allocation18 + $0x88] ss:$16 sps:$4 sm:$0xff]  }
 0x81f   : > { %v4861_v14 = vld [vmem:[%s756_s11] sm:$0xff]  ;;  %s5197_s11 = sshll.u32 %s5406_s0, 4  ;;  %s5198_s11 = int_to_ptr.vmem [resolvable:$false] %s5197_s11 }
 0x820   : > { %3271 = vmatpush1.bf16.msra.mxu1 %v4649_v4  ;;  %3312 = vmatpush1.bf16.msra.mxu0 %v4652_v27  ;;  %v4107_v4 = vcombine.low %v4861_v14, %v4861_v14  ;;  %v4739_v27 = vld [vmem:[#allocation21] sm:$0xff]   ;;  %s5199_s18 = scalar_lea.vmem %s5198_s11, 256  ;;  %p5200_p3 = scmp.lt.s32.totalorder %s3658_s13, %s5198_s11 }
 0x821   : > { %3272 = vmatprep.subr.bf16.mxu1 %v4657_v25  ;;  %3313 = vmatprep.subr.bf16.mxu0 %v4660_v31  ;;  %v4740_v25 = vld [vmem:[#allocation21 + $0x8] sm:$0xff]   ;;  %v4741_v31 = vld [vmem:[#allocation21 + $0x10] sm:$0xff]   ;;  %p5201_p0 = scmp.lt.s32.totalorder %s5199_s18, %s5193_s19 }
 0x823   : > { %p5202_p5 = por %p5201_p0, %p5200_p3 }
 0x824   : > { %3273 = vmatpush1.bf16.msra.mxu1 %v4655_v3  ;;  %3314 = vmatpush1.bf16.msra.mxu0 %v4658_v0  ;;  %v4742_v3 = vld [vmem:[#allocation21 + $0x18] sm:$0xff]   ;;  %v4743_v0 = vld [vmem:[#allocation21 + $0x20] sm:$0xff]  }
 0x825   : > { %3274 = vmatprep.subr.bf16.mxu1 %v4663_v22  ;;  %3315 = vmatprep.subr.bf16.mxu0 %v4666_v9  ;;  %v4744_v22 = vld [vmem:[#allocation21 + $0x28] sm:$0xff]   ;;  %v4745_v9 = vld [vmem:[#allocation21 + $0x30] sm:$0xff]   ;;  %p5203_p9 = pnand %p5202_p5, %p5196_p8 }
 0x828   : > { %3275 = vmatpush1.bf16.msra.mxu1 %v4661_v11  ;;  %3316 = vmatpush1.bf16.msra.mxu0 %v4664_v12  ;;  %v4746_v11 = vld [vmem:[#allocation21 + $0x38] sm:$0xff]  }
 0x829   : > { %3276 = vmatprep.subr.bf16.mxu1 %v4669_v7  ;;  %3317 = vmatprep.subr.bf16.mxu0 %v4672_v13 }
 0x82c   : > { %3277 = vmatpush1.bf16.msra.mxu1 %v4667_v56  ;;  %3318 = vmatpush1.bf16.msra.mxu0 %v4670_v23 }
 0x82d   : > { %3278 = vmatprep.subr.bf16.mxu1 %v4675_v21  ;;  %3319 = vmatprep.subr.bf16.mxu0 %v4678_v59 }
 0x830   : > { %3279 = vmatpush1.bf16.msra.mxu1 %v4673_v24  ;;  %3320 = vmatpush1.bf16.msra.mxu0 %v4676_v51  ;;  %v3350_v51 = vld [vmem:[%s6750_s23] sm:$0xf] }
 0x831   : > { %3280 = vmatprep.subr.bf16.mxu1 %v4681_v52  ;;  %3321 = vmatprep.subr.bf16.mxu0 %v4684_v53  ;;  %v3355_v52 = vrot.slane %v3350_v51, %v6035_v45  ;;  %v3367_v45 = vrot.slane %v3350_v51, %v6148_v20 }
 0x834   : > { %3281 = vmatpush1.bf16.msra.mxu1 %v4679_v61  ;;  %3322 = vmatpush1.bf16.msra.mxu0 %v4682_v58  ;;  %v3359_v58 = vrot.slane %v3350_v51, %v6142_v18 }
 0x835   : > { %3282 = vmatprep.subr.bf16.mxu1 %v4687_v46  ;;  %3323 = vmatprep.subr.bf16.mxu0 %v4690_v2 }
 0x838   : > { %3283 = vmatpush1.bf16.msra.mxu1 %v4685_v17  ;;  %3324 = vmatpush1.bf16.msra.mxu0 %v4688_v49 }
 0x839   : > { %3284 = vmatprep.subr.bf16.mxu1 %v4693_v32  ;;  %3325 = vmatprep.subr.bf16.mxu0 %v4696_v15 }
 0x83c   : > { %3285 = vmatpush1.bf16.msra.mxu1 %v4691_v40  ;;  %3326 = vmatpush1.bf16.msra.mxu0 %v4694_v34 }
 0x83d   : > { %3286 = vmatprep.subr.bf16.mxu1 %v4699_v63  ;;  %3327 = vmatprep.subr.bf16.mxu0 %v4702_v6 }
 0x840   : > { %3287 = vmatpush1.bf16.msra.mxu1 %v4697_v50  ;;  %3328 = vmatpush1.bf16.msra.mxu0 %v4700_v5 }
 0x841   : > { %3288 = vmatprep.subr.bf16.mxu1 %v4705_v30  ;;  %3329 = vmatprep.subr.bf16.mxu0 %v4708_v16  ;;  %v3363_v16 = vrot.slane %v3350_v51, %v6145_v19 }
 0x844   : > { %3289 = vmatpush1.bf16.msra.mxu1 %v4703_v57  ;;  %3330 = vmatpush1.bf16.msra.mxu0 %v4706_v28 }
 0x845   : > { %3290 = vmatprep.subr.bf16.mxu1 %v4711_v54  ;;  %3331 = vmatprep.subr.bf16.mxu0 %v4714_v33 }
 0x848   : > { %3291 = vmatpush1.bf16.msra.mxu1 %v4709_v26  ;;  %3332 = vmatpush1.bf16.msra.mxu0 %v4712_v43 }
 0x849   : > { %3292 = vmatprep.subr.bf16.mxu1 %v4717_v42  ;;  %3333 = vmatprep.subr.bf16.mxu0 %v4720_v39  ;;  %v907_v39 = vld [vmem:[%s765_s1] sm:$0xff] }
 0x84c   : > { %3293 = vmatpush1.bf16.msra.mxu1 %v4715_v38  ;;  %3334 = vmatpush1.bf16.msra.mxu0 %v4718_v29 }
 0x84d   : > { %3294 = vmatprep.subr.bf16.mxu1 %v4723_v8  ;;  %3335 = vmatprep.subr.bf16.mxu0 %v4726_v47 }
 0x850   : > { %3295 = vmatpush1.bf16.msra.mxu1 %v4721_v55  ;;  %3336 = vmatpush1.bf16.msra.mxu0 %v4724_v10 }
 0x851   : > { %3296 = vmatprep.subr.bf16.mxu1 %v4729_v44  ;;  %3337 = vmatprep.subr.bf16.mxu0 %v4732_v36 }
 0x854   : > { %3297 = vmatpush1.bf16.msra.mxu1 %v4727_v37  ;;  %3338 = vmatpush1.bf16.msra.mxu0 %v4730_v48  ;;  %v4175_v48 = vld [vmem:[%s6751_s28] ss:$0 sm:$0xff] }
 0x855   : > { %3298 = vmatprep.subr.bf16.mxu1 %v4735_v60  ;;  %3339 = vmatprep.subr.bf16.mxu0 %v4738_v62 }
 0x858   : > { %3299 = vmatpush1.bf16.msra.mxu1 %v4733_v41  ;;  %3340 = vmatpush1.bf16.msra.mxu0 %v4736_v35 }
 0x859   : > { %4365 = vmatprep.subr.bf16.mxu1 %v5401_v1 }
 0x85b   : > { %3301 = vmatmul.mubr.bf16.vlgmr.msra.gmra.mrb[16].mxu1 %v4107_v4  ;;  %3342 = vmatmul.mubr.bf16.vlgmr.msra.gmra.mrb[20].mxu0 %v4107_v4 }
 0x85c   : > { %4381 = vmatprep.mubr.msk.bf16.mxu1 %vm5402_vm0, %v5401_v1  ;;  %4366 = vmatpush3.bf16.msra.mxu1 %v4739_v27 }
 0x85d   : > { %4367 = vmatprep.subr.bf16.mxu1 %v5401_v1 }
 0x860   : > { %4368 = vmatpush3.bf16.msra.mxu1 %v4740_v25 }
 0x861   : > { %4369 = vmatprep.subr.bf16.mxu1 %v5401_v1 }
 0x864   : > { %4370 = vmatpush3.bf16.msra.mxu1 %v4741_v31 }
 0x865   : > { %4371 = vmatprep.subr.bf16.mxu1 %v5401_v1 }
 0x868   : > { %4372 = vmatpush3.bf16.msra.mxu1 %v4742_v3 }
 0x869   : > { %4373 = vmatprep.subr.bf16.mxu1 %v5401_v1 }
 0x86c   : > { %4374 = vmatpush3.bf16.msra.mxu1 %v4743_v0 }
 0x86d   : > { %4375 = vmatprep.subr.bf16.mxu1 %v5401_v1 }
 0x870   : > { %4376 = vmatpush3.bf16.msra.mxu1 %v4744_v22 }
 0x871   : > { %4377 = vmatprep.subr.bf16.mxu1 %v5401_v1 }
 0x874   : > { %4378 = vmatpush3.bf16.msra.mxu1 %v4745_v9 }
 0x875   : > { %4379 = vmatprep.subr.bf16.mxu1 %v5401_v1 }
 0x878   : > { %4380 = vmatpush3.bf16.msra.mxu1 %v4746_v11 }
 0x8ee   : > { %v2897_v12 = vpop.f32.mrb[12].mxu1  ;;  %v2938_v7 = vpop.f32.mrb[16].mxu0 }
 0x8ef   : > { %v2899_v13 = vpop.f32.mrb[13].mxu1  ;;  %v2940_v56 = vpop.f32.mrb[17].mxu0 }
 0x8f0   : > { %v2901_v23 = vpop.f32.mrb[14].mxu1  ;;  %v2942_v21 = vpop.f32.mrb[18].mxu0 }
 0x8f1   : > { %v2902_v59 = vpop.f32.mrb[15].mxu1  ;;  %v2943_v24 = vpop.f32.mrb[19].mxu0 }
 0x92e   : > { %v3302_v53 = vpop.f32.mrb[16].mxu1  ;;  %v3343_v61 = vpop.f32.mrb[20].mxu0 }
 0x92f   : > { %v3303_v1 = vadd.f32 %v3302_v53, %v2897_v12  ;;  %v3344_v46 = vadd.f32 %v3343_v61, %v2938_v7  ;;  %v3304_v2 = vpop.f32.mrb[17].mxu1  ;;  %v3345_v17 = vpop.f32.mrb[21].mxu0 }
 0x930   : > { %v3305_v49 = vadd.f32 %v3304_v2, %v2899_v13  ;;  %v3346_v32 = vadd.f32 %v3345_v17, %v2940_v56  ;;  %v3306_v15 = vpop.f32.mrb[18].mxu1  ;;  %v3347_v40 = vpop.f32.mrb[22].mxu0 }
 0x931   : > { %v3372_v34 = vadd.f32 %v3355_v52, %v3303_v1  ;;  %v3307_v63 = vpop.f32.mrb[19].mxu1  ;;  %v3348_v6 = vpop.f32.mrb[23].mxu0  ;;  %v3374_v28 = vadd.f32 %v3363_v16, %v3344_v46 }
 0x932   : > { %v3373_v50 = vadd.f32 %v3359_v58, %v3305_v49  ;;  %v3375_v18 = vadd.f32 %v3367_v45, %v3346_v32 }
 0x933   : > { %v4172_v5 = vmul.f32 -1.442695, %v3372_v34 }
 0x934   : > { %v4173_v30 = vmul.f32 -1.442695, %v3373_v50  ;;  %v4174_v57 = vmul.f32 -1.442695, %v3375_v18 }
 0x935   : > { %4833 = vpow2.f32 %v4172_v5 }
 0x936   : > { %4835 = vpow2.f32 %v4173_v30 }
 0x937   : > { %4837 = vpow2.f32 %v4174_v57 }
 0x938   : > { %4839 = vtanh.f32 %v3374_v28 }
 0x93f   : > { %v4834_v54 = vpop.eup %4833 }
 0x940   : > { %v4836_v33 = vpop.eup %4835  ;;  %v3379_v26 = vadd.f32 1.0, %v4834_v54 }
 0x941   : > { %v3385_v43 = vadd.f32 1.0, %v4836_v33  ;;  %v4838_v42 = vpop.eup %4837 }
 0x942   : > { %4841 = vrcp.f32 %v3379_v26  ;;  %v4840_v20 = vpop.eup %4839  ;;  %v3392_v8 = vadd.f32 1.0, %v4838_v42 }
 0x943   : > { %4843 = vrcp.f32 %v3385_v43 }
 0x944   : > { %4845 = vrcp.f32 %v3392_v8 }
 0x94c   : > { %v4842_v38 = vpop.eup %4841 }
 0x94d   : > { %v4844_v29 = vpop.eup %4843  ;;  %v3396_v19 = vmul.f32 %v4842_v38, %v4840_v20 }
 0x94e   : > { %v3395_v47 = vmul.f32 %v4844_v29, %v907_v39  ;;  %v4846_v10 = vpop.eup %4845 }
 0x950   : > { %v3397_v55 = vadd.f32 %v3396_v19, %v3395_v47 }
 0x952   : > { %4847 = vtanh.f32 %v3397_v55  ;;  %3524 = vst [vmem:[%s895_s14] sm:$0xff] %v3397_v55 }
 0x95c   : > { %v4848_v44 = vpop.eup %4847 }
 0x95d   : > { %v3399_v36 = vmul.f32 %v4848_v44, %v4846_v10 }
 0x95f   : > { %v3400_v37 = vpack.c.bf16 %v3399_v36, %v3399_v36  ;;  %3523 = vst [vmem:[%s888_s17] sm:$0xff] %v3399_v36 }
 0x961   : > { %4382 = vmatmul.mubr.bf16.vlgmr.msra.gmra.mrb[20].mxu1 %v3400_v37 }
 0xa34   : > { %v3506_v60 = vpop.f32.mrb[20].mxu1 }
 0xa35   : > { %v3507_v62 = vadd.f32 %v4175_v48, %v3506_v60  ;;  %v4383_v41 = vpop.f32.mrb[21].mxu1 }
 0xa36   : > { %v3509_v35 = vpop.f32.mrb[22].mxu1 }
 0xa37   : > { %3512 = vmax.xlane.f32.xlu0 %v3507_v62  ;;  %v4384_v14 = vpop.f32.mrb[23].mxu1 }
 0xac4   : > { %v3513_v4 = vpop.xlane.xlu0 %3512 }
 0xac5   : > { %v6480_v27 = vsub.f32 %v3507_v62, %v3513_v4 }
 0xac7   : > { %v3515_v25 = vmul.f32 1.442695, %v6480_v27 }
 0xac9   : > { %4849 = vpow2.f32 %v3515_v25 }
 0xad3   : > { %v4850_v31 = vpop.eup %4849 }
 0xad4   : > { %3517 = vadd.xlane.f32.xlu0 %v4850_v31 }
 0xad5   : > { %5206 = shalt.err (!%p5203_p9)
}
 0xad6   : > { %s5207_s3 = scalar_lea.hbm %s6490_s7, 128  ;;  %s5211_s1 = scalar_lea.hbm %s6753_s4, 256 }
 0xad7   : > { %p5208_p11 = scmp.ne.s32.totalorder %s6490_s7, %s5207_s3  ;;  %p5212_p2 = scmp.lt.u32.totalorder %s6490_s7, %s6753_s4 }
 0xad8   : > { %p5213_p10 = scmp.lt.u32.totalorder %s5211_s1, %s5207_s3  ;;  %p5215_p6 = scmp.lt.u32.totalorder %s5207_s3, %s6490_s7 }
 0xad9   : > { %p5209_p12 = pnand %p5208_p11, %p6754_p4 }
 0xada   : > { %p5214_p1 = por %p5213_p10, %p5212_p2 }
 0xadb   : > { %p5210_p7 = pneg %p5209_p12 }
 0xadc   : > { %p5216_p13 = por %p5215_p6, %p5214_p1 }
 0xade   : > { %p5217_p8 = pnand %p5216_p13, %p5210_p7 }
 0xae0   : > { %5220 = shalt.err (!%p5217_p8)
}
 0xae1   : > { %4426 = dma.vmem_to_hbm [thread:$0]  (%p6754_p4), %s3658_s13, 128, %s6490_s7, %s3621_s2  }
 0xae2   : > { %s6755_s19 = sld [smem:[#allocation62_spill]]  ;;  %s3670_s11 = sshll.u32 %s895_s14, 4  ;;  %s3671_s11 = int_to_ptr.vmem [resolvable:$true] %s3670_s11 }
 0xae3   : > { %s5221_s18 = scalar_lea.vmem %s3671_s11, 128  ;;  %s5407_s3 = smov [#allocation25]  }
 0xae4   : > { %p5222_p3 = scmp.ne.s32.totalorder %s3671_s11, %s5221_s18  ;;  %s5225_s23 = sshll.u32 %s5407_s3, 4  ;;  %s5226_s23 = int_to_ptr.vmem [resolvable:$false] %s5225_s23 }
 0xae5   : > { %s5227_s17 = scalar_lea.vmem %s5226_s23, 256  ;;  %p5228_p9 = scmp.lt.s32.totalorder %s3671_s11, %s5226_s23 }
 0xae6   : > { %p5223_p0 = pnand %p5222_p3, %p6754_p4  ;;  %p5229_p11 = scmp.lt.s32.totalorder %s5227_s17, %s5221_s18 }
 0xae8   : > { %s6516_s0 = scalar_lea.hbm %s6755_s19, %s6484_s30  ;;  %p5224_p5 = pneg %p5223_p0 }
 0xae9   : > { %p5230_p12 = por %p5229_p11, %p5228_p9 }
 0xaeb   : > { %p5231_p7 = pnand %p5230_p12, %p5224_p5 }
 0xaed   : > { %5234 = shalt.err (!%p5231_p7)
}
 0xaee   : > { %s5235_s14 = scalar_lea.hbm %s6516_s0, 128  ;;  %s5239_s1 = scalar_lea.hbm %s6755_s19, 256 }
 0xaef   : > { %p5236_p2 = scmp.ne.s32.totalorder %s6516_s0, %s5235_s14  ;;  %p5240_p6 = scmp.lt.u32.totalorder %s6516_s0, %s6755_s19 }
 0xaf0   : > { %p5241_p13 = scmp.lt.u32.totalorder %s5239_s1, %s5235_s14  ;;  %p5243_p3 = scmp.lt.u32.totalorder %s5235_s14, %s6516_s0 }
 0xaf1   : > { %p5237_p10 = pnand %p5236_p2, %p6754_p4 }
 0xaf2   : > { %p5242_p8 = por %p5241_p13, %p5240_p6 }
 0xaf3   : > { %p5238_p1 = pneg %p5237_p10 }
 0xaf4   : > { %p5244_p0 = por %p5243_p3, %p5242_p8 }
 0xaf6   : > { %p5245_p5 = pnand %p5244_p0, %p5238_p1 }
 0xaf8   : > { %5248 = shalt.err (!%p5245_p5)
}
 0xaf9   : > { %4427 = dma.vmem_to_hbm [thread:$0]  (%p6754_p4), %s3671_s11, 128, %s6516_s0, %s3621_s2  }
 0xafa   : > { %s6756_s18 = sld [smem:[#allocation63_spill]]  ;;  %s3683_s23 = sshll.u32 %s902_s29, 4  ;;  %s3684_s23 = int_to_ptr.vmem [resolvable:$true] %s3683_s23 }
 0xafb   : > { %s3631_s17 = scalar_lea.sflag [#allocation27], %s5942_s25  ;;  %s5249_s14 = scalar_lea.vmem %s3684_s23, 128 }
 0xafc   : > { %p5250_p9 = scmp.ne.s32.totalorder %s3684_s23, %s5249_s14  ;;  %s5408_s26 = smov [#allocation26]  }
 0xafd   : > { %s5253_s7 = sshll.u32 %s5408_s26, 4  ;;  %s5254_s7 = int_to_ptr.vmem [resolvable:$false] %s5253_s7 }
 0xafe   : > { %p5251_p11 = pnand %p5250_p9, %p6754_p4  ;;  %s5255_s13 = scalar_lea.vmem %s5254_s7, 256 }
 0xaff   : > { %p5256_p7 = scmp.lt.s32.totalorder %s3684_s23, %s5254_s7  ;;  %p5257_p2 = scmp.lt.s32.totalorder %s5255_s13, %s5249_s14 }
 0xb00   : > { %s6543_s3 = scalar_lea.hbm %s6756_s18, %s6484_s30  ;;  %p5252_p12 = pneg %p5251_p11 }
 0xb01   : > { %p5258_p10 = por %p5257_p2, %p5256_p7 }
 0xb03   : > { %p5259_p1 = pnand %p5258_p10, %p5252_p12 }
 0xb05   : > { %5262 = shalt.err (!%p5259_p1)
}
 0xb06   : > { %s5263_s29 = scalar_lea.hbm %s6543_s3, 128  ;;  %s5267_s11 = scalar_lea.hbm %s6756_s18, 256 }
 0xb07   : > { %p5264_p6 = scmp.ne.s32.totalorder %s6543_s3, %s5263_s29  ;;  %p5268_p3 = scmp.lt.u32.totalorder %s6543_s3, %s6756_s18 }
 0xb08   : > { %p5269_p0 = scmp.lt.u32.totalorder %s5267_s11, %s5263_s29  ;;  %p5271_p9 = scmp.lt.u32.totalorder %s5263_s29, %s6543_s3 }
 0xb09   : > { %p5265_p13 = pnand %p5264_p6, %p6754_p4 }
 0xb0a   : > { %p5270_p5 = por %p5269_p0, %p5268_p3 }
 0xb0b   : > { %p5266_p8 = pneg %p5265_p13 }
 0xb0c   : > { %p5272_p11 = por %p5271_p9, %p5270_p5 }
 0xb0e   : > { %p5273_p12 = pnand %p5272_p11, %p5266_p8 }
 0xb10   : > { %5276 = shalt.err (!%p5273_p12)
}
 0xb11   : > { %4428 = dma.vmem_to_hbm [thread:$0]  (%p6754_p4), %s3684_s23, 128, %s6543_s3, %s3631_s17  }
 0xb12   : > { %s881_s28 = scalar_lea.vmem [#allocation22], %s5945_s5  ;;  %s6757_s26 = sld [smem:[#allocation60_spill]] }
 0xb13   : > { %s3644_s10 = sshll.u32 %s881_s28, 4  ;;  %s3616_s3 = scalar_lea.sflag [#allocation4], %s5942_s25  ;;  %s6573_s10 = int_to_ptr.vmem [resolvable:$true] %s3644_s10 }
 0xb14   : > { %s5277_s23 = scalar_lea.vmem %s6573_s10, 128  ;;  %s5409_s5 = smov [#allocation22]  }
 0xb15   : > { %p5278_p7 = scmp.ne.s32.totalorder %s6573_s10, %s5277_s23  ;;  %s5281_s17 = sshll.u32 %s5409_s5, 4  ;;  %s5282_s17 = int_to_ptr.vmem [resolvable:$false] %s5281_s17 }
 0xb16   : > { %s5283_s13 = scalar_lea.vmem %s5282_s17, 256  ;;  %p5284_p1 = scmp.lt.s32.totalorder %s6573_s10, %s5282_s17 }
 0xb17   : > { %p5279_p2 = pnand %p5278_p7, %p6754_p4  ;;  %p5285_p6 = scmp.lt.s32.totalorder %s5283_s13, %s5277_s23 }
 0xb18   : > { %s6571_s7 = scalar_lea.hbm %s6757_s26, %s6484_s30 }
 0xb19   : > { %p5280_p10 = pneg %p5279_p2  ;;  %p5286_p13 = por %p5285_p6, %p5284_p1 }
 0xb1b   : > { %p5287_p8 = pnand %p5286_p13, %p5280_p10 }
 0xb61   : > { %v3518_v3 = vpop.xlane.xlu0 %3517 }
 0xb62   : > { %4851 = vlog2.f32 %v3518_v3 }
 0xb6c   : > { %v4852_v0 = vpop.eup %4851 }
 0xb6d   : > { %v3520_v22 = vmul.f32 0.6931472, %v4852_v0 }
 0xb6f   : > { %v3521_v9 = vsub.f32 %v6480_v27, %v3520_v22 }
 0xb71   : > { %3522 = vst [vmem:[%s881_s28] sm:$0xff] %v3521_v9 }
 0xb72   : > { %5290 = shalt.err (!%p5287_p8)
}
 0xb73   : > { %s5291_s25 = scalar_lea.hbm %s6571_s7, 128  ;;  %s5295_s2 = scalar_lea.hbm %s6757_s26, 256 }
 0xb74   : > { %p5292_p3 = scmp.ne.s32.totalorder %s6571_s7, %s5291_s25  ;;  %p5296_p9 = scmp.lt.u32.totalorder %s6571_s7, %s6757_s26 }
 0xb75   : > { %p5297_p11 = scmp.lt.u32.totalorder %s5295_s2, %s5291_s25  ;;  %p5299_p7 = scmp.lt.u32.totalorder %s5291_s25, %s6571_s7 }
 0xb76   : > { %p5293_p0 = pnand %p5292_p3, %p6754_p4 }
 0xb77   : > { %p5298_p12 = por %p5297_p11, %p5296_p9 }
 0xb78   : > { %p5294_p5 = pneg %p5293_p0 }
 0xb79   : > { %p5300_p2 = por %p5299_p7, %p5298_p12 }
 0xb7b   : > { %p5301_p10 = pnand %p5300_p2, %p5294_p5 }
 0xb7d   : > { %5304 = shalt.err (!%p5301_p10)
}
 0xb7e   : > { %4425 = dma.vmem_to_hbm [thread:$0]  (%p6754_p4), %s6573_s10, 128, %s6571_s7, %s3616_s3  }
 0xb7f PF: > { %s6758_s1 = sld [smem:[#allocation40_spill]]  ;;  %s6759_s21 = sld [smem:[#allocation45_spill]] }
 0xb80   : > { %p6761_p6 = scmp.ge.s32.totalorder %s5383_s24, 2 }
 0xb85   : > { %s3695_s28 = sand.u32 1, %s6758_s1   ;;  %p6760_p1 = scmp.ne.s32.totalorder %s6759_s21, 0 }
 0xb86   : > { %s3696_s6 = scalar_lea.sflag [#allocation4], %s3695_s28 }
 0xb87   : > { %p4472_p13 = pnand %p6761_p6, %p6760_p1 }
 0xb89   : > { %5358 = dma.done.wait (!%p4472_p13), %s3696_s6, 128  }
 0xb8a   : > { %5360 = vsyncadd (!%p4472_p13), %s3696_s6, 4294967168  ;;  %s6762_s14 = sadd.s32 4294967294, %s5383_s24  }
 0xb8b   : > { %s3704_s23 = sand.u32 1, %s6762_s14  }
 0xb8c   : > { %s3705_s5 = scalar_lea.sflag [#allocation24], %s3704_s23 }
 0xb8d   : > { %5362 = dma.done.wait (!%p4472_p13), %s3705_s5, 256  }
 0xb8e   : > { %5364 = vsyncadd (!%p4472_p13), %s3705_s5, 4294967040  ;;  %s3723_s9 = scalar_lea.sflag [#allocation27], %s3695_s28 }
 0xb8f   : > { %5366 = dma.done.wait (!%p4472_p13), %s3723_s9, 128  }
 0xb90   : > { %5368 = vsyncadd (!%p4472_p13), %s3723_s9, 4294967168  ;;  %s6763_s24 = sld [smem:[#allocation42_spill]]  ;;  %s6764_s10 = sld [smem:[#allocation41_spill]] }
 0xb91   : > { %s6765_s23 = sld [smem:[#allocation43_spill]]  ;;  %s6766_s1 = smov %s5375_s22 }
 0xb96   : > { %p50_p4 = scmp.ge.s32.totalorder %s6763_s24, 4   ;;  %s6767_s22 = smov %s6764_s10 }
 0xb98   :  { %52 = sbr.rel (!%p50_p4) target bundleno = 36 (0x24), region = 252 }
 0xb9f   :  { %3728 = vsyncpa [#allocation3], 1 }
 0xba0   :  { %3730 = vsyncpa [#allocation3 + $0x1], 1 }
 0xba1   :  { %3731 = vsyncpa [#allocation7], 1 }
 0xba2   :  { %3733 = vsyncpa [#allocation7 + $0x1], 1 }
 0xba3   :  { %3734 = vsyncpa [#allocation10], 1 }
 0xba4   :  { %3736 = vsyncpa [#allocation10 + $0x1], 1 }
 0xba5   :  { %3737 = vsyncpa [#allocation13], 1 }
 0xba6   :  { %3738 = vsyncpa [#allocation16], 1 }
 0xba7   :  { %3739 = vsyncpa [#allocation20], 1 }
 0xba8   :  { %3740 = vsyncpa [#allocation4], 1 }
 0xba9   :  { %3742 = vsyncpa [#allocation4 + $0x1], 1 }
 0xbaa   :  { %3743 = vsyncpa [#allocation24], 1 }
 0xbab   :  { %3745 = vsyncpa [#allocation24 + $0x1], 1 }
 0xbac   :  { %3746 = vsyncpa [#allocation27], 1 }
 0xbad   :  { %3748 = vsyncpa [#allocation27 + $0x1], 1 }
 0xbae   :  { %3749 = vsyncpa [#allocation5], 1 }
 0xbaf   :  { %3751 = vsyncpa [#allocation5 + $0x1], 1 }

</bundles_post_ra>
